<compile_context>
chip_gen: v6e
topology: v6e:2x2x1
jax: 0.10.0
libtpu: 0.0.40
codegen_flags: <defaults>
</compile_context>

<pallas_src>
import functools

import jax
import jax.numpy as jnp
from jax.experimental import pallas as pl
from jax.experimental.pallas import tpu as pltpu


_VMEM_LIMIT = 32 * 1024 * 1024  # scoped-VMEM cap; well under v7x's 64 MiB


def _round_up(x, m):
    return ((x + m - 1) // m) * m


# ----------------------------- Pallas kernels ------------------------------

def _gemm_bn_relu_kernel(a_ref, w_ref, gamma_ref, beta_ref, o_ref, *, inv_m):
    # a_ref: (K, Mp) bf16   w_ref: (C, K) bf16   gamma/beta: (C, 1) f32
    # Padded columns of a_ref are zero => GEMM result is exactly 0 there, so the
    # sums below are exact; just divide by the true M (inv_m).
    x = jnp.dot(w_ref[...], a_ref[...], preferred_element_type=jnp.float32)
    s1 = jnp.sum(x, axis=1, keepdims=True)
    s2 = jnp.sum(x * x, axis=1, keepdims=True)
    mean = s1 * inv_m
    var = s2 * inv_m - mean * mean            # biased (train-mode) variance
    scale = jax.lax.rsqrt(var + 1e-5) * gamma_ref[...]
    shift = beta_ref[...] - mean * scale
    o_ref[...] = jnp.maximum(x * scale + shift, 0.0).astype(o_ref.dtype)


def _gemm_tanh_kernel(a_ref, w_ref, bias_ref, o_ref):
    x = jnp.dot(w_ref[...], a_ref[...], preferred_element_type=jnp.float32)
    o_ref[...] = jnp.tanh(x + bias_ref[...])


# ----------------------------- kernel wrappers ------------------------------

def gemm_bn_relu(at, wt, gamma, beta):
    """at: (K, M) bf16, wt: (C, K) bf16, gamma/beta: (C,) f32 -> (C, Mp) bf16.

    Whole layer in one block: the (C, Mp) GEMM result stays resident in VMEM, so
    train-mode batch statistics, normalization and ReLU are a fused GEMM epilogue.
    The conv bias is intentionally NOT applied: it cancels exactly under BatchNorm.
    """
    K, M = at.shape
    C, _ = wt.shape
    m_pad = _round_up(M, 128)                 # lane-dense (unmasked) stores
    if m_pad != M:
        at = jnp.pad(at, ((0, 0), (0, m_pad - M)))
    return pl.pallas_call(
        functools.partial(_gemm_bn_relu_kernel, inv_m=1.0 / float(M)),
        out_shape=jax.ShapeDtypeStruct((C, m_pad), jnp.bfloat16),
        compiler_params=pltpu.CompilerParams(vmem_limit_bytes=_VMEM_LIMIT),
    )(at, wt, gamma.reshape(C, 1), beta.reshape(C, 1))


def gemm_bias_tanh(at, wt, bias, n_blocks=4):
    """at: (K, M) bf16, wt: (C, K) bf16, bias: (C,) f32 -> (C, Mp) f32.

    Gridded over the lane (M) axis: overlaps the A^T DMA with MXU+EUP work on
    single-TC parts and lets megacore parts shard the blocks across cores.
    """
    K, M = at.shape
    C, _ = wt.shape
    tm = _round_up(pl.cdiv(M, n_blocks), 128)
    m_pad = tm * n_blocks
    if m_pad != M:
        at = jnp.pad(at, ((0, 0), (0, m_pad - M)))
    return pl.pallas_call(
        _gemm_tanh_kernel,
        out_shape=jax.ShapeDtypeStruct((C, m_pad), jnp.float32),
        grid=(n_blocks,),
        in_specs=[
            pl.BlockSpec((K, tm), lambda i: (0, i)),
            pl.BlockSpec((C, K), lambda i: (0, 0)),
            pl.BlockSpec((C, 1), lambda i: (0, 0)),
        ],
        out_specs=pl.BlockSpec((C, tm), lambda i: (0, i)),
        compiler_params=pltpu.CompilerParams(
            # TODO(synk): on v7x try pltpu.CORE_PARALLEL here for guaranteed 2-TC split.
            dimension_semantics=("parallel",),
            vmem_limit_bytes=_VMEM_LIMIT,
        ),
    )(at, wt, bias.reshape(C, 1))


# ------------------------- ConvTranspose2d + epilogue ------------------------

def conv_transpose_layer(x, w, b, stride, padding, gamma=None, beta=None, final=False):
    """
    x: (Cin, B, H, W) activation (f32 or bf16); channel-major keeps the GEMM lane-dense.
    w: (Cin, Cout, kH, kW)  PyTorch ConvTranspose2d weight layout.   b: (Cout,)
    Returns (Cout, B, Ho, Wo): bf16 for BN+ReLU layers, f32 for the final tanh layer.
    """
    Cin, B, H, W = x.shape
    _, Cout, kH, kW = w.shape
    sH, sW = stride
    pH, pW = padding
    ph, pw = kH - 1 - pH, kW - 1 - pW
    Ho = (H - 1) * sH - 2 * pH + kH
    Wo = (W - 1) * sW - 2 * pW + kW
    M = B * Ho * Wo

    # All im2col glue in bf16 (half the HBM bytes of f32).
    x = x.astype(jnp.bfloat16)

    # Zero-insertion (stride) + edge padding in a single pad op (interior padding).
    xp = jax.lax.pad(
        x, jnp.array(0.0, x.dtype),
        ((0, 0, 0), (0, 0, 0), (ph, ph, sH - 1), (pw, pw, sW - 1)))

    # Transposed im2col: A^T is (K, M) = (kH*kW*Cin, B*Ho*Wo), big M on the lane axis.
    # TODO(synk): build these windows in-kernel (implicit im2col) to drop A^T from HBM.
    wins = [xp[:, :, kh:kh + Ho, kw:kw + Wo] for kh in range(kH) for kw in range(kW)]
    at = jnp.stack(wins, axis=0).reshape(kH * kW * Cin, M)

    # Spatially-flipped transposed weight as a (Cout, K) matrix, K ordered (kh, kw, cin).
    wt = jnp.transpose(w[:, :, ::-1, ::-1], (1, 2, 3, 0)).reshape(Cout, kH * kW * Cin)
    wt = wt.astype(jnp.bfloat16)

    # Pad K to a multiple of 16 so the bf16 GEMM LHS needs no sublane-pack relayout.
    K = kH * kW * Cin
    Kp = _round_up(K, 16)
    if Kp != K:
        at = jnp.pad(at, ((0, Kp - K), (0, 0)))
        wt = jnp.pad(wt, ((0, 0), (0, Kp - K)))

    # Pad channels up to a sublane multiple of 8 (only the final Cout=1 layer pads).
    Cp = max(8, _round_up(Cout, 8))
    if Cp != Cout:
        wt = jnp.pad(wt, ((0, Cp - Cout), (0, 0)))
        b = jnp.pad(b, (0, Cp - Cout))
        if gamma is not None:
            gamma = jnp.pad(gamma, (0, Cp - Cout))
            beta = jnp.pad(beta, (0, Cp - Cout))

    if final:
        y = gemm_bias_tanh(at, wt, b)
    else:
        # Conv bias skipped: (x+b) - mean(x+b) == x - mean(x) under BatchNorm.
        y = gemm_bn_relu(at, wt, gamma, beta)
    return y[:Cout, :M].reshape(Cout, B, Ho, Wo)


# ------------------------------- Generator ---------------------------------

def make_configs(latent_dim, image_channel, features):
    # (cin, cout, kernel, stride, padding, final_layer)  — matches the PyTorch module
    return [
        (latent_dim,   features * 8,  (4, 4), (1, 1), (0, 0), False),
        (features * 8, features * 4,  (3, 3), (2, 2), (0, 0), False),
        (features * 4, features * 2,  (3, 3), (2, 2), (1, 1), False),
        (features * 2, features * 1,  (3, 3), (2, 2), (1, 1), False),
        (features * 1, features * 1,  (3, 3), (2, 2), (1, 1), False),
        (features,     image_channel, (3, 4), (1, 2), (1, 1), True),
    ]


def init_params(key, cfgs):
    params = []
    for cin, cout, k, s, p, final in cfgs:
        key, k1, k2, k3, k4 = jax.random.split(key, 5)
        fan_in = cin * k[0] * k[1]
        layer = {
            # Conv bias kept to mirror the PyTorch module's parameters; for BN layers
            # it is mathematically a no-op (cancelled by mean-centering) and unused.
            "w": jax.random.normal(k1, (cin, cout, k[0], k[1]), jnp.float32)
                 / jnp.sqrt(float(fan_in)),
            "b": 0.01 * jax.random.normal(k2, (cout,), jnp.float32),
        }
        if not final:
            layer["gamma"] = 1.0 + 0.1 * jax.random.normal(k3, (cout,), jnp.float32)
            layer["beta"] = 0.1 * jax.random.normal(k4, (cout,), jnp.float32)
        params.append(layer)
    return params


def generator_forward(noise, cfgs, params):
    """noise: (B, latent_dim) -> (B, image_channel, H_out, W_out) (NCHW like PyTorch)."""
    B, latent = noise.shape
    cur = noise.T.reshape(latent, B, 1, 1)  # channel-major (C, B, H, W) view of (B,latent,1,1)
    for (cin, cout, k, s, p, final), prm in zip(cfgs, params):
        cur = conv_transpose_layer(
            cur, prm["w"], prm["b"], s, p,
            gamma=prm.get("gamma"), beta=prm.get("beta"), final=final)
    return jnp.transpose(cur, (1, 0, 2, 3))  # (B, image_channel, H, W) f32


# --------------------------------- main -------------------------------------

if __name__ == "__main__":
    latent_dim, image_channel, features, batch = 32, 1, 8, 2

    key = jax.random.PRNGKey(0)
    kp, kn = jax.random.split(key)
    cfgs = make_configs(latent_dim, image_channel, features)
    params = init_params(kp, cfgs)
    noise = jax.random.normal(kn, (batch, latent_dim), jnp.float32)

    fwd = jax.jit(lambda n, p: generator_forward(n, cfgs, p))
    out = jax.block_until_ready(fwd(noise, params))

    # Spatial trace: 1x1 -> 4x4 -> 9x9 -> 17x17 -> 33x33 -> 65x65 -> 65x130
    assert out.shape == (batch, image_channel, 65, 130), out.shape
    assert bool(jnp.all(jnp.isfinite(out)))
    print("KERNEL_OK")
</pallas_src>

<mosaic_0001>
module attributes {stable_mosaic.version = 11 : i64} {
  func.func @_gemm_bn_relu_kernel(%arg0: memref<512x128xbf16, #tpu.memory_space<vmem>>, %arg1: memref<64x512xbf16, #tpu.memory_space<vmem>>, %arg2: memref<64x1xf32, #tpu.memory_space<vmem>>, %arg3: memref<64x1xf32, #tpu.memory_space<vmem>>, %arg4: memref<64x128xbf16, #tpu.memory_space<vmem>>) attributes {dimension_semantics = [], scalar_prefetch = 0 : i64, scratch_operands = 0 : i64, tpu.core_type = #tpu.core_type<tc>} {
    %c0 = arith.constant 0 : index
    %c0_0 = arith.constant 0 : index
    %0 = vector.load %arg1[%c0, %c0_0] : memref<64x512xbf16, #tpu.memory_space<vmem>>, vector<64x512xbf16>
    %c0_1 = arith.constant 0 : index
    %c0_2 = arith.constant 0 : index
    %1 = vector.load %arg0[%c0_1, %c0_2] : memref<512x128xbf16, #tpu.memory_space<vmem>>, vector<512x128xbf16>
    %cst = arith.constant dense<0.000000e+00> : vector<64x128xf32>
    %2 = tpu.matmul %0, %1, %cst {dimension_numbers = #tpu.dot_dimension_numbers<[1], [0], [0], [1], [0, 0, 1, 1], [], []>} : vector<64x512xbf16>, vector<512x128xbf16>, vector<64x128xf32> -> vector<64x128xf32>
    %cst_3 = arith.constant dense<0.000000e+00> : vector<64xf32>
    %3 = vector.multi_reduction <add>, %2, %cst_3 [1] : vector<64x128xf32> to vector<64xf32>
    %4 = vector.shape_cast %3 : vector<64xf32> to vector<64x1xf32>
    %5 = arith.mulf %2, %2 : vector<64x128xf32>
    %cst_4 = arith.constant dense<0.000000e+00> : vector<64xf32>
    %6 = vector.multi_reduction <add>, %5, %cst_4 [1] : vector<64x128xf32> to vector<64xf32>
    %7 = vector.shape_cast %6 : vector<64xf32> to vector<64x1xf32>
    %cst_5 = arith.constant 3.125000e-02 : f32
    %8 = vector.broadcast %cst_5 : f32 to vector<64x1xf32>
    %9 = arith.mulf %4, %8 : vector<64x1xf32>
    %cst_6 = arith.constant 3.125000e-02 : f32
    %10 = vector.broadcast %cst_6 : f32 to vector<64x1xf32>
    %11 = arith.mulf %7, %10 : vector<64x1xf32>
    %12 = arith.mulf %9, %9 : vector<64x1xf32>
    %13 = arith.subf %11, %12 : vector<64x1xf32>
    %cst_7 = arith.constant 9.99999974E-6 : f32
    %14 = vector.broadcast %cst_7 : f32 to vector<64x1xf32>
    %15 = arith.addf %13, %14 : vector<64x1xf32>
    %16 = math.rsqrt %15 : vector<64x1xf32>
    %c0_8 = arith.constant 0 : index
    %c0_9 = arith.constant 0 : index
    %17 = vector.load %arg2[%c0_8, %c0_9] : memref<64x1xf32, #tpu.memory_space<vmem>>, vector<64x1xf32>
    %18 = arith.mulf %16, %17 : vector<64x1xf32>
    %c0_10 = arith.constant 0 : index
    %c0_11 = arith.constant 0 : index
    %19 = vector.load %arg3[%c0_10, %c0_11] : memref<64x1xf32, #tpu.memory_space<vmem>>, vector<64x1xf32>
    %20 = arith.mulf %9, %18 : vector<64x1xf32>
    %21 = arith.subf %19, %20 : vector<64x1xf32>
    %22 = vector.broadcast %18 : vector<64x1xf32> to vector<64x128xf32>
    %23 = arith.mulf %2, %22 : vector<64x128xf32>
    %24 = vector.broadcast %21 : vector<64x1xf32> to vector<64x128xf32>
    %25 = arith.addf %23, %24 : vector<64x128xf32>
    %cst_12 = arith.constant 0.000000e+00 : f32
    %26 = vector.broadcast %cst_12 : f32 to vector<64x128xf32>
    %27 = arith.maximumf %25, %26 : vector<64x128xf32>
    %28 = arith.truncf %27 : vector<64x128xf32> to vector<64x128xbf16>
    %c0_13 = arith.constant 0 : index
    %c0_14 = arith.constant 0 : index
    %29 = vector.load %arg4[%c0_13, %c0_14] : memref<64x128xbf16, #tpu.memory_space<vmem>>, vector<64x128xbf16>
    tpu.vector_store %arg4[%c0_13, %c0_14], %28 {strides = array<i32>} : memref<64x128xbf16, #tpu.memory_space<vmem>>, vector<64x128xbf16>,
    return
  }
}

module attributes {stable_mosaic.version = 11 : i64} {
  func.func @_gemm_bn_relu_kernel(%arg0: memref<576x256xbf16, #tpu.memory_space<vmem>>, %arg1: memref<32x576xbf16, #tpu.memory_space<vmem>>, %arg2: memref<32x1xf32, #tpu.memory_space<vmem>>, %arg3: memref<32x1xf32, #tpu.memory_space<vmem>>, %arg4: memref<32x256xbf16, #tpu.memory_space<vmem>>) attributes {dimension_semantics = [], scalar_prefetch = 0 : i64, scratch_operands = 0 : i64, tpu.core_type = #tpu.core_type<tc>} {
    %c0 = arith.constant 0 : index
    %c0_0 = arith.constant 0 : index
    %0 = vector.load %arg1[%c0, %c0_0] : memref<32x576xbf16, #tpu.memory_space<vmem>>, vector<32x576xbf16>
    %c0_1 = arith.constant 0 : index
    %c0_2 = arith.constant 0 : index
    %1 = vector.load %arg0[%c0_1, %c0_2] : memref<576x256xbf16, #tpu.memory_space<vmem>>, vector<576x256xbf16>
    %cst = arith.constant dense<0.000000e+00> : vector<32x256xf32>
    %2 = tpu.matmul %0, %1, %cst {dimension_numbers = #tpu.dot_dimension_numbers<[1], [0], [0], [1], [0, 0, 1, 1], [], []>} : vector<32x576xbf16>, vector<576x256xbf16>, vector<32x256xf32> -> vector<32x256xf32>
    %cst_3 = arith.constant dense<0.000000e+00> : vector<32xf32>
    %3 = vector.multi_reduction <add>, %2, %cst_3 [1] : vector<32x256xf32> to vector<32xf32>
    %4 = vector.shape_cast %3 : vector<32xf32> to vector<32x1xf32>
    %5 = arith.mulf %2, %2 : vector<32x256xf32>
    %cst_4 = arith.constant dense<0.000000e+00> : vector<32xf32>
    %6 = vector.multi_reduction <add>, %5, %cst_4 [1] : vector<32x256xf32> to vector<32xf32>
    %7 = vector.shape_cast %6 : vector<32xf32> to vector<32x1xf32>
    %cst_5 = arith.constant 0.00617283955 : f32
    %8 = vector.broadcast %cst_5 : f32 to vector<32x1xf32>
    %9 = arith.mulf %4, %8 : vector<32x1xf32>
    %cst_6 = arith.constant 0.00617283955 : f32
    %10 = vector.broadcast %cst_6 : f32 to vector<32x1xf32>
    %11 = arith.mulf %7, %10 : vector<32x1xf32>
    %12 = arith.mulf %9, %9 : vector<32x1xf32>
    %13 = arith.subf %11, %12 : vector<32x1xf32>
    %cst_7 = arith.constant 9.99999974E-6 : f32
    %14 = vector.broadcast %cst_7 : f32 to vector<32x1xf32>
    %15 = arith.addf %13, %14 : vector<32x1xf32>
    %16 = math.rsqrt %15 : vector<32x1xf32>
    %c0_8 = arith.constant 0 : index
    %c0_9 = arith.constant 0 : index
    %17 = vector.load %arg2[%c0_8, %c0_9] : memref<32x1xf32, #tpu.memory_space<vmem>>, vector<32x1xf32>
    %18 = arith.mulf %16, %17 : vector<32x1xf32>
    %c0_10 = arith.constant 0 : index
    %c0_11 = arith.constant 0 : index
    %19 = vector.load %arg3[%c0_10, %c0_11] : memref<32x1xf32, #tpu.memory_space<vmem>>, vector<32x1xf32>
    %20 = arith.mulf %9, %18 : vector<32x1xf32>
    %21 = arith.subf %19, %20 : vector<32x1xf32>
    %22 = vector.broadcast %18 : vector<32x1xf32> to vector<32x256xf32>
    %23 = arith.mulf %2, %22 : vector<32x256xf32>
    %24 = vector.broadcast %21 : vector<32x1xf32> to vector<32x256xf32>
    %25 = arith.addf %23, %24 : vector<32x256xf32>
    %cst_12 = arith.constant 0.000000e+00 : f32
    %26 = vector.broadcast %cst_12 : f32 to vector<32x256xf32>
    %27 = arith.maximumf %25, %26 : vector<32x256xf32>
    %28 = arith.truncf %27 : vector<32x256xf32> to vector<32x256xbf16>
    %c0_13 = arith.constant 0 : index
    %c0_14 = arith.constant 0 : index
    %29 = vector.load %arg4[%c0_13, %c0_14] : memref<32x256xbf16, #tpu.memory_space<vmem>>, vector<32x256xbf16>
    tpu.vector_store %arg4[%c0_13, %c0_14], %28 {strides = array<i32>} : memref<32x256xbf16, #tpu.memory_space<vmem>>, vector<32x256xbf16>,
    return
  }
}

module attributes {stable_mosaic.version = 11 : i64} {
  func.func @_gemm_bn_relu_kernel(%arg0: memref<288x640xbf16, #tpu.memory_space<vmem>>, %arg1: memref<16x288xbf16, #tpu.memory_space<vmem>>, %arg2: memref<16x1xf32, #tpu.memory_space<vmem>>, %arg3: memref<16x1xf32, #tpu.memory_space<vmem>>, %arg4: memref<16x640xbf16, #tpu.memory_space<vmem>>) attributes {dimension_semantics = [], scalar_prefetch = 0 : i64, scratch_operands = 0 : i64, tpu.core_type = #tpu.core_type<tc>} {
    %c0 = arith.constant 0 : index
    %c0_0 = arith.constant 0 : index
    %0 = vector.load %arg1[%c0, %c0_0] : memref<16x288xbf16, #tpu.memory_space<vmem>>, vector<16x288xbf16>
    %c0_1 = arith.constant 0 : index
    %c0_2 = arith.constant 0 : index
    %1 = vector.load %arg0[%c0_1, %c0_2] : memref<288x640xbf16, #tpu.memory_space<vmem>>, vector<288x640xbf16>
    %cst = arith.constant dense<0.000000e+00> : vector<16x640xf32>
    %2 = tpu.matmul %0, %1, %cst {dimension_numbers = #tpu.dot_dimension_numbers<[1], [0], [0], [1], [0, 0, 1, 1], [], []>} : vector<16x288xbf16>, vector<288x640xbf16>, vector<16x640xf32> -> vector<16x640xf32>
    %cst_3 = arith.constant dense<0.000000e+00> : vector<16xf32>
    %3 = vector.multi_reduction <add>, %2, %cst_3 [1] : vector<16x640xf32> to vector<16xf32>
    %4 = vector.shape_cast %3 : vector<16xf32> to vector<16x1xf32>
    %5 = arith.mulf %2, %2 : vector<16x640xf32>
    %cst_4 = arith.constant dense<0.000000e+00> : vector<16xf32>
    %6 = vector.multi_reduction <add>, %5, %cst_4 [1] : vector<16x640xf32> to vector<16xf32>
    %7 = vector.shape_cast %6 : vector<16xf32> to vector<16x1xf32>
    %cst_5 = arith.constant 0.00173010386 : f32
    %8 = vector.broadcast %cst_5 : f32 to vector<16x1xf32>
    %9 = arith.mulf %4, %8 : vector<16x1xf32>
    %cst_6 = arith.constant 0.00173010386 : f32
    %10 = vector.broadcast %cst_6 : f32 to vector<16x1xf32>
    %11 = arith.mulf %7, %10 : vector<16x1xf32>
    %12 = arith.mulf %9, %9 : vector<16x1xf32>
    %13 = arith.subf %11, %12 : vector<16x1xf32>
    %cst_7 = arith.constant 9.99999974E-6 : f32
    %14 = vector.broadcast %cst_7 : f32 to vector<16x1xf32>
    %15 = arith.addf %13, %14 : vector<16x1xf32>
    %16 = math.rsqrt %15 : vector<16x1xf32>
    %c0_8 = arith.constant 0 : index
    %c0_9 = arith.constant 0 : index
    %17 = vector.load %arg2[%c0_8, %c0_9] : memref<16x1xf32, #tpu.memory_space<vmem>>, vector<16x1xf32>
    %18 = arith.mulf %16, %17 : vector<16x1xf32>
    %c0_10 = arith.constant 0 : index
    %c0_11 = arith.constant 0 : index
    %19 = vector.load %arg3[%c0_10, %c0_11] : memref<16x1xf32, #tpu.memory_space<vmem>>, vector<16x1xf32>
    %20 = arith.mulf %9, %18 : vector<16x1xf32>
    %21 = arith.subf %19, %20 : vector<16x1xf32>
    %22 = vector.broadcast %18 : vector<16x1xf32> to vector<16x640xf32>
    %23 = arith.mulf %2, %22 : vector<16x640xf32>
    %24 = vector.broadcast %21 : vector<16x1xf32> to vector<16x640xf32>
    %25 = arith.addf %23, %24 : vector<16x640xf32>
    %cst_12 = arith.constant 0.000000e+00 : f32
    %26 = vector.broadcast %cst_12 : f32 to vector<16x640xf32>
    %27 = arith.maximumf %25, %26 : vector<16x640xf32>
    %28 = arith.truncf %27 : vector<16x640xf32> to vector<16x640xbf16>
    %c0_13 = arith.constant 0 : index
    %c0_14 = arith.constant 0 : index
    %29 = vector.load %arg4[%c0_13, %c0_14] : memref<16x640xbf16, #tpu.memory_space<vmem>>, vector<16x640xbf16>
    tpu.vector_store %arg4[%c0_13, %c0_14], %28 {strides = array<i32>} : memref<16x640xbf16, #tpu.memory_space<vmem>>, vector<16x640xbf16>,
    return
  }
}

module attributes {stable_mosaic.version = 11 : i64} {
  func.func @_gemm_bn_relu_kernel(%arg0: memref<144x2304xbf16, #tpu.memory_space<vmem>>, %arg1: memref<8x144xbf16, #tpu.memory_space<vmem>>, %arg2: memref<8x1xf32, #tpu.memory_space<vmem>>, %arg3: memref<8x1xf32, #tpu.memory_space<vmem>>, %arg4: memref<8x2304xbf16, #tpu.memory_space<vmem>>) attributes {dimension_semantics = [], scalar_prefetch = 0 : i64, scratch_operands = 0 : i64, tpu.core_type = #tpu.core_type<tc>} {
    %c0 = arith.constant 0 : index
    %c0_0 = arith.constant 0 : index
    %0 = vector.load %arg1[%c0, %c0_0] : memref<8x144xbf16, #tpu.memory_space<vmem>>, vector<8x144xbf16>
    %c0_1 = arith.constant 0 : index
    %c0_2 = arith.constant 0 : index
    %1 = vector.load %arg0[%c0_1, %c0_2] : memref<144x2304xbf16, #tpu.memory_space<vmem>>, vector<144x2304xbf16>
    %cst = arith.constant dense<0.000000e+00> : vector<8x2304xf32>
    %2 = tpu.matmul %0, %1, %cst {dimension_numbers = #tpu.dot_dimension_numbers<[1], [0], [0], [1], [0, 0, 1, 1], [], []>} : vector<8x144xbf16>, vector<144x2304xbf16>, vector<8x2304xf32> -> vector<8x2304xf32>
    %cst_3 = arith.constant dense<0.000000e+00> : vector<8xf32>
    %3 = vector.multi_reduction <add>, %2, %cst_3 [1] : vector<8x2304xf32> to vector<8xf32>
    %4 = vector.shape_cast %3 : vector<8xf32> to vector<8x1xf32>
    %5 = arith.mulf %2, %2 : vector<8x2304xf32>
    %cst_4 = arith.constant dense<0.000000e+00> : vector<8xf32>
    %6 = vector.multi_reduction <add>, %5, %cst_4 [1] : vector<8x2304xf32> to vector<8xf32>
    %7 = vector.shape_cast %6 : vector<8xf32> to vector<8x1xf32>
    %cst_5 = arith.constant 4.5913682E-4 : f32
    %8 = vector.broadcast %cst_5 : f32 to vector<8x1xf32>
    %9 = arith.mulf %4, %8 : vector<8x1xf32>
    %cst_6 = arith.constant 4.5913682E-4 : f32
    %10 = vector.broadcast %cst_6 : f32 to vector<8x1xf32>
    %11 = arith.mulf %7, %10 : vector<8x1xf32>
    %12 = arith.mulf %9, %9 : vector<8x1xf32>
    %13 = arith.subf %11, %12 : vector<8x1xf32>
    %cst_7 = arith.constant 9.99999974E-6 : f32
    %14 = vector.broadcast %cst_7 : f32 to vector<8x1xf32>
    %15 = arith.addf %13, %14 : vector<8x1xf32>
    %16 = math.rsqrt %15 : vector<8x1xf32>
    %c0_8 = arith.constant 0 : index
    %c0_9 = arith.constant 0 : index
    %17 = vector.load %arg2[%c0_8, %c0_9] : memref<8x1xf32, #tpu.memory_space<vmem>>, vector<8x1xf32>
    %18 = arith.mulf %16, %17 : vector<8x1xf32>
    %c0_10 = arith.constant 0 : index
    %c0_11 = arith.constant 0 : index
    %19 = vector.load %arg3[%c0_10, %c0_11] : memref<8x1xf32, #tpu.memory_space<vmem>>, vector<8x1xf32>
    %20 = arith.mulf %9, %18 : vector<8x1xf32>
    %21 = arith.subf %19, %20 : vector<8x1xf32>
    %22 = vector.broadcast %18 : vector<8x1xf32> to vector<8x2304xf32>
    %23 = arith.mulf %2, %22 : vector<8x2304xf32>
    %24 = vector.broadcast %21 : vector<8x1xf32> to vector<8x2304xf32>
    %25 = arith.addf %23, %24 : vector<8x2304xf32>
    %cst_12 = arith.constant 0.000000e+00 : f32
    %26 = vector.broadcast %cst_12 : f32 to vector<8x2304xf32>
    %27 = arith.maximumf %25, %26 : vector<8x2304xf32>
    %28 = arith.truncf %27 : vector<8x2304xf32> to vector<8x2304xbf16>
    %c0_13 = arith.constant 0 : index
    %c0_14 = arith.constant 0 : index
    %29 = vector.load %arg4[%c0_13, %c0_14] : memref<8x2304xbf16, #tpu.memory_space<vmem>>, vector<8x2304xbf16>
    tpu.vector_store %arg4[%c0_13, %c0_14], %28 {strides = array<i32>} : memref<8x2304xbf16, #tpu.memory_space<vmem>>, vector<8x2304xbf16>,
    return
  }
}

module attributes {stable_mosaic.version = 11 : i64} {
  func.func @_gemm_bn_relu_kernel(%arg0: memref<80x8576xbf16, #tpu.memory_space<vmem>>, %arg1: memref<8x80xbf16, #tpu.memory_space<vmem>>, %arg2: memref<8x1xf32, #tpu.memory_space<vmem>>, %arg3: memref<8x1xf32, #tpu.memory_space<vmem>>, %arg4: memref<8x8576xbf16, #tpu.memory_space<vmem>>) attributes {dimension_semantics = [], scalar_prefetch = 0 : i64, scratch_operands = 0 : i64, tpu.core_type = #tpu.core_type<tc>} {
    %c0 = arith.constant 0 : index
    %c0_0 = arith.constant 0 : index
    %0 = vector.load %arg1[%c0, %c0_0] : memref<8x80xbf16, #tpu.memory_space<vmem>>, vector<8x80xbf16>
    %c0_1 = arith.constant 0 : index
    %c0_2 = arith.constant 0 : index
    %1 = vector.load %arg0[%c0_1, %c0_2] : memref<80x8576xbf16, #tpu.memory_space<vmem>>, vector<80x8576xbf16>
    %cst = arith.constant dense<0.000000e+00> : vector<8x8576xf32>
    %2 = tpu.matmul %0, %1, %cst {dimension_numbers = #tpu.dot_dimension_numbers<[1], [0], [0], [1], [0, 0, 1, 1], [], []>} : vector<8x80xbf16>, vector<80x8576xbf16>, vector<8x8576xf32> -> vector<8x8576xf32>
    %cst_3 = arith.constant dense<0.000000e+00> : vector<8xf32>
    %3 = vector.multi_reduction <add>, %2, %cst_3 [1] : vector<8x8576xf32> to vector<8xf32>
    %4 = vector.shape_cast %3 : vector<8xf32> to vector<8x1xf32>
    %5 = arith.mulf %2, %2 : vector<8x8576xf32>
    %cst_4 = arith.constant dense<0.000000e+00> : vector<8xf32>
    %6 = vector.multi_reduction <add>, %5, %cst_4 [1] : vector<8x8576xf32> to vector<8xf32>
    %7 = vector.shape_cast %6 : vector<8xf32> to vector<8x1xf32>
    %cst_5 = arith.constant 1.18343196E-4 : f32
    %8 = vector.broadcast %cst_5 : f32 to vector<8x1xf32>
    %9 = arith.mulf %4, %8 : vector<8x1xf32>
    %cst_6 = arith.constant 1.18343196E-4 : f32
    %10 = vector.broadcast %cst_6 : f32 to vector<8x1xf32>
    %11 = arith.mulf %7, %10 : vector<8x1xf32>
    %12 = arith.mulf %9, %9 : vector<8x1xf32>
    %13 = arith.subf %11, %12 : vector<8x1xf32>
    %cst_7 = arith.constant 9.99999974E-6 : f32
    %14 = vector.broadcast %cst_7 : f32 to vector<8x1xf32>
    %15 = arith.addf %13, %14 : vector<8x1xf32>
    %16 = math.rsqrt %15 : vector<8x1xf32>
    %c0_8 = arith.constant 0 : index
    %c0_9 = arith.constant 0 : index
    %17 = vector.load %arg2[%c0_8, %c0_9] : memref<8x1xf32, #tpu.memory_space<vmem>>, vector<8x1xf32>
    %18 = arith.mulf %16, %17 : vector<8x1xf32>
    %c0_10 = arith.constant 0 : index
    %c0_11 = arith.constant 0 : index
    %19 = vector.load %arg3[%c0_10, %c0_11] : memref<8x1xf32, #tpu.memory_space<vmem>>, vector<8x1xf32>
    %20 = arith.mulf %9, %18 : vector<8x1xf32>
    %21 = arith.subf %19, %20 : vector<8x1xf32>
    %22 = vector.broadcast %18 : vector<8x1xf32> to vector<8x8576xf32>
    %23 = arith.mulf %2, %22 : vector<8x8576xf32>
    %24 = vector.broadcast %21 : vector<8x1xf32> to vector<8x8576xf32>
    %25 = arith.addf %23, %24 : vector<8x8576xf32>
    %cst_12 = arith.constant 0.000000e+00 : f32
    %26 = vector.broadcast %cst_12 : f32 to vector<8x8576xf32>
    %27 = arith.maximumf %25, %26 : vector<8x8576xf32>
    %28 = arith.truncf %27 : vector<8x8576xf32> to vector<8x8576xbf16>
    %c0_13 = arith.constant 0 : index
    %c0_14 = arith.constant 0 : index
    %29 = vector.load %arg4[%c0_13, %c0_14] : memref<8x8576xbf16, #tpu.memory_space<vmem>>, vector<8x8576xbf16>
    tpu.vector_store %arg4[%c0_13, %c0_14], %28 {strides = array<i32>} : memref<8x8576xbf16, #tpu.memory_space<vmem>>, vector<8x8576xbf16>,
    return
  }
}

module attributes {stable_mosaic.version = 11 : i64} {
  func.func @_gemm_tanh_kernel(%arg0: i32, %arg1: memref<96x4352xbf16, #tpu.memory_space<vmem>>, %arg2: memref<8x96xbf16, #tpu.memory_space<vmem>>, %arg3: memref<8x1xf32, #tpu.memory_space<vmem>>, %arg4: memref<8x4352xf32, #tpu.memory_space<vmem>>) attributes {dimension_semantics = [#tpu.dimension_semantics<parallel>], iteration_bounds = array<i64: 4>, scalar_prefetch = 0 : i64, scratch_operands = 0 : i64, tpu.core_type = #tpu.core_type<tc>, window_params = [{transform_indices = @transform_0, window_bounds = array<i64: 96, 4352>}, {pipeline_mode = #tpu.pipeline_mode<synchronous>, transform_indices = @transform_1, window_bounds = array<i64: 8, 96>}, {pipeline_mode = #tpu.pipeline_mode<synchronous>, transform_indices = @transform_2, window_bounds = array<i64: 8, 1>}, {transform_indices = @transform_3, window_bounds = array<i64: 8, 4352>}]} {
    %c0 = arith.constant 0 : index
    %c0_0 = arith.constant 0 : index
    %0 = vector.load %arg2[%c0, %c0_0] : memref<8x96xbf16, #tpu.memory_space<vmem>>, vector<8x96xbf16>
    %c0_1 = arith.constant 0 : index
    %c0_2 = arith.constant 0 : index
    %1 = vector.load %arg1[%c0_1, %c0_2] : memref<96x4352xbf16, #tpu.memory_space<vmem>>, vector<96x4352xbf16>
    %cst = arith.constant dense<0.000000e+00> : vector<8x4352xf32>
    %2 = tpu.matmul %0, %1, %cst {dimension_numbers = #tpu.dot_dimension_numbers<[1], [0], [0], [1], [0, 0, 1, 1], [], []>} : vector<8x96xbf16>, vector<96x4352xbf16>, vector<8x4352xf32> -> vector<8x4352xf32>
    %c0_3 = arith.constant 0 : index
    %c0_4 = arith.constant 0 : index
    %3 = vector.load %arg3[%c0_3, %c0_4] : memref<8x1xf32, #tpu.memory_space<vmem>>, vector<8x1xf32>
    %4 = vector.broadcast %3 : vector<8x1xf32> to vector<8x4352xf32>
    %5 = arith.addf %2, %4 : vector<8x4352xf32>
    %6 = math.tanh %5 : vector<8x4352xf32>
    %c0_5 = arith.constant 0 : index
    %c0_6 = arith.constant 0 : index
    %7 = vector.load %arg4[%c0_5, %c0_6] : memref<8x4352xf32, #tpu.memory_space<vmem>>, vector<8x4352xf32>
    tpu.vector_store %arg4[%c0_5, %c0_6], %6 {strides = array<i32>} : memref<8x4352xf32, #tpu.memory_space<vmem>>, vector<8x4352xf32>,
    return
  }
  func.func @transform_0(%arg0: i32) -> (i32, i32) {
    %c0_i32 = arith.constant 0 : i32
    %c0_i32_0 = arith.constant 0 : i32
    return %c0_i32, %arg0 : i32, i32
  }
  func.func @transform_1(%arg0: i32) -> (i32, i32) {
    %c0_i32 = arith.constant 0 : i32
    %c0_i32_0 = arith.constant 0 : i32
    %c0_i32_1 = arith.constant 0 : i32
    return %c0_i32, %c0_i32_0 : i32, i32
  }
  func.func @transform_2(%arg0: i32) -> (i32, i32) {
    %c0_i32 = arith.constant 0 : i32
    %c0_i32_0 = arith.constant 0 : i32
    %c0_i32_1 = arith.constant 0 : i32
    return %c0_i32, %c0_i32_0 : i32, i32
  }
  func.func @transform_3(%arg0: i32) -> (i32, i32) {
    %c0_i32 = arith.constant 0 : i32
    %c0_i32_0 = arith.constant 0 : i32
    return %c0_i32, %arg0 : i32, i32
  }
}

</mosaic_0001>

<bundles_post_ra>
// kernel: _lambda_.6
= control target key start
LH: loop header
LB: loop body
LE: loop exit
PB: predicated region body
PF: predicated region fallthrough
CT: control target
= control target key end

     0   :  { %s1321_s0 = inlined_call_operand.vmem [shape: bf16[512,128], index: 0, kind: input, shape index: {}]   ;;  %s1322_s1 = inlined_call_operand.vmem [shape: bf16[64,512], index: 1, kind: input, shape index: {}]   ;;  %s1323_s2 = inlined_call_operand.vmem [shape: f32[64,1], index: 2, kind: input, shape index: {}]   ;;  %s1324_s3 = inlined_call_operand.vmem [shape: f32[64,1], index: 3, kind: input, shape index: {}]   ;;  %s1325_s4 = inlined_call_operand.vmem [shape: bf16[64,128], index: 4, kind: output, shape index: {}]  }
   0x1   :  { %v946_v0 = vld [vmem:[%s1321_s0 + $0x78] sm:$0xff]   ;;  %v950_v4 = vld [vmem:[%s1321_s0 + $0x70] sm:$0xff]   ;;  %v954_v8 = vld [vmem:[%s1321_s0 + $0x68] sm:$0xff]  }
   0x2   :  { %v947_v1 = vld [vmem:[%s1321_s0 + $0xf8] sm:$0xff]   ;;  %863 = vmatprep.subr.bf16.mxu0 %v946_v0  ;;  %v951_v5 = vld [vmem:[%s1321_s0 + $0xf0] sm:$0xff]   ;;  %v955_v9 = vld [vmem:[%s1321_s0 + $0xe8] sm:$0xff]  }
   0x3   :  { %v948_v2 = vld [vmem:[%s1321_s0 + $0x38] sm:$0xff]   ;;  %903 = vmatprep.subr.bf16.mxu1 %v947_v1  ;;  %v952_v6 = vld [vmem:[%s1321_s0 + $0x30] sm:$0xff]   ;;  %v956_v10 = vld [vmem:[%s1321_s0 + $0x28] sm:$0xff]  }
   0x4   :  { %v949_v3 = vld [vmem:[%s1321_s0 + $0xb8] sm:$0xff]   ;;  %864 = vmatpush3.bf16.msra.mxu0 %v948_v2  ;;  %v953_v7 = vld [vmem:[%s1321_s0 + $0xb0] sm:$0xff]   ;;  %v957_v11 = vld [vmem:[%s1321_s0 + $0xa8] sm:$0xff]  }
   0x5   :  { %904 = vmatpush3.bf16.msra.mxu1 %v949_v3  ;;  %865 = vmatprep.subr.bf16.mxu0 %v950_v4  ;;  %v958_v12 = vld [vmem:[%s1321_s0 + $0x60] sm:$0xff]   ;;  %v962_v16 = vld [vmem:[%s1321_s0 + $0x58] sm:$0xff]   ;;  %v966_v20 = vld [vmem:[%s1321_s0 + $0x50] sm:$0xff]  }
   0x6   :  { %905 = vmatprep.subr.bf16.mxu1 %v951_v5  ;;  %v959_v13 = vld [vmem:[%s1321_s0 + $0xe0] sm:$0xff]   ;;  %v963_v17 = vld [vmem:[%s1321_s0 + $0xd8] sm:$0xff]   ;;  %v967_v21 = vld [vmem:[%s1321_s0 + $0xd0] sm:$0xff]  }
   0x7   :  { %v960_v14 = vld [vmem:[%s1321_s0 + $0x20] sm:$0xff]   ;;  %v964_v18 = vld [vmem:[%s1321_s0 + $0x18] sm:$0xff]   ;;  %v968_v22 = vld [vmem:[%s1321_s0 + $0x10] sm:$0xff]  }
   0x8   :  { %866 = vmatpush3.bf16.msra.mxu0 %v952_v6  ;;  %v961_v15 = vld [vmem:[%s1321_s0 + $0xa0] sm:$0xff]   ;;  %v965_v19 = vld [vmem:[%s1321_s0 + $0x98] sm:$0xff]   ;;  %v969_v23 = vld [vmem:[%s1321_s0 + $0x90] sm:$0xff]  }
   0x9   :  { %906 = vmatpush3.bf16.msra.mxu1 %v953_v7  ;;  %867 = vmatprep.subr.bf16.mxu0 %v954_v8  ;;  %v970_v24 = vld [vmem:[%s1321_s0 + $0x48] sm:$0xff]   ;;  %v974_v28 = vld [vmem:[%s1321_s0 + $0x40] sm:$0xff]  }
   0xa   :  { %907 = vmatprep.subr.bf16.mxu1 %v955_v9  ;;  %v971_v25 = vld [vmem:[%s1321_s0 + $0xc8] sm:$0xff]   ;;  %v975_v29 = vld [vmem:[%s1321_s0 + $0xc0] sm:$0xff]  }
   0xb   :  { %v972_v26 = vld [vmem:[%s1321_s0 + $0x8] sm:$0xff]   ;;  %v976_v30 = vld [vmem:[%s1321_s0] sm:$0xff]  }
   0xc   :  { %868 = vmatpush3.bf16.msra.mxu0 %v956_v10  ;;  %v973_v27 = vld [vmem:[%s1321_s0 + $0x88] sm:$0xff]   ;;  %v977_v31 = vld [vmem:[%s1321_s0 + $0x80] sm:$0xff]  }
   0xd   :  { %908 = vmatpush3.bf16.msra.mxu1 %v957_v11  ;;  %869 = vmatprep.subr.bf16.mxu0 %v958_v12  ;;  %v978_v32 = vld [vmem:[%s1322_s1] ss:$16 sps:$4 sm:$0xff]   ;;  %v980_v33 = vld [vmem:[%s1322_s1 + $0x4] ss:$16 sps:$4 sm:$0xff]   ;;  %v981_v34 = vld [vmem:[%s1322_s1 + $0x8] ss:$16 sps:$4 sm:$0xff]  }
   0xe   :  { %909 = vmatprep.subr.bf16.mxu1 %v959_v13  ;;  %v983_v35 = vld [vmem:[%s1322_s1 + $0xc] ss:$16 sps:$4 sm:$0xff]   ;;  %402 = vmatprep.mubr.bf16.mxu0 %v980_v33  ;;  %v984_v36 = vld [vmem:[%s1322_s1 + $0x24] ss:$16 sps:$4 sm:$0xff]   ;;  %v988_v38 = vld [vmem:[%s1322_s1 + $0x20] ss:$16 sps:$4 sm:$0xff]  }
   0xf   :  { %467 = vmatprep.mubr.bf16.mxu1 %v983_v35  ;;  %v986_v37 = vld [vmem:[%s1322_s1 + $0x2c] ss:$16 sps:$4 sm:$0xff]   ;;  %v989_v39 = vld [vmem:[%s1322_s1 + $0x28] ss:$16 sps:$4 sm:$0xff]   ;;  %v990_v40 = vld [vmem:[%s1322_s1 + $0x44] ss:$16 sps:$4 sm:$0xff]  }
  0x10   :  { %870 = vmatpush3.bf16.msra.mxu0 %v960_v14  ;;  %v992_v41 = vld [vmem:[%s1322_s1 + $0x4c] ss:$16 sps:$4 sm:$0xff]   ;;  %v994_v42 = vld [vmem:[%s1322_s1 + $0x40] ss:$16 sps:$4 sm:$0xff]   ;;  %v995_v43 = vld [vmem:[%s1322_s1 + $0x48] ss:$16 sps:$4 sm:$0xff]  }
  0x11   :  { %910 = vmatpush3.bf16.msra.mxu1 %v961_v15  ;;  %871 = vmatprep.subr.bf16.mxu0 %v962_v16  ;;  %v996_v44 = vld [vmem:[%s1322_s1 + $0x64] ss:$16 sps:$4 sm:$0xff]   ;;  %v998_v45 = vld [vmem:[%s1322_s1 + $0x6c] ss:$16 sps:$4 sm:$0xff]   ;;  %v1000_v46 = vld [vmem:[%s1322_s1 + $0x60] ss:$16 sps:$4 sm:$0xff]  }
  0x12   :  { %911 = vmatprep.subr.bf16.mxu1 %v963_v17  ;;  %v1001_v47 = vld [vmem:[%s1322_s1 + $0x68] ss:$16 sps:$4 sm:$0xff]  }
  0x14   :  { %872 = vmatpush3.bf16.msra.mxu0 %v964_v18 }
  0x15   :  { %912 = vmatpush3.bf16.msra.mxu1 %v965_v19  ;;  %873 = vmatprep.subr.bf16.mxu0 %v966_v20 }
  0x16   :  { %913 = vmatprep.subr.bf16.mxu1 %v967_v21 }
  0x18   :  { %874 = vmatpush3.bf16.msra.mxu0 %v968_v22 }
  0x19   :  { %914 = vmatpush3.bf16.msra.mxu1 %v969_v23  ;;  %875 = vmatprep.subr.bf16.mxu0 %v970_v24 }
  0x1a   :  { %915 = vmatprep.subr.bf16.mxu1 %v971_v25 }
  0x1c   :  { %876 = vmatpush3.bf16.msra.mxu0 %v972_v26 }
  0x1d   :  { %916 = vmatpush3.bf16.msra.mxu1 %v973_v27  ;;  %877 = vmatprep.subr.bf16.mxu0 %v974_v28 }
  0x1e   :  { %917 = vmatprep.subr.bf16.mxu1 %v975_v29 }
  0x20   :  { %878 = vmatpush3.bf16.msra.mxu0 %v976_v30 }
  0x21   :  { %918 = vmatpush3.bf16.msra.mxu1 %v977_v31 }
  0x23   :  { %403 = vmatmul.mubr.bf16.vlgmr.msra.gmra.mxu0 %v978_v32 }
  0x24   :  { %468 = vmatmul.mubr.bf16.vlgmr.msra.gmra.mxu1 %v981_v34  ;;  %410 = vmatprep.mubr.bf16.mxu0 %v984_v36 }
  0x25   :  { %475 = vmatprep.mubr.bf16.mxu1 %v986_v37 }
  0x2b   :  { %411 = vmatmul.mubr.bf16.gmra.mxu0 %v988_v38 }
  0x2c   :  { %476 = vmatmul.mubr.bf16.gmra.mxu1 %v989_v39  ;;  %418 = vmatprep.mubr.bf16.mxu0 %v990_v40 }
  0x2d   :  { %483 = vmatprep.mubr.bf16.mxu1 %v992_v41 }
  0x33   :  { %419 = vmatmul.mubr.bf16.gmra.mxu0 %v994_v42 }
  0x34   :  { %484 = vmatmul.mubr.bf16.gmra.mxu1 %v995_v43  ;;  %426 = vmatprep.mubr.bf16.mxu0 %v996_v44 }
  0x35   :  { %491 = vmatprep.mubr.bf16.mxu1 %v998_v45 }
  0x3b   :  { %427 = vmatmul.mubr.bf16.gmra.mxu0 %v1000_v46 }
  0x3c   :  { %492 = vmatmul.mubr.bf16.gmra.mxu1 %v1001_v47 }
  0xe3   :  { %v879_v48 = vpop.f32.mrf.mxu0 }
  0xe4   :  { %v919_v49 = vpop.f32.mrf.mxu1 }
  0xe5   :  { %v880_v50 = vpop.f32.mrf.mxu0 }
  0xe6   :  { %v881_v51 = vadd.f32 %v880_v50, %v879_v48  ;;  %v920_v52 = vpop.f32.mrf.mxu1  ;;  %v1018_v48 = vmov 0  }
  0xe7   :  { %v921_v53 = vadd.f32 %v920_v52, %v919_v49  ;;  %v882_v54 = vpop.f32.mrf.mxu0  ;;  %944 = vset.pattern.permute.xlu0 %v1018_v48  ;;  %945 = vset.pattern.permute.xlu1 %v1018_v48  ;;  %v605_v48 = vld [vmem:[%s1324_s3 + $0x8] sm:$0xff] }
  0xe8   :  { %v922_v55 = vpop.f32.mrf.mxu1 }
  0xe9   :  { %v1188_v56 = vadd.f32 %v921_v53, %v881_v51  ;;  %v883_v57 = vpop.f32.mrf.mxu0 }
  0xea   :  { %v884_v58 = vadd.f32 %v883_v57, %v882_v54  ;;  %v923_v59 = vpop.f32.mrf.mxu1 }
  0xeb   :  { %v924_v60 = vadd.f32 %v923_v59, %v922_v55  ;;  %500 = vadd.xlane.f32.xlu0 %v1188_v56  ;;  %v885_v61 = vpop.f32.mrf.mxu0  ;;  %v516_v1 = vmul.f32 %v1188_v56, %v1188_v56 }
  0xec   :  { %v925_v62 = vpop.f32.mrf.mxu1 }
  0xed   :  { %v1191_v63 = vadd.f32 %v924_v60, %v884_v58  ;;  %v886_v0 = vpop.f32.mrf.mxu0 }
  0xee   :  { %v887_v2 = vadd.f32 %v886_v0, %v885_v61  ;;  %v926_v3 = vpop.f32.mrf.mxu1 }
  0xef   :  { %v927_v4 = vadd.f32 %v926_v3, %v925_v62  ;;  %524 = vadd.xlane.f32.xlu0 %v516_v1  ;;  %v888_v5 = vpop.f32.mrf.mxu0  ;;  %v517_v6 = vmul.f32 %v1191_v63, %v1191_v63 }
  0xf0   :  { %v928_v7 = vpop.f32.mrf.mxu1 }
  0xf1   :  { %v1197_v8 = vadd.f32 %v927_v4, %v887_v2  ;;  %526 = vadd.xlane.f32.xlu1 %v517_v6  ;;  %v889_v9 = vpop.f32.mrf.mxu0 }
  0xf2   :  { %v929_v10 = vpop.f32.mrf.mxu1  ;;  %v890_v11 = vadd.f32 %v889_v9, %v888_v5 }
  0xf3   :  { %v930_v12 = vadd.f32 %v929_v10, %v928_v7  ;;  %502 = vadd.xlane.f32.xlu0 %v1191_v63  ;;  %v891_v13 = vpop.f32.mrf.mxu0  ;;  %v518_v14 = vmul.f32 %v1197_v8, %v1197_v8 }
  0xf4   :  { %v931_v15 = vpop.f32.mrf.mxu1 }
  0xf5   :  { %504 = vadd.xlane.f32.xlu1 %v1197_v8  ;;  %v892_v16 = vpop.f32.mrf.mxu0  ;;  %v1203_v19 = vadd.f32 %v930_v12, %v890_v11 }
  0xf6   :  { %v893_v17 = vadd.f32 %v892_v16, %v891_v13  ;;  %v932_v18 = vpop.f32.mrf.mxu1 }
  0xf7   :  { %v933_v20 = vadd.f32 %v932_v18, %v931_v15  ;;  %528 = vadd.xlane.f32.xlu0 %v518_v14  ;;  %v894_v21 = vpop.f32.mrf.mxu0  ;;  %v519_v29 = vmul.f32 %v1203_v19, %v1203_v19 }
  0xf8   :  { %v934_v22 = vpop.f32.mrf.mxu1 }
  0xf9   :  { %v1205_v23 = vadd.f32 %v933_v20, %v893_v17  ;;  %506 = vadd.xlane.f32.xlu1 %v1203_v19  ;;  %v895_v24 = vpop.f32.mrf.mxu0 }
  0xfa   :  { %v896_v25 = vadd.f32 %v895_v24, %v894_v21  ;;  %v935_v26 = vpop.f32.mrf.mxu1 }
  0xfb   :  { %v936_v27 = vadd.f32 %v935_v26, %v934_v22  ;;  %508 = vadd.xlane.f32.xlu0 %v1205_v23  ;;  %v897_v28 = vpop.f32.mrf.mxu0  ;;  %v520_v30 = vmul.f32 %v1205_v23, %v1205_v23 }
  0xfc   :  { %v937_v31 = vpop.f32.mrf.mxu1 }
  0xfd   :  { %v1213_v32 = vadd.f32 %v936_v27, %v896_v25  ;;  %530 = vadd.xlane.f32.xlu1 %v519_v29  ;;  %v898_v33 = vpop.f32.mrf.mxu0  ;;  %v588_v25 = vld [vmem:[%s1323_s2] sm:$0xff] }
  0xfe   :  { %v899_v34 = vadd.f32 %v898_v33, %v897_v28  ;;  %v938_v35 = vpop.f32.mrf.mxu1 }
  0xff   :  { %v939_v36 = vadd.f32 %v938_v35, %v937_v31  ;;  %532 = vadd.xlane.f32.xlu0 %v520_v30  ;;  %v900_v37 = vpop.f32.mrf.mxu0  ;;  %v521_v41 = vmul.f32 %v1213_v32, %v1213_v32 }
 0x100   :  { %v940_v38 = vpop.f32.mrf.mxu1 }
 0x101   :  { %v1215_v39 = vadd.f32 %v939_v36, %v899_v34  ;;  %510 = vadd.xlane.f32.xlu1 %v1213_v32  ;;  %v901_v40 = vpop.f32.mrf.mxu0  ;;  %v589_v34 = vld [vmem:[%s1323_s2 + $0x8] sm:$0xff] }
 0x102   :  { %v902_v42 = vadd.f32 %v901_v40, %v900_v37  ;;  %v941_v43 = vpop.f32.mrf.mxu1 }
 0x103   :  { %512 = vadd.xlane.f32.xlu0 %v1215_v39  ;;  %v942_v44 = vadd.f32 %v941_v43, %v940_v38  ;;  %v522_v45 = vmul.f32 %v1215_v39, %v1215_v39 }
 0x105   :  { %v1223_v46 = vadd.f32 %v942_v44, %v902_v42  ;;  %534 = vadd.xlane.f32.xlu1 %v521_v41 }
 0x107   :  { %536 = vadd.xlane.f32.xlu0 %v522_v45  ;;  %v523_v47 = vmul.f32 %v1223_v46, %v1223_v46 }
 0x109   :  { %514 = vadd.xlane.f32.xlu1 %v1223_v46 }
 0x10d   :  { %538 = vadd.xlane.f32.xlu1 %v523_v47  ;;  %v604_v47 = vld [vmem:[%s1324_s3] sm:$0xff] }
 0x174   :  { %v501_v49 = vpop.xlane.xlu0 %500 }
 0x175   :  { %v540_v50 = vmul.f32 0.03125, %v501_v49 }
 0x177   :  { %v556_v52 = vmul.f32 %v540_v50, %v540_v50 }
 0x178   :  { %v525_v51 = vpop.xlane.xlu0 %524 }
 0x179   :  { %v548_v53 = vmul.f32 0.03125, %v525_v51 }
 0x17a   :  { %v527_v54 = vpop.xlane.xlu1 %526 }
 0x17b   :  { %v564_v55 = vsub.f32 %v548_v53, %v556_v52  ;;  %v549_v61 = vmul.f32 0.03125, %v527_v54 }
 0x17c   :  { %v503_v57 = vpop.xlane.xlu0 %502 }
 0x17d   :  { %v572_v58 = vadd.f32 1e-05, %v564_v55  ;;  %v541_v59 = vmul.f32 0.03125, %v503_v57 }
 0x17e   :  { %v505_v60 = vpop.xlane.xlu1 %504 }
 0x17f   :  { %1002 = vrsqrt.f32 %v572_v58  ;;  %v557_v62 = vmul.f32 %v541_v59, %v541_v59  ;;  %v1228_v0 = vmul.f32 0.03125, %v505_v60  ;;  %v590_v60 = vld [vmem:[%s1323_s2 + $0x10] sm:$0xff] }
 0x180   :  { %v529_v1 = vpop.xlane.xlu0 %528 }
 0x181   :  { %v565_v2 = vsub.f32 %v549_v61, %v557_v62  ;;  %v558_v3 = vmul.f32 %v1228_v0, %v1228_v0  ;;  %v550_v4 = vmul.f32 0.03125, %v529_v1 }
 0x182   :  { %v507_v5 = vpop.xlane.xlu1 %506 }
 0x183   :  { %v573_v6 = vadd.f32 1e-05, %v565_v2  ;;  %v566_v7 = vsub.f32 %v550_v4, %v558_v3  ;;  %v1232_v9 = vmul.f32 0.03125, %v507_v5  ;;  %v607_v5 = vld [vmem:[%s1324_s3 + $0x18] sm:$0xff] }
 0x184   :  { %v509_v10 = vpop.xlane.xlu0 %508 }
 0x185   :  { %1004 = vrsqrt.f32 %v573_v6  ;;  %v1234_v11 = vmul.f32 0.03125, %v509_v10  ;;  %v574_v13 = vadd.f32 1e-05, %v566_v7  ;;  %v559_v14 = vmul.f32 %v1232_v9, %v1232_v9 }
 0x186   :  { %v531_v12 = vpop.xlane.xlu1 %530 }
 0x187   :  { %v551_v15 = vmul.f32 0.03125, %v531_v12  ;;  %v560_v18 = vmul.f32 %v1234_v11, %v1234_v11  ;;  %1006 = vrsqrt.f32 %v574_v13  ;;  %v606_v13 = vld [vmem:[%s1324_s3 + $0x10] sm:$0xff] }
 0x188   :  { %v533_v16 = vpop.xlane.xlu0 %532 }
 0x189   :  { %v567_v17 = vsub.f32 %v551_v15, %v559_v14  ;;  %v552_v20 = vmul.f32 0.03125, %v533_v16  ;;  %v593_v14 = vld [vmem:[%s1323_s2 + $0x28] sm:$0xff] }
 0x18a   :  { %v511_v21 = vpop.xlane.xlu1 %510 }
 0x18b   :  { %v575_v22 = vadd.f32 1e-05, %v567_v17  ;;  %v1240_v24 = vmul.f32 0.03125, %v511_v21  ;;  %v568_v28 = vsub.f32 %v552_v20, %v560_v18 }
 0x18c   :  { %v1003_v26 = vpop.eup %1002  ;;  %v513_v29 = vpop.xlane.xlu0 %512 }
 0x18d   :  { %1008 = vrsqrt.f32 %v575_v22  ;;  %v561_v27 = vmul.f32 %v1240_v24, %v1240_v24  ;;  %v596_v31 = vmul.f32 %v1003_v26, %v588_v25  ;;  %v576_v37 = vadd.f32 1e-05, %v568_v28  ;;  %v595_v25 = vld [vmem:[%s1323_s2 + $0x38] sm:$0xff] }
 0x18e   :  { %v535_v30 = vpop.xlane.xlu1 %534  ;;  %v1250_v38 = vmul.f32 0.03125, %v513_v29  ;;  %v611_v29 = vld [vmem:[%s1324_s3 + $0x38] sm:$0xff] }
 0x18f   :  { %v553_v33 = vmul.f32 0.03125, %v535_v30  ;;  %630 = vperm.xlu0 %944, %v596_v31   ;;  %v612_v44 = vmul.f32 %v596_v31, %v540_v50 }
 0x190   :  { %v537_v45 = vpop.xlane.xlu0 %536  ;;  %v562_v52 = vmul.f32 %v1250_v38, %v1250_v38 }
 0x191   :  { %v569_v35 = vsub.f32 %v553_v33, %v561_v27  ;;  %v554_v54 = vmul.f32 0.03125, %v537_v45  ;;  %v620_v55 = vsub.f32 %v604_v47, %v612_v44 }
 0x192   :  { %v1005_v36 = vpop.eup %1004  ;;  %v515_v40 = vpop.xlane.xlu1 %514 }
 0x193   :  { %v597_v41 = vmul.f32 %v1005_v36, %v589_v34  ;;  %v577_v42 = vadd.f32 1e-05, %v569_v35  ;;  %v547_v43 = vmul.f32 0.03125, %v515_v40  ;;  %v570_v1 = vsub.f32 %v554_v54, %v562_v52  ;;  %v594_v35 = vld [vmem:[%s1323_s2 + $0x30] sm:$0xff] }
 0x194   :  { %v1007_v58 = vpop.eup %1006 }
 0x195   :  { %v613_v49 = vmul.f32 %v597_v41, %v541_v59  ;;  %1010 = vrsqrt.f32 %v577_v42  ;;  %v563_v51 = vmul.f32 %v547_v43, %v547_v43  ;;  %635 = vperm.xlu1 %945, %v597_v41   ;;  %v591_v59 = vld [vmem:[%s1323_s2 + $0x18] sm:$0xff]  ;;  %v598_v3 = vmul.f32 %v1007_v58, %v590_v60 }
 0x196   :  { %1012 = vrsqrt.f32 %v576_v37  ;;  %v539_v53 = vpop.xlane.xlu1 %538  ;;  %v578_v7 = vadd.f32 1e-05, %v570_v1  ;;  %v610_v37 = vld [vmem:[%s1324_s3 + $0x30] sm:$0xff] }
 0x197   :  { %v555_v50 = vmul.f32 0.03125, %v539_v53  ;;  %v621_v57 = vsub.f32 %v605_v48, %v613_v49  ;;  %v614_v12 = vmul.f32 %v598_v3, %v1228_v0  ;;  %v592_v0 = vld [vmem:[%s1323_s2 + $0x20] sm:$0xff] }
 0x199   :  { %v571_v61 = vsub.f32 %v555_v50, %v563_v51  ;;  %678 = vperm.xlu1 %945, %v620_v55   ;;  %683 = vperm.xlu0 %944, %v621_v57   ;;  %v622_v17 = vsub.f32 %v606_v13, %v614_v12 }
 0x19a   :  { %v1009_v62 = vpop.eup %1008 }
 0x19b   :  { %v579_v2 = vadd.f32 1e-05, %v571_v61  ;;  %v599_v4 = vmul.f32 %v1009_v62, %v591_v59 }
 0x19d   :  { %1014 = vrsqrt.f32 %v579_v2  ;;  %640 = vperm.xlu1 %945, %v598_v3   ;;  %v615_v6 = vmul.f32 %v599_v4, %v1232_v9  ;;  %v609_v9 = vld [vmem:[%s1324_s3 + $0x28] sm:$0xff] }
 0x19e   :  { %1016 = vrsqrt.f32 %v578_v7 }
 0x19f   :  { %v623_v10 = vsub.f32 %v607_v5, %v615_v6 }
 0x1a1   :  { %693 = vperm.xlu0 %944, %v623_v10   ;;  %645 = vperm.xlu1 %945, %v599_v4  }
 0x1a2   :  { %v1011_v15 = vpop.eup %1010 }
 0x1a3   :  { %v1013_v16 = vpop.eup %1012  ;;  %v601_v18 = vmul.f32 %v1011_v15, %v593_v14 }
 0x1a4   :  { %v600_v22 = vmul.f32 %v1013_v16, %v592_v0 }
 0x1a5   :  { %688 = vperm.xlu1 %945, %v622_v17   ;;  %v617_v20 = vmul.f32 %v601_v18, %v1240_v24  ;;  %v608_v24 = vld [vmem:[%s1324_s3 + $0x20] sm:$0xff] }
 0x1a6   :  { %v616_v28 = vmul.f32 %v600_v22, %v1234_v11 }
 0x1a7   :  { %v625_v21 = vsub.f32 %v609_v9, %v617_v20 }
 0x1a8   :  { %v624_v33 = vsub.f32 %v608_v24, %v616_v28 }
 0x1a9   :  { %703 = vperm.xlu0 %944, %v625_v21   ;;  %650 = vperm.xlu1 %945, %v600_v22  }
 0x1aa   :  { %v1015_v26 = vpop.eup %1014 }
 0x1ab   :  { %v603_v27 = vmul.f32 %v1015_v26, %v595_v25  ;;  %v1017_v34 = vpop.eup %1016 }
 0x1ac   :  { %v602_v11 = vmul.f32 %v1017_v34, %v594_v35 }
 0x1ad   :  { %655 = vperm.xlu1 %945, %v601_v18   ;;  %v619_v30 = vmul.f32 %v603_v27, %v547_v43 }
 0x1ae   :  { %v618_v36 = vmul.f32 %v602_v11, %v1250_v38 }
 0x1af   :  { %v627_v31 = vsub.f32 %v611_v29, %v619_v30 }
 0x1b0   :  { %v626_v40 = vsub.f32 %v610_v37, %v618_v36 }
 0x1b1   :  { %713 = vperm.xlu0 %944, %v627_v31   ;;  %698 = vperm.xlu1 %945, %v624_v33  }
 0x1b5   :  { %660 = vperm.xlu1 %945, %v602_v11  }
 0x1b9   :  { %665 = vperm.xlu1 %945, %v603_v27  }
 0x1bd   :  { %708 = vperm.xlu1 %945, %v626_v40  }
 0x20a   :  { %v631_v41 = vpop.permute.xlu0 %630 }
 0x20b   :  { %v668_v43 = vmul.f32 %v631_v41, %v1188_v56 }
 0x210   :  { %v636_v42 = vpop.permute.xlu1 %635 }
 0x211   :  { %v669_v44 = vmul.f32 %v636_v42, %v1191_v63 }
 0x214   :  { %v679_v45 = vpop.permute.xlu1 %678  ;;  %v684_v47 = vpop.permute.xlu0 %683 }
 0x215   :  { %v716_v48 = vadd.f32 %v679_v45, %v668_v43  ;;  %v717_v49 = vadd.f32 %v684_v47, %v669_v44 }
 0x217   :  { %v724_v51 = vmax.f32 %v716_v48, 0.0  ;;  %v725_v52 = vmax.f32 %v717_v49, 0.0 }
 0x218   :  { %v641_v38 = vpop.permute.xlu1 %640 }
 0x219   :  { %v843_v53 = vpack.c.bf16 %v725_v52, %v724_v51  ;;  %v670_v56 = vmul.f32 %v641_v38, %v1197_v8 }
 0x21b   :  { %844 = vst [vmem:[%s1325_s4] sm:$0xff] %v843_v53  }
 0x21c   :  { %v646_v54 = vpop.permute.xlu1 %645  ;;  %v694_v55 = vpop.permute.xlu0 %693 }
 0x21d   :  { %v671_v50 = vmul.f32 %v646_v54, %v1203_v19 }
 0x21f   :  { %v719_v57 = vadd.f32 %v694_v55, %v671_v50 }
 0x220   :  { %v689_v63 = vpop.permute.xlu1 %688 }
 0x221   :  { %v718_v58 = vadd.f32 %v689_v63, %v670_v56  ;;  %v727_v60 = vmax.f32 %v719_v57, 0.0 }
 0x223   :  { %v726_v59 = vmax.f32 %v718_v58, 0.0 }
 0x224   :  { %v651_v61 = vpop.permute.xlu1 %650  ;;  %v704_v3 = vpop.permute.xlu0 %703 }
 0x225   :  { %v848_v62 = vpack.c.bf16 %v727_v60, %v726_v59  ;;  %v672_v19 = vmul.f32 %v651_v61, %v1205_v23 }
 0x227   :  { %860 = vst [vmem:[%s1325_s4 + $0x8] sm:$0xff] %v848_v62  }
 0x228   :  { %v656_v1 = vpop.permute.xlu1 %655 }
 0x229   :  { %v673_v2 = vmul.f32 %v656_v1, %v1213_v32 }
 0x22b   :  { %v721_v4 = vadd.f32 %v704_v3, %v673_v2 }
 0x22c   :  { %v699_v5 = vpop.permute.xlu1 %698  ;;  %v714_v15 = vpop.permute.xlu0 %713 }
 0x22d   :  { %v720_v8 = vadd.f32 %v699_v5, %v672_v19  ;;  %v729_v6 = vmax.f32 %v721_v4, 0.0 }
 0x22f   :  { %v728_v7 = vmax.f32 %v720_v8, 0.0 }
 0x230   :  { %v661_v10 = vpop.permute.xlu1 %660 }
 0x231   :  { %v853_v12 = vpack.c.bf16 %v729_v6, %v728_v7  ;;  %v674_v32 = vmul.f32 %v661_v10, %v1215_v39 }
 0x233   :  { %861 = vst [vmem:[%s1325_s4 + $0x10] sm:$0xff] %v853_v12  }
 0x234   :  { %v666_v13 = vpop.permute.xlu1 %665 }
 0x235   :  { %v675_v14 = vmul.f32 %v666_v13, %v1223_v46 }
 0x237   :  { %v723_v16 = vadd.f32 %v714_v15, %v675_v14 }
 0x238   :  { %v709_v17 = vpop.permute.xlu1 %708 }
 0x239   :  { %v722_v23 = vadd.f32 %v709_v17, %v674_v32  ;;  %v731_v18 = vmax.f32 %v723_v16, 0.0 }
 0x23b   :  { %v730_v9 = vmax.f32 %v722_v23, 0.0 }
 0x23d   :  { %v858_v0 = vpack.c.bf16 %v731_v18, %v730_v9 }
 0x23f   :  { %862 = vst [vmem:[%s1325_s4 + $0x18] sm:$0xff] %v858_v0  }

// kernel: _lambda_.7
= control target key start
LH: loop header
LB: loop body
LE: loop exit
PB: predicated region body
PF: predicated region fallthrough
CT: control target
= control target key end

     0   :  { %v1083_v1 = vmov 0   ;;  %vm512_vm0 = vcmask 523264   ;;  %s1443_s0 = inlined_call_operand.vmem [shape: bf16[576,256], index: 0, kind: input, shape index: {}]   ;;  %s1444_s1 = inlined_call_operand.vmem [shape: bf16[32,576], index: 1, kind: input, shape index: {}]   ;;  %s1445_s2 = inlined_call_operand.vmem [shape: f32[32,1], index: 2, kind: input, shape index: {}]   ;;  %s1446_s3 = inlined_call_operand.vmem [shape: f32[32,1], index: 3, kind: input, shape index: {}]   ;;  %s1447_s4 = inlined_call_operand.vmem [shape: bf16[32,256], index: 4, kind: output, shape index: {}]  }
   0x1   :  { %v953_v0 = vld [vmem:[%s1443_s0 + $0x74] ss:$8 sps:$4 sm:$0xff]   ;;  %951 = vset.pattern.permute.xlu0 %v1083_v1  ;;  %952 = vset.pattern.permute.xlu1 %v1083_v1  ;;  %v957_v3 = vld [vmem:[%s1443_s0 + $0x70] ss:$8 sps:$4 sm:$0xff]   ;;  %v959_v5 = vld [vmem:[%s1443_s0 + $0x64] ss:$8 sps:$4 sm:$0xff]  }
   0x2   :  { %v955_v2 = vld [vmem:[%s1443_s0 + $0x174] ss:$8 sps:$4 sm:$0xff]   ;;  %519 = vmatprep.subr.bf16.mxu0 %v953_v0  ;;  %v958_v4 = vld [vmem:[%s1443_s0 + $0x170] ss:$8 sps:$4 sm:$0xff]   ;;  %v961_v6 = vld [vmem:[%s1443_s0 + $0x164] ss:$8 sps:$4 sm:$0xff]  }
   0x3   :  { %572 = vmatprep.subr.bf16.mxu1 %v955_v2  ;;  %520 = vmatpush1.bf16.msra.mxu0 %v957_v3  ;;  %v963_v7 = vld [vmem:[%s1443_s0 + $0x60] ss:$8 sps:$4 sm:$0xff]   ;;  %v965_v9 = vld [vmem:[%s1443_s0 + $0x54] ss:$8 sps:$4 sm:$0xff]   ;;  %v969_v11 = vld [vmem:[%s1443_s0 + $0x50] ss:$8 sps:$4 sm:$0xff]  }
   0x4   :  { %573 = vmatpush1.bf16.msra.mxu1 %v958_v4  ;;  %521 = vmatprep.subr.bf16.mxu0 %v959_v5  ;;  %v964_v8 = vld [vmem:[%s1443_s0 + $0x160] ss:$8 sps:$4 sm:$0xff]   ;;  %v967_v10 = vld [vmem:[%s1443_s0 + $0x154] ss:$8 sps:$4 sm:$0xff]   ;;  %v970_v12 = vld [vmem:[%s1443_s0 + $0x150] ss:$8 sps:$4 sm:$0xff]  }
   0x5   :  { %574 = vmatprep.subr.bf16.mxu1 %v961_v6  ;;  %v971_v13 = vld [vmem:[%s1443_s0 + $0x44] ss:$8 sps:$4 sm:$0xff]   ;;  %v975_v15 = vld [vmem:[%s1443_s0 + $0x40] ss:$8 sps:$4 sm:$0xff]   ;;  %v977_v17 = vld [vmem:[%s1443_s0 + $0x34] ss:$8 sps:$4 sm:$0xff]  }
   0x6   :  { %v973_v14 = vld [vmem:[%s1443_s0 + $0x144] ss:$8 sps:$4 sm:$0xff]   ;;  %v976_v16 = vld [vmem:[%s1443_s0 + $0x140] ss:$8 sps:$4 sm:$0xff]   ;;  %v979_v18 = vld [vmem:[%s1443_s0 + $0x134] ss:$8 sps:$4 sm:$0xff]  }
   0x7   :  { %522 = vmatpush1.bf16.msra.mxu0 %v963_v7  ;;  %v981_v19 = vld [vmem:[%s1443_s0 + $0x30] ss:$8 sps:$4 sm:$0xff]   ;;  %v983_v21 = vld [vmem:[%s1443_s0 + $0x24] ss:$8 sps:$4 sm:$0xff]   ;;  %v987_v23 = vld [vmem:[%s1443_s0 + $0x20] ss:$8 sps:$4 sm:$0xff]  }
   0x8   :  { %575 = vmatpush1.bf16.msra.mxu1 %v964_v8  ;;  %523 = vmatprep.subr.bf16.mxu0 %v965_v9  ;;  %v982_v20 = vld [vmem:[%s1443_s0 + $0x130] ss:$8 sps:$4 sm:$0xff]   ;;  %v985_v22 = vld [vmem:[%s1443_s0 + $0x124] ss:$8 sps:$4 sm:$0xff]   ;;  %v988_v24 = vld [vmem:[%s1443_s0 + $0x120] ss:$8 sps:$4 sm:$0xff]  }
   0x9   :  { %576 = vmatprep.subr.bf16.mxu1 %v967_v10  ;;  %v989_v25 = vld [vmem:[%s1443_s0 + $0x14] ss:$8 sps:$4 sm:$0xff]   ;;  %v993_v27 = vld [vmem:[%s1443_s0 + $0x10] ss:$8 sps:$4 sm:$0xff]   ;;  %v995_v29 = vld [vmem:[%s1443_s0 + $0x4] ss:$8 sps:$4 sm:$0xff]  }
   0xa   :  { %v991_v26 = vld [vmem:[%s1443_s0 + $0x114] ss:$8 sps:$4 sm:$0xff]   ;;  %v994_v28 = vld [vmem:[%s1443_s0 + $0x110] ss:$8 sps:$4 sm:$0xff]   ;;  %v997_v30 = vld [vmem:[%s1443_s0 + $0x104] ss:$8 sps:$4 sm:$0xff]  }
   0xb   :  { %524 = vmatpush1.bf16.msra.mxu0 %v969_v11  ;;  %v999_v31 = vld [vmem:[%s1443_s0] ss:$8 sps:$4 sm:$0xff]   ;;  %v1001_v33 = vld [vmem:[%s1443_s0 + $0xf4] ss:$8 sps:$4 sm:$0xff]   ;;  %v1005_v35 = vld [vmem:[%s1443_s0 + $0xf0] ss:$8 sps:$4 sm:$0xff]  }
   0xc   :  { %577 = vmatpush1.bf16.msra.mxu1 %v970_v12  ;;  %525 = vmatprep.subr.bf16.mxu0 %v971_v13  ;;  %v1000_v32 = vld [vmem:[%s1443_s0 + $0x100] ss:$8 sps:$4 sm:$0xff]   ;;  %v1003_v34 = vld [vmem:[%s1443_s0 + $0x1f4] ss:$8 sps:$4 sm:$0xff]   ;;  %v1006_v36 = vld [vmem:[%s1443_s0 + $0x1f0] ss:$8 sps:$4 sm:$0xff]  }
   0xd   :  { %578 = vmatprep.subr.bf16.mxu1 %v973_v14  ;;  %v1007_v37 = vld [vmem:[%s1443_s0 + $0xe4] ss:$8 sps:$4 sm:$0xff]   ;;  %v1011_v39 = vld [vmem:[%s1443_s0 + $0xe0] ss:$8 sps:$4 sm:$0xff]   ;;  %v1013_v41 = vld [vmem:[%s1443_s0 + $0xd4] ss:$8 sps:$4 sm:$0xff]  }
   0xe   :  { %v1009_v38 = vld [vmem:[%s1443_s0 + $0x1e4] ss:$8 sps:$4 sm:$0xff]   ;;  %v1012_v40 = vld [vmem:[%s1443_s0 + $0x1e0] ss:$8 sps:$4 sm:$0xff]   ;;  %v1015_v42 = vld [vmem:[%s1443_s0 + $0x1d4] ss:$8 sps:$4 sm:$0xff]  }
   0xf   :  { %526 = vmatpush1.bf16.msra.mxu0 %v975_v15  ;;  %v1017_v43 = vld [vmem:[%s1443_s0 + $0xd0] ss:$8 sps:$4 sm:$0xff]   ;;  %v1019_v45 = vld [vmem:[%s1443_s0 + $0xc4] ss:$8 sps:$4 sm:$0xff]   ;;  %v1023_v47 = vld [vmem:[%s1443_s0 + $0xc0] ss:$8 sps:$4 sm:$0xff]  }
  0x10   :  { %579 = vmatpush1.bf16.msra.mxu1 %v976_v16  ;;  %527 = vmatprep.subr.bf16.mxu0 %v977_v17  ;;  %v1018_v44 = vld [vmem:[%s1443_s0 + $0x1d0] ss:$8 sps:$4 sm:$0xff]   ;;  %v1021_v46 = vld [vmem:[%s1443_s0 + $0x1c4] ss:$8 sps:$4 sm:$0xff]   ;;  %v1024_v48 = vld [vmem:[%s1443_s0 + $0x1c0] ss:$8 sps:$4 sm:$0xff]  }
  0x11   :  { %580 = vmatprep.subr.bf16.mxu1 %v979_v18  ;;  %v1025_v49 = vld [vmem:[%s1443_s0 + $0xb4] ss:$8 sps:$4 sm:$0xff]   ;;  %v1051_v50 = vld [vmem:[%s1444_s1 + $0x4] ss:$20 sps:$4 sm:$0xff]   ;;  %v1054_v52 = vld [vmem:[%s1444_s1 + $0xc] ss:$20 sps:$4 sm:$0xff]  }
  0x12   :  { %v1027_v51 = vld [vmem:[%s1443_s0 + $0x1b4] ss:$8 sps:$4 sm:$0xff]   ;;  %551 = vmatprep.mubr.bf16.mxu0 %v1051_v50  ;;  %v1029_v53 = vld [vmem:[%s1443_s0 + $0xb0] ss:$8 sps:$4 sm:$0xff]   ;;  %604 = vmatprep.mubr.bf16.mxu1 %v1054_v52  ;;  %v1031_v55 = vld [vmem:[%s1443_s0 + $0xa4] ss:$8 sps:$4 sm:$0xff]  }
  0x13   :  { %528 = vmatpush1.bf16.msra.mxu0 %v981_v19  ;;  %v1030_v54 = vld [vmem:[%s1443_s0 + $0x1b0] ss:$8 sps:$4 sm:$0xff]   ;;  %v1033_v56 = vld [vmem:[%s1443_s0 + $0x1a4] ss:$8 sps:$4 sm:$0xff]   ;;  %v1035_v57 = vld [vmem:[%s1443_s0 + $0xa0] ss:$8 sps:$4 sm:$0xff]  }
  0x14   :  { %581 = vmatpush1.bf16.msra.mxu1 %v982_v20  ;;  %529 = vmatprep.subr.bf16.mxu0 %v983_v21  ;;  %v1036_v58 = vld [vmem:[%s1443_s0 + $0x1a0] ss:$8 sps:$4 sm:$0xff]   ;;  %v1037_v59 = vld [vmem:[%s1443_s0 + $0x94] ss:$8 sps:$4 sm:$0xff]   ;;  %v1041_v61 = vld [vmem:[%s1443_s0 + $0x90] ss:$8 sps:$4 sm:$0xff]  }
  0x15   :  { %582 = vmatprep.subr.bf16.mxu1 %v985_v22  ;;  %v1039_v60 = vld [vmem:[%s1443_s0 + $0x194] ss:$8 sps:$4 sm:$0xff]   ;;  %v1042_v62 = vld [vmem:[%s1443_s0 + $0x190] ss:$8 sps:$4 sm:$0xff]   ;;  %v1043_v63 = vld [vmem:[%s1443_s0 + $0x84] ss:$8 sps:$4 sm:$0xff]  }
  0x16   :  { %v1045_v0 = vld [vmem:[%s1443_s0 + $0x184] ss:$8 sps:$4 sm:$0xff]   ;;  %v1047_v2 = vld [vmem:[%s1443_s0 + $0x80] ss:$8 sps:$4 sm:$0xff]   ;;  %v1057_v4 = vld [vmem:[%s1443_s0 + $0x234] ss:$8 sps:$4 sm:$0xff]  }
  0x17   :  { %530 = vmatpush1.bf16.msra.mxu0 %v987_v23  ;;  %v1048_v3 = vld [vmem:[%s1443_s0 + $0x180] ss:$8 sps:$4 sm:$0xff]   ;;  %v1055_v7 = vld [vmem:[%s1443_s0 + $0x230] ss:$8 sps:$4 sm:$0xff]   ;;  %v1060_v8 = vld [vmem:[%s1443_s0 + $0x224] ss:$8 sps:$4 sm:$0xff]  }
  0x18   :  { %583 = vmatpush1.bf16.msra.mxu1 %v988_v24  ;;  %531 = vmatprep.subr.bf16.mxu0 %v989_v25  ;;  %v1049_v5 = vld [vmem:[%s1444_s1] ss:$20 sps:$4 sm:$0xff]   ;;  %v1052_v6 = vld [vmem:[%s1444_s1 + $0x8] ss:$20 sps:$4 sm:$0xff]   ;;  %v1066_v14 = vld [vmem:[%s1444_s1 + $0x30] ss:$20 sps:$4 sm:$0xff]  }
  0x19   :  { %584 = vmatprep.subr.bf16.mxu1 %v991_v26  ;;  %v1061_v9 = vld [vmem:[%s1444_s1 + $0x2c] ss:$20 sps:$4 sm:$0xff]   ;;  %v1063_v10 = vld [vmem:[%s1444_s1 + $0x34] ss:$20 sps:$4 sm:$0xff]   ;;  %v1067_v15 = vld [vmem:[%s1443_s0 + $0x210] ss:$8 sps:$4 sm:$0xff]  }
  0x1a   :  { %v1058_v11 = vld [vmem:[%s1443_s0 + $0x220] ss:$8 sps:$4 sm:$0xff]   ;;  %v1069_v12 = vld [vmem:[%s1443_s0 + $0x214] ss:$8 sps:$4 sm:$0xff]   ;;  %v1072_v16 = vld [vmem:[%s1443_s0 + $0x204] ss:$8 sps:$4 sm:$0xff]  }
  0x1b   :  { %532 = vmatpush1.bf16.msra.mxu0 %v993_v27  ;;  %v1065_v13 = vld [vmem:[%s1444_s1 + $0x28] ss:$20 sps:$4 sm:$0xff]   ;;  %v1073_v18 = vld [vmem:[%s1444_s1 + $0x10] ss:$20 sps:$4 sm:$0xff]   ;;  %v1074_v19 = vld [vmem:[%s1444_s1 + $0x38] ss:$20 sps:$4 sm:$0xff]  }
  0x1c   :  { %585 = vmatpush1.bf16.msra.mxu1 %v994_v28  ;;  %533 = vmatprep.subr.bf16.mxu0 %v995_v29  ;;  %v1070_v17 = vld [vmem:[%s1443_s0 + $0x200] ss:$8 sps:$4 sm:$0xff]  }
  0x1d   :  { %586 = vmatprep.subr.bf16.mxu1 %v997_v30 }
  0x1f   :  { %534 = vmatpush1.bf16.msra.mxu0 %v999_v31 }
  0x20   :  { %587 = vmatpush1.bf16.msra.mxu1 %v1000_v32  ;;  %535 = vmatprep.subr.bf16.mxu0 %v1001_v33 }
  0x21   :  { %588 = vmatprep.subr.bf16.mxu1 %v1003_v34 }
  0x23   :  { %536 = vmatpush2.bf16.msra.mxu0 %v1005_v35 }
  0x24   :  { %589 = vmatpush2.bf16.msra.mxu1 %v1006_v36  ;;  %537 = vmatprep.subr.bf16.mxu0 %v1007_v37 }
  0x25   :  { %590 = vmatprep.subr.bf16.mxu1 %v1009_v38 }
  0x27   :  { %538 = vmatpush2.bf16.msra.mxu0 %v1011_v39 }
  0x28   :  { %591 = vmatpush2.bf16.msra.mxu1 %v1012_v40  ;;  %539 = vmatprep.subr.bf16.mxu0 %v1013_v41 }
  0x29   :  { %592 = vmatprep.subr.bf16.mxu1 %v1015_v42 }
  0x2b   :  { %540 = vmatpush2.bf16.msra.mxu0 %v1017_v43 }
  0x2c   :  { %593 = vmatpush2.bf16.msra.mxu1 %v1018_v44  ;;  %541 = vmatprep.subr.bf16.mxu0 %v1019_v45 }
  0x2d   :  { %594 = vmatprep.subr.bf16.mxu1 %v1021_v46 }
  0x2f   :  { %542 = vmatpush2.bf16.msra.mxu0 %v1023_v47 }
  0x30   :  { %595 = vmatpush2.bf16.msra.mxu1 %v1024_v48  ;;  %543 = vmatprep.subr.bf16.mxu0 %v1025_v49 }
  0x31   :  { %596 = vmatprep.subr.bf16.mxu1 %v1027_v51 }
  0x33   :  { %544 = vmatpush2.bf16.msra.mxu0 %v1029_v53 }
  0x34   :  { %597 = vmatpush2.bf16.msra.mxu1 %v1030_v54  ;;  %545 = vmatprep.subr.bf16.mxu0 %v1031_v55 }
  0x35   :  { %598 = vmatprep.subr.bf16.mxu1 %v1033_v56 }
  0x37   :  { %546 = vmatpush2.bf16.msra.mxu0 %v1035_v57 }
  0x38   :  { %599 = vmatpush2.bf16.msra.mxu1 %v1036_v58  ;;  %547 = vmatprep.subr.bf16.mxu0 %v1037_v59 }
  0x39   :  { %600 = vmatprep.subr.bf16.mxu1 %v1039_v60 }
  0x3b   :  { %548 = vmatpush2.bf16.msra.mxu0 %v1041_v61 }
  0x3c   :  { %601 = vmatpush2.bf16.msra.mxu1 %v1042_v62  ;;  %549 = vmatprep.subr.bf16.mxu0 %v1043_v63 }
  0x3d   :  { %602 = vmatprep.subr.bf16.mxu1 %v1045_v0 }
  0x3f   :  { %550 = vmatpush2.bf16.msra.mxu0 %v1047_v2 }
  0x40   :  { %603 = vmatpush2.bf16.msra.mxu1 %v1048_v3  ;;  %633 = vmatprep.subr.bf16.mxu0 %v1057_v4 }
  0x41   :  { %942 = vmatprep.subr.bf16.mxu1 %v1057_v4 }
  0x42   :  { %552 = vmatmul.mubr.bf16.vlgmr.msra.gmra.mxu0 %v1049_v5 }
  0x43   :  { %605 = vmatmul.mubr.bf16.vlgmr.msra.gmra.mxu1 %v1052_v6  ;;  %634 = vmatpush1.bf16.msra.mxu0 %v1055_v7 }
  0x44   :  { %946 = vmatpush1.bf16.msra.mxu1 %v1055_v7  ;;  %635 = vmatprep.subr.bf16.mxu0 %v1060_v8 }
  0x45   :  { %943 = vmatprep.subr.bf16.mxu1 %v1060_v8  ;;  %561 = vmatprep.mubr.bf16.mxu0 %v1061_v9 }
  0x46   :  { %614 = vmatprep.mubr.bf16.mxu1 %v1063_v10 }
  0x47   :  { %636 = vmatpush1.bf16.msra.mxu0 %v1058_v11 }
  0x48   :  { %947 = vmatpush1.bf16.msra.mxu1 %v1058_v11  ;;  %637 = vmatprep.subr.bf16.mxu0 %v1069_v12 }
  0x49   :  { %944 = vmatprep.subr.bf16.mxu1 %v1069_v12 }
  0x4a   :  { %562 = vmatmul.mubr.bf16.gmra.mxu0 %v1065_v13 }
  0x4b   :  { %615 = vmatmul.mubr.bf16.gmra.mxu1 %v1066_v14  ;;  %638 = vmatpush1.bf16.msra.mxu0 %v1067_v15 }
  0x4c   :  { %948 = vmatpush1.bf16.msra.mxu1 %v1067_v15  ;;  %639 = vmatprep.subr.bf16.mxu0 %v1072_v16 }
  0x4d   :  { %945 = vmatprep.subr.bf16.mxu1 %v1072_v16  ;;  %657 = vmatprep.mubr.bf16.mxu0 %v1083_v1 }
  0x4e   :  { %667 = vmatprep.mubr.bf16.mxu1 %v1083_v1 }
  0x4f   :  { %640 = vmatpush1.bf16.msra.mxu0 %v1070_v17 }
  0x50   :  { %949 = vmatpush1.bf16.msra.mxu1 %v1070_v17 }
  0x52   :  { %932 = vmatmul.mubr.msk.bf16.vlgmr.msra.gmra.mxu0 %vm512_vm0, %v1073_v18 }
  0x53   :  { %933 = vmatmul.mubr.msk.bf16.vlgmr.msra.gmra.mxu1 %vm512_vm0, %v1074_v19 }
 0x102   :  { %v553_v20 = vpop.f32.mrf.mxu0 }
 0x103   :  { %v606_v21 = vpop.f32.mrf.mxu1 }
 0x104   :  { %v555_v22 = vpop.f32.mrf.mxu0  ;;  %v607_v35 = vadd.f32 %v606_v21, %v553_v20 }
 0x105   :  { %v608_v23 = vpop.f32.mrf.mxu1 }
 0x106   :  { %v557_v24 = vpop.f32.mrf.mxu0  ;;  %v609_v38 = vadd.f32 %v608_v23, %v555_v22 }
 0x107   :  { %v610_v25 = vpop.f32.mrf.mxu1 }
 0x108   :  { %v559_v1 = vpop.f32.mrf.mxu0  ;;  %v611_v47 = vadd.f32 %v610_v25, %v557_v24 }
 0x109   :  { %v612_v26 = vpop.f32.mrf.mxu1 }
 0x10a   :  { %v563_v27 = vpop.f32.mrf.mxu0  ;;  %v613_v48 = vadd.f32 %v612_v26, %v559_v1 }
 0x10b   :  { %v616_v28 = vpop.f32.mrf.mxu1 }
 0x10c   :  { %v565_v29 = vpop.f32.mrf.mxu0  ;;  %v617_v39 = vadd.f32 %v616_v28, %v563_v27 }
 0x10d   :  { %v618_v30 = vpop.f32.mrf.mxu1 }
 0x10e   :  { %v567_v31 = vpop.f32.mrf.mxu0  ;;  %v619_v40 = vadd.f32 %v618_v30, %v565_v29 }
 0x10f   :  { %v620_v32 = vpop.f32.mrf.mxu1 }
 0x110   :  { %v569_v33 = vpop.f32.mrf.mxu0  ;;  %v621_v51 = vadd.f32 %v620_v32, %v567_v31 }
 0x111   :  { %v622_v34 = vpop.f32.mrf.mxu1 }
 0x112   :  { %v659_v36 = vpop.f32.mrf.mxu0  ;;  %v623_v52 = vadd.f32 %v622_v34, %v569_v33 }
 0x113   :  { %v669_v37 = vpop.f32.mrf.mxu1  ;;  %v1359_v41 = vadd.f32 %v659_v36, %v607_v35 }
 0x114   :  { %v661_v42 = vpop.f32.mrf.mxu0  ;;  %v1361_v44 = vadd.f32 %v669_v37, %v617_v39  ;;  %v734_v39 = vld [vmem:[%s1445_s2] sm:$0xff] }
 0x115   :  { %v671_v43 = vpop.f32.mrf.mxu1  ;;  %v1363_v45 = vadd.f32 %v661_v42, %v609_v38  ;;  %v690_v58 = vmul.f32 %v1359_v41, %v1359_v41 }
 0x116   :  { %v1365_v46 = vadd.f32 %v671_v43, %v619_v40  ;;  %v663_v49 = vpop.f32.mrf.mxu0  ;;  %v694_v8 = vmul.f32 %v1361_v44, %v1361_v44  ;;  %v736_v43 = vld [vmem:[%s1445_s2 + $0x10] sm:$0xff] }
 0x117   :  { %v673_v50 = vpop.f32.mrf.mxu1  ;;  %v678_v54 = vadd.f32 %v1363_v45, %v1359_v41  ;;  %v1371_v55 = vadd.f32 %v663_v49, %v611_v47  ;;  %v691_v59 = vmul.f32 %v1363_v45, %v1363_v45 }
 0x118   :  { %v684_v53 = vadd.f32 %v1365_v46, %v1361_v44  ;;  %v665_v56 = vpop.f32.mrf.mxu0  ;;  %v1377_v60 = vadd.f32 %v673_v50, %v621_v51  ;;  %v695_v6 = vmul.f32 %v1365_v46, %v1365_v46  ;;  %v735_v50 = vld [vmem:[%s1445_s2 + $0x8] sm:$0xff] }
 0x119   :  { %v675_v57 = vpop.f32.mrf.mxu1  ;;  %v1379_v61 = vadd.f32 %v665_v56, %v613_v48  ;;  %679 = vadd.xlane.f32.xlu0 %v678_v54  ;;  %v698_v63 = vadd.f32 %v691_v59, %v690_v58  ;;  %v692_v3 = vmul.f32 %v1371_v55, %v1371_v55 }
 0x11a   :  { %v1381_v62 = vadd.f32 %v675_v57, %v623_v52  ;;  %685 = vadd.xlane.f32.xlu1 %v684_v53  ;;  %v696_v9 = vmul.f32 %v1377_v60, %v1377_v60  ;;  %v704_v10 = vadd.f32 %v695_v6, %v694_v8  ;;  %v737_v53 = vld [vmem:[%s1445_s2 + $0x18] sm:$0xff]  ;;  %v742_v57 = vld [vmem:[%s1446_s3] sm:$0xff] }
 0x11b   :  { %v693_v2 = vmul.f32 %v1379_v61, %v1379_v61  ;;  %v681_v4 = vadd.f32 %v1379_v61, %v1371_v55  ;;  %v745_v6 = vld [vmem:[%s1446_s3 + $0x18] sm:$0xff] }
 0x11c   :  { %v687_v0 = vadd.f32 %v1381_v62, %v1377_v60  ;;  %v697_v7 = vmul.f32 %v1381_v62, %v1381_v62 }
 0x11d   :  { %699 = vadd.xlane.f32.xlu0 %v698_v63  ;;  %v701_v5 = vadd.f32 %v693_v2, %v692_v3  ;;  %v744_v63 = vld [vmem:[%s1446_s3 + $0x10] sm:$0xff]  ;;  %v743_v3 = vld [vmem:[%s1446_s3 + $0x8] sm:$0xff] }
 0x11e   :  { %688 = vadd.xlane.f32.xlu1 %v687_v0  ;;  %v707_v11 = vadd.f32 %v697_v7, %v696_v9 }
 0x121   :  { %682 = vadd.xlane.f32.xlu0 %v681_v4 }
 0x122   :  { %702 = vadd.xlane.f32.xlu1 %v701_v5 }
 0x125   :  { %705 = vadd.xlane.f32.xlu0 %v704_v10 }
 0x126   :  { %708 = vadd.xlane.f32.xlu1 %v707_v11 }
 0x1a2   :  { %v680_v13 = vpop.xlane.xlu0 %679 }
 0x1a3   :  { %v686_v12 = vpop.xlane.xlu1 %685  ;;  %v710_v14 = vmul.f32 0.0061728396, %v680_v13 }
 0x1a4   :  { %v712_v22 = vmul.f32 0.0061728396, %v686_v12 }
 0x1a5   :  { %v718_v17 = vmul.f32 %v710_v14, %v710_v14 }
 0x1a6   :  { %v700_v15 = vpop.xlane.xlu0 %699  ;;  %v720_v29 = vmul.f32 %v712_v22, %v712_v22 }
 0x1a7   :  { %v689_v16 = vpop.xlane.xlu1 %688  ;;  %v714_v18 = vmul.f32 0.0061728396, %v700_v15 }
 0x1a8   :  { %v713_v25 = vmul.f32 0.0061728396, %v689_v16 }
 0x1a9   :  { %v722_v19 = vsub.f32 %v714_v18, %v718_v17 }
 0x1aa   :  { %v683_v20 = vpop.xlane.xlu0 %682  ;;  %v721_v33 = vmul.f32 %v713_v25, %v713_v25 }
 0x1ab   :  { %v703_v21 = vpop.xlane.xlu1 %702  ;;  %v726_v23 = vadd.f32 1e-05, %v722_v19  ;;  %v711_v24 = vmul.f32 0.0061728396, %v683_v20 }
 0x1ac   :  { %v715_v26 = vmul.f32 0.0061728396, %v703_v21 }
 0x1ad   :  { %1075 = vrsqrt.f32 %v726_v23  ;;  %v719_v1 = vmul.f32 %v711_v24, %v711_v24 }
 0x1ae   :  { %v706_v27 = vpop.xlane.xlu0 %705 }
 0x1af   :  { %v709_v28 = vpop.xlane.xlu1 %708  ;;  %v723_v30 = vsub.f32 %v715_v26, %v719_v1  ;;  %v716_v31 = vmul.f32 0.0061728396, %v706_v27 }
 0x1b0   :  { %v717_v32 = vmul.f32 0.0061728396, %v709_v28 }
 0x1b1   :  { %v724_v34 = vsub.f32 %v716_v31, %v720_v29  ;;  %v727_v35 = vadd.f32 1e-05, %v723_v30 }
 0x1b2   :  { %v725_v37 = vsub.f32 %v717_v32, %v721_v33 }
 0x1b3   :  { %v728_v36 = vadd.f32 1e-05, %v724_v34 }
 0x1b4   :  { %v729_v38 = vadd.f32 1e-05, %v725_v37 }
 0x1b5   :  { %1077 = vrsqrt.f32 %v728_v36 }
 0x1b6   :  { %1079 = vrsqrt.f32 %v727_v35 }
 0x1b7   :  { %1081 = vrsqrt.f32 %v729_v38 }
 0x1ba   :  { %v1076_v40 = vpop.eup %1075 }
 0x1bb   :  { %v738_v42 = vmul.f32 %v1076_v40, %v734_v39 }
 0x1bd   :  { %756 = vperm.xlu0 %951, %v738_v42   ;;  %v746_v56 = vmul.f32 %v738_v42, %v710_v14 }
 0x1bf   :  { %v750_v58 = vsub.f32 %v742_v57, %v746_v56 }
 0x1c2   :  { %v1078_v47 = vpop.eup %1077 }
 0x1c3   :  { %v740_v48 = vmul.f32 %v1078_v47, %v736_v43  ;;  %v1080_v49 = vpop.eup %1079 }
 0x1c4   :  { %v739_v51 = vmul.f32 %v1080_v49, %v735_v50  ;;  %v1082_v52 = vpop.eup %1081 }
 0x1c5   :  { %766 = vperm.xlu1 %952, %v740_v48   ;;  %v741_v54 = vmul.f32 %v1082_v52, %v737_v53  ;;  %v748_v59 = vmul.f32 %v740_v48, %v712_v22 }
 0x1c6   :  { %v747_v2 = vmul.f32 %v739_v51, %v711_v24 }
 0x1c7   :  { %v752_v0 = vsub.f32 %v744_v63, %v748_v59  ;;  %v749_v5 = vmul.f32 %v741_v54, %v713_v25 }
 0x1c8   :  { %v751_v4 = vsub.f32 %v743_v3, %v747_v2 }
 0x1c9   :  { %761 = vperm.xlu1 %952, %v739_v51   ;;  %v753_v7 = vsub.f32 %v745_v6, %v749_v5 }
 0x1cd   :  { %771 = vperm.xlu1 %952, %v741_v54  }
 0x1d1   :  { %784 = vperm.xlu1 %952, %v750_v58  }
 0x1d5   :  { %794 = vperm.xlu1 %952, %v752_v0  }
 0x1d9   :  { %789 = vperm.xlu1 %952, %v751_v4  }
 0x1dd   :  { %799 = vperm.xlu1 %952, %v753_v7  }
 0x238   :  { %v757_v10 = vpop.permute.xlu0 %756 }
 0x239   :  { %v774_v12 = vmul.f32 %v757_v10, %v1359_v41  ;;  %v775_v13 = vmul.f32 %v757_v10, %v1363_v45 }
 0x240   :  { %v767_v8 = vpop.permute.xlu1 %766 }
 0x241   :  { %v778_v17 = vmul.f32 %v767_v8, %v1361_v44  ;;  %v779_v18 = vmul.f32 %v767_v8, %v1365_v46 }
 0x244   :  { %v762_v9 = vpop.permute.xlu1 %761 }
 0x245   :  { %v776_v25 = vmul.f32 %v762_v9, %v1371_v55  ;;  %v777_v1 = vmul.f32 %v762_v9, %v1379_v61 }
 0x248   :  { %v772_v11 = vpop.permute.xlu1 %771 }
 0x249   :  { %v780_v28 = vmul.f32 %v772_v11, %v1377_v60  ;;  %v781_v29 = vmul.f32 %v772_v11, %v1381_v62 }
 0x24c   :  { %v785_v14 = vpop.permute.xlu1 %784 }
 0x24d   :  { %v802_v15 = vadd.f32 %v785_v14, %v774_v12  ;;  %v803_v16 = vadd.f32 %v785_v14, %v775_v13 }
 0x24f   :  { %v810_v19 = vmax.f32 %v802_v15, 0.0  ;;  %v811_v20 = vmax.f32 %v803_v16, 0.0 }
 0x250   :  { %v795_v21 = vpop.permute.xlu1 %794 }
 0x251   :  { %v938_v22 = vpack.c.bf16 %v811_v20, %v810_v19  ;;  %v806_v23 = vadd.f32 %v795_v21, %v778_v17  ;;  %v807_v24 = vadd.f32 %v795_v21, %v779_v18 }
 0x253   :  { %842 = vst [vmem:[%s1447_s4] sm:$0xff] %v938_v22  ;;  %v814_v41 = vmax.f32 %v806_v23, 0.0  ;;  %v815_v45 = vmax.f32 %v807_v24, 0.0 }
 0x254   :  { %v790_v26 = vpop.permute.xlu1 %789 }
 0x255   :  { %v940_v44 = vpack.c.bf16 %v815_v45, %v814_v41  ;;  %v804_v27 = vadd.f32 %v790_v26, %v776_v25  ;;  %v805_v46 = vadd.f32 %v790_v26, %v777_v1 }
 0x257   :  { %844 = vst [vmem:[%s1447_s4 + $0x10] sm:$0xff] %v940_v44  ;;  %v812_v55 = vmax.f32 %v804_v27, 0.0  ;;  %v813_v61 = vmax.f32 %v805_v46, 0.0 }
 0x258   :  { %v800_v30 = vpop.permute.xlu1 %799 }
 0x259   :  { %v939_v31 = vpack.c.bf16 %v813_v61, %v812_v55  ;;  %v808_v32 = vadd.f32 %v800_v30, %v780_v28  ;;  %v809_v33 = vadd.f32 %v800_v30, %v781_v29 }
 0x25b   :  { %843 = vst [vmem:[%s1447_s4 + $0x8] sm:$0xff] %v939_v31  ;;  %v816_v34 = vmax.f32 %v808_v32, 0.0  ;;  %v817_v35 = vmax.f32 %v809_v33, 0.0 }
 0x25d   :  { %v941_v36 = vpack.c.bf16 %v817_v35, %v816_v34 }
 0x25f   :  { %845 = vst [vmem:[%s1447_s4 + $0x18] sm:$0xff] %v941_v36 }

// kernel: _lambda_.8
= control target key start
LH: loop header
LB: loop body
LE: loop exit
PB: predicated region body
PF: predicated region fallthrough
CT: control target
= control target key end

     0   :  { %v1299_v1 = vmov 0   ;;  %vm613_vm0 = vcmask 261120   ;;  %vm1301_vm1 = vmmov 0   ;;  %s1707_s0 = inlined_call_operand.vmem [shape: bf16[288,640], index: 0, kind: input, shape index: {}]   ;;  %s1708_s1 = inlined_call_operand.vmem [shape: bf16[16,288], index: 1, kind: input, shape index: {}]   ;;  %s1709_s2 = inlined_call_operand.vmem [shape: f32[16,1], index: 2, kind: input, shape index: {}]   ;;  %s1710_s3 = inlined_call_operand.vmem [shape: f32[16,1], index: 3, kind: input, shape index: {}]   ;;  %s1711_s4 = inlined_call_operand.vmem [shape: bf16[16,640], index: 4, kind: output, shape index: {}]  }
   0x1   :  { %v1165_v0 = vld [vmem:[%s1707_s0 + $0x11c] ss:$20 sps:$4 sm:$0xff]   ;;  %692 = vmatprep.mubr.bf16.mxu1 %v1299_v1  ;;  %1163 = vset.pattern.permute.xlu0 %v1299_v1  ;;  %v1167_v2 = vld [vmem:[%s1707_s0 + $0x2ac] ss:$20 sps:$4 sm:$0xff]   ;;  %v1171_v5 = vld [vmem:[%s1707_s0 + $0xf4] ss:$20 sps:$4 sm:$0xff]  }
   0x2   :  { %1164 = vset.pattern.permute.xlu1 %v1299_v1  ;;  %617 = vmatprep.subr.bf16.mxu0 %v1165_v0  ;;  %v1169_v3 = vld [vmem:[%s1707_s0 + $0x118] ss:$20 sps:$4 sm:$0xff]   ;;  %v1170_v4 = vld [vmem:[%s1707_s0 + $0x2a8] ss:$20 sps:$4 sm:$0xff]   ;;  %v1175_v7 = vld [vmem:[%s1707_s0 + $0xf0] ss:$20 sps:$4 sm:$0xff]  }
   0x3   :  { %672 = vmatprep.subr.bf16.mxu1 %v1167_v2  ;;  %618 = vmatpush1.bf16.msra.mxu0 %v1169_v3  ;;  %v1173_v6 = vld [vmem:[%s1707_s0 + $0x284] ss:$20 sps:$4 sm:$0xff]   ;;  %v1176_v8 = vld [vmem:[%s1707_s0 + $0x280] ss:$20 sps:$4 sm:$0xff]   ;;  %v1182_v12 = vld [vmem:[%s1707_s0 + $0xc8] ss:$20 sps:$4 sm:$0xff]  }
   0x4   :  { %673 = vmatpush1.bf16.msra.mxu1 %v1170_v4  ;;  %619 = vmatprep.subr.bf16.mxu0 %v1171_v5  ;;  %v1177_v9 = vld [vmem:[%s1707_s0 + $0xcc] ss:$20 sps:$4 sm:$0xff]   ;;  %v1181_v11 = vld [vmem:[%s1707_s0 + $0x124] ss:$20 sps:$4 sm:$0xff]   ;;  %v1369_v13 = vld [vmem:[%s1708_s1 + $0x8] ss:$12 sps:$4 sm:$0xff]  }
   0x5   :  { %674 = vmatprep.subr.bf16.mxu1 %v1173_v6  ;;  %v1179_v10 = vld [vmem:[%s1707_s0 + $0x120] ss:$20 sps:$4 sm:$0xff]   ;;  %v1184_v14 = vld [vmem:[%s1707_s0 + $0xa4] ss:$20 sps:$4 sm:$0xff]   ;;  %v1188_v16 = vld [vmem:[%s1707_s0 + $0xfc] ss:$20 sps:$4 sm:$0xff]  }
   0x6   :  { %v1186_v15 = vld [vmem:[%s1707_s0 + $0xf8] ss:$20 sps:$4 sm:$0xff]   ;;  %v1189_v17 = vld [vmem:[%s1707_s0 + $0xa0] ss:$20 sps:$4 sm:$0xff]   ;;  %v1190_v18 = vld [vmem:[%s1707_s0 + $0x7c] ss:$20 sps:$4 sm:$0xff]  }
   0x7   :  { %620 = vmatpush1.bf16.msra.mxu0 %v1175_v7  ;;  %v1194_v19 = vld [vmem:[%s1707_s0 + $0xd4] ss:$20 sps:$4 sm:$0xff]   ;;  %v1192_v20 = vld [vmem:[%s1707_s0 + $0xd0] ss:$20 sps:$4 sm:$0xff]   ;;  %v1195_v21 = vld [vmem:[%s1707_s0 + $0x78] ss:$20 sps:$4 sm:$0xff]  }
   0x8   :  { %675 = vmatpush1.bf16.msra.mxu1 %v1176_v8  ;;  %621 = vmatprep.subr.bf16.mxu0 %v1177_v9  ;;  %v1196_v22 = vld [vmem:[%s1707_s0 + $0x54] ss:$20 sps:$4 sm:$0xff]   ;;  %v1200_v23 = vld [vmem:[%s1707_s0 + $0xac] ss:$20 sps:$4 sm:$0xff]   ;;  %v1201_v25 = vld [vmem:[%s1707_s0 + $0x50] ss:$20 sps:$4 sm:$0xff]  }
   0x9   :  { %703 = vmatprep.subr.bf16.mxu1 %v1181_v11  ;;  %v1198_v24 = vld [vmem:[%s1707_s0 + $0xa8] ss:$20 sps:$4 sm:$0xff]   ;;  %v1202_v26 = vld [vmem:[%s1707_s0 + $0x2c] ss:$20 sps:$4 sm:$0xff]   ;;  %v1206_v27 = vld [vmem:[%s1707_s0 + $0x84] ss:$20 sps:$4 sm:$0xff]  }
   0xa   :  { %v1204_v28 = vld [vmem:[%s1707_s0 + $0x80] ss:$20 sps:$4 sm:$0xff]   ;;  %v1207_v29 = vld [vmem:[%s1707_s0 + $0x28] ss:$20 sps:$4 sm:$0xff]   ;;  %v1208_v30 = vld [vmem:[%s1707_s0 + $0x4] ss:$20 sps:$4 sm:$0xff]  }
   0xb   :  { %1112 = vmatmul.mubr.msk.bf16.vlgmr.msra.gmra.mxu1 %vm613_vm0, %v1369_v13  ;;  %622 = vmatpush1.bf16.msra.mxu0 %v1182_v12  ;;  %v1212_v31 = vld [vmem:[%s1707_s0 + $0x5c] ss:$20 sps:$4 sm:$0xff]   ;;  %v1210_v32 = vld [vmem:[%s1707_s0 + $0x58] ss:$20 sps:$4 sm:$0xff]   ;;  %v1213_v33 = vld [vmem:[%s1707_s0] ss:$20 sps:$4 sm:$0xff]  }
   0xc   :  { %704 = vmatpush1.bf16.msra.mxu1 %v1179_v10  ;;  %623 = vmatprep.subr.bf16.mxu0 %v1184_v14  ;;  %v1214_v34 = vld [vmem:[%s1707_s0 + $0x25c] ss:$20 sps:$4 sm:$0xff]   ;;  %v1218_v35 = vld [vmem:[%s1707_s0 + $0x34] ss:$20 sps:$4 sm:$0xff]   ;;  %v1219_v37 = vld [vmem:[%s1707_s0 + $0x258] ss:$20 sps:$4 sm:$0xff]  }
   0xd   :  { %705 = vmatprep.subr.bf16.mxu1 %v1188_v16  ;;  %v1216_v36 = vld [vmem:[%s1707_s0 + $0x30] ss:$20 sps:$4 sm:$0xff]   ;;  %v1220_v38 = vld [vmem:[%s1707_s0 + $0x234] ss:$20 sps:$4 sm:$0xff]   ;;  %v1224_v39 = vld [vmem:[%s1707_s0 + $0xc] ss:$20 sps:$4 sm:$0xff]  }
   0xe   :  { %v1222_v40 = vld [vmem:[%s1707_s0 + $0x8] ss:$20 sps:$4 sm:$0xff]   ;;  %v1225_v41 = vld [vmem:[%s1707_s0 + $0x230] ss:$20 sps:$4 sm:$0xff]   ;;  %v1226_v42 = vld [vmem:[%s1707_s0 + $0x20c] ss:$20 sps:$4 sm:$0xff]  }
   0xf   :  { %624 = vmatpush1.bf16.msra.mxu0 %v1189_v17  ;;  %v1230_v43 = vld [vmem:[%s1707_s0 + $0x264] ss:$20 sps:$4 sm:$0xff]   ;;  %v1228_v44 = vld [vmem:[%s1707_s0 + $0x260] ss:$20 sps:$4 sm:$0xff]   ;;  %v1231_v45 = vld [vmem:[%s1707_s0 + $0x208] ss:$20 sps:$4 sm:$0xff]  }
  0x10   :  { %706 = vmatpush1.bf16.msra.mxu1 %v1186_v15  ;;  %625 = vmatprep.subr.bf16.mxu0 %v1190_v18  ;;  %v1232_v46 = vld [vmem:[%s1707_s0 + $0x1e4] ss:$20 sps:$4 sm:$0xff]   ;;  %v1236_v47 = vld [vmem:[%s1707_s0 + $0x23c] ss:$20 sps:$4 sm:$0xff]   ;;  %v1237_v49 = vld [vmem:[%s1707_s0 + $0x1e0] ss:$20 sps:$4 sm:$0xff]  }
  0x11   :  { %707 = vmatprep.subr.bf16.mxu1 %v1194_v19  ;;  %v1234_v48 = vld [vmem:[%s1707_s0 + $0x238] ss:$20 sps:$4 sm:$0xff]   ;;  %v1238_v50 = vld [vmem:[%s1707_s0 + $0x1bc] ss:$20 sps:$4 sm:$0xff]   ;;  %v1242_v52 = vld [vmem:[%s1707_s0 + $0x214] ss:$20 sps:$4 sm:$0xff]  }
  0x12   :  { %v1262_v51 = vld [vmem:[%s1708_s1 + $0x4] ss:$12 sps:$4 sm:$0xff]   ;;  %v1243_v54 = vld [vmem:[%s1707_s0 + $0x1b8] ss:$20 sps:$4 sm:$0xff]   ;;  %v1244_v55 = vld [vmem:[%s1707_s0 + $0x194] ss:$20 sps:$4 sm:$0xff]  }
  0x13   :  { %626 = vmatpush1.bf16.msra.mxu0 %v1195_v21  ;;  %649 = vmatprep.mubr.bf16.mxu0 %v1262_v51  ;;  %v1240_v53 = vld [vmem:[%s1707_s0 + $0x210] ss:$20 sps:$4 sm:$0xff]   ;;  %v1248_v56 = vld [vmem:[%s1707_s0 + $0x1ec] ss:$20 sps:$4 sm:$0xff]   ;;  %v1246_v57 = vld [vmem:[%s1707_s0 + $0x1e8] ss:$20 sps:$4 sm:$0xff]  }
  0x14   :  { %708 = vmatpush1.bf16.msra.mxu1 %v1192_v20  ;;  %627 = vmatprep.subr.bf16.mxu0 %v1196_v22  ;;  %v1249_v58 = vld [vmem:[%s1707_s0 + $0x190] ss:$20 sps:$4 sm:$0xff]   ;;  %v1250_v59 = vld [vmem:[%s1707_s0 + $0x16c] ss:$20 sps:$4 sm:$0xff]   ;;  %v1255_v62 = vld [vmem:[%s1707_s0 + $0x168] ss:$20 sps:$4 sm:$0xff]  }
  0x15   :  { %709 = vmatprep.subr.bf16.mxu1 %v1200_v23  ;;  %735 = vmatprep.mubr.bf16.mxu1 %v1262_v51  ;;  %v1254_v60 = vld [vmem:[%s1707_s0 + $0x1c4] ss:$20 sps:$4 sm:$0xff]   ;;  %v1252_v61 = vld [vmem:[%s1707_s0 + $0x1c0] ss:$20 sps:$4 sm:$0xff]   ;;  %v1260_v0 = vld [vmem:[%s1707_s0 + $0x19c] ss:$20 sps:$4 sm:$0xff]  }
  0x16   :  { %v1256_v63 = vld [vmem:[%s1707_s0 + $0x144] ss:$20 sps:$4 sm:$0xff]   ;;  %v1261_v3 = vld [vmem:[%s1707_s0 + $0x140] ss:$20 sps:$4 sm:$0xff]   ;;  %v1268_v6 = vld [vmem:[%s1707_s0 + $0x268] ss:$20 sps:$4 sm:$0xff]  }
  0x17   :  { %628 = vmatpush1.bf16.msra.mxu0 %v1201_v25  ;;  %v1258_v2 = vld [vmem:[%s1707_s0 + $0x198] ss:$20 sps:$4 sm:$0xff]   ;;  %v1267_v4 = vld [vmem:[%s1707_s0 + $0x174] ss:$20 sps:$4 sm:$0xff]   ;;  %v1265_v7 = vld [vmem:[%s1707_s0 + $0x170] ss:$20 sps:$4 sm:$0xff]  }
  0x18   :  { %710 = vmatpush1.bf16.msra.mxu1 %v1198_v24  ;;  %629 = vmatprep.subr.bf16.mxu0 %v1202_v26  ;;  %v1538_v5 = vld [vmem:[%s1708_s1] ss:$12 sps:$4 sm:$0xff]   ;;  %v1269_v8 = vld [vmem:[%s1707_s0 + $0x128] ss:$20 sps:$4 sm:$0xff]   ;;  %v1275_v16 = vld [vmem:[%s1707_s0 + $0x2b0] ss:$20 sps:$4 sm:$0xff]  }
  0x19   :  { %711 = vmatprep.subr.bf16.mxu1 %v1206_v27  ;;  %v1272_v9 = vld [vmem:[%s1707_s0 + $0x14c] ss:$20 sps:$4 sm:$0xff]   ;;  %v1270_v11 = vld [vmem:[%s1707_s0 + $0x148] ss:$20 sps:$4 sm:$0xff]   ;;  %v1283_v19 = vld [vmem:[%s1707_s0 + $0x1f0] ss:$20 sps:$4 sm:$0xff]  }
  0x1a   :  { %v1273_v10 = vld [vmem:[%s1707_s0 + $0x240] ss:$20 sps:$4 sm:$0xff]   ;;  %v1278_v15 = vld [vmem:[%s1707_s0 + $0x218] ss:$20 sps:$4 sm:$0xff]   ;;  %v1280_v20 = vld [vmem:[%s1707_s0 + $0x288] ss:$20 sps:$4 sm:$0xff]  }
  0x1b   :  { %630 = vmatpush1.bf16.msra.mxu0 %v1207_v29  ;;  %v1274_v12 = vld [vmem:[%s1707_s0 + $0x100] ss:$20 sps:$4 sm:$0xff]   ;;  %v1279_v17 = vld [vmem:[%s1707_s0 + $0xd8] ss:$20 sps:$4 sm:$0xff]   ;;  %v1284_v21 = vld [vmem:[%s1707_s0 + $0xb0] ss:$20 sps:$4 sm:$0xff]  }
  0x1c   :  { %712 = vmatpush1.bf16.msra.mxu1 %v1204_v28  ;;  %631 = vmatprep.subr.bf16.mxu0 %v1208_v30  ;;  %v1277_v14 = vld [vmem:[%s1707_s0 + $0x2b4] ss:$20 sps:$4 sm:$0xff]   ;;  %v1282_v18 = vld [vmem:[%s1707_s0 + $0x28c] ss:$20 sps:$4 sm:$0xff]   ;;  %v1300_v26 = vmov 0.0  }
  0x1d   :  { %713 = vmatprep.subr.bf16.mxu1 %v1212_v31  ;;  %v1285_v22 = vld [vmem:[%s1707_s0 + $0x1c8] ss:$20 sps:$4 sm:$0xff]   ;;  %v1289_v24 = vld [vmem:[%s1707_s0 + $0x2b8] ss:$20 sps:$4 sm:$0xff]   ;;  %v1287_v25 = vld [vmem:[%s1707_s0 + $0x1a0] ss:$20 sps:$4 sm:$0xff]  }
  0x1e   :  { %v1286_v23 = vld [vmem:[%s1707_s0 + $0x88] ss:$20 sps:$4 sm:$0xff]   ;;  %v1292_v27 = vld [vmem:[%s1707_s0 + $0x290] ss:$20 sps:$4 sm:$0xff]   ;;  %v1290_v28 = vld [vmem:[%s1707_s0 + $0x178] ss:$20 sps:$4 sm:$0xff]  }
  0x1f   :  { %632 = vmatpush1.bf16.msra.mxu0 %v1213_v33  ;;  %v1291_v29 = vld [vmem:[%s1707_s0 + $0x38] ss:$20 sps:$4 sm:$0xff]   ;;  %v1293_v30 = vld [vmem:[%s1707_s0 + $0x150] ss:$20 sps:$4 sm:$0xff]  }
  0x20   :  { %714 = vmatpush1.bf16.msra.mxu1 %v1210_v32  ;;  %633 = vmatprep.subr.bf16.mxu0 %v1214_v34  ;;  %v1294_v31 = vld [vmem:[%s1707_s0 + $0x10] ss:$20 sps:$4 sm:$0xff]  }
  0x21   :  { %715 = vmatprep.subr.bf16.mxu1 %v1218_v35 }
  0x23   :  { %634 = vmatpush2.bf16.msra.mxu0 %v1219_v37 }
  0x24   :  { %716 = vmatpush1.bf16.msra.mxu1 %v1216_v36  ;;  %635 = vmatprep.subr.bf16.mxu0 %v1220_v38 }
  0x25   :  { %717 = vmatprep.subr.bf16.mxu1 %v1224_v39 }
  0x27   :  { %636 = vmatpush2.bf16.msra.mxu0 %v1225_v41 }
  0x28   :  { %718 = vmatpush1.bf16.msra.mxu1 %v1222_v40  ;;  %637 = vmatprep.subr.bf16.mxu0 %v1226_v42 }
  0x29   :  { %719 = vmatprep.subr.bf16.mxu1 %v1230_v43 }
  0x2b   :  { %638 = vmatpush2.bf16.msra.mxu0 %v1231_v45 }
  0x2c   :  { %720 = vmatpush2.bf16.msra.mxu1 %v1228_v44  ;;  %639 = vmatprep.subr.bf16.mxu0 %v1232_v46 }
  0x2d   :  { %721 = vmatprep.subr.bf16.mxu1 %v1236_v47 }
  0x2f   :  { %640 = vmatpush2.bf16.msra.mxu0 %v1237_v49 }
  0x30   :  { %722 = vmatpush2.bf16.msra.mxu1 %v1234_v48  ;;  %641 = vmatprep.subr.bf16.mxu0 %v1238_v50 }
  0x31   :  { %723 = vmatprep.subr.bf16.mxu1 %v1242_v52 }
  0x33   :  { %642 = vmatpush2.bf16.msra.mxu0 %v1243_v54 }
  0x34   :  { %724 = vmatpush2.bf16.msra.mxu1 %v1240_v53  ;;  %643 = vmatprep.subr.bf16.mxu0 %v1244_v55 }
  0x35   :  { %725 = vmatprep.subr.bf16.mxu1 %v1248_v56 }
  0x37   :  { %644 = vmatpush2.bf16.msra.mxu0 %v1249_v58 }
  0x38   :  { %726 = vmatpush2.bf16.msra.mxu1 %v1246_v57  ;;  %645 = vmatprep.subr.bf16.mxu0 %v1250_v59 }
  0x39   :  { %727 = vmatprep.subr.bf16.mxu1 %v1254_v60 }
  0x3b   :  { %646 = vmatpush2.bf16.msra.mxu0 %v1255_v62 }
  0x3c   :  { %728 = vmatpush2.bf16.msra.mxu1 %v1252_v61  ;;  %647 = vmatprep.subr.bf16.mxu0 %v1256_v63 }
  0x3d   :  { %729 = vmatprep.subr.bf16.mxu1 %v1260_v0 }
  0x3f   :  { %648 = vmatpush2.bf16.msra.mxu0 %v1261_v3 }
  0x40   :  { %730 = vmatpush2.bf16.msra.mxu1 %v1258_v2  ;;  %1127 = vmatprep.subr.bf16.mxu0 %v1268_v6 }
  0x41   :  { %731 = vmatprep.subr.bf16.mxu1 %v1267_v4 }
  0x42   :  { %650 = vmatmul.mubr.bf16.vlgmr.msra.gmra.mxu0 %v1538_v5 }
  0x43   :  { %1128 = vmatpush3.bf16.msra.mxu0 %v1269_v8  ;;  %821 = vmatprep.mubr.bf16.mxu0 %v1262_v51 }
  0x44   :  { %732 = vmatpush2.bf16.msra.mxu1 %v1265_v7  ;;  %1129 = vmatprep.subr.bf16.mxu0 %v1273_v10 }
  0x45   :  { %733 = vmatprep.subr.bf16.mxu1 %v1272_v9 }
  0x47   :  { %1130 = vmatpush3.bf16.msra.mxu0 %v1274_v12 }
  0x48   :  { %734 = vmatpush2.bf16.msra.mxu1 %v1270_v11  ;;  %1131 = vmatprep.subr.bf16.mxu0 %v1278_v15 }
  0x49   :  { %758 = vmatprep.subr.bf16.mxu1 %v1277_v14 }
  0x4b   :  { %736 = vmatmul.mubr.bf16.vlgmr.msra.gmra.mxu1 %v1538_v5  ;;  %1132 = vmatpush3.bf16.msra.mxu0 %v1279_v17 }
  0x4c   :  { %759 = vmatpush1.bf16.msra.mxu1 %v1275_v16  ;;  %1133 = vmatprep.subr.bf16.mxu0 %v1283_v19 }
  0x4d   :  { %760 = vmatprep.subr.bf16.mxu1 %v1282_v18  ;;  %778 = vmatprep.mubr.bf16.mxu1 %v1299_v1  ;;  %v1288_v1 = vld [vmem:[%s1707_s0 + $0x60] ss:$20 sps:$4 sm:$0xff]  }
  0x4f   :  { %1134 = vmatpush3.bf16.msra.mxu0 %v1284_v21 }
  0x50   :  { %761 = vmatpush1.bf16.msra.mxu1 %v1280_v20  ;;  %1135 = vmatprep.subr.bf16.mxu0 %v1285_v22 }
  0x51   :  { %1152 = vmatprep.subr.bf16.mxu1 %v1300_v26 }
  0x53   :  { %1113 = vmatmul.mubr.msk.bf16.vlgmr.msra.gmra.mxu1 %vm613_vm0, %v1369_v13  ;;  %1136 = vmatpush3.bf16.msra.mxu0 %v1286_v23 }
  0x54   :  { %1153 = vmatpush3.bf16.msra.mxu1 %v1289_v24  ;;  %1137 = vmatprep.subr.bf16.mxu0 %v1287_v25 }
  0x55   :  { %1154 = vmatprep.subr.bf16.mxu1 %v1300_v26  ;;  %1156 = vmatprep.mubr.msk.bf16.mxu1 %vm1301_vm1, %v1300_v26 }
  0x57   :  { %1138 = vmatpush3.bf16.msra.mxu0 %v1288_v1 }
  0x58   :  { %1155 = vmatpush3.bf16.msra.mxu1 %v1292_v27  ;;  %1139 = vmatprep.subr.bf16.mxu0 %v1290_v28 }
  0x5b   :  { %1157 = vmatmul.mubr.msk.bf16.vlgmr.msra.gmra.mxu1 %vm613_vm0, %v1369_v13  ;;  %1140 = vmatpush3.bf16.msra.mxu0 %v1291_v29 }
  0x5c   :  { %1141 = vmatprep.subr.bf16.mxu0 %v1293_v30 }
  0x5f   :  { %1142 = vmatpush3.bf16.msra.mxu0 %v1294_v31 }
  0x62   :  { %822 = vmatmul.mubr.bf16.vlgmr.msra.gmra.mxu0 %v1538_v5 }
  0xcb   :  { %v694_v32 = vpop.f32.mrf.mxu1 }
  0xcd   :  { %v696_v33 = vpop.f32.mrf.mxu1 }
  0xcf   :  { %v698_v34 = vpop.f32.mrf.mxu1 }
  0xd1   :  { %v700_v35 = vpop.f32.mrf.mxu1 }
 0x102   :  { %v651_v39 = vpop.f32.mrf.mxu0 }
 0x103   :  { %v1625_v48 = vadd.f32 %v694_v32, %v651_v39 }
 0x104   :  { %v653_v13 = vpop.f32.mrf.mxu0 }
 0x105   :  { %v1623_v46 = vadd.f32 %v696_v33, %v653_v13  ;;  %v883_v55 = vmul.f32 %v1625_v48, %v1625_v48 }
 0x106   :  { %v655_v44 = vpop.f32.mrf.mxu0 }
 0x107   :  { %v884_v52 = vmul.f32 %v1623_v46, %v1623_v46  ;;  %v871_v59 = vadd.f32 %v1623_v46, %v1625_v48  ;;  %v1641_v60 = vadd.f32 %v698_v34, %v655_v44 }
 0x108   :  { %v657_v49 = vpop.f32.mrf.mxu0 }
 0x109   :  { %v1631_v54 = vadd.f32 %v700_v35, %v657_v49  ;;  %v893_v63 = vadd.f32 %v884_v52, %v883_v55  ;;  %v888_v7 = vmul.f32 %v1641_v60, %v1641_v60 }
 0x10b   :  { %v737_v36 = vpop.f32.mrf.mxu1  ;;  %v889_v0 = vmul.f32 %v1631_v54, %v1631_v54  ;;  %v877_v8 = vadd.f32 %v1631_v54, %v1641_v60 }
 0x10d   :  { %v739_v37 = vpop.f32.mrf.mxu1  ;;  %v899_v12 = vadd.f32 %v889_v0, %v888_v7 }
 0x10f   :  { %v741_v38 = vpop.f32.mrf.mxu1 }
 0x111   :  { %v743_v40 = vpop.f32.mrf.mxu1 }
 0x113   :  { %v780_v41 = vpop.f32.mrf.mxu1 }
 0x114   :  { %v1627_v50 = vadd.f32 %v780_v41, %v737_v36 }
 0x115   :  { %v782_v42 = vpop.f32.mrf.mxu1 }
 0x116   :  { %v885_v56 = vmul.f32 %v1627_v50, %v1627_v50  ;;  %v1637_v57 = vadd.f32 %v782_v42, %v739_v37  ;;  %v872_v2 = vadd.f32 %v871_v59, %v1627_v50 }
 0x117   :  { %v784_v43 = vpop.f32.mrf.mxu1 }
 0x118   :  { %v1643_v61 = vadd.f32 %v784_v43, %v741_v38  ;;  %v886_v5 = vmul.f32 %v1637_v57, %v1637_v57  ;;  %v894_v6 = vadd.f32 %v893_v63, %v885_v56  ;;  %v873_v16 = vadd.f32 %v872_v2, %v1637_v57  ;;  %v917_v43 = vld [vmem:[%s1709_s2] sm:$0xff] }
 0x119   :  { %v786_v45 = vpop.f32.mrf.mxu1 }
 0x11a   :  { %v1648_v3 = vadd.f32 %v786_v45, %v743_v40  ;;  %v890_v9 = vmul.f32 %v1643_v61, %v1643_v61  ;;  %v878_v14 = vadd.f32 %v877_v8, %v1643_v61  ;;  %v895_v19 = vadd.f32 %v894_v6, %v886_v5 }
 0x11b   :  { %v864_v47 = vpop.f32.mrf.mxu1 }
 0x11c   :  { %v891_v17 = vmul.f32 %v1648_v3, %v1648_v3  ;;  %v900_v23 = vadd.f32 %v899_v12, %v890_v9  ;;  %v879_v26 = vadd.f32 %v878_v14, %v1648_v3 }
 0x11d   :  { %v1158_v51 = vpop.f32.mrf.mxu1 }
 0x11e   :  { %v901_v28 = vadd.f32 %v900_v23, %v891_v17 }
 0x11f   :  { %v867_v53 = vpop.f32.mrf.mxu1 }
 0x121   :  { %v1159_v58 = vpop.f32.mrf.mxu1 }
 0x122   :  { %v1143_v62 = vpop.f32.mrf.mxu0  ;;  %v922_v58 = vld [vmem:[%s1710_s3 + $0x8] sm:$0xff] }
 0x124   :  { %v1144_v4 = vpop.f32.mrf.mxu0 }
 0x125   :  { %v1145_v10 = vadd.f32 %v1144_v4, %v1143_v62 }
 0x126   :  { %v1146_v11 = vpop.f32.mrf.mxu0 }
 0x127   :  { %v865_v15 = vadd.f32 %v1145_v10, %v864_v47  ;;  %v918_v47 = vld [vmem:[%s1709_s2 + $0x8] sm:$0xff] }
 0x128   :  { %v1147_v18 = vpop.f32.mrf.mxu0 }
 0x129   :  { %v1148_v20 = vadd.f32 %v1147_v18, %v1146_v11  ;;  %v874_v21 = vadd.f32 %v873_v16, %v865_v15  ;;  %v887_v22 = vmul.f32 %v865_v15, %v865_v15 }
 0x12b   :  { %v1662_v24 = vadd.f32 %v1148_v20, %v867_v53  ;;  %875 = vadd.xlane.f32.xlu0 %v874_v21  ;;  %v896_v25 = vadd.f32 %v895_v19, %v887_v22  ;;  %v921_v53 = vld [vmem:[%s1710_s3] sm:$0xff] }
 0x12d   :  { %897 = vadd.xlane.f32.xlu1 %v896_v25  ;;  %v880_v1 = vadd.f32 %v879_v26, %v1662_v24  ;;  %v892_v27 = vmul.f32 %v1662_v24, %v1662_v24 }
 0x12f   :  { %881 = vadd.xlane.f32.xlu0 %v880_v1  ;;  %v902_v29 = vadd.f32 %v901_v28, %v892_v27 }
 0x131   :  { %903 = vadd.xlane.f32.xlu1 %v902_v29 }
 0x1b4   :  { %v876_v30 = vpop.xlane.xlu0 %875 }
 0x1b5   :  { %v905_v31 = vmul.f32 0.0017301039, %v876_v30 }
 0x1b6   :  { %v898_v32 = vpop.xlane.xlu1 %897 }
 0x1b7   :  { %v909_v33 = vmul.f32 %v905_v31, %v905_v31  ;;  %v907_v34 = vmul.f32 0.0017301039, %v898_v32 }
 0x1b8   :  { %v882_v35 = vpop.xlane.xlu0 %881 }
 0x1b9   :  { %v911_v36 = vsub.f32 %v907_v34, %v909_v33  ;;  %v906_v37 = vmul.f32 0.0017301039, %v882_v35 }
 0x1ba   :  { %v904_v38 = vpop.xlane.xlu1 %903 }
 0x1bb   :  { %v913_v39 = vadd.f32 1e-05, %v911_v36  ;;  %v910_v40 = vmul.f32 %v906_v37, %v906_v37  ;;  %v908_v41 = vmul.f32 0.0017301039, %v904_v38 }
 0x1bd   :  { %1295 = vrsqrt.f32 %v913_v39  ;;  %v912_v13 = vsub.f32 %v908_v41, %v910_v40 }
 0x1bf   :  { %v914_v42 = vadd.f32 1e-05, %v912_v13 }
 0x1c1   :  { %1297 = vrsqrt.f32 %v914_v42 }
 0x1ca   :  { %v1296_v44 = vpop.eup %1295 }
 0x1cb   :  { %v919_v45 = vmul.f32 %v1296_v44, %v917_v43 }
 0x1cd   :  { %929 = vperm.xlu0 %1163, %v919_v45   ;;  %v923_v52 = vmul.f32 %v919_v45, %v905_v31 }
 0x1ce   :  { %v1298_v49 = vpop.eup %1297 }
 0x1cf   :  { %v920_v51 = vmul.f32 %v1298_v49, %v918_v47  ;;  %v925_v55 = vsub.f32 %v921_v53, %v923_v52 }
 0x1d1   :  { %934 = vperm.xlu1 %1164, %v920_v51   ;;  %v924_v56 = vmul.f32 %v920_v51, %v906_v37 }
 0x1d3   :  { %v926_v59 = vsub.f32 %v922_v58, %v924_v56 }
 0x1d5   :  { %949 = vperm.xlu1 %1164, %v925_v55  }
 0x1d9   :  { %954 = vperm.xlu1 %1164, %v926_v59  }
 0x248   :  { %v930_v62 = vpop.permute.xlu0 %929 }
 0x249   :  { %v937_v0 = vmul.f32 %v930_v62, %v1625_v48  ;;  %v938_v2 = vmul.f32 %v930_v62, %v1623_v46  ;;  %v939_v4 = vmul.f32 %v930_v62, %v1627_v50  ;;  %v940_v5 = vmul.f32 %v930_v62, %v1637_v57 }
 0x24a   :  { %v941_v6 = vmul.f32 %v930_v62, %v865_v15 }
 0x24c   :  { %v935_v63 = vpop.permute.xlu1 %934 }
 0x24d   :  { %v942_v14 = vmul.f32 %v935_v63, %v1641_v60  ;;  %v943_v16 = vmul.f32 %v935_v63, %v1631_v54  ;;  %v944_v50 = vmul.f32 %v935_v63, %v1643_v61  ;;  %v945_v57 = vmul.f32 %v935_v63, %v1648_v3 }
 0x24e   :  { %v946_v15 = vmul.f32 %v935_v63, %v1662_v24 }
 0x250   :  { %v950_v7 = vpop.permute.xlu1 %949 }
 0x251   :  { %v957_v8 = vadd.f32 %v950_v7, %v937_v0  ;;  %v958_v9 = vadd.f32 %v950_v7, %v938_v2  ;;  %v959_v10 = vadd.f32 %v950_v7, %v939_v4  ;;  %v960_v11 = vadd.f32 %v950_v7, %v940_v5 }
 0x252   :  { %v961_v12 = vadd.f32 %v950_v7, %v941_v6 }
 0x253   :  { %v967_v17 = vmax.f32 %v957_v8, 0.0  ;;  %v968_v18 = vmax.f32 %v958_v9, 0.0  ;;  %v969_v48 = vmax.f32 %v959_v10, 0.0  ;;  %v970_v19 = vmax.f32 %v960_v11, 0.0 }
 0x254   :  { %v971_v46 = vmax.f32 %v961_v12, 0.0  ;;  %v955_v20 = vpop.permute.xlu1 %954 }
 0x255   :  { %v1121_v21 = vpack.c.bf16 %v968_v18, %v967_v17  ;;  %v1122_v22 = vpack.c.bf16 %v970_v19, %v969_v48  ;;  %v962_v23 = vadd.f32 %v955_v20, %v942_v14  ;;  %v963_v25 = vadd.f32 %v955_v20, %v943_v16 }
 0x256   :  { %v1123_v26 = vpack.c.bf16 %v971_v46, %v971_v46  ;;  %v964_v60 = vadd.f32 %v955_v20, %v944_v50  ;;  %v965_v1 = vadd.f32 %v955_v20, %v945_v57  ;;  %v966_v54 = vadd.f32 %v955_v20, %v946_v15 }
 0x257   :  { %1009 = vst [vmem:[%s1711_s4] sm:$0xff] %v1121_v21  ;;  %1010 = vst [vmem:[%s1711_s4 + $0x8] sm:$0xff] %v1122_v22  ;;  %v972_v61 = vmax.f32 %v962_v23, 0.0  ;;  %v973_v3 = vmax.f32 %v963_v25, 0.0 }
 0x258   :  { %1011 = vst [vmem:[%s1711_s4 + $0x10] sm:$0xf] %v1123_v26  ;;  %v974_v24 = vmax.f32 %v964_v60, 0.0  ;;  %v975_v27 = vmax.f32 %v965_v1, 0.0  ;;  %v976_v28 = vmax.f32 %v966_v54, 0.0 }
 0x259   :  { %v1124_v29 = vpack.c.bf16 %v973_v3, %v972_v61 }
 0x25a   :  { %v1125_v30 = vpack.c.bf16 %v975_v27, %v974_v24  ;;  %v1126_v31 = vpack.c.bf16 %v976_v28, %v976_v28 }
 0x25b   :  { %1012 = vst [vmem:[%s1711_s4 + $0x14] sm:$0xff] %v1124_v29 }
 0x25c   :  { %1013 = vst [vmem:[%s1711_s4 + $0x1c] sm:$0xff] %v1125_v30  ;;  %1014 = vst [vmem:[%s1711_s4 + $0x24] sm:$0xf] %v1126_v31 }

// kernel: _lambda_.9
= control target key start
LH: loop header
LB: loop body
LE: loop exit
PB: predicated region body
PF: predicated region fallthrough
CT: control target
= control target key end

     0   :  { %vm997_vm0 = vcmask 130048   ;;  %s2702_s0 = inlined_call_operand.vmem [shape: bf16[144,2304], index: 0, kind: input, shape index: {}]   ;;  %s2703_s1 = inlined_call_operand.vmem [shape: bf16[8,144], index: 1, kind: input, shape index: {}]   ;;  %s2704_s2 = inlined_call_operand.vmem [shape: f32[8,1], index: 2, kind: input, shape index: {}]   ;;  %s2705_s3 = inlined_call_operand.vmem [shape: f32[8,1], index: 3, kind: input, shape index: {}]   ;;  %s2706_s4 = inlined_call_operand.vmem [shape: bf16[8,2304], index: 4, kind: output, shape index: {}]  }
   0x1   :  { %v1780_v0 = vld [vmem:[%s2702_s0 + $0x3f4] ss:$72 sps:$4 sm:$0xff]   ;;  %v1782_v1 = vld [vmem:[%s2702_s0 + $0x3f0] ss:$72 sps:$4 sm:$0xff]   ;;  %v1783_v2 = vld [vmem:[%s2702_s0 + $0x364] ss:$72 sps:$4 sm:$0xff]  }
   0x2   :  { %1001 = vmatprep.subr.bf16.mxu0 %v1780_v0  ;;  %v1785_v3 = vld [vmem:[%s2702_s0 + $0x3fc] ss:$72 sps:$4 sm:$0xff]   ;;  %v1787_v4 = vld [vmem:[%s2702_s0 + $0x360] ss:$72 sps:$4 sm:$0xff]   ;;  %v1791_v7 = vld [vmem:[%s2702_s0 + $0x36c] ss:$72 sps:$4 sm:$0xff]  }
   0x3   :  { %1002 = vmatpush1.bf16.msra.mxu0 %v1782_v1  ;;  %v1788_v5 = vld [vmem:[%s2702_s0 + $0x3f8] ss:$72 sps:$4 sm:$0xff]   ;;  %v1789_v6 = vld [vmem:[%s2702_s0 + $0x2d4] ss:$72 sps:$4 sm:$0xff]   ;;  %1042 = vmatprep.subr.bf16.mxu1 %v1785_v3  ;;  %v1794_v8 = vld [vmem:[%s2702_s0 + $0x368] ss:$72 sps:$4 sm:$0xff]  }
   0x4   :  { %1003 = vmatprep.subr.bf16.mxu0 %v1783_v2  ;;  %1043 = vmatpush1.bf16.msra.mxu1 %v1788_v5  ;;  %v1793_v9 = vld [vmem:[%s2702_s0 + $0x2d0] ss:$72 sps:$4 sm:$0xff]   ;;  %v1795_v10 = vld [vmem:[%s2702_s0 + $0x244] ss:$72 sps:$4 sm:$0xff]   ;;  %v1799_v13 = vld [vmem:[%s2702_s0 + $0x240] ss:$72 sps:$4 sm:$0xff]  }
   0x5   :  { %1044 = vmatprep.subr.bf16.mxu1 %v1791_v7  ;;  %v1797_v11 = vld [vmem:[%s2702_s0 + $0x2dc] ss:$72 sps:$4 sm:$0xff]   ;;  %v1800_v12 = vld [vmem:[%s2702_s0 + $0x2d8] ss:$72 sps:$4 sm:$0xff]   ;;  %v1803_v14 = vld [vmem:[%s2702_s0 + $0x24c] ss:$72 sps:$4 sm:$0xff]  }
   0x6   :  { %v1801_v15 = vld [vmem:[%s2702_s0 + $0x1b4] ss:$72 sps:$4 sm:$0xff]   ;;  %v1805_v16 = vld [vmem:[%s2702_s0 + $0x1b0] ss:$72 sps:$4 sm:$0xff]   ;;  %v1807_v19 = vld [vmem:[%s2702_s0 + $0x124] ss:$72 sps:$4 sm:$0xff]  }
   0x7   :  { %1004 = vmatpush1.bf16.msra.mxu0 %v1787_v4  ;;  %v1806_v17 = vld [vmem:[%s2702_s0 + $0x248] ss:$72 sps:$4 sm:$0xff]   ;;  %v1809_v18 = vld [vmem:[%s2702_s0 + $0x1bc] ss:$72 sps:$4 sm:$0xff]   ;;  %v1812_v20 = vld [vmem:[%s2702_s0 + $0x1b8] ss:$72 sps:$4 sm:$0xff]  }
   0x8   :  { %1005 = vmatprep.subr.bf16.mxu0 %v1789_v6  ;;  %1045 = vmatpush1.bf16.msra.mxu1 %v1794_v8  ;;  %v1811_v21 = vld [vmem:[%s2702_s0 + $0x120] ss:$72 sps:$4 sm:$0xff]   ;;  %v1815_v22 = vld [vmem:[%s2702_s0 + $0x12c] ss:$72 sps:$4 sm:$0xff]   ;;  %v1817_v24 = vld [vmem:[%s2702_s0 + $0x90] ss:$72 sps:$4 sm:$0xff]  }
   0x9   :  { %1046 = vmatprep.subr.bf16.mxu1 %v1797_v11  ;;  %v1813_v23 = vld [vmem:[%s2702_s0 + $0x94] ss:$72 sps:$4 sm:$0xff]   ;;  %v1818_v25 = vld [vmem:[%s2702_s0 + $0x128] ss:$72 sps:$4 sm:$0xff]   ;;  %v18_v26 = vld [vmem:[%s2703_s1] sm:$0xff] }
   0xa   :  { %v1821_v27 = vld [vmem:[%s2702_s0 + $0x9c] ss:$72 sps:$4 sm:$0xff]   ;;  %v2137_v28 = vcombine.high %v18_v26, %v18_v26  ;;  %v1823_v30 = vld [vmem:[%s2702_s0] ss:$72 sps:$4 sm:$0xff]   ;;  %v1827_v32 = vld [vmem:[%s2702_s0 + $0xc] ss:$72 sps:$4 sm:$0xff]   ;;  %v2170_v38 = vcombine.low %v18_v26, %v18_v26 }
   0xb   :  { %1006 = vmatpush1.bf16.msra.mxu0 %v1793_v9  ;;  %v1819_v29 = vld [vmem:[%s2702_s0 + $0x4] ss:$72 sps:$4 sm:$0xff]   ;;  %v1824_v31 = vld [vmem:[%s2702_s0 + $0x98] ss:$72 sps:$4 sm:$0xff]   ;;  %v1830_v35 = vld [vmem:[%s2702_s0 + $0x8] ss:$72 sps:$4 sm:$0xff]  }
   0xc   :  { %1007 = vmatprep.subr.bf16.mxu0 %v1795_v10  ;;  %1047 = vmatpush1.bf16.msra.mxu1 %v1800_v12  ;;  %v1825_v33 = vld [vmem:[%s2702_s0 + $0x484] ss:$72 sps:$4 sm:$0xff]   ;;  %v1829_v34 = vld [vmem:[%s2702_s0 + $0x480] ss:$72 sps:$4 sm:$0xff]   ;;  %v1841_v42 = vld [vmem:[%s2702_s0 + $0x374] ss:$72 sps:$4 sm:$0xff]  }
   0xd   :  { %1048 = vmatprep.subr.bf16.mxu1 %v1803_v14  ;;  %1750 = vmatprep.mubr.msk.bf16.mxu0 %vm997_vm0, %v2137_v28  ;;  %v1833_v36 = vld [vmem:[%s2702_s0 + $0x48c] ss:$72 sps:$4 sm:$0xff]   ;;  %v1835_v39 = vld [vmem:[%s2702_s0 + $0x400] ss:$72 sps:$4 sm:$0xff]   ;;  %v1839_v43 = vld [vmem:[%s2702_s0 + $0x370] ss:$72 sps:$4 sm:$0xff]  }
   0xe   :  { %1751 = vmatprep.mubr.msk.bf16.mxu1 %vm997_vm0, %v2137_v28  ;;  %v1837_v37 = vld [vmem:[%s2702_s0 + $0x404] ss:$72 sps:$4 sm:$0xff]   ;;  %v1838_v40 = vld [vmem:[%s2702_s0 + $0x488] ss:$72 sps:$4 sm:$0xff]   ;;  %v1848_v48 = vld [vmem:[%s2702_s0 + $0x378] ss:$72 sps:$4 sm:$0xff]  }
   0xf   :  { %1008 = vmatpush1.bf16.msra.mxu0 %v1799_v13  ;;  %v1844_v41 = vld [vmem:[%s2702_s0 + $0x40c] ss:$72 sps:$4 sm:$0xff]   ;;  %v1842_v44 = vld [vmem:[%s2702_s0 + $0x408] ss:$72 sps:$4 sm:$0xff]   ;;  %v1850_v45 = vld [vmem:[%s2702_s0 + $0x37c] ss:$72 sps:$4 sm:$0xff]  }
  0x10   :  { %1009 = vmatprep.subr.bf16.mxu0 %v1801_v15  ;;  %1049 = vmatpush1.bf16.msra.mxu1 %v1806_v17  ;;  %v1847_v46 = vld [vmem:[%s2702_s0 + $0x2e4] ss:$72 sps:$4 sm:$0xff]   ;;  %v1845_v47 = vld [vmem:[%s2702_s0 + $0x2e0] ss:$72 sps:$4 sm:$0xff]   ;;  %v1853_v50 = vld [vmem:[%s2702_s0 + $0x254] ss:$72 sps:$4 sm:$0xff]  }
  0x11   :  { %1050 = vmatprep.subr.bf16.mxu1 %v1809_v18  ;;  %v1856_v49 = vld [vmem:[%s2702_s0 + $0x2ec] ss:$72 sps:$4 sm:$0xff]   ;;  %v1851_v51 = vld [vmem:[%s2702_s0 + $0x250] ss:$72 sps:$4 sm:$0xff]   ;;  %v1862_v53 = vld [vmem:[%s2702_s0 + $0x25c] ss:$72 sps:$4 sm:$0xff]  }
  0x12   :  { %v1854_v52 = vld [vmem:[%s2702_s0 + $0x2e8] ss:$72 sps:$4 sm:$0xff]   ;;  %v1859_v54 = vld [vmem:[%s2702_s0 + $0x1c4] ss:$72 sps:$4 sm:$0xff]   ;;  %v1860_v56 = vld [vmem:[%s2702_s0 + $0x258] ss:$72 sps:$4 sm:$0xff]  }
  0x13   :  { %1010 = vmatpush1.bf16.msra.mxu0 %v1805_v16  ;;  %v1857_v55 = vld [vmem:[%s2702_s0 + $0x1c0] ss:$72 sps:$4 sm:$0xff]   ;;  %v1868_v57 = vld [vmem:[%s2702_s0 + $0x1cc] ss:$72 sps:$4 sm:$0xff]   ;;  %v1863_v59 = vld [vmem:[%s2702_s0 + $0x130] ss:$72 sps:$4 sm:$0xff]  }
  0x14   :  { %1011 = vmatprep.subr.bf16.mxu0 %v1807_v19  ;;  %1051 = vmatpush1.bf16.msra.mxu1 %v1812_v20  ;;  %v1865_v58 = vld [vmem:[%s2702_s0 + $0x134] ss:$72 sps:$4 sm:$0xff]   ;;  %v1866_v60 = vld [vmem:[%s2702_s0 + $0x1c8] ss:$72 sps:$4 sm:$0xff]   ;;  %v1871_v62 = vld [vmem:[%s2702_s0 + $0xa4] ss:$72 sps:$4 sm:$0xff]  }
  0x15   :  { %1052 = vmatprep.subr.bf16.mxu1 %v1815_v22  ;;  %v1874_v61 = vld [vmem:[%s2702_s0 + $0x13c] ss:$72 sps:$4 sm:$0xff]   ;;  %v1869_v63 = vld [vmem:[%s2702_s0 + $0xa0] ss:$72 sps:$4 sm:$0xff]   ;;  %v1880_v1 = vld [vmem:[%s2702_s0 + $0xac] ss:$72 sps:$4 sm:$0xff]  }
  0x16   :  { %v1872_v0 = vld [vmem:[%s2702_s0 + $0x138] ss:$72 sps:$4 sm:$0xff]   ;;  %v1877_v2 = vld [vmem:[%s2702_s0 + $0x14] ss:$72 sps:$4 sm:$0xff]   ;;  %v1878_v4 = vld [vmem:[%s2702_s0 + $0xa8] ss:$72 sps:$4 sm:$0xff]  }
  0x17   :  { %1012 = vmatpush1.bf16.msra.mxu0 %v1811_v21  ;;  %v1875_v3 = vld [vmem:[%s2702_s0 + $0x10] ss:$72 sps:$4 sm:$0xff]   ;;  %v1886_v5 = vld [vmem:[%s2702_s0 + $0x1c] ss:$72 sps:$4 sm:$0xff]   ;;  %v1893_v15 = vld [vmem:[%s2702_s0 + $0x380] ss:$72 sps:$4 sm:$0xff]  }
  0x18   :  { %1013 = vmatprep.subr.bf16.mxu0 %v1813_v23  ;;  %1053 = vmatpush1.bf16.msra.mxu1 %v1818_v25  ;;  %v1883_v6 = vld [vmem:[%s2702_s0 + $0x494] ss:$72 sps:$4 sm:$0xff]   ;;  %v1881_v7 = vld [vmem:[%s2702_s0 + $0x490] ss:$72 sps:$4 sm:$0xff]   ;;  %v1895_v14 = vld [vmem:[%s2702_s0 + $0x384] ss:$72 sps:$4 sm:$0xff]  }
  0x19   :  { %1054 = vmatprep.subr.bf16.mxu1 %v1821_v27  ;;  %v1884_v8 = vld [vmem:[%s2702_s0 + $0x18] ss:$72 sps:$4 sm:$0xff]   ;;  %v1889_v9 = vld [vmem:[%s2702_s0 + $0x49c] ss:$72 sps:$4 sm:$0xff]   ;;  %v1904_v17 = vld [vmem:[%s2702_s0 + $0x38c] ss:$72 sps:$4 sm:$0xff]  }
  0x1a   :  { %v1892_v10 = vld [vmem:[%s2702_s0 + $0x414] ss:$72 sps:$4 sm:$0xff]   ;;  %v1887_v11 = vld [vmem:[%s2702_s0 + $0x498] ss:$72 sps:$4 sm:$0xff]   ;;  %v1902_v20 = vld [vmem:[%s2702_s0 + $0x388] ss:$72 sps:$4 sm:$0xff]  }
  0x1b   :  { %1014 = vmatpush1.bf16.msra.mxu0 %v1817_v24  ;;  %v1890_v12 = vld [vmem:[%s2702_s0 + $0x410] ss:$72 sps:$4 sm:$0xff]   ;;  %v1898_v13 = vld [vmem:[%s2702_s0 + $0x41c] ss:$72 sps:$4 sm:$0xff]   ;;  %v1905_v23 = vld [vmem:[%s2702_s0 + $0x260] ss:$72 sps:$4 sm:$0xff]  }
  0x1c   :  { %1015 = vmatprep.subr.bf16.mxu0 %v1819_v29  ;;  %1055 = vmatpush1.bf16.msra.mxu1 %v1824_v31  ;;  %v1896_v16 = vld [vmem:[%s2702_s0 + $0x418] ss:$72 sps:$4 sm:$0xff]   ;;  %v1901_v18 = vld [vmem:[%s2702_s0 + $0x2f4] ss:$72 sps:$4 sm:$0xff]   ;;  %v1907_v22 = vld [vmem:[%s2702_s0 + $0x264] ss:$72 sps:$4 sm:$0xff]  }
  0x1d   :  { %1056 = vmatprep.subr.bf16.mxu1 %v1827_v32  ;;  %v1899_v19 = vld [vmem:[%s2702_s0 + $0x2f0] ss:$72 sps:$4 sm:$0xff]   ;;  %v1910_v21 = vld [vmem:[%s2702_s0 + $0x2fc] ss:$72 sps:$4 sm:$0xff]   ;;  %v1916_v25 = vld [vmem:[%s2702_s0 + $0x26c] ss:$72 sps:$4 sm:$0xff]  }
  0x1e   :  { %v1908_v24 = vld [vmem:[%s2702_s0 + $0x2f8] ss:$72 sps:$4 sm:$0xff]   ;;  %v1913_v26 = vld [vmem:[%s2702_s0 + $0x1d4] ss:$72 sps:$4 sm:$0xff]   ;;  %v1914_v29 = vld [vmem:[%s2702_s0 + $0x268] ss:$72 sps:$4 sm:$0xff]  }
  0x1f   :  { %1016 = vmatpush1.bf16.msra.mxu0 %v1823_v30  ;;  %v1911_v27 = vld [vmem:[%s2702_s0 + $0x1d0] ss:$72 sps:$4 sm:$0xff]   ;;  %v1922_v30 = vld [vmem:[%s2702_s0 + $0x1dc] ss:$72 sps:$4 sm:$0xff]   ;;  %v1917_v32 = vld [vmem:[%s2702_s0 + $0x140] ss:$72 sps:$4 sm:$0xff]  }
  0x20   :  { %1031 = vmatprep.subr.bf16.mxu0 %v1825_v33  ;;  %1057 = vmatpush1.bf16.msra.mxu1 %v1830_v35  ;;  %v1919_v31 = vld [vmem:[%s2702_s0 + $0x144] ss:$72 sps:$4 sm:$0xff]   ;;  %v1920_v33 = vld [vmem:[%s2702_s0 + $0x1d8] ss:$72 sps:$4 sm:$0xff]   ;;  %v1925_v35 = vld [vmem:[%s2702_s0 + $0xb4] ss:$72 sps:$4 sm:$0xff]  }
  0x21   :  { %1072 = vmatprep.subr.bf16.mxu1 %v1833_v36  ;;  %v1923_v36 = vld [vmem:[%s2702_s0 + $0xb0] ss:$72 sps:$4 sm:$0xff]  }
  0x23   :  { %1032 = vmatpush2.bf16.msra.mxu0 %v1829_v34  ;;  %v1928_v34 = vld [vmem:[%s2702_s0 + $0x14c] ss:$72 sps:$4 sm:$0xff]  }
  0x24   :  { %1083 = vmatprep.subr.bf16.mxu0 %v1837_v37  ;;  %1073 = vmatpush2.bf16.msra.mxu1 %v1838_v40  ;;  %v1926_v37 = vld [vmem:[%s2702_s0 + $0x148] ss:$72 sps:$4 sm:$0xff]   ;;  %v1931_v40 = vld [vmem:[%s2702_s0 + $0x24] ss:$72 sps:$4 sm:$0xff]  }
  0x25   :  { %1124 = vmatprep.subr.bf16.mxu1 %v1844_v41  ;;  %v1929_v41 = vld [vmem:[%s2702_s0 + $0x20] ss:$72 sps:$4 sm:$0xff]  }
  0x26   :  { %1034 = vmatmul.mubr.bf16.vlgmr.msra.gmra.mxu0 %v2170_v38 }
  0x27   :  { %1084 = vmatpush1.bf16.msra.mxu0 %v1835_v39  ;;  %1752 = vmatprep.mubr.msk.bf16.mxu0 %vm997_vm0, %v2137_v28  ;;  %v1934_v39 = vld [vmem:[%s2702_s0 + $0xbc] ss:$72 sps:$4 sm:$0xff]  }
  0x28   :  { %1085 = vmatprep.subr.bf16.mxu0 %v1841_v42  ;;  %1075 = vmatmul.mubr.bf16.vlgmr.msra.gmra.mxu1 %v2170_v38  ;;  %v1932_v42 = vld [vmem:[%s2702_s0 + $0xb8] ss:$72 sps:$4 sm:$0xff]  }
  0x29   :  { %1125 = vmatpush1.bf16.msra.mxu1 %v1842_v44  ;;  %1753 = vmatprep.mubr.msk.bf16.mxu1 %vm997_vm0, %v2137_v28  ;;  %v1937_v44 = vld [vmem:[%s2702_s0 + $0x4a4] ss:$72 sps:$4 sm:$0xff]  }
  0x2a   :  { %1126 = vmatprep.subr.bf16.mxu1 %v1850_v45  ;;  %v1935_v45 = vld [vmem:[%s2702_s0 + $0x4a0] ss:$72 sps:$4 sm:$0xff]  }
  0x2b   :  { %1086 = vmatpush1.bf16.msra.mxu0 %v1839_v43  ;;  %v1940_v43 = vld [vmem:[%s2702_s0 + $0x2c] ss:$72 sps:$4 sm:$0xff]  }
  0x2c   :  { %1087 = vmatprep.subr.bf16.mxu0 %v1847_v46  ;;  %v1938_v46 = vld [vmem:[%s2702_s0 + $0x28] ss:$72 sps:$4 sm:$0xff]  }
  0x2d   :  { %1127 = vmatpush1.bf16.msra.mxu1 %v1848_v48  ;;  %v1946_v48 = vld [vmem:[%s2702_s0 + $0x424] ss:$72 sps:$4 sm:$0xff]  }
  0x2e   :  { %1128 = vmatprep.subr.bf16.mxu1 %v1856_v49  ;;  %v1941_v49 = vld [vmem:[%s2702_s0 + $0x4a8] ss:$72 sps:$4 sm:$0xff]  }
  0x2f   :  { %1088 = vmatpush1.bf16.msra.mxu0 %v1845_v47  ;;  %v1943_v47 = vld [vmem:[%s2702_s0 + $0x4ac] ss:$72 sps:$4 sm:$0xff]  }
  0x30   :  { %1089 = vmatprep.subr.bf16.mxu0 %v1853_v50  ;;  %v1944_v50 = vld [vmem:[%s2702_s0 + $0x420] ss:$72 sps:$4 sm:$0xff]  }
  0x31   :  { %1129 = vmatpush1.bf16.msra.mxu1 %v1854_v52  ;;  %v1949_v52 = vld [vmem:[%s2702_s0 + $0x394] ss:$72 sps:$4 sm:$0xff]  }
  0x32   :  { %1130 = vmatprep.subr.bf16.mxu1 %v1862_v53  ;;  %v1950_v53 = vld [vmem:[%s2702_s0 + $0x428] ss:$72 sps:$4 sm:$0xff]  }
  0x33   :  { %1090 = vmatpush1.bf16.msra.mxu0 %v1851_v51  ;;  %v1952_v51 = vld [vmem:[%s2702_s0 + $0x42c] ss:$72 sps:$4 sm:$0xff]  }
  0x34   :  { %1091 = vmatprep.subr.bf16.mxu0 %v1859_v54  ;;  %v1947_v54 = vld [vmem:[%s2702_s0 + $0x390] ss:$72 sps:$4 sm:$0xff]  }
  0x35   :  { %1131 = vmatpush1.bf16.msra.mxu1 %v1860_v56  ;;  %v1955_v56 = vld [vmem:[%s2702_s0 + $0x304] ss:$72 sps:$4 sm:$0xff]  }
  0x36   :  { %1132 = vmatprep.subr.bf16.mxu1 %v1868_v57  ;;  %v1956_v57 = vld [vmem:[%s2702_s0 + $0x398] ss:$72 sps:$4 sm:$0xff]  }
  0x37   :  { %1092 = vmatpush1.bf16.msra.mxu0 %v1857_v55  ;;  %v1958_v55 = vld [vmem:[%s2702_s0 + $0x39c] ss:$72 sps:$4 sm:$0xff]  }
  0x38   :  { %1093 = vmatprep.subr.bf16.mxu0 %v1865_v58  ;;  %v1953_v58 = vld [vmem:[%s2702_s0 + $0x300] ss:$72 sps:$4 sm:$0xff]  }
  0x39   :  { %1133 = vmatpush1.bf16.msra.mxu1 %v1866_v60  ;;  %v1961_v60 = vld [vmem:[%s2702_s0 + $0x274] ss:$72 sps:$4 sm:$0xff]  }
  0x3a   :  { %1134 = vmatprep.subr.bf16.mxu1 %v1874_v61  ;;  %v1962_v61 = vld [vmem:[%s2702_s0 + $0x308] ss:$72 sps:$4 sm:$0xff]  }
  0x3b   :  { %1094 = vmatpush1.bf16.msra.mxu0 %v1863_v59  ;;  %v1964_v59 = vld [vmem:[%s2702_s0 + $0x30c] ss:$72 sps:$4 sm:$0xff]  }
  0x3c   :  { %1095 = vmatprep.subr.bf16.mxu0 %v1871_v62  ;;  %v1959_v62 = vld [vmem:[%s2702_s0 + $0x270] ss:$72 sps:$4 sm:$0xff]  }
  0x3d   :  { %1135 = vmatpush1.bf16.msra.mxu1 %v1872_v0  ;;  %v1967_v0 = vld [vmem:[%s2702_s0 + $0x1e4] ss:$72 sps:$4 sm:$0xff]  }
  0x3e   :  { %1136 = vmatprep.subr.bf16.mxu1 %v1880_v1  ;;  %v1968_v1 = vld [vmem:[%s2702_s0 + $0x278] ss:$72 sps:$4 sm:$0xff]  }
  0x3f   :  { %1096 = vmatpush1.bf16.msra.mxu0 %v1869_v63  ;;  %v1970_v63 = vld [vmem:[%s2702_s0 + $0x27c] ss:$72 sps:$4 sm:$0xff]  }
  0x40   :  { %1097 = vmatprep.subr.bf16.mxu0 %v1877_v2  ;;  %v1965_v2 = vld [vmem:[%s2702_s0 + $0x1e0] ss:$72 sps:$4 sm:$0xff]  }
  0x41   :  { %1137 = vmatpush1.bf16.msra.mxu1 %v1878_v4  ;;  %v1973_v4 = vld [vmem:[%s2702_s0 + $0x154] ss:$72 sps:$4 sm:$0xff]  }
  0x42   :  { %1138 = vmatprep.subr.bf16.mxu1 %v1886_v5  ;;  %v1974_v5 = vld [vmem:[%s2702_s0 + $0x1e8] ss:$72 sps:$4 sm:$0xff]  }
  0x43   :  { %1098 = vmatpush1.bf16.msra.mxu0 %v1875_v3  ;;  %v1976_v3 = vld [vmem:[%s2702_s0 + $0x1ec] ss:$72 sps:$4 sm:$0xff]  }
  0x44   :  { %1113 = vmatprep.subr.bf16.mxu0 %v1883_v6  ;;  %v1971_v6 = vld [vmem:[%s2702_s0 + $0x150] ss:$72 sps:$4 sm:$0xff]  }
  0x45   :  { %1139 = vmatpush1.bf16.msra.mxu1 %v1884_v8  ;;  %v1979_v8 = vld [vmem:[%s2702_s0 + $0xc4] ss:$72 sps:$4 sm:$0xff]  }
  0x46   :  { %1154 = vmatprep.subr.bf16.mxu1 %v1889_v9  ;;  %v1980_v9 = vld [vmem:[%s2702_s0 + $0x158] ss:$72 sps:$4 sm:$0xff]  }
  0x47   :  { %1114 = vmatpush2.bf16.msra.mxu0 %v1881_v7  ;;  %v1982_v7 = vld [vmem:[%s2702_s0 + $0x15c] ss:$72 sps:$4 sm:$0xff]  }
  0x48   :  { %1165 = vmatprep.subr.bf16.mxu0 %v1892_v10  ;;  %v1977_v10 = vld [vmem:[%s2702_s0 + $0xc0] ss:$72 sps:$4 sm:$0xff]  }
  0x49   :  { %1155 = vmatpush2.bf16.msra.mxu1 %v1887_v11  ;;  %v1988_v11 = vld [vmem:[%s2702_s0 + $0xcc] ss:$72 sps:$4 sm:$0xff]  }
  0x4a   :  { %1116 = vmatmul.mubr.bf16.vlgmr.msra.gmra.mxu0 %v2170_v38  ;;  %1206 = vmatprep.subr.bf16.mxu1 %v1898_v13  ;;  %v1986_v13 = vld [vmem:[%s2702_s0 + $0xc8] ss:$72 sps:$4 sm:$0xff]  }
  0x4b   :  { %1166 = vmatpush1.bf16.msra.mxu0 %v1890_v12  ;;  %1754 = vmatprep.mubr.msk.bf16.mxu0 %vm997_vm0, %v2137_v28  ;;  %v1985_v12 = vld [vmem:[%s2702_s0 + $0x34] ss:$72 sps:$4 sm:$0xff]  }
  0x4c   :  { %1167 = vmatprep.subr.bf16.mxu0 %v1895_v14  ;;  %1157 = vmatmul.mubr.bf16.vlgmr.msra.gmra.mxu1 %v2170_v38  ;;  %v1983_v14 = vld [vmem:[%s2702_s0 + $0x30] ss:$72 sps:$4 sm:$0xff]  }
  0x4d   :  { %1207 = vmatpush1.bf16.msra.mxu1 %v1896_v16  ;;  %1755 = vmatprep.mubr.msk.bf16.mxu1 %vm997_vm0, %v2137_v28  ;;  %v1991_v16 = vld [vmem:[%s2702_s0 + $0x4b4] ss:$72 sps:$4 sm:$0xff]  }
  0x4e   :  { %1208 = vmatprep.subr.bf16.mxu1 %v1904_v17  ;;  %v1992_v17 = vld [vmem:[%s2702_s0 + $0x38] ss:$72 sps:$4 sm:$0xff]  }
  0x4f   :  { %1168 = vmatpush1.bf16.msra.mxu0 %v1893_v15  ;;  %v1994_v15 = vld [vmem:[%s2702_s0 + $0x3c] ss:$72 sps:$4 sm:$0xff]  }
  0x50   :  { %1169 = vmatprep.subr.bf16.mxu0 %v1901_v18  ;;  %v1989_v18 = vld [vmem:[%s2702_s0 + $0x4b0] ss:$72 sps:$4 sm:$0xff]  }
  0x51   :  { %1209 = vmatpush1.bf16.msra.mxu1 %v1902_v20  ;;  %v2000_v20 = vld [vmem:[%s2702_s0 + $0x434] ss:$72 sps:$4 sm:$0xff]  }
  0x52   :  { %1210 = vmatprep.subr.bf16.mxu1 %v1910_v21  ;;  %v1995_v21 = vld [vmem:[%s2702_s0 + $0x4b8] ss:$72 sps:$4 sm:$0xff]  }
  0x53   :  { %1170 = vmatpush1.bf16.msra.mxu0 %v1899_v19  ;;  %v1997_v19 = vld [vmem:[%s2702_s0 + $0x4bc] ss:$72 sps:$4 sm:$0xff]  }
  0x54   :  { %1171 = vmatprep.subr.bf16.mxu0 %v1907_v22  ;;  %v1998_v22 = vld [vmem:[%s2702_s0 + $0x430] ss:$72 sps:$4 sm:$0xff]  }
  0x55   :  { %1211 = vmatpush1.bf16.msra.mxu1 %v1908_v24  ;;  %v2001_v24 = vld [vmem:[%s2702_s0 + $0x3a0] ss:$72 sps:$4 sm:$0xff]  }
  0x56   :  { %1212 = vmatprep.subr.bf16.mxu1 %v1916_v25  ;;  %v2006_v25 = vld [vmem:[%s2702_s0 + $0x314] ss:$72 sps:$4 sm:$0xff]  }
  0x57   :  { %1172 = vmatpush1.bf16.msra.mxu0 %v1905_v23  ;;  %v2003_v23 = vld [vmem:[%s2702_s0 + $0x3a4] ss:$72 sps:$4 sm:$0xff]  }
  0x58   :  { %1173 = vmatprep.subr.bf16.mxu0 %v1913_v26  ;;  %v2004_v26 = vld [vmem:[%s2702_s0 + $0x310] ss:$72 sps:$4 sm:$0xff]  }
  0x59   :  { %1213 = vmatpush1.bf16.msra.mxu1 %v1914_v29  ;;  %v2012_v29 = vld [vmem:[%s2702_s0 + $0x1f4] ss:$72 sps:$4 sm:$0xff]  }
  0x5a   :  { %1214 = vmatprep.subr.bf16.mxu1 %v1922_v30  ;;  %v2010_v30 = vld [vmem:[%s2702_s0 + $0x1f0] ss:$72 sps:$4 sm:$0xff]  }
  0x5b   :  { %1174 = vmatpush1.bf16.msra.mxu0 %v1911_v27  ;;  %v2009_v27 = vld [vmem:[%s2702_s0 + $0x284] ss:$72 sps:$4 sm:$0xff]  }
  0x5c   :  { %1175 = vmatprep.subr.bf16.mxu0 %v1919_v31  ;;  %v2015_v31 = vld [vmem:[%s2702_s0 + $0x164] ss:$72 sps:$4 sm:$0xff]  }
  0x5d   :  { %1215 = vmatpush1.bf16.msra.mxu1 %v1920_v33  ;;  %v2018_v33 = vld [vmem:[%s2702_s0 + $0xd4] ss:$72 sps:$4 sm:$0xff]  }
  0x5e   :  { %1216 = vmatprep.subr.bf16.mxu1 %v1928_v34  ;;  %v2016_v34 = vld [vmem:[%s2702_s0 + $0xd0] ss:$72 sps:$4 sm:$0xff]  }
  0x5f   :  { %1176 = vmatpush1.bf16.msra.mxu0 %v1917_v32  ;;  %v2013_v32 = vld [vmem:[%s2702_s0 + $0x160] ss:$72 sps:$4 sm:$0xff]  }
  0x60   :  { %1177 = vmatprep.subr.bf16.mxu0 %v1925_v35  ;;  %v2021_v35 = vld [vmem:[%s2702_s0 + $0x44] ss:$72 sps:$4 sm:$0xff]  }
  0x61   :  { %1217 = vmatpush1.bf16.msra.mxu1 %v1926_v37  ;;  %v2024_v37 = vld [vmem:[%s2702_s0 + $0x4c4] ss:$72 sps:$4 sm:$0xff]  }
  0x62   :  { %1218 = vmatprep.subr.bf16.mxu1 %v1934_v39  ;;  %v2022_v39 = vld [vmem:[%s2702_s0 + $0x4c0] ss:$72 sps:$4 sm:$0xff]  }
  0x63   :  { %1178 = vmatpush1.bf16.msra.mxu0 %v1923_v36  ;;  %v2019_v36 = vld [vmem:[%s2702_s0 + $0x40] ss:$72 sps:$4 sm:$0xff]  }
  0x64   :  { %1179 = vmatprep.subr.bf16.mxu0 %v1931_v40 }
  0x65   :  { %1219 = vmatpush1.bf16.msra.mxu1 %v1932_v42 }
  0x66   :  { %1220 = vmatprep.subr.bf16.mxu1 %v1940_v43 }
  0x67   :  { %1180 = vmatpush1.bf16.msra.mxu0 %v1929_v41 }
  0x68   :  { %1195 = vmatprep.subr.bf16.mxu0 %v1937_v44 }
  0x69   :  { %1221 = vmatpush1.bf16.msra.mxu1 %v1938_v46 }
  0x6a   :  { %1236 = vmatprep.subr.bf16.mxu1 %v1943_v47 }
  0x6b   :  { %1196 = vmatpush2.bf16.msra.mxu0 %v1935_v45 }
  0x6c   :  { %1247 = vmatprep.subr.bf16.mxu0 %v1946_v48 }
  0x6d   :  { %1237 = vmatpush2.bf16.msra.mxu1 %v1941_v49 }
  0x6e   :  { %1198 = vmatmul.mubr.bf16.vlgmr.msra.gmra.mxu0 %v2170_v38  ;;  %1288 = vmatprep.subr.bf16.mxu1 %v1952_v51 }
  0x6f   :  { %1248 = vmatpush1.bf16.msra.mxu0 %v1944_v50  ;;  %1756 = vmatprep.mubr.msk.bf16.mxu0 %vm997_vm0, %v2137_v28 }
  0x70   :  { %1249 = vmatprep.subr.bf16.mxu0 %v1949_v52  ;;  %1239 = vmatmul.mubr.bf16.vlgmr.msra.gmra.mxu1 %v2170_v38 }
  0x71   :  { %1289 = vmatpush1.bf16.msra.mxu1 %v1950_v53  ;;  %1757 = vmatprep.mubr.msk.bf16.mxu1 %vm997_vm0, %v2137_v28 }
  0x72   :  { %1290 = vmatprep.subr.bf16.mxu1 %v1958_v55 }
  0x73   :  { %1250 = vmatpush1.bf16.msra.mxu0 %v1947_v54 }
  0x74   :  { %1251 = vmatprep.subr.bf16.mxu0 %v1955_v56 }
  0x75   :  { %1291 = vmatpush1.bf16.msra.mxu1 %v1956_v57 }
  0x76   :  { %1292 = vmatprep.subr.bf16.mxu1 %v1964_v59 }
  0x77   :  { %1252 = vmatpush1.bf16.msra.mxu0 %v1953_v58 }
  0x78   :  { %1253 = vmatprep.subr.bf16.mxu0 %v1961_v60 }
  0x79   :  { %1293 = vmatpush1.bf16.msra.mxu1 %v1962_v61 }
  0x7a   :  { %1294 = vmatprep.subr.bf16.mxu1 %v1970_v63 }
  0x7b   :  { %1254 = vmatpush1.bf16.msra.mxu0 %v1959_v62 }
  0x7c   :  { %1255 = vmatprep.subr.bf16.mxu0 %v1967_v0 }
  0x7d   :  { %1295 = vmatpush1.bf16.msra.mxu1 %v1968_v1 }
  0x7e   :  { %1296 = vmatprep.subr.bf16.mxu1 %v1976_v3 }
  0x7f   :  { %1256 = vmatpush1.bf16.msra.mxu0 %v1965_v2 }
  0x80   :  { %1257 = vmatprep.subr.bf16.mxu0 %v1973_v4 }
  0x81   :  { %1297 = vmatpush1.bf16.msra.mxu1 %v1974_v5 }
  0x82   :  { %1298 = vmatprep.subr.bf16.mxu1 %v1982_v7 }
  0x83   :  { %1258 = vmatpush1.bf16.msra.mxu0 %v1971_v6 }
  0x84   :  { %1259 = vmatprep.subr.bf16.mxu0 %v1979_v8 }
  0x85   :  { %1299 = vmatpush1.bf16.msra.mxu1 %v1980_v9 }
  0x86   :  { %1300 = vmatprep.subr.bf16.mxu1 %v1988_v11 }
  0x87   :  { %1260 = vmatpush1.bf16.msra.mxu0 %v1977_v10 }
  0x88   :  { %1261 = vmatprep.subr.bf16.mxu0 %v1985_v12 }
  0x89   :  { %1301 = vmatpush1.bf16.msra.mxu1 %v1986_v13 }
  0x8a   :  { %1302 = vmatprep.subr.bf16.mxu1 %v1994_v15 }
  0x8b   :  { %1262 = vmatpush1.bf16.msra.mxu0 %v1983_v14 }
  0x8c   :  { %1277 = vmatprep.subr.bf16.mxu0 %v1991_v16 }
  0x8d   :  { %1303 = vmatpush1.bf16.msra.mxu1 %v1992_v17 }
  0x8e   :  { %1318 = vmatprep.subr.bf16.mxu1 %v1997_v19 }
  0x8f   :  { %1278 = vmatpush2.bf16.msra.mxu0 %v1989_v18 }
  0x90   :  { %1329 = vmatprep.subr.bf16.mxu0 %v2000_v20 }
  0x91   :  { %1319 = vmatpush2.bf16.msra.mxu1 %v1995_v21 }
  0x92   :  { %1280 = vmatmul.mubr.bf16.vlgmr.msra.gmra.mxu0 %v2170_v38 }
  0x93   :  { %1330 = vmatpush1.bf16.msra.mxu0 %v1998_v22  ;;  %1758 = vmatprep.mubr.msk.bf16.mxu0 %vm997_vm0, %v2137_v28  ;;  %v2007_v28 = vld [vmem:[%s2702_s0 + $0x280] ss:$72 sps:$4 sm:$0xff]  }
  0x94   :  { %1331 = vmatprep.subr.bf16.mxu0 %v2003_v23  ;;  %1321 = vmatmul.mubr.bf16.vlgmr.msra.gmra.mxu1 %v2170_v38 }
  0x97   :  { %1332 = vmatpush1.bf16.msra.mxu0 %v2001_v24 }
  0x98   :  { %1333 = vmatprep.subr.bf16.mxu0 %v2006_v25 }
  0x9b   :  { %1334 = vmatpush1.bf16.msra.mxu0 %v2004_v26 }
  0x9c   :  { %1335 = vmatprep.subr.bf16.mxu0 %v2009_v27 }
  0x9f   :  { %1336 = vmatpush1.bf16.msra.mxu0 %v2007_v28 }
  0xa0   :  { %1337 = vmatprep.subr.bf16.mxu0 %v2012_v29 }
  0xa3   :  { %1338 = vmatpush1.bf16.msra.mxu0 %v2010_v30 }
  0xa4   :  { %1339 = vmatprep.subr.bf16.mxu0 %v2015_v31 }
  0xa7   :  { %1340 = vmatpush1.bf16.msra.mxu0 %v2013_v32 }
  0xa8   :  { %1341 = vmatprep.subr.bf16.mxu0 %v2018_v33 }
  0xab   :  { %1342 = vmatpush1.bf16.msra.mxu0 %v2016_v34 }
  0xac   :  { %1343 = vmatprep.subr.bf16.mxu0 %v2021_v35 }
  0xaf   :  { %1344 = vmatpush1.bf16.msra.mxu0 %v2019_v36 }
  0xb0   :  { %1359 = vmatprep.subr.bf16.mxu0 %v2024_v37 }
  0xb3   :  { %1360 = vmatpush2.bf16.msra.mxu0 %v2022_v39 }
  0xb6   :  { %1362 = vmatmul.mubr.bf16.vlgmr.msra.gmra.mxu0 %v2170_v38 }
  0xe6   :  { %v2573_v40 = vpop.f32.mrf.mxu0 }
  0xe7   :  { %v1389_v63 = vmul.f32 %v2573_v40, %v2573_v40 }
  0xe8   :  { %v2575_v41 = vpop.f32.mrf.mxu0  ;;  %v2577_v42 = vpop.f32.mrf.mxu1 }
  0xe9   :  { %v1390_v0 = vmul.f32 %v2575_v41, %v2575_v41  ;;  %v1370_v1 = vadd.f32 %v2575_v41, %v2573_v40  ;;  %v1391_v3 = vmul.f32 %v2577_v42, %v2577_v42 }
  0xea   :  { %v1039_v43 = vpop.f32.mrf.mxu0  ;;  %v2579_v44 = vpop.f32.mrf.mxu1 }
  0xeb   :  { %v1407_v2 = vadd.f32 %v1390_v0, %v1389_v63  ;;  %v1371_v4 = vadd.f32 %v1370_v1, %v2577_v42  ;;  %v1392_v6 = vmul.f32 %v2579_v44, %v2579_v44 }
  0xec   :  { %v1040_v45 = vpop.f32.mrf.mxu0  ;;  %v1080_v46 = vpop.f32.mrf.mxu1 }
  0xed   :  { %v1408_v5 = vadd.f32 %v1407_v2, %v1391_v3  ;;  %v1372_v7 = vadd.f32 %v1371_v4, %v2579_v44 }
  0xee   :  { %v1081_v47 = vpop.f32.mrf.mxu1 }
  0xef   :  { %v1409_v9 = vadd.f32 %v1408_v5, %v1392_v6 }
 0x10a   :  { %v2581_v48 = vpop.f32.mrf.mxu0 }
 0x10b   :  { %v1393_v8 = vmul.f32 %v2581_v48, %v2581_v48  ;;  %v1373_v10 = vadd.f32 %v1372_v7, %v2581_v48 }
 0x10c   :  { %v2583_v49 = vpop.f32.mrf.mxu0  ;;  %v2585_v50 = vpop.f32.mrf.mxu1 }
 0x10d   :  { %v1410_v11 = vadd.f32 %v1409_v9, %v1393_v8  ;;  %v1394_v12 = vmul.f32 %v2583_v49, %v2583_v49  ;;  %v1374_v13 = vadd.f32 %v1373_v10, %v2583_v49  ;;  %v1395_v16 = vmul.f32 %v2585_v50, %v2585_v50 }
 0x10e   :  { %v1121_v51 = vpop.f32.mrf.mxu0  ;;  %v2587_v38 = vpop.f32.mrf.mxu1 }
 0x10f   :  { %v1411_v15 = vadd.f32 %v1410_v11, %v1394_v12  ;;  %v1375_v18 = vadd.f32 %v1374_v13, %v2585_v50  ;;  %v1396_v22 = vmul.f32 %v2587_v38, %v2587_v38  ;;  %v2027_v11 = vmov 0  }
 0x110   :  { %v1122_v52 = vpop.f32.mrf.mxu0  ;;  %v1162_v53 = vpop.f32.mrf.mxu1  ;;  %1778 = vset.pattern.permute.xlu1 %v2027_v11  ;;  %1779 = vset.pattern.permute.xlu0 %v2027_v11 }
 0x111   :  { %v1412_v21 = vadd.f32 %v1411_v15, %v1395_v16  ;;  %v1376_v25 = vadd.f32 %v1375_v18, %v2587_v38 }
 0x112   :  { %v1163_v54 = vpop.f32.mrf.mxu1 }
 0x113   :  { %v1413_v28 = vadd.f32 %v1412_v21, %v1396_v22  ;;  %v1432_v22 = vld [vmem:[%s2704_s2] sm:$0xff] }
 0x12e   :  { %v2589_v55 = vpop.f32.mrf.mxu0 }
 0x12f   :  { %v1397_v26 = vmul.f32 %v2589_v55, %v2589_v55  ;;  %v1377_v29 = vadd.f32 %v1376_v25, %v2589_v55 }
 0x130   :  { %v2591_v56 = vpop.f32.mrf.mxu0  ;;  %v2593_v57 = vpop.f32.mrf.mxu1 }
 0x131   :  { %v1414_v31 = vadd.f32 %v1413_v28, %v1397_v26  ;;  %v1398_v32 = vmul.f32 %v2591_v56, %v2591_v56  ;;  %v1378_v33 = vadd.f32 %v1377_v29, %v2591_v56  ;;  %v1399_v35 = vmul.f32 %v2593_v57, %v2593_v57  ;;  %v1434_v26 = vld [vmem:[%s2705_s3] sm:$0xff] }
 0x132   :  { %v1203_v58 = vpop.f32.mrf.mxu0  ;;  %v2595_v59 = vpop.f32.mrf.mxu1 }
 0x133   :  { %v1415_v34 = vadd.f32 %v1414_v31, %v1398_v32  ;;  %v1379_v36 = vadd.f32 %v1378_v33, %v2593_v57  ;;  %v1400_v39 = vmul.f32 %v2595_v59, %v2595_v59 }
 0x134   :  { %v1204_v60 = vpop.f32.mrf.mxu0  ;;  %v1244_v61 = vpop.f32.mrf.mxu1 }
 0x135   :  { %v1416_v37 = vadd.f32 %v1415_v34, %v1399_v35  ;;  %v1380_v43 = vadd.f32 %v1379_v36, %v2595_v59 }
 0x136   :  { %v1245_v62 = vpop.f32.mrf.mxu1 }
 0x137   :  { %v1417_v46 = vadd.f32 %v1416_v37, %v1400_v39 }
 0x152   :  { %v2615_v14 = vpop.f32.mrf.mxu0 }
 0x153   :  { %v1401_v45 = vmul.f32 %v2615_v14, %v2615_v14  ;;  %v1381_v47 = vadd.f32 %v1380_v43, %v2615_v14 }
 0x154   :  { %v2619_v17 = vpop.f32.mrf.mxu0  ;;  %v2622_v19 = vpop.f32.mrf.mxu1 }
 0x155   :  { %v1418_v51 = vadd.f32 %v1417_v46, %v1401_v45  ;;  %v1402_v52 = vmul.f32 %v2619_v17, %v2619_v17  ;;  %v1382_v53 = vadd.f32 %v1381_v47, %v2619_v17  ;;  %v1403_v58 = vmul.f32 %v2622_v19, %v2622_v19 }
 0x156   :  { %v1285_v20 = vpop.f32.mrf.mxu0  ;;  %v2626_v23 = vpop.f32.mrf.mxu1 }
 0x157   :  { %v1419_v54 = vadd.f32 %v1418_v51, %v1402_v52  ;;  %v1383_v60 = vadd.f32 %v1382_v53, %v2622_v19  ;;  %v1404_v62 = vmul.f32 %v2626_v23, %v2626_v23 }
 0x158   :  { %v1286_v24 = vpop.f32.mrf.mxu0  ;;  %v1326_v27 = vpop.f32.mrf.mxu1 }
 0x159   :  { %v1420_v61 = vadd.f32 %v1419_v54, %v1403_v58  ;;  %v1384_v63 = vadd.f32 %v1383_v60, %v2626_v23 }
 0x15a   :  { %v1327_v30 = vpop.f32.mrf.mxu1 }
 0x15b   :  { %v1421_v3 = vadd.f32 %v1420_v61, %v1404_v62 }
 0x176   :  { %v1363_v0 = vpop.f32.mrf.mxu0 }
 0x177   :  { %v1405_v1 = vmul.f32 %v1363_v0, %v1363_v0  ;;  %v1385_v2 = vadd.f32 %v1384_v63, %v1363_v0 }
 0x178   :  { %v1365_v4 = vpop.f32.mrf.mxu0 }
 0x179   :  { %v1386_v5 = vadd.f32 %v1385_v2, %v1365_v4  ;;  %v1406_v6 = vmul.f32 %v1365_v4, %v1365_v4  ;;  %v1422_v7 = vadd.f32 %v1421_v3, %v1405_v1 }
 0x17a   :  { %v1367_v8 = vpop.f32.mrf.mxu0 }
 0x17b   :  { %1387 = vadd.xlane.f32.xlu0 %v1386_v5  ;;  %v1423_v10 = vadd.f32 %v1422_v7, %v1406_v6 }
 0x17c   :  { %v1368_v9 = vpop.f32.mrf.mxu0 }
 0x17f   :  { %1424 = vadd.xlane.f32.xlu0 %v1423_v10 }
 0x204   :  { %v1388_v12 = vpop.xlane.xlu0 %1387 }
 0x205   :  { %v1426_v13 = vmul.f32 0.00045913682, %v1388_v12 }
 0x207   :  { %v1428_v16 = vmul.f32 %v1426_v13, %v1426_v13 }
 0x208   :  { %v1425_v15 = vpop.xlane.xlu0 %1424 }
 0x209   :  { %v1427_v18 = vmul.f32 0.00045913682, %v1425_v15 }
 0x20b   :  { %v1429_v20 = vsub.f32 %v1427_v18, %v1428_v16 }
 0x20d   :  { %v1430_v21 = vadd.f32 1e-05, %v1429_v20 }
 0x20f   :  { %2025 = vrsqrt.f32 %v1430_v21 }
 0x21c   :  { %v2026_v24 = vpop.eup %2025 }
 0x21d   :  { %v1433_v25 = vmul.f32 %v2026_v24, %v1432_v22 }
 0x21f   :  { %1439 = vperm.xlu1 %1778, %v1433_v25   ;;  %v1435_v27 = vmul.f32 %v1433_v25, %v1426_v13 }
 0x221   :  { %v1436_v28 = vsub.f32 %v1434_v26, %v1435_v27 }
 0x223   :  { %1462 = vperm.xlu1 %1778, %v1436_v28  }
 0x29a   :  { %v1440_v29 = vpop.permute.xlu1 %1439 }
 0x29b   :  { %v1442_v30 = vmul.f32 %v1440_v29, %v2573_v40  ;;  %v1443_v31 = vmul.f32 %v1440_v29, %v2575_v41  ;;  %v1444_v32 = vmul.f32 %v1440_v29, %v2577_v42  ;;  %v1445_v33 = vmul.f32 %v1440_v29, %v2579_v44 }
 0x29c   :  { %v1446_v34 = vmul.f32 %v1440_v29, %v2581_v48  ;;  %v1447_v35 = vmul.f32 %v1440_v29, %v2583_v49  ;;  %v1448_v36 = vmul.f32 %v1440_v29, %v2585_v50  ;;  %v1449_v37 = vmul.f32 %v1440_v29, %v2587_v38 }
 0x29d   :  { %v1450_v39 = vmul.f32 %v1440_v29, %v2589_v55  ;;  %v1451_v43 = vmul.f32 %v1440_v29, %v2591_v56  ;;  %v1452_v40 = vmul.f32 %v1440_v29, %v2593_v57  ;;  %v1453_v41 = vmul.f32 %v1440_v29, %v2595_v59 }
 0x29e   :  { %v1454_v42 = vmul.f32 %v1440_v29, %v2615_v14  ;;  %v1455_v44 = vmul.f32 %v1440_v29, %v2619_v17  ;;  %v1456_v48 = vmul.f32 %v1440_v29, %v2622_v19  ;;  %v1457_v49 = vmul.f32 %v1440_v29, %v2626_v23  ;;  %v1463_v45 = vpop.permute.xlu1 %1462 }
 0x29f   :  { %v1458_v50 = vmul.f32 %v1440_v29, %v1363_v0  ;;  %v1459_v46 = vmul.f32 %v1440_v29, %v1365_v4  ;;  %v1465_v38 = vadd.f32 %v1463_v45, %v1442_v30  ;;  %v1466_v47 = vadd.f32 %v1463_v45, %v1443_v31 }
 0x2a0   :  { %v1467_v55 = vadd.f32 %v1463_v45, %v1444_v32  ;;  %v1468_v51 = vadd.f32 %v1463_v45, %v1445_v33  ;;  %v1469_v56 = vadd.f32 %v1463_v45, %v1446_v34  ;;  %v1470_v52 = vadd.f32 %v1463_v45, %v1447_v35 }
 0x2a1   :  { %v1471_v57 = vadd.f32 %v1463_v45, %v1448_v36  ;;  %v1472_v53 = vadd.f32 %v1463_v45, %v1449_v37  ;;  %v1473_v59 = vadd.f32 %v1463_v45, %v1450_v39  ;;  %v1474_v54 = vadd.f32 %v1463_v45, %v1451_v43 }
 0x2a2   :  { %v1475_v14 = vadd.f32 %v1463_v45, %v1452_v40  ;;  %v1476_v58 = vadd.f32 %v1463_v45, %v1453_v41  ;;  %v1477_v17 = vadd.f32 %v1463_v45, %v1454_v42  ;;  %v1478_v60 = vadd.f32 %v1463_v45, %v1455_v44 }
 0x2a3   :  { %v1479_v19 = vadd.f32 %v1463_v45, %v1456_v48  ;;  %v1480_v61 = vadd.f32 %v1463_v45, %v1457_v49  ;;  %v1481_v23 = vadd.f32 %v1463_v45, %v1458_v50  ;;  %v1482_v62 = vadd.f32 %v1463_v45, %v1459_v46 }
 0x2a4   :  { %v1483_v63 = vmax.f32 %v1465_v38, 0.0  ;;  %v1484_v0 = vmax.f32 %v1466_v47, 0.0  ;;  %v1485_v1 = vmax.f32 %v1467_v55, 0.0  ;;  %v1486_v2 = vmax.f32 %v1468_v51, 0.0 }
 0x2a5   :  { %v1487_v3 = vmax.f32 %v1469_v56, 0.0  ;;  %v1488_v4 = vmax.f32 %v1470_v52, 0.0  ;;  %v1489_v5 = vmax.f32 %v1471_v57, 0.0  ;;  %v1490_v6 = vmax.f32 %v1472_v53, 0.0 }
 0x2a6   :  { %v1491_v7 = vmax.f32 %v1473_v59, 0.0  ;;  %v1492_v8 = vmax.f32 %v1474_v54, 0.0  ;;  %v1493_v9 = vmax.f32 %v1475_v14, 0.0  ;;  %v1494_v10 = vmax.f32 %v1476_v58, 0.0 }
 0x2a7   :  { %v1495_v11 = vmax.f32 %v1477_v17, 0.0  ;;  %v1496_v12 = vmax.f32 %v1478_v60, 0.0  ;;  %v1497_v13 = vmax.f32 %v1479_v19, 0.0  ;;  %v1498_v15 = vmax.f32 %v1480_v61, 0.0 }
 0x2a8   :  { %v1499_v16 = vmax.f32 %v1481_v23, 0.0  ;;  %v1500_v18 = vmax.f32 %v1482_v62, 0.0  ;;  %v1768_v20 = vpack.c.bf16 %v1484_v0, %v1483_v63  ;;  %v1769_v21 = vpack.c.bf16 %v1486_v2, %v1485_v1 }
 0x2a9   :  { %v1770_v22 = vpack.c.bf16 %v1488_v4, %v1487_v3  ;;  %v1771_v24 = vpack.c.bf16 %v1490_v6, %v1489_v5  ;;  %v1772_v25 = vpack.c.bf16 %v1492_v8, %v1491_v7  ;;  %v1773_v26 = vpack.c.bf16 %v1494_v10, %v1493_v9 }
 0x2aa   :  { %v1774_v27 = vpack.c.bf16 %v1496_v12, %v1495_v11  ;;  %v1775_v28 = vpack.c.bf16 %v1498_v15, %v1497_v13  ;;  %v1776_v29 = vpack.c.bf16 %v1500_v18, %v1499_v16  ;;  %1573 = vst [vmem:[%s2706_s4] sm:$0xff] %v1768_v20  ;;  %1574 = vst [vmem:[%s2706_s4 + $0x8] sm:$0xff] %v1769_v21 }
 0x2ab   :  { %1575 = vst [vmem:[%s2706_s4 + $0x10] sm:$0xff] %v1770_v22  ;;  %1576 = vst [vmem:[%s2706_s4 + $0x18] sm:$0xff] %v1771_v24 }
 0x2ac   :  { %1577 = vst [vmem:[%s2706_s4 + $0x20] sm:$0xff] %v1772_v25  ;;  %1578 = vst [vmem:[%s2706_s4 + $0x28] sm:$0xff] %v1773_v26 }
 0x2ad   :  { %1579 = vst [vmem:[%s2706_s4 + $0x30] sm:$0xff] %v1774_v27  ;;  %1580 = vst [vmem:[%s2706_s4 + $0x38] sm:$0xff] %v1775_v28 }
 0x2ae   :  { %1581 = vst [vmem:[%s2706_s4 + $0x40] sm:$0xff] %v1776_v29 }

// kernel: _lambda_.10
= control target key start
LH: loop header
LB: loop body
LE: loop exit
PB: predicated region body
PF: predicated region fallthrough
CT: control target
= control target key end

     0   :  { %v5134_v1 = vmov 0   ;;  %vm2039_vm0 = vcmask 654336   ;;  %vm5136_vm1 = vmmov 0   ;;  %s7353_s0 = inlined_call_operand.vmem [shape: bf16[80,8576], index: 0, kind: input, shape index: {}]   ;;  %s7354_s1 = inlined_call_operand.vmem [shape: bf16[8,80], index: 1, kind: input, shape index: {}]   ;;  %s7355_s2 = inlined_call_operand.vmem [shape: f32[8,1], index: 2, kind: input, shape index: {}]   ;;  %s7356_s3 = inlined_call_operand.vmem [shape: f32[8,1], index: 3, kind: input, shape index: {}]   ;;  %s7357_s4 = inlined_call_operand.vmem [shape: bf16[8,8576], index: 4, kind: output, shape index: {}]  }
   0x1   :  { %v4630_v0 = vld [vmem:[%s7353_s0 + $0x864] ss:$268 sps:$4 sm:$0xff]   ;;  %2075 = vmatprep.mubr.bf16.mxu0 %v5134_v1  ;;  %2116 = vmatprep.mubr.bf16.mxu1 %v5134_v1  ;;  %v4632_v2 = vld [vmem:[%s7353_s0 + $0x86c] ss:$268 sps:$4 sm:$0xff]   ;;  %v4635_v4 = vld [vmem:[%s7353_s0 + $0x868] ss:$268 sps:$4 sm:$0xff]  }
   0x2   :  { %4628 = vset.pattern.permute.xlu1 %v5134_v1  ;;  %4629 = vset.pattern.permute.xlu0 %v5134_v1  ;;  %v4634_v3 = vld [vmem:[%s7353_s0 + $0x860] ss:$268 sps:$4 sm:$0xff]   ;;  %v4640_v7 = vld [vmem:[%s7353_s0 + $0x648] ss:$268 sps:$4 sm:$0xff]   ;;  %v4641_v8 = vld [vmem:[%s7353_s0 + $0x650] ss:$268 sps:$4 sm:$0xff]  }
   0x3   :  { %2049 = vmatprep.subr.bf16.mxu0 %v4630_v0  ;;  %2090 = vmatprep.subr.bf16.mxu1 %v4632_v2  ;;  %v4636_v5 = vld [vmem:[%s7353_s0 + $0x64c] ss:$268 sps:$4 sm:$0xff]   ;;  %v4638_v6 = vld [vmem:[%s7353_s0 + $0x654] ss:$268 sps:$4 sm:$0xff]   ;;  %v4644_v10 = vld [vmem:[%s7353_s0 + $0x43c] ss:$268 sps:$4 sm:$0xff]  }
   0x4   :  { %2050 = vmatpush1.bf16.msra.mxu0 %v4634_v3  ;;  %2091 = vmatpush1.bf16.msra.mxu1 %v4635_v4  ;;  %v4642_v9 = vld [vmem:[%s7353_s0 + $0x434] ss:$268 sps:$4 sm:$0xff]   ;;  %v4646_v11 = vld [vmem:[%s7353_s0 + $0x430] ss:$268 sps:$4 sm:$0xff]   ;;  %v4647_v12 = vld [vmem:[%s7353_s0 + $0x438] ss:$268 sps:$4 sm:$0xff]  }
   0x5   :  { %2051 = vmatprep.subr.bf16.mxu0 %v4636_v5  ;;  %2092 = vmatprep.subr.bf16.mxu1 %v4638_v6  ;;  %v4648_v13 = vld [vmem:[%s7353_s0 + $0x21c] ss:$268 sps:$4 sm:$0xff]   ;;  %v4650_v14 = vld [vmem:[%s7353_s0 + $0x224] ss:$268 sps:$4 sm:$0xff]   ;;  %v4653_v16 = vld [vmem:[%s7353_s0 + $0x220] ss:$268 sps:$4 sm:$0xff]  }
   0x6   :  { %v4652_v15 = vld [vmem:[%s7353_s0 + $0x218] ss:$268 sps:$4 sm:$0xff]   ;;  %v4658_v19 = vld [vmem:[%s7353_s0] ss:$268 sps:$4 sm:$0xff]   ;;  %v4659_v20 = vld [vmem:[%s7353_s0 + $0x8] ss:$268 sps:$4 sm:$0xff]  }
   0x7   :  { %v4654_v17 = vld [vmem:[%s7353_s0 + $0x4] ss:$268 sps:$4 sm:$0xff]   ;;  %v4656_v18 = vld [vmem:[%s7353_s0 + $0xc] ss:$268 sps:$4 sm:$0xff]   ;;  %v4662_v21 = vld [vmem:[%s7353_s0 + $0x874] ss:$268 sps:$4 sm:$0xff]  }
   0x8   :  { %2052 = vmatpush1.bf16.msra.mxu0 %v4640_v7  ;;  %2093 = vmatpush1.bf16.msra.mxu1 %v4641_v8  ;;  %v4665_v22 = vld [vmem:[%s7353_s0 + $0x87c] ss:$268 sps:$4 sm:$0xff]   ;;  %v5235_v23 = vld [vmem:[%s7354_s1] sm:$0xf]  ;;  %v4663_v25 = vld [vmem:[%s7353_s0 + $0x878] ss:$268 sps:$4 sm:$0xff]  }
   0x9   :  { %2053 = vmatprep.subr.bf16.mxu0 %v4642_v9  ;;  %2094 = vmatprep.subr.bf16.mxu1 %v4644_v10  ;;  %v4660_v24 = vld [vmem:[%s7353_s0 + $0x870] ss:$268 sps:$4 sm:$0xff]   ;;  %v4666_v28 = vld [vmem:[%s7353_s0 + $0x658] ss:$268 sps:$4 sm:$0xff]   ;;  %v4669_v29 = vld [vmem:[%s7353_s0 + $0x660] ss:$268 sps:$4 sm:$0xff]  }
   0xa   :  { %v4668_v26 = vld [vmem:[%s7353_s0 + $0x65c] ss:$268 sps:$4 sm:$0xff]   ;;  %v4671_v27 = vld [vmem:[%s7353_s0 + $0x664] ss:$268 sps:$4 sm:$0xff]   ;;  %v4677_v31 = vld [vmem:[%s7353_s0 + $0x44c] ss:$268 sps:$4 sm:$0xff]  }
   0xb   :  { %v4674_v30 = vld [vmem:[%s7353_s0 + $0x444] ss:$268 sps:$4 sm:$0xff]   ;;  %v4672_v32 = vld [vmem:[%s7353_s0 + $0x440] ss:$268 sps:$4 sm:$0xff]   ;;  %v4675_v33 = vld [vmem:[%s7353_s0 + $0x448] ss:$268 sps:$4 sm:$0xff]  }
   0xc   :  { %2054 = vmatpush1.bf16.msra.mxu0 %v4646_v11  ;;  %2095 = vmatpush1.bf16.msra.mxu1 %v4647_v12  ;;  %v4680_v34 = vld [vmem:[%s7353_s0 + $0x22c] ss:$268 sps:$4 sm:$0xff]   ;;  %v4683_v35 = vld [vmem:[%s7353_s0 + $0x234] ss:$268 sps:$4 sm:$0xff]   ;;  %v4681_v37 = vld [vmem:[%s7353_s0 + $0x230] ss:$268 sps:$4 sm:$0xff]  }
   0xd   :  { %2055 = vmatprep.subr.bf16.mxu0 %v4648_v13  ;;  %2096 = vmatprep.subr.bf16.mxu1 %v4650_v14  ;;  %v4678_v36 = vld [vmem:[%s7353_s0 + $0x228] ss:$268 sps:$4 sm:$0xff]   ;;  %v4684_v40 = vld [vmem:[%s7353_s0 + $0x10] ss:$268 sps:$4 sm:$0xff]   ;;  %v4687_v41 = vld [vmem:[%s7353_s0 + $0x18] ss:$268 sps:$4 sm:$0xff]  }
   0xe   :  { %v4686_v38 = vld [vmem:[%s7353_s0 + $0x14] ss:$268 sps:$4 sm:$0xff]   ;;  %v4689_v39 = vld [vmem:[%s7353_s0 + $0x1c] ss:$268 sps:$4 sm:$0xff]   ;;  %v4692_v42 = vld [vmem:[%s7353_s0 + $0x884] ss:$268 sps:$4 sm:$0xff]  }
   0xf   :  { %v4695_v43 = vld [vmem:[%s7353_s0 + $0x88c] ss:$268 sps:$4 sm:$0xff]   ;;  %v4693_v45 = vld [vmem:[%s7353_s0 + $0x888] ss:$268 sps:$4 sm:$0xff]   ;;  %v4699_v49 = vld [vmem:[%s7353_s0 + $0x670] ss:$268 sps:$4 sm:$0xff]  }
  0x10   :  { %2056 = vmatpush1.bf16.msra.mxu0 %v4652_v15  ;;  %2097 = vmatpush1.bf16.msra.mxu1 %v4653_v16  ;;  %v4690_v44 = vld [vmem:[%s7353_s0 + $0x880] ss:$268 sps:$4 sm:$0xff]   ;;  %v4696_v48 = vld [vmem:[%s7353_s0 + $0x668] ss:$268 sps:$4 sm:$0xff]   ;;  %v4702_v52 = vld [vmem:[%s7353_s0 + $0x450] ss:$268 sps:$4 sm:$0xff]  }
  0x11   :  { %2057 = vmatprep.subr.bf16.mxu0 %v4654_v17  ;;  %2098 = vmatprep.subr.bf16.mxu1 %v4656_v18  ;;  %v4698_v46 = vld [vmem:[%s7353_s0 + $0x66c] ss:$268 sps:$4 sm:$0xff]   ;;  %v4701_v47 = vld [vmem:[%s7353_s0 + $0x674] ss:$268 sps:$4 sm:$0xff]   ;;  %v4707_v51 = vld [vmem:[%s7353_s0 + $0x45c] ss:$268 sps:$4 sm:$0xff]  }
  0x12   :  { %v4704_v50 = vld [vmem:[%s7353_s0 + $0x454] ss:$268 sps:$4 sm:$0xff]   ;;  %v4705_v53 = vld [vmem:[%s7353_s0 + $0x458] ss:$268 sps:$4 sm:$0xff]   ;;  %v4710_v54 = vld [vmem:[%s7353_s0 + $0x23c] ss:$268 sps:$4 sm:$0xff]  }
  0x13   :  { %v4713_v55 = vld [vmem:[%s7353_s0 + $0x244] ss:$268 sps:$4 sm:$0xff]   ;;  %v4711_v57 = vld [vmem:[%s7353_s0 + $0x240] ss:$268 sps:$4 sm:$0xff]   ;;  %v4717_v61 = vld [vmem:[%s7353_s0 + $0x28] ss:$268 sps:$4 sm:$0xff]  }
  0x14   :  { %2058 = vmatpush1.bf16.msra.mxu0 %v4658_v19  ;;  %2099 = vmatpush1.bf16.msra.mxu1 %v4659_v20  ;;  %v4708_v56 = vld [vmem:[%s7353_s0 + $0x238] ss:$268 sps:$4 sm:$0xff]   ;;  %v4714_v60 = vld [vmem:[%s7353_s0 + $0x20] ss:$268 sps:$4 sm:$0xff]   ;;  %v4725_v63 = vld [vmem:[%s7353_s0 + $0x89c] ss:$268 sps:$4 sm:$0xff]  }
  0x15   :  { %2131 = vmatprep.subr.bf16.mxu0 %v4662_v21  ;;  %2172 = vmatprep.subr.bf16.mxu1 %v4665_v22  ;;  %v4716_v58 = vld [vmem:[%s7353_s0 + $0x24] ss:$268 sps:$4 sm:$0xff]   ;;  %v4719_v59 = vld [vmem:[%s7353_s0 + $0x2c] ss:$268 sps:$4 sm:$0xff]   ;;  %v4722_v62 = vld [vmem:[%s7353_s0 + $0x894] ss:$268 sps:$4 sm:$0xff]  }
  0x16   :  { %v4720_v0 = vld [vmem:[%s7353_s0 + $0x890] ss:$268 sps:$4 sm:$0xff]   ;;  %v4723_v2 = vld [vmem:[%s7353_s0 + $0x898] ss:$268 sps:$4 sm:$0xff]   ;;  %v4729_v6 = vld [vmem:[%s7353_s0 + $0x680] ss:$268 sps:$4 sm:$0xff]  }
  0x17   :  { %4503 = vmatmul.mubr.msk.bf16.vlgmr.msra.gmra.mxu0 %vm2039_vm0, %v5235_v23  ;;  %4504 = vmatmul.mubr.msk.bf16.vlgmr.msra.gmra.mxu1 %vm2039_vm0, %v5235_v23  ;;  %v4728_v3 = vld [vmem:[%s7353_s0 + $0x67c] ss:$268 sps:$4 sm:$0xff]   ;;  %v4731_v4 = vld [vmem:[%s7353_s0 + $0x684] ss:$268 sps:$4 sm:$0xff]   ;;  %v4737_v8 = vld [vmem:[%s7353_s0 + $0x46c] ss:$268 sps:$4 sm:$0xff]  }
  0x18   :  { %2132 = vmatpush1.bf16.msra.mxu0 %v4660_v24  ;;  %2173 = vmatpush1.bf16.msra.mxu1 %v4663_v25  ;;  %v4726_v5 = vld [vmem:[%s7353_s0 + $0x678] ss:$268 sps:$4 sm:$0xff]   ;;  %v4732_v9 = vld [vmem:[%s7353_s0 + $0x460] ss:$268 sps:$4 sm:$0xff]   ;;  %v4735_v10 = vld [vmem:[%s7353_s0 + $0x468] ss:$268 sps:$4 sm:$0xff]  }
  0x19   :  { %2133 = vmatprep.subr.bf16.mxu0 %v4668_v26  ;;  %2174 = vmatprep.subr.bf16.mxu1 %v4671_v27  ;;  %v4734_v7 = vld [vmem:[%s7353_s0 + $0x464] ss:$268 sps:$4 sm:$0xff]   ;;  %v4740_v11 = vld [vmem:[%s7353_s0 + $0x24c] ss:$268 sps:$4 sm:$0xff]   ;;  %v4743_v12 = vld [vmem:[%s7353_s0 + $0x254] ss:$268 sps:$4 sm:$0xff]  }
  0x1a   :  { %2157 = vmatprep.mubr.bf16.mxu0 %v5134_v1  ;;  %2198 = vmatprep.mubr.bf16.mxu1 %v5134_v1  ;;  %v4738_v13 = vld [vmem:[%s7353_s0 + $0x248] ss:$268 sps:$4 sm:$0xff]   ;;  %v4741_v14 = vld [vmem:[%s7353_s0 + $0x250] ss:$268 sps:$4 sm:$0xff]   ;;  %v4747_v18 = vld [vmem:[%s7353_s0 + $0x38] ss:$268 sps:$4 sm:$0xff]  }
  0x1b   :  { %v4746_v15 = vld [vmem:[%s7353_s0 + $0x34] ss:$268 sps:$4 sm:$0xff]   ;;  %v4749_v16 = vld [vmem:[%s7353_s0 + $0x3c] ss:$268 sps:$4 sm:$0xff]   ;;  %v4752_v19 = vld [vmem:[%s7353_s0 + $0x8a4] ss:$268 sps:$4 sm:$0xff]  }
  0x1c   :  { %2134 = vmatpush1.bf16.msra.mxu0 %v4666_v28  ;;  %2175 = vmatpush1.bf16.msra.mxu1 %v4669_v29  ;;  %v4744_v17 = vld [vmem:[%s7353_s0 + $0x30] ss:$268 sps:$4 sm:$0xff]   ;;  %v4755_v20 = vld [vmem:[%s7353_s0 + $0x8ac] ss:$268 sps:$4 sm:$0xff]   ;;  %v4753_v22 = vld [vmem:[%s7353_s0 + $0x8a8] ss:$268 sps:$4 sm:$0xff]  }
  0x1d   :  { %2135 = vmatprep.subr.bf16.mxu0 %v4674_v30  ;;  %2176 = vmatprep.subr.bf16.mxu1 %v4677_v31  ;;  %v4750_v21 = vld [vmem:[%s7353_s0 + $0x8a0] ss:$268 sps:$4 sm:$0xff]   ;;  %v4756_v26 = vld [vmem:[%s7353_s0 + $0x688] ss:$268 sps:$4 sm:$0xff]   ;;  %v4759_v27 = vld [vmem:[%s7353_s0 + $0x690] ss:$268 sps:$4 sm:$0xff]  }
  0x1e   :  { %v4758_v24 = vld [vmem:[%s7353_s0 + $0x68c] ss:$268 sps:$4 sm:$0xff]   ;;  %v4761_v25 = vld [vmem:[%s7353_s0 + $0x694] ss:$268 sps:$4 sm:$0xff]   ;;  %v4767_v29 = vld [vmem:[%s7353_s0 + $0x47c] ss:$268 sps:$4 sm:$0xff]  }
  0x1f   :  { %v4764_v28 = vld [vmem:[%s7353_s0 + $0x474] ss:$268 sps:$4 sm:$0xff]   ;;  %v4762_v30 = vld [vmem:[%s7353_s0 + $0x470] ss:$268 sps:$4 sm:$0xff]   ;;  %v4765_v31 = vld [vmem:[%s7353_s0 + $0x478] ss:$268 sps:$4 sm:$0xff]  }
  0x20   :  { %2136 = vmatpush1.bf16.msra.mxu0 %v4672_v32  ;;  %2177 = vmatpush1.bf16.msra.mxu1 %v4675_v33  ;;  %v4770_v32 = vld [vmem:[%s7353_s0 + $0x25c] ss:$268 sps:$4 sm:$0xff]   ;;  %v4773_v33 = vld [vmem:[%s7353_s0 + $0x264] ss:$268 sps:$4 sm:$0xff]  }
  0x21   :  { %2137 = vmatprep.subr.bf16.mxu0 %v4680_v34  ;;  %2178 = vmatprep.subr.bf16.mxu1 %v4683_v35  ;;  %v4768_v34 = vld [vmem:[%s7353_s0 + $0x258] ss:$268 sps:$4 sm:$0xff]   ;;  %v4771_v35 = vld [vmem:[%s7353_s0 + $0x260] ss:$268 sps:$4 sm:$0xff]  }
  0x24   :  { %2138 = vmatpush1.bf16.msra.mxu0 %v4678_v36  ;;  %2179 = vmatpush1.bf16.msra.mxu1 %v4681_v37  ;;  %v4776_v36 = vld [vmem:[%s7353_s0 + $0x44] ss:$268 sps:$4 sm:$0xff]   ;;  %v4779_v37 = vld [vmem:[%s7353_s0 + $0x4c] ss:$268 sps:$4 sm:$0xff]  }
  0x25   :  { %2139 = vmatprep.subr.bf16.mxu0 %v4686_v38  ;;  %2180 = vmatprep.subr.bf16.mxu1 %v4689_v39  ;;  %v4774_v38 = vld [vmem:[%s7353_s0 + $0x40] ss:$268 sps:$4 sm:$0xff]   ;;  %v4777_v39 = vld [vmem:[%s7353_s0 + $0x48] ss:$268 sps:$4 sm:$0xff]  }
  0x28   :  { %2140 = vmatpush1.bf16.msra.mxu0 %v4684_v40  ;;  %2181 = vmatpush1.bf16.msra.mxu1 %v4687_v41  ;;  %v4782_v40 = vld [vmem:[%s7353_s0 + $0x8b4] ss:$268 sps:$4 sm:$0xff]   ;;  %v4785_v41 = vld [vmem:[%s7353_s0 + $0x8bc] ss:$268 sps:$4 sm:$0xff]  }
  0x29   :  { %2213 = vmatprep.subr.bf16.mxu0 %v4692_v42  ;;  %2254 = vmatprep.subr.bf16.mxu1 %v4695_v43  ;;  %v4780_v42 = vld [vmem:[%s7353_s0 + $0x8b0] ss:$268 sps:$4 sm:$0xff]   ;;  %v4783_v43 = vld [vmem:[%s7353_s0 + $0x8b8] ss:$268 sps:$4 sm:$0xff]  }
  0x2b   :  { %4505 = vmatmul.mubr.msk.bf16.vlgmr.msra.gmra.mxu0 %vm2039_vm0, %v5235_v23  ;;  %4506 = vmatmul.mubr.msk.bf16.vlgmr.msra.gmra.mxu1 %vm2039_vm0, %v5235_v23 }
  0x2c   :  { %2214 = vmatpush1.bf16.msra.mxu0 %v4690_v44  ;;  %2255 = vmatpush1.bf16.msra.mxu1 %v4693_v45  ;;  %v4788_v44 = vld [vmem:[%s7353_s0 + $0x69c] ss:$268 sps:$4 sm:$0xff]   ;;  %v4791_v45 = vld [vmem:[%s7353_s0 + $0x6a4] ss:$268 sps:$4 sm:$0xff]  }
  0x2d   :  { %2215 = vmatprep.subr.bf16.mxu0 %v4698_v46  ;;  %2256 = vmatprep.subr.bf16.mxu1 %v4701_v47  ;;  %v4786_v46 = vld [vmem:[%s7353_s0 + $0x698] ss:$268 sps:$4 sm:$0xff]   ;;  %v4789_v47 = vld [vmem:[%s7353_s0 + $0x6a0] ss:$268 sps:$4 sm:$0xff]  }
  0x2e   :  { %2239 = vmatprep.mubr.bf16.mxu0 %v5134_v1  ;;  %2280 = vmatprep.mubr.bf16.mxu1 %v5134_v1 }
  0x30   :  { %2216 = vmatpush1.bf16.msra.mxu0 %v4696_v48  ;;  %2257 = vmatpush1.bf16.msra.mxu1 %v4699_v49  ;;  %v4794_v48 = vld [vmem:[%s7353_s0 + $0x484] ss:$268 sps:$4 sm:$0xff]   ;;  %v4797_v49 = vld [vmem:[%s7353_s0 + $0x48c] ss:$268 sps:$4 sm:$0xff]  }
  0x31   :  { %2217 = vmatprep.subr.bf16.mxu0 %v4704_v50  ;;  %2258 = vmatprep.subr.bf16.mxu1 %v4707_v51  ;;  %v4792_v50 = vld [vmem:[%s7353_s0 + $0x480] ss:$268 sps:$4 sm:$0xff]   ;;  %v4795_v51 = vld [vmem:[%s7353_s0 + $0x488] ss:$268 sps:$4 sm:$0xff]  }
  0x34   :  { %2218 = vmatpush1.bf16.msra.mxu0 %v4702_v52  ;;  %2259 = vmatpush1.bf16.msra.mxu1 %v4705_v53  ;;  %v4800_v52 = vld [vmem:[%s7353_s0 + $0x26c] ss:$268 sps:$4 sm:$0xff]   ;;  %v4803_v53 = vld [vmem:[%s7353_s0 + $0x274] ss:$268 sps:$4 sm:$0xff]  }
  0x35   :  { %2219 = vmatprep.subr.bf16.mxu0 %v4710_v54  ;;  %2260 = vmatprep.subr.bf16.mxu1 %v4713_v55  ;;  %v4798_v54 = vld [vmem:[%s7353_s0 + $0x268] ss:$268 sps:$4 sm:$0xff]   ;;  %v4801_v55 = vld [vmem:[%s7353_s0 + $0x270] ss:$268 sps:$4 sm:$0xff]  }
  0x38   :  { %2220 = vmatpush1.bf16.msra.mxu0 %v4708_v56  ;;  %2261 = vmatpush1.bf16.msra.mxu1 %v4711_v57  ;;  %v4806_v56 = vld [vmem:[%s7353_s0 + $0x54] ss:$268 sps:$4 sm:$0xff]   ;;  %v4809_v57 = vld [vmem:[%s7353_s0 + $0x5c] ss:$268 sps:$4 sm:$0xff]  }
  0x39   :  { %2221 = vmatprep.subr.bf16.mxu0 %v4716_v58  ;;  %2262 = vmatprep.subr.bf16.mxu1 %v4719_v59  ;;  %v4804_v58 = vld [vmem:[%s7353_s0 + $0x50] ss:$268 sps:$4 sm:$0xff]   ;;  %v4807_v59 = vld [vmem:[%s7353_s0 + $0x58] ss:$268 sps:$4 sm:$0xff]  }
  0x3c   :  { %2222 = vmatpush1.bf16.msra.mxu0 %v4714_v60  ;;  %2263 = vmatpush1.bf16.msra.mxu1 %v4717_v61  ;;  %v4812_v60 = vld [vmem:[%s7353_s0 + $0x8c4] ss:$268 sps:$4 sm:$0xff]   ;;  %v4815_v61 = vld [vmem:[%s7353_s0 + $0x8cc] ss:$268 sps:$4 sm:$0xff]  }
  0x3d   :  { %2295 = vmatprep.subr.bf16.mxu0 %v4722_v62  ;;  %2336 = vmatprep.subr.bf16.mxu1 %v4725_v63  ;;  %v4810_v62 = vld [vmem:[%s7353_s0 + $0x8c0] ss:$268 sps:$4 sm:$0xff]   ;;  %v4813_v63 = vld [vmem:[%s7353_s0 + $0x8c8] ss:$268 sps:$4 sm:$0xff]  }
  0x3f   :  { %4507 = vmatmul.mubr.msk.bf16.vlgmr.msra.gmra.mxu0 %vm2039_vm0, %v5235_v23  ;;  %4508 = vmatmul.mubr.msk.bf16.vlgmr.msra.gmra.mxu1 %vm2039_vm0, %v5235_v23 }
  0x40   :  { %2296 = vmatpush1.bf16.msra.mxu0 %v4720_v0  ;;  %2337 = vmatpush1.bf16.msra.mxu1 %v4723_v2  ;;  %v4818_v0 = vld [vmem:[%s7353_s0 + $0x6ac] ss:$268 sps:$4 sm:$0xff]   ;;  %v4821_v2 = vld [vmem:[%s7353_s0 + $0x6b4] ss:$268 sps:$4 sm:$0xff]  }
  0x41   :  { %2297 = vmatprep.subr.bf16.mxu0 %v4728_v3  ;;  %2338 = vmatprep.subr.bf16.mxu1 %v4731_v4  ;;  %v4816_v3 = vld [vmem:[%s7353_s0 + $0x6a8] ss:$268 sps:$4 sm:$0xff]   ;;  %v4819_v4 = vld [vmem:[%s7353_s0 + $0x6b0] ss:$268 sps:$4 sm:$0xff]  }
  0x42   :  { %2321 = vmatprep.mubr.bf16.mxu0 %v5134_v1  ;;  %2362 = vmatprep.mubr.bf16.mxu1 %v5134_v1 }
  0x44   :  { %2298 = vmatpush1.bf16.msra.mxu0 %v4726_v5  ;;  %2339 = vmatpush1.bf16.msra.mxu1 %v4729_v6  ;;  %v4824_v5 = vld [vmem:[%s7353_s0 + $0x494] ss:$268 sps:$4 sm:$0xff]   ;;  %v4827_v6 = vld [vmem:[%s7353_s0 + $0x49c] ss:$268 sps:$4 sm:$0xff]  }
  0x45   :  { %2299 = vmatprep.subr.bf16.mxu0 %v4734_v7  ;;  %2340 = vmatprep.subr.bf16.mxu1 %v4737_v8  ;;  %v4822_v7 = vld [vmem:[%s7353_s0 + $0x490] ss:$268 sps:$4 sm:$0xff]   ;;  %v4825_v8 = vld [vmem:[%s7353_s0 + $0x498] ss:$268 sps:$4 sm:$0xff]  }
  0x48   :  { %2300 = vmatpush1.bf16.msra.mxu0 %v4732_v9  ;;  %2341 = vmatpush1.bf16.msra.mxu1 %v4735_v10  ;;  %v4830_v9 = vld [vmem:[%s7353_s0 + $0x27c] ss:$268 sps:$4 sm:$0xff]   ;;  %v4833_v10 = vld [vmem:[%s7353_s0 + $0x284] ss:$268 sps:$4 sm:$0xff]  }
  0x49   :  { %2301 = vmatprep.subr.bf16.mxu0 %v4740_v11  ;;  %2342 = vmatprep.subr.bf16.mxu1 %v4743_v12  ;;  %v4828_v11 = vld [vmem:[%s7353_s0 + $0x278] ss:$268 sps:$4 sm:$0xff]   ;;  %v4831_v12 = vld [vmem:[%s7353_s0 + $0x280] ss:$268 sps:$4 sm:$0xff]  }
  0x4c   :  { %2302 = vmatpush1.bf16.msra.mxu0 %v4738_v13  ;;  %2343 = vmatpush1.bf16.msra.mxu1 %v4741_v14  ;;  %v4836_v13 = vld [vmem:[%s7353_s0 + $0x64] ss:$268 sps:$4 sm:$0xff]   ;;  %v4839_v14 = vld [vmem:[%s7353_s0 + $0x6c] ss:$268 sps:$4 sm:$0xff]  }
  0x4d   :  { %2303 = vmatprep.subr.bf16.mxu0 %v4746_v15  ;;  %2344 = vmatprep.subr.bf16.mxu1 %v4749_v16  ;;  %v4834_v15 = vld [vmem:[%s7353_s0 + $0x60] ss:$268 sps:$4 sm:$0xff]   ;;  %v4837_v16 = vld [vmem:[%s7353_s0 + $0x68] ss:$268 sps:$4 sm:$0xff]  }
  0x50   :  { %2304 = vmatpush1.bf16.msra.mxu0 %v4744_v17  ;;  %2345 = vmatpush1.bf16.msra.mxu1 %v4747_v18  ;;  %v4842_v17 = vld [vmem:[%s7353_s0 + $0x8d4] ss:$268 sps:$4 sm:$0xff]   ;;  %v4845_v18 = vld [vmem:[%s7353_s0 + $0x8dc] ss:$268 sps:$4 sm:$0xff]  }
  0x51   :  { %2377 = vmatprep.subr.bf16.mxu0 %v4752_v19  ;;  %2418 = vmatprep.subr.bf16.mxu1 %v4755_v20  ;;  %v4840_v19 = vld [vmem:[%s7353_s0 + $0x8d0] ss:$268 sps:$4 sm:$0xff]   ;;  %v4843_v20 = vld [vmem:[%s7353_s0 + $0x8d8] ss:$268 sps:$4 sm:$0xff]  }
  0x53   :  { %4509 = vmatmul.mubr.msk.bf16.vlgmr.msra.gmra.mxu0 %vm2039_vm0, %v5235_v23  ;;  %4510 = vmatmul.mubr.msk.bf16.vlgmr.msra.gmra.mxu1 %vm2039_vm0, %v5235_v23 }
  0x54   :  { %2378 = vmatpush1.bf16.msra.mxu0 %v4750_v21  ;;  %2419 = vmatpush1.bf16.msra.mxu1 %v4753_v22  ;;  %v4848_v21 = vld [vmem:[%s7353_s0 + $0x6bc] ss:$268 sps:$4 sm:$0xff]   ;;  %v4851_v22 = vld [vmem:[%s7353_s0 + $0x6c4] ss:$268 sps:$4 sm:$0xff]  }
  0x55   :  { %2379 = vmatprep.subr.bf16.mxu0 %v4758_v24  ;;  %2420 = vmatprep.subr.bf16.mxu1 %v4761_v25  ;;  %v4846_v24 = vld [vmem:[%s7353_s0 + $0x6b8] ss:$268 sps:$4 sm:$0xff]   ;;  %v4849_v25 = vld [vmem:[%s7353_s0 + $0x6c0] ss:$268 sps:$4 sm:$0xff]  }
  0x56   :  { %2403 = vmatprep.mubr.bf16.mxu0 %v5134_v1  ;;  %2444 = vmatprep.mubr.bf16.mxu1 %v5134_v1 }
  0x58   :  { %2380 = vmatpush1.bf16.msra.mxu0 %v4756_v26  ;;  %2421 = vmatpush1.bf16.msra.mxu1 %v4759_v27  ;;  %v4854_v26 = vld [vmem:[%s7353_s0 + $0x4a4] ss:$268 sps:$4 sm:$0xff]   ;;  %v4852_v27 = vld [vmem:[%s7353_s0 + $0x4a0] ss:$268 sps:$4 sm:$0xff]  }
  0x59   :  { %2381 = vmatprep.subr.bf16.mxu0 %v4764_v28  ;;  %2422 = vmatprep.subr.bf16.mxu1 %v4767_v29  ;;  %v4855_v28 = vld [vmem:[%s7353_s0 + $0x4a8] ss:$268 sps:$4 sm:$0xff]   ;;  %v4860_v29 = vld [vmem:[%s7353_s0 + $0x28c] ss:$268 sps:$4 sm:$0xff]  }
  0x5c   :  { %2382 = vmatpush1.bf16.msra.mxu0 %v4762_v30  ;;  %2423 = vmatpush1.bf16.msra.mxu1 %v4765_v31  ;;  %v4863_v30 = vld [vmem:[%s7353_s0 + $0x294] ss:$268 sps:$4 sm:$0xff]  }
  0x5d   :  { %2383 = vmatprep.subr.bf16.mxu0 %v4770_v32  ;;  %2424 = vmatprep.subr.bf16.mxu1 %v4773_v33  ;;  %v4858_v31 = vld [vmem:[%s7353_s0 + $0x288] ss:$268 sps:$4 sm:$0xff]   ;;  %v4861_v32 = vld [vmem:[%s7353_s0 + $0x290] ss:$268 sps:$4 sm:$0xff]  }
  0x5e   :  { %v4866_v33 = vld [vmem:[%s7353_s0 + $0x74] ss:$268 sps:$4 sm:$0xff]  }
  0x60   :  { %2384 = vmatpush1.bf16.msra.mxu0 %v4768_v34  ;;  %2425 = vmatpush1.bf16.msra.mxu1 %v4771_v35  ;;  %v4869_v34 = vld [vmem:[%s7353_s0 + $0x7c] ss:$268 sps:$4 sm:$0xff]  }
  0x61   :  { %2385 = vmatprep.subr.bf16.mxu0 %v4776_v36  ;;  %2426 = vmatprep.subr.bf16.mxu1 %v4779_v37  ;;  %v4864_v35 = vld [vmem:[%s7353_s0 + $0x70] ss:$268 sps:$4 sm:$0xff]   ;;  %v4867_v36 = vld [vmem:[%s7353_s0 + $0x78] ss:$268 sps:$4 sm:$0xff]  }
  0x62   :  { %v4872_v37 = vld [vmem:[%s7353_s0 + $0x8e4] ss:$268 sps:$4 sm:$0xff]  }
  0x64   :  { %2386 = vmatpush1.bf16.msra.mxu0 %v4774_v38  ;;  %2427 = vmatpush1.bf16.msra.mxu1 %v4777_v39  ;;  %v4875_v38 = vld [vmem:[%s7353_s0 + $0x8ec] ss:$268 sps:$4 sm:$0xff]  }
  0x65   :  { %2459 = vmatprep.subr.bf16.mxu0 %v4782_v40  ;;  %2500 = vmatprep.subr.bf16.mxu1 %v4785_v41  ;;  %v4870_v39 = vld [vmem:[%s7353_s0 + $0x8e0] ss:$268 sps:$4 sm:$0xff]   ;;  %v4873_v40 = vld [vmem:[%s7353_s0 + $0x8e8] ss:$268 sps:$4 sm:$0xff]  }
  0x66   :  { %v4878_v41 = vld [vmem:[%s7353_s0 + $0x6cc] ss:$268 sps:$4 sm:$0xff]  }
  0x67   :  { %4511 = vmatmul.mubr.msk.bf16.vlgmr.msra.gmra.mxu0 %vm2039_vm0, %v5235_v23  ;;  %4512 = vmatmul.mubr.msk.bf16.vlgmr.msra.gmra.mxu1 %vm2039_vm0, %v5235_v23 }
  0x68   :  { %2460 = vmatpush1.bf16.msra.mxu0 %v4780_v42  ;;  %2501 = vmatpush1.bf16.msra.mxu1 %v4783_v43  ;;  %v4881_v42 = vld [vmem:[%s7353_s0 + $0x6d4] ss:$268 sps:$4 sm:$0xff]  }
  0x69   :  { %2461 = vmatprep.subr.bf16.mxu0 %v4788_v44  ;;  %2502 = vmatprep.subr.bf16.mxu1 %v4791_v45  ;;  %v5714_v43 = vld [vmem:[%s7354_s1] sm:$0xf]  ;;  %v4876_v44 = vld [vmem:[%s7353_s0 + $0x6c8] ss:$268 sps:$4 sm:$0xff]   ;;  %v4879_v45 = vld [vmem:[%s7353_s0 + $0x6d0] ss:$268 sps:$4 sm:$0xff]  }
  0x6a   :  { %2485 = vmatprep.mubr.bf16.mxu0 %v5134_v1  ;;  %2526 = vmatprep.mubr.bf16.mxu1 %v5134_v1 }
  0x6c   :  { %2462 = vmatpush1.bf16.msra.mxu0 %v4786_v46  ;;  %2503 = vmatpush1.bf16.msra.mxu1 %v4789_v47  ;;  %v4884_v46 = vld [vmem:[%s7353_s0 + $0x4b4] ss:$268 sps:$4 sm:$0xff]   ;;  %v4887_v47 = vld [vmem:[%s7353_s0 + $0x4bc] ss:$268 sps:$4 sm:$0xff]  }
  0x6d   :  { %2463 = vmatprep.subr.bf16.mxu0 %v4794_v48  ;;  %2504 = vmatprep.subr.bf16.mxu1 %v4797_v49  ;;  %v4882_v48 = vld [vmem:[%s7353_s0 + $0x4b0] ss:$268 sps:$4 sm:$0xff]   ;;  %v4885_v49 = vld [vmem:[%s7353_s0 + $0x4b8] ss:$268 sps:$4 sm:$0xff]  }
  0x70   :  { %2464 = vmatpush1.bf16.msra.mxu0 %v4792_v50  ;;  %2505 = vmatpush1.bf16.msra.mxu1 %v4795_v51  ;;  %v4890_v50 = vld [vmem:[%s7353_s0 + $0x29c] ss:$268 sps:$4 sm:$0xff]   ;;  %v4893_v51 = vld [vmem:[%s7353_s0 + $0x2a4] ss:$268 sps:$4 sm:$0xff]  }
  0x71   :  { %2465 = vmatprep.subr.bf16.mxu0 %v4800_v52  ;;  %2506 = vmatprep.subr.bf16.mxu1 %v4803_v53  ;;  %v4888_v52 = vld [vmem:[%s7353_s0 + $0x298] ss:$268 sps:$4 sm:$0xff]   ;;  %v4891_v53 = vld [vmem:[%s7353_s0 + $0x2a0] ss:$268 sps:$4 sm:$0xff]  }
  0x74   :  { %2466 = vmatpush1.bf16.msra.mxu0 %v4798_v54  ;;  %2507 = vmatpush1.bf16.msra.mxu1 %v4801_v55  ;;  %v4896_v54 = vld [vmem:[%s7353_s0 + $0x84] ss:$268 sps:$4 sm:$0xff]   ;;  %v4899_v55 = vld [vmem:[%s7353_s0 + $0x8c] ss:$268 sps:$4 sm:$0xff]  }
  0x75   :  { %2467 = vmatprep.subr.bf16.mxu0 %v4806_v56  ;;  %2508 = vmatprep.subr.bf16.mxu1 %v4809_v57  ;;  %v4894_v56 = vld [vmem:[%s7353_s0 + $0x80] ss:$268 sps:$4 sm:$0xff]   ;;  %v4897_v57 = vld [vmem:[%s7353_s0 + $0x88] ss:$268 sps:$4 sm:$0xff]  }
  0x78   :  { %2468 = vmatpush1.bf16.msra.mxu0 %v4804_v58  ;;  %2509 = vmatpush1.bf16.msra.mxu1 %v4807_v59  ;;  %v4902_v58 = vld [vmem:[%s7353_s0 + $0x8f4] ss:$268 sps:$4 sm:$0xff]   ;;  %v4905_v59 = vld [vmem:[%s7353_s0 + $0x8fc] ss:$268 sps:$4 sm:$0xff]  }
  0x79   :  { %2541 = vmatprep.subr.bf16.mxu0 %v4812_v60  ;;  %2582 = vmatprep.subr.bf16.mxu1 %v4815_v61  ;;  %v4900_v60 = vld [vmem:[%s7353_s0 + $0x8f0] ss:$268 sps:$4 sm:$0xff]   ;;  %v4903_v61 = vld [vmem:[%s7353_s0 + $0x8f8] ss:$268 sps:$4 sm:$0xff]  }
  0x7b   :  { %4513 = vmatmul.mubr.msk.bf16.vlgmr.msra.gmra.mxu0 %vm2039_vm0, %v5235_v23  ;;  %4514 = vmatmul.mubr.msk.bf16.vlgmr.msra.gmra.mxu1 %vm2039_vm0, %v5235_v23 }
  0x7c   :  { %2542 = vmatpush1.bf16.msra.mxu0 %v4810_v62  ;;  %2583 = vmatpush1.bf16.msra.mxu1 %v4813_v63  ;;  %v4908_v62 = vld [vmem:[%s7353_s0 + $0x6dc] ss:$268 sps:$4 sm:$0xff]   ;;  %v4911_v63 = vld [vmem:[%s7353_s0 + $0x6e4] ss:$268 sps:$4 sm:$0xff]  }
  0x7d   :  { %2543 = vmatprep.subr.bf16.mxu0 %v4818_v0  ;;  %2584 = vmatprep.subr.bf16.mxu1 %v4821_v2  ;;  %v4906_v0 = vld [vmem:[%s7353_s0 + $0x6d8] ss:$268 sps:$4 sm:$0xff]   ;;  %v4909_v2 = vld [vmem:[%s7353_s0 + $0x6e0] ss:$268 sps:$4 sm:$0xff]  }
  0x7e   :  { %2567 = vmatprep.mubr.bf16.mxu0 %v5134_v1  ;;  %2608 = vmatprep.mubr.bf16.mxu1 %v5134_v1 }
  0x80   :  { %2544 = vmatpush1.bf16.msra.mxu0 %v4816_v3  ;;  %2585 = vmatpush1.bf16.msra.mxu1 %v4819_v4  ;;  %v4914_v3 = vld [vmem:[%s7353_s0 + $0x4c4] ss:$268 sps:$4 sm:$0xff]   ;;  %v4917_v4 = vld [vmem:[%s7353_s0 + $0x4cc] ss:$268 sps:$4 sm:$0xff]  }
  0x81   :  { %2545 = vmatprep.subr.bf16.mxu0 %v4824_v5  ;;  %2586 = vmatprep.subr.bf16.mxu1 %v4827_v6  ;;  %v4912_v5 = vld [vmem:[%s7353_s0 + $0x4c0] ss:$268 sps:$4 sm:$0xff]   ;;  %v4915_v6 = vld [vmem:[%s7353_s0 + $0x4c8] ss:$268 sps:$4 sm:$0xff]  }
  0x84   :  { %2546 = vmatpush1.bf16.msra.mxu0 %v4822_v7  ;;  %2587 = vmatpush1.bf16.msra.mxu1 %v4825_v8  ;;  %v4920_v7 = vld [vmem:[%s7353_s0 + $0x2ac] ss:$268 sps:$4 sm:$0xff]   ;;  %v4923_v8 = vld [vmem:[%s7353_s0 + $0x2b4] ss:$268 sps:$4 sm:$0xff]  }
  0x85   :  { %2547 = vmatprep.subr.bf16.mxu0 %v4830_v9  ;;  %2588 = vmatprep.subr.bf16.mxu1 %v4833_v10  ;;  %v4918_v9 = vld [vmem:[%s7353_s0 + $0x2a8] ss:$268 sps:$4 sm:$0xff]   ;;  %v4921_v10 = vld [vmem:[%s7353_s0 + $0x2b0] ss:$268 sps:$4 sm:$0xff]  }
  0x88   :  { %2548 = vmatpush1.bf16.msra.mxu0 %v4828_v11  ;;  %2589 = vmatpush1.bf16.msra.mxu1 %v4831_v12  ;;  %v4926_v11 = vld [vmem:[%s7353_s0 + $0x94] ss:$268 sps:$4 sm:$0xff]   ;;  %v4929_v12 = vld [vmem:[%s7353_s0 + $0x9c] ss:$268 sps:$4 sm:$0xff]  }
  0x89   :  { %2549 = vmatprep.subr.bf16.mxu0 %v4836_v13  ;;  %2590 = vmatprep.subr.bf16.mxu1 %v4839_v14  ;;  %v4924_v13 = vld [vmem:[%s7353_s0 + $0x90] ss:$268 sps:$4 sm:$0xff]   ;;  %v4927_v14 = vld [vmem:[%s7353_s0 + $0x98] ss:$268 sps:$4 sm:$0xff]  }
  0x8c   :  { %2550 = vmatpush1.bf16.msra.mxu0 %v4834_v15  ;;  %2591 = vmatpush1.bf16.msra.mxu1 %v4837_v16  ;;  %v4932_v15 = vld [vmem:[%s7353_s0 + $0x904] ss:$268 sps:$4 sm:$0xff]   ;;  %v4935_v16 = vld [vmem:[%s7353_s0 + $0x90c] ss:$268 sps:$4 sm:$0xff]  }
  0x8d   :  { %2623 = vmatprep.subr.bf16.mxu0 %v4842_v17  ;;  %2664 = vmatprep.subr.bf16.mxu1 %v4845_v18  ;;  %v4930_v17 = vld [vmem:[%s7353_s0 + $0x900] ss:$268 sps:$4 sm:$0xff]   ;;  %v4933_v18 = vld [vmem:[%s7353_s0 + $0x908] ss:$268 sps:$4 sm:$0xff]  }
  0x8f   :  { %4515 = vmatmul.mubr.msk.bf16.vlgmr.msra.gmra.mxu0 %vm2039_vm0, %v5235_v23  ;;  %4516 = vmatmul.mubr.msk.bf16.vlgmr.msra.gmra.mxu1 %vm2039_vm0, %v5235_v23  ;;  %v4857_v23 = vld [vmem:[%s7353_s0 + $0x4ac] ss:$268 sps:$4 sm:$0xff]  }
  0x90   :  { %2624 = vmatpush1.bf16.msra.mxu0 %v4840_v19  ;;  %2665 = vmatpush1.bf16.msra.mxu1 %v4843_v20  ;;  %v4938_v19 = vld [vmem:[%s7353_s0 + $0x6ec] ss:$268 sps:$4 sm:$0xff]   ;;  %v4941_v20 = vld [vmem:[%s7353_s0 + $0x6f4] ss:$268 sps:$4 sm:$0xff]  }
  0x91   :  { %2625 = vmatprep.subr.bf16.mxu0 %v4848_v21  ;;  %2666 = vmatprep.subr.bf16.mxu1 %v4851_v22  ;;  %v4936_v21 = vld [vmem:[%s7353_s0 + $0x6e8] ss:$268 sps:$4 sm:$0xff]   ;;  %v4939_v22 = vld [vmem:[%s7353_s0 + $0x6f0] ss:$268 sps:$4 sm:$0xff]  }
  0x92   :  { %2649 = vmatprep.mubr.bf16.mxu0 %v5134_v1  ;;  %2690 = vmatprep.mubr.bf16.mxu1 %v5134_v1 }
  0x94   :  { %2626 = vmatpush1.bf16.msra.mxu0 %v4846_v24  ;;  %2667 = vmatpush1.bf16.msra.mxu1 %v4849_v25  ;;  %v4944_v24 = vld [vmem:[%s7353_s0 + $0x4d4] ss:$268 sps:$4 sm:$0xff]   ;;  %v4947_v25 = vld [vmem:[%s7353_s0 + $0x4dc] ss:$268 sps:$4 sm:$0xff]  }
  0x95   :  { %2627 = vmatprep.subr.bf16.mxu0 %v4854_v26  ;;  %2668 = vmatprep.subr.bf16.mxu1 %v4857_v23  ;;  %v4942_v26 = vld [vmem:[%s7353_s0 + $0x4d0] ss:$268 sps:$4 sm:$0xff]   ;;  %v4945_v23 = vld [vmem:[%s7353_s0 + $0x4d8] ss:$268 sps:$4 sm:$0xff]  }
  0x98   :  { %2628 = vmatpush1.bf16.msra.mxu0 %v4852_v27  ;;  %2669 = vmatpush1.bf16.msra.mxu1 %v4855_v28  ;;  %v4950_v27 = vld [vmem:[%s7353_s0 + $0x2bc] ss:$268 sps:$4 sm:$0xff]   ;;  %v4953_v28 = vld [vmem:[%s7353_s0 + $0x2c4] ss:$268 sps:$4 sm:$0xff]  }
  0x99   :  { %2629 = vmatprep.subr.bf16.mxu0 %v4860_v29  ;;  %2670 = vmatprep.subr.bf16.mxu1 %v4863_v30  ;;  %v4948_v29 = vld [vmem:[%s7353_s0 + $0x2b8] ss:$268 sps:$4 sm:$0xff]   ;;  %v4951_v30 = vld [vmem:[%s7353_s0 + $0x2c0] ss:$268 sps:$4 sm:$0xff]  }
  0x9c   :  { %2630 = vmatpush1.bf16.msra.mxu0 %v4858_v31  ;;  %2671 = vmatpush1.bf16.msra.mxu1 %v4861_v32  ;;  %v4956_v31 = vld [vmem:[%s7353_s0 + $0xa4] ss:$268 sps:$4 sm:$0xff]   ;;  %v4959_v32 = vld [vmem:[%s7353_s0 + $0xac] ss:$268 sps:$4 sm:$0xff]  }
  0x9d   :  { %2631 = vmatprep.subr.bf16.mxu0 %v4866_v33  ;;  %2672 = vmatprep.subr.bf16.mxu1 %v4869_v34  ;;  %v4954_v33 = vld [vmem:[%s7353_s0 + $0xa0] ss:$268 sps:$4 sm:$0xff]  }
  0xa0   :  { %2632 = vmatpush1.bf16.msra.mxu0 %v4864_v35  ;;  %2673 = vmatpush1.bf16.msra.mxu1 %v4867_v36  ;;  %v4957_v36 = vld [vmem:[%s7353_s0 + $0xa8] ss:$268 sps:$4 sm:$0xff]  }
  0xa1   :  { %2705 = vmatprep.subr.bf16.mxu0 %v4872_v37  ;;  %2746 = vmatprep.subr.bf16.mxu1 %v4875_v38  ;;  %v4962_v37 = vld [vmem:[%s7353_s0 + $0x914] ss:$268 sps:$4 sm:$0xff]  }
  0xa3   :  { %4517 = vmatmul.mubr.msk.bf16.vlgmr.msra.gmra.mxu0 %vm2039_vm0, %v5714_v43  ;;  %4518 = vmatmul.mubr.msk.bf16.vlgmr.msra.gmra.mxu1 %vm2039_vm0, %v5714_v43 }
  0xa4   :  { %2706 = vmatpush1.bf16.msra.mxu0 %v4870_v39  ;;  %2747 = vmatpush1.bf16.msra.mxu1 %v4873_v40  ;;  %v4965_v40 = vld [vmem:[%s7353_s0 + $0x91c] ss:$268 sps:$4 sm:$0xff]  }
  0xa5   :  { %2707 = vmatprep.subr.bf16.mxu0 %v4878_v41  ;;  %2748 = vmatprep.subr.bf16.mxu1 %v4881_v42 }
  0xa6   :  { %2731 = vmatprep.mubr.bf16.mxu0 %v5134_v1  ;;  %2772 = vmatprep.mubr.bf16.mxu1 %v5134_v1 }
  0xa8   :  { %2708 = vmatpush1.bf16.msra.mxu0 %v4876_v44  ;;  %2749 = vmatpush1.bf16.msra.mxu1 %v4879_v45  ;;  %v4960_v44 = vld [vmem:[%s7353_s0 + $0x910] ss:$268 sps:$4 sm:$0xff]   ;;  %v4963_v45 = vld [vmem:[%s7353_s0 + $0x918] ss:$268 sps:$4 sm:$0xff]  }
  0xa9   :  { %2709 = vmatprep.subr.bf16.mxu0 %v4884_v46  ;;  %2750 = vmatprep.subr.bf16.mxu1 %v4887_v47 }
  0xac   :  { %2710 = vmatpush1.bf16.msra.mxu0 %v4882_v48  ;;  %2751 = vmatpush1.bf16.msra.mxu1 %v4885_v49  ;;  %v4968_v48 = vld [vmem:[%s7353_s0 + $0x6fc] ss:$268 sps:$4 sm:$0xff]   ;;  %v4971_v49 = vld [vmem:[%s7353_s0 + $0x704] ss:$268 sps:$4 sm:$0xff]  }
  0xad   :  { %2711 = vmatprep.subr.bf16.mxu0 %v4890_v50  ;;  %2752 = vmatprep.subr.bf16.mxu1 %v4893_v51  ;;  %v4966_v50 = vld [vmem:[%s7353_s0 + $0x6f8] ss:$268 sps:$4 sm:$0xff]   ;;  %v4969_v51 = vld [vmem:[%s7353_s0 + $0x700] ss:$268 sps:$4 sm:$0xff]  }
  0xb0   :  { %2712 = vmatpush1.bf16.msra.mxu0 %v4888_v52  ;;  %2753 = vmatpush1.bf16.msra.mxu1 %v4891_v53  ;;  %v4974_v52 = vld [vmem:[%s7353_s0 + $0x4e4] ss:$268 sps:$4 sm:$0xff]   ;;  %v4977_v53 = vld [vmem:[%s7353_s0 + $0x4ec] ss:$268 sps:$4 sm:$0xff]  }
  0xb1   :  { %2713 = vmatprep.subr.bf16.mxu0 %v4896_v54  ;;  %2754 = vmatprep.subr.bf16.mxu1 %v4899_v55  ;;  %v4972_v54 = vld [vmem:[%s7353_s0 + $0x4e0] ss:$268 sps:$4 sm:$0xff]   ;;  %v4975_v55 = vld [vmem:[%s7353_s0 + $0x4e8] ss:$268 sps:$4 sm:$0xff]  }
  0xb4   :  { %2714 = vmatpush1.bf16.msra.mxu0 %v4894_v56  ;;  %2755 = vmatpush1.bf16.msra.mxu1 %v4897_v57  ;;  %v4980_v56 = vld [vmem:[%s7353_s0 + $0x2cc] ss:$268 sps:$4 sm:$0xff]   ;;  %v4983_v57 = vld [vmem:[%s7353_s0 + $0x2d4] ss:$268 sps:$4 sm:$0xff]  }
  0xb5   :  { %2787 = vmatprep.subr.bf16.mxu0 %v4902_v58  ;;  %2828 = vmatprep.subr.bf16.mxu1 %v4905_v59  ;;  %v4978_v58 = vld [vmem:[%s7353_s0 + $0x2c8] ss:$268 sps:$4 sm:$0xff]   ;;  %v4981_v59 = vld [vmem:[%s7353_s0 + $0x2d0] ss:$268 sps:$4 sm:$0xff]  }
  0xb7   :  { %4519 = vmatmul.mubr.msk.bf16.vlgmr.msra.gmra.mxu0 %vm2039_vm0, %v5714_v43  ;;  %4520 = vmatmul.mubr.msk.bf16.vlgmr.msra.gmra.mxu1 %vm2039_vm0, %v5714_v43 }
  0xb8   :  { %2788 = vmatpush1.bf16.msra.mxu0 %v4900_v60  ;;  %2829 = vmatpush1.bf16.msra.mxu1 %v4903_v61  ;;  %v4986_v60 = vld [vmem:[%s7353_s0 + $0xb4] ss:$268 sps:$4 sm:$0xff]   ;;  %v4989_v61 = vld [vmem:[%s7353_s0 + $0xbc] ss:$268 sps:$4 sm:$0xff]  }
  0xb9   :  { %2789 = vmatprep.subr.bf16.mxu0 %v4908_v62  ;;  %2830 = vmatprep.subr.bf16.mxu1 %v4911_v63 }
  0xba   :  { %2813 = vmatprep.mubr.bf16.mxu0 %v5134_v1  ;;  %2854 = vmatprep.mubr.bf16.mxu1 %v5134_v1 }
  0xbc   :  { %2790 = vmatpush1.bf16.msra.mxu0 %v4906_v0  ;;  %2831 = vmatpush1.bf16.msra.mxu1 %v4909_v2  ;;  %v4984_v0 = vld [vmem:[%s7353_s0 + $0xb0] ss:$268 sps:$4 sm:$0xff]   ;;  %v4987_v2 = vld [vmem:[%s7353_s0 + $0xb8] ss:$268 sps:$4 sm:$0xff]  }
  0xbd   :  { %2791 = vmatprep.subr.bf16.mxu0 %v4914_v3  ;;  %2832 = vmatprep.subr.bf16.mxu1 %v4917_v4 }
  0xc0   :  { %2792 = vmatpush1.bf16.msra.mxu0 %v4912_v5  ;;  %2833 = vmatpush1.bf16.msra.mxu1 %v4915_v6  ;;  %v4992_v5 = vld [vmem:[%s7353_s0 + $0x924] ss:$268 sps:$4 sm:$0xff]   ;;  %v4995_v6 = vld [vmem:[%s7353_s0 + $0x92c] ss:$268 sps:$4 sm:$0xff]  }
  0xc1   :  { %2793 = vmatprep.subr.bf16.mxu0 %v4920_v7  ;;  %2834 = vmatprep.subr.bf16.mxu1 %v4923_v8 }
  0xc4   :  { %2794 = vmatpush1.bf16.msra.mxu0 %v4918_v9  ;;  %2835 = vmatpush1.bf16.msra.mxu1 %v4921_v10  ;;  %v4990_v9 = vld [vmem:[%s7353_s0 + $0x920] ss:$268 sps:$4 sm:$0xff]   ;;  %v4993_v10 = vld [vmem:[%s7353_s0 + $0x928] ss:$268 sps:$4 sm:$0xff]  }
  0xc5   :  { %2795 = vmatprep.subr.bf16.mxu0 %v4926_v11  ;;  %2836 = vmatprep.subr.bf16.mxu1 %v4929_v12 }
  0xc8   :  { %2796 = vmatpush1.bf16.msra.mxu0 %v4924_v13  ;;  %2837 = vmatpush1.bf16.msra.mxu1 %v4927_v14  ;;  %v4998_v13 = vld [vmem:[%s7353_s0 + $0x70c] ss:$268 sps:$4 sm:$0xff]   ;;  %v5001_v14 = vld [vmem:[%s7353_s0 + $0x714] ss:$268 sps:$4 sm:$0xff]  }
  0xc9   :  { %2869 = vmatprep.subr.bf16.mxu0 %v4932_v15  ;;  %2910 = vmatprep.subr.bf16.mxu1 %v4935_v16  ;;  %v4996_v15 = vld [vmem:[%s7353_s0 + $0x708] ss:$268 sps:$4 sm:$0xff]   ;;  %v4999_v16 = vld [vmem:[%s7353_s0 + $0x710] ss:$268 sps:$4 sm:$0xff]  }
  0xcb   :  { %4521 = vmatmul.mubr.msk.bf16.vlgmr.msra.gmra.mxu0 %vm2039_vm0, %v5714_v43  ;;  %4522 = vmatmul.mubr.msk.bf16.vlgmr.msra.gmra.mxu1 %vm2039_vm0, %v5714_v43 }
  0xcc   :  { %2870 = vmatpush1.bf16.msra.mxu0 %v4930_v17  ;;  %2911 = vmatpush1.bf16.msra.mxu1 %v4933_v18  ;;  %v5004_v17 = vld [vmem:[%s7353_s0 + $0x4f4] ss:$268 sps:$4 sm:$0xff]   ;;  %v5007_v18 = vld [vmem:[%s7353_s0 + $0x4fc] ss:$268 sps:$4 sm:$0xff]  }
  0xcd   :  { %2871 = vmatprep.subr.bf16.mxu0 %v4938_v19  ;;  %2912 = vmatprep.subr.bf16.mxu1 %v4941_v20  ;;  %v5002_v19 = vld [vmem:[%s7353_s0 + $0x4f0] ss:$268 sps:$4 sm:$0xff]   ;;  %v5005_v20 = vld [vmem:[%s7353_s0 + $0x4f8] ss:$268 sps:$4 sm:$0xff]  }
  0xce   :  { %2895 = vmatprep.mubr.bf16.mxu0 %v5134_v1  ;;  %2936 = vmatprep.mubr.bf16.mxu1 %v5134_v1 }
  0xd0   :  { %2872 = vmatpush1.bf16.msra.mxu0 %v4936_v21  ;;  %2913 = vmatpush1.bf16.msra.mxu1 %v4939_v22  ;;  %v5010_v21 = vld [vmem:[%s7353_s0 + $0x2dc] ss:$268 sps:$4 sm:$0xff]   ;;  %v5013_v22 = vld [vmem:[%s7353_s0 + $0x2e4] ss:$268 sps:$4 sm:$0xff]  }
  0xd1   :  { %2873 = vmatprep.subr.bf16.mxu0 %v4944_v24  ;;  %2914 = vmatprep.subr.bf16.mxu1 %v4947_v25  ;;  %v5008_v24 = vld [vmem:[%s7353_s0 + $0x2d8] ss:$268 sps:$4 sm:$0xff]   ;;  %v5011_v25 = vld [vmem:[%s7353_s0 + $0x2e0] ss:$268 sps:$4 sm:$0xff]  }
  0xd4   :  { %2874 = vmatpush1.bf16.msra.mxu0 %v4942_v26  ;;  %2915 = vmatpush1.bf16.msra.mxu1 %v4945_v23  ;;  %v5016_v26 = vld [vmem:[%s7353_s0 + $0xc4] ss:$268 sps:$4 sm:$0xff]   ;;  %v5019_v23 = vld [vmem:[%s7353_s0 + $0xcc] ss:$268 sps:$4 sm:$0xff]  }
  0xd5   :  { %2875 = vmatprep.subr.bf16.mxu0 %v4950_v27  ;;  %2916 = vmatprep.subr.bf16.mxu1 %v4953_v28 }
  0xd7   :  { %v5893_v34 = vpop.f32.mrf.mxu0  ;;  %v5895_v35 = vpop.f32.mrf.mxu1 }
  0xd8   :  { %2876 = vmatpush1.bf16.msra.mxu0 %v4948_v29  ;;  %2917 = vmatpush1.bf16.msra.mxu1 %v4951_v30  ;;  %v5014_v29 = vld [vmem:[%s7353_s0 + $0xc0] ss:$268 sps:$4 sm:$0xff]   ;;  %v5017_v30 = vld [vmem:[%s7353_s0 + $0xc8] ss:$268 sps:$4 sm:$0xff]  }
  0xd9   :  { %v5903_v38 = vpop.f32.mrf.mxu0  ;;  %v5905_v39 = vpop.f32.mrf.mxu1  ;;  %2877 = vmatprep.subr.bf16.mxu0 %v4956_v31  ;;  %2918 = vmatprep.subr.bf16.mxu1 %v4959_v32 }
  0xdb   :  { %v2081_v41 = vpop.f32.mrf.mxu0  ;;  %v2122_v42 = vpop.f32.mrf.mxu1 }
  0xdc   :  { %2878 = vmatpush1.bf16.msra.mxu0 %v4954_v33  ;;  %2919 = vmatpush1.bf16.msra.mxu1 %v4957_v36  ;;  %v5022_v33 = vld [vmem:[%s7353_s0 + $0x934] ss:$268 sps:$4 sm:$0xff]   ;;  %v5025_v36 = vld [vmem:[%s7353_s0 + $0x93c] ss:$268 sps:$4 sm:$0xff]   ;;  %v5023_v42 = vld [vmem:[%s7353_s0 + $0x938] ss:$268 sps:$4 sm:$0xff]  }
  0xdd   :  { %v2082_v46 = vpop.f32.mrf.mxu0  ;;  %v2123_v47 = vpop.f32.mrf.mxu1  ;;  %2951 = vmatprep.subr.bf16.mxu0 %v4962_v37  ;;  %2992 = vmatprep.subr.bf16.mxu1 %v4965_v40  ;;  %v5020_v41 = vld [vmem:[%s7353_s0 + $0x930] ss:$268 sps:$4 sm:$0xff]  }
  0xde   :  { %v5028_v46 = vld [vmem:[%s7353_s0 + $0x71c] ss:$268 sps:$4 sm:$0xff]   ;;  %v5031_v47 = vld [vmem:[%s7353_s0 + $0x724] ss:$268 sps:$4 sm:$0xff]  }
  0xdf   :  { %4523 = vmatmul.mubr.msk.bf16.vlgmr.msra.gmra.mxu0 %vm2039_vm0, %v5714_v43  ;;  %4524 = vmatmul.mubr.msk.bf16.vlgmr.msra.gmra.mxu1 %vm2039_vm0, %v5714_v43 }
  0xe0   :  { %2952 = vmatpush1.bf16.msra.mxu0 %v4960_v44  ;;  %2993 = vmatpush1.bf16.msra.mxu1 %v4963_v45 }
  0xe1   :  { %2953 = vmatprep.subr.bf16.mxu0 %v4968_v48  ;;  %2994 = vmatprep.subr.bf16.mxu1 %v4971_v49  ;;  %v5026_v48 = vld [vmem:[%s7353_s0 + $0x718] ss:$268 sps:$4 sm:$0xff]   ;;  %v5029_v49 = vld [vmem:[%s7353_s0 + $0x720] ss:$268 sps:$4 sm:$0xff]  }
  0xe2   :  { %2977 = vmatprep.mubr.bf16.mxu0 %v5134_v1  ;;  %3018 = vmatprep.mubr.bf16.mxu1 %v5134_v1 }
  0xe4   :  { %2954 = vmatpush1.bf16.msra.mxu0 %v4966_v50  ;;  %2995 = vmatpush1.bf16.msra.mxu1 %v4969_v51  ;;  %v5034_v50 = vld [vmem:[%s7353_s0 + $0x504] ss:$268 sps:$4 sm:$0xff]   ;;  %v5037_v51 = vld [vmem:[%s7353_s0 + $0x50c] ss:$268 sps:$4 sm:$0xff]  }
  0xe5   :  { %2955 = vmatprep.subr.bf16.mxu0 %v4974_v52  ;;  %2996 = vmatprep.subr.bf16.mxu1 %v4977_v53  ;;  %v5032_v52 = vld [vmem:[%s7353_s0 + $0x500] ss:$268 sps:$4 sm:$0xff]   ;;  %v5035_v53 = vld [vmem:[%s7353_s0 + $0x508] ss:$268 sps:$4 sm:$0xff]  }
  0xe8   :  { %2956 = vmatpush1.bf16.msra.mxu0 %v4972_v54  ;;  %2997 = vmatpush1.bf16.msra.mxu1 %v4975_v55  ;;  %v5040_v54 = vld [vmem:[%s7353_s0 + $0x2ec] ss:$268 sps:$4 sm:$0xff]   ;;  %v5043_v55 = vld [vmem:[%s7353_s0 + $0x2f4] ss:$268 sps:$4 sm:$0xff]  }
  0xe9   :  { %2957 = vmatprep.subr.bf16.mxu0 %v4980_v56  ;;  %2998 = vmatprep.subr.bf16.mxu1 %v4983_v57  ;;  %v5038_v56 = vld [vmem:[%s7353_s0 + $0x2e8] ss:$268 sps:$4 sm:$0xff]   ;;  %v5041_v57 = vld [vmem:[%s7353_s0 + $0x2f0] ss:$268 sps:$4 sm:$0xff]  }
  0xeb   :  { %v5964_v62 = vpop.f32.mrf.mxu0  ;;  %v5966_v63 = vpop.f32.mrf.mxu1 }
  0xec   :  { %2958 = vmatpush1.bf16.msra.mxu0 %v4978_v58  ;;  %2999 = vmatpush1.bf16.msra.mxu1 %v4981_v59  ;;  %v5046_v58 = vld [vmem:[%s7353_s0 + $0xd4] ss:$268 sps:$4 sm:$0xff]   ;;  %v5049_v59 = vld [vmem:[%s7353_s0 + $0xdc] ss:$268 sps:$4 sm:$0xff]  }
  0xed   :  { %v5974_v3 = vpop.f32.mrf.mxu0  ;;  %v5976_v4 = vpop.f32.mrf.mxu1  ;;  %2959 = vmatprep.subr.bf16.mxu0 %v4986_v60  ;;  %3000 = vmatprep.subr.bf16.mxu1 %v4989_v61 }
  0xef   :  { %v2163_v7 = vpop.f32.mrf.mxu0  ;;  %v2204_v8 = vpop.f32.mrf.mxu1 }
  0xf0   :  { %2960 = vmatpush1.bf16.msra.mxu0 %v4984_v0  ;;  %3001 = vmatpush1.bf16.msra.mxu1 %v4987_v2  ;;  %v5044_v0 = vld [vmem:[%s7353_s0 + $0xd0] ss:$268 sps:$4 sm:$0xff]   ;;  %v5047_v2 = vld [vmem:[%s7353_s0 + $0xd8] ss:$268 sps:$4 sm:$0xff]  }
  0xf1   :  { %v2164_v11 = vpop.f32.mrf.mxu0  ;;  %v2205_v12 = vpop.f32.mrf.mxu1  ;;  %3033 = vmatprep.subr.bf16.mxu0 %v4992_v5  ;;  %3074 = vmatprep.subr.bf16.mxu1 %v4995_v6  ;;  %v5052_v7 = vld [vmem:[%s7353_s0 + $0x944] ss:$268 sps:$4 sm:$0xff]   ;;  %v5055_v8 = vld [vmem:[%s7353_s0 + $0x94c] ss:$268 sps:$4 sm:$0xff]  }
  0xf2   :  { %v5050_v11 = vld [vmem:[%s7353_s0 + $0x940] ss:$268 sps:$4 sm:$0xff]   ;;  %v5053_v12 = vld [vmem:[%s7353_s0 + $0x948] ss:$268 sps:$4 sm:$0xff]  }
  0xf3   :  { %4525 = vmatmul.mubr.msk.bf16.vlgmr.msra.gmra.mxu0 %vm2039_vm0, %v5714_v43  ;;  %4526 = vmatmul.mubr.msk.bf16.vlgmr.msra.gmra.mxu1 %vm2039_vm0, %v5714_v43 }
  0xf4   :  { %3034 = vmatpush1.bf16.msra.mxu0 %v4990_v9  ;;  %3075 = vmatpush1.bf16.msra.mxu1 %v4993_v10 }
  0xf5   :  { %3035 = vmatprep.subr.bf16.mxu0 %v4998_v13  ;;  %3076 = vmatprep.subr.bf16.mxu1 %v5001_v14 }
  0xf6   :  { %3059 = vmatprep.mubr.bf16.mxu0 %v5134_v1  ;;  %3100 = vmatprep.mubr.bf16.mxu1 %v5134_v1 }
  0xf8   :  { %3036 = vmatpush1.bf16.msra.mxu0 %v4996_v15  ;;  %3077 = vmatpush1.bf16.msra.mxu1 %v4999_v16  ;;  %v5058_v15 = vld [vmem:[%s7353_s0 + $0x72c] ss:$268 sps:$4 sm:$0xff]   ;;  %v5061_v16 = vld [vmem:[%s7353_s0 + $0x734] ss:$268 sps:$4 sm:$0xff]  }
  0xf9   :  { %3037 = vmatprep.subr.bf16.mxu0 %v5004_v17  ;;  %3078 = vmatprep.subr.bf16.mxu1 %v5007_v18  ;;  %v5056_v17 = vld [vmem:[%s7353_s0 + $0x728] ss:$268 sps:$4 sm:$0xff]   ;;  %v5059_v18 = vld [vmem:[%s7353_s0 + $0x730] ss:$268 sps:$4 sm:$0xff]  }
  0xfc   :  { %3038 = vmatpush1.bf16.msra.mxu0 %v5002_v19  ;;  %3079 = vmatpush1.bf16.msra.mxu1 %v5005_v20  ;;  %v5064_v19 = vld [vmem:[%s7353_s0 + $0x514] ss:$268 sps:$4 sm:$0xff]   ;;  %v5067_v20 = vld [vmem:[%s7353_s0 + $0x51c] ss:$268 sps:$4 sm:$0xff]  }
  0xfd   :  { %3039 = vmatprep.subr.bf16.mxu0 %v5010_v21  ;;  %3080 = vmatprep.subr.bf16.mxu1 %v5013_v22  ;;  %v5062_v21 = vld [vmem:[%s7353_s0 + $0x510] ss:$268 sps:$4 sm:$0xff]   ;;  %v5065_v22 = vld [vmem:[%s7353_s0 + $0x518] ss:$268 sps:$4 sm:$0xff]  }
  0xff   :  { %v6038_v27 = vpop.f32.mrf.mxu0  ;;  %v6040_v28 = vpop.f32.mrf.mxu1 }
 0x100   :  { %3040 = vmatpush1.bf16.msra.mxu0 %v5008_v24  ;;  %3081 = vmatpush1.bf16.msra.mxu1 %v5011_v25  ;;  %v5070_v24 = vld [vmem:[%s7353_s0 + $0x2fc] ss:$268 sps:$4 sm:$0xff]   ;;  %v5073_v25 = vld [vmem:[%s7353_s0 + $0x304] ss:$268 sps:$4 sm:$0xff]  }
 0x101   :  { %v6048_v31 = vpop.f32.mrf.mxu0  ;;  %v6050_v32 = vpop.f32.mrf.mxu1  ;;  %3041 = vmatprep.subr.bf16.mxu0 %v5016_v26  ;;  %3082 = vmatprep.subr.bf16.mxu1 %v5019_v23  ;;  %v5068_v26 = vld [vmem:[%s7353_s0 + $0x2f8] ss:$268 sps:$4 sm:$0xff]   ;;  %v5071_v23 = vld [vmem:[%s7353_s0 + $0x300] ss:$268 sps:$4 sm:$0xff]  }
 0x103   :  { %v2245_v37 = vpop.f32.mrf.mxu0  ;;  %v2286_v40 = vpop.f32.mrf.mxu1 }
 0x104   :  { %3042 = vmatpush1.bf16.msra.mxu0 %v5014_v29  ;;  %3083 = vmatpush1.bf16.msra.mxu1 %v5017_v30  ;;  %v5076_v29 = vld [vmem:[%s7353_s0 + $0xe4] ss:$268 sps:$4 sm:$0xff]   ;;  %v5079_v30 = vld [vmem:[%s7353_s0 + $0xec] ss:$268 sps:$4 sm:$0xff]   ;;  %v5077_v40 = vld [vmem:[%s7353_s0 + $0xe8] ss:$268 sps:$4 sm:$0xff]  }
 0x105   :  { %v2246_v44 = vpop.f32.mrf.mxu0  ;;  %v2287_v45 = vpop.f32.mrf.mxu1  ;;  %3115 = vmatprep.subr.bf16.mxu0 %v5022_v33  ;;  %3156 = vmatprep.subr.bf16.mxu1 %v5025_v36  ;;  %v5074_v37 = vld [vmem:[%s7353_s0 + $0xe0] ss:$268 sps:$4 sm:$0xff]  }
 0x106   :  { %v5082_v44 = vld [vmem:[%s7353_s0 + $0x954] ss:$268 sps:$4 sm:$0xff]   ;;  %v5085_v45 = vld [vmem:[%s7353_s0 + $0x95c] ss:$268 sps:$4 sm:$0xff]  }
 0x107   :  { %4527 = vmatmul.mubr.msk.bf16.vlgmr.msra.gmra.mxu0 %vm2039_vm0, %v5714_v43  ;;  %4528 = vmatmul.mubr.msk.bf16.vlgmr.msra.gmra.mxu1 %vm2039_vm0, %v5714_v43 }
 0x108   :  { %3116 = vmatpush1.bf16.msra.mxu0 %v5020_v41  ;;  %3157 = vmatpush1.bf16.msra.mxu1 %v5023_v42 }
 0x109   :  { %3117 = vmatprep.subr.bf16.mxu0 %v5028_v46  ;;  %3158 = vmatprep.subr.bf16.mxu1 %v5031_v47 }
 0x10a   :  { %3141 = vmatprep.mubr.bf16.mxu0 %v5134_v1  ;;  %3182 = vmatprep.mubr.bf16.mxu1 %v5134_v1 }
 0x10c   :  { %3118 = vmatpush1.bf16.msra.mxu0 %v5026_v48  ;;  %3159 = vmatpush1.bf16.msra.mxu1 %v5029_v49  ;;  %v5080_v48 = vld [vmem:[%s7353_s0 + $0x950] ss:$268 sps:$4 sm:$0xff]   ;;  %v5083_v49 = vld [vmem:[%s7353_s0 + $0x958] ss:$268 sps:$4 sm:$0xff]  }
 0x10d   :  { %3119 = vmatprep.subr.bf16.mxu0 %v5034_v50  ;;  %3160 = vmatprep.subr.bf16.mxu1 %v5037_v51 }
 0x110   :  { %3120 = vmatpush1.bf16.msra.mxu0 %v5032_v52  ;;  %3161 = vmatpush1.bf16.msra.mxu1 %v5035_v53  ;;  %v5088_v52 = vld [vmem:[%s7353_s0 + $0x73c] ss:$268 sps:$4 sm:$0xff]   ;;  %v5091_v53 = vld [vmem:[%s7353_s0 + $0x744] ss:$268 sps:$4 sm:$0xff]  }
 0x111   :  { %3121 = vmatprep.subr.bf16.mxu0 %v5040_v54  ;;  %3162 = vmatprep.subr.bf16.mxu1 %v5043_v55  ;;  %v5086_v54 = vld [vmem:[%s7353_s0 + $0x738] ss:$268 sps:$4 sm:$0xff]   ;;  %v5089_v55 = vld [vmem:[%s7353_s0 + $0x740] ss:$268 sps:$4 sm:$0xff]  }
 0x113   :  { %v6112_v60 = vpop.f32.mrf.mxu0  ;;  %v6114_v61 = vpop.f32.mrf.mxu1 }
 0x114   :  { %3122 = vmatpush1.bf16.msra.mxu0 %v5038_v56  ;;  %3163 = vmatpush1.bf16.msra.mxu1 %v5041_v57  ;;  %v5094_v56 = vld [vmem:[%s7353_s0 + $0x524] ss:$268 sps:$4 sm:$0xff]   ;;  %v5097_v57 = vld [vmem:[%s7353_s0 + $0x52c] ss:$268 sps:$4 sm:$0xff]  }
 0x115   :  { %v6122_v5 = vpop.f32.mrf.mxu0  ;;  %v6124_v6 = vpop.f32.mrf.mxu1  ;;  %3123 = vmatprep.subr.bf16.mxu0 %v5046_v58  ;;  %3164 = vmatprep.subr.bf16.mxu1 %v5049_v59  ;;  %v5092_v58 = vld [vmem:[%s7353_s0 + $0x520] ss:$268 sps:$4 sm:$0xff]   ;;  %v5095_v59 = vld [vmem:[%s7353_s0 + $0x528] ss:$268 sps:$4 sm:$0xff]  }
 0x117   :  { %v2327_v9 = vpop.f32.mrf.mxu0  ;;  %v2368_v10 = vpop.f32.mrf.mxu1 }
 0x118   :  { %3124 = vmatpush1.bf16.msra.mxu0 %v5044_v0  ;;  %3165 = vmatpush1.bf16.msra.mxu1 %v5047_v2  ;;  %v5100_v0 = vld [vmem:[%s7353_s0 + $0x30c] ss:$268 sps:$4 sm:$0xff]   ;;  %v5103_v2 = vld [vmem:[%s7353_s0 + $0x314] ss:$268 sps:$4 sm:$0xff]   ;;  %v5109_v10 = vld [vmem:[%s7353_s0 + $0xfc] ss:$268 sps:$4 sm:$0xff]  }
 0x119   :  { %v2328_v13 = vpop.f32.mrf.mxu0  ;;  %v2369_v14 = vpop.f32.mrf.mxu1  ;;  %3197 = vmatprep.subr.bf16.mxu0 %v5052_v7  ;;  %3238 = vmatprep.subr.bf16.mxu1 %v5055_v8  ;;  %v5098_v7 = vld [vmem:[%s7353_s0 + $0x308] ss:$268 sps:$4 sm:$0xff]   ;;  %v5101_v8 = vld [vmem:[%s7353_s0 + $0x310] ss:$268 sps:$4 sm:$0xff]  }
 0x11a   :  { %v5106_v9 = vld [vmem:[%s7353_s0 + $0xf4] ss:$268 sps:$4 sm:$0xff]  }
 0x11b   :  { %4529 = vmatmul.mubr.msk.bf16.vlgmr.msra.gmra.mxu0 %vm2039_vm0, %v5714_v43  ;;  %4530 = vmatmul.mubr.msk.bf16.vlgmr.msra.gmra.mxu1 %vm2039_vm0, %v5714_v43 }
 0x11c   :  { %3198 = vmatpush1.bf16.msra.mxu0 %v5050_v11  ;;  %3239 = vmatpush1.bf16.msra.mxu1 %v5053_v12  ;;  %v3504_v11 = vmul.f32 %v5893_v34, %v5893_v34  ;;  %v3505_v12 = vmul.f32 %v5903_v38, %v5903_v38 }
 0x11d   :  { %3199 = vmatprep.subr.bf16.mxu0 %v5058_v15  ;;  %3240 = vmatprep.subr.bf16.mxu1 %v5061_v16  ;;  %v3436_v15 = vadd.f32 %v5903_v38, %v5893_v34  ;;  %v5104_v16 = vld [vmem:[%s7353_s0 + $0xf0] ss:$268 sps:$4 sm:$0xff]  }
 0x11e   :  { %3223 = vmatprep.mubr.bf16.mxu0 %v5134_v1  ;;  %3264 = vmatprep.mubr.bf16.mxu1 %v5134_v1 }
 0x120   :  { %3200 = vmatpush1.bf16.msra.mxu0 %v5056_v17  ;;  %3241 = vmatpush1.bf16.msra.mxu1 %v5059_v18  ;;  %v5107_v17 = vld [vmem:[%s7353_s0 + $0xf8] ss:$268 sps:$4 sm:$0xff]  }
 0x121   :  { %3201 = vmatprep.subr.bf16.mxu0 %v5064_v19  ;;  %3242 = vmatprep.subr.bf16.mxu1 %v5067_v20  ;;  %v5112_v20 = vld [vmem:[%s7353_s0 + $0x964] ss:$268 sps:$4 sm:$0xff]  }
 0x124   :  { %3202 = vmatpush1.bf16.msra.mxu0 %v5062_v21  ;;  %3243 = vmatpush1.bf16.msra.mxu1 %v5065_v22  ;;  %v3506_v21 = vmul.f32 %v5895_v35, %v5895_v35  ;;  %v3571_v22 = vadd.f32 %v3505_v12, %v3504_v11  ;;  %v3511_v12 = vmul.f32 %v5976_v4, %v5976_v4 }
 0x125   :  { %3203 = vmatprep.subr.bf16.mxu0 %v5070_v24  ;;  %3244 = vmatprep.subr.bf16.mxu1 %v5073_v25 }
 0x127   :  { %v6186_v33 = vpop.f32.mrf.mxu0  ;;  %v6188_v36 = vpop.f32.mrf.mxu1 }
 0x128   :  { %3204 = vmatpush1.bf16.msra.mxu0 %v5068_v26  ;;  %3245 = vmatpush1.bf16.msra.mxu1 %v5071_v23  ;;  %v3437_v26 = vadd.f32 %v3436_v15, %v5895_v35  ;;  %v5110_v23 = vld [vmem:[%s7353_s0 + $0x960] ss:$268 sps:$4 sm:$0xff]  }
 0x129   :  { %v6196_v41 = vpop.f32.mrf.mxu0  ;;  %v6198_v42 = vpop.f32.mrf.mxu1  ;;  %3205 = vmatprep.subr.bf16.mxu0 %v5076_v29  ;;  %3246 = vmatprep.subr.bf16.mxu1 %v5079_v30  ;;  %v5113_v29 = vld [vmem:[%s7353_s0 + $0x968] ss:$268 sps:$4 sm:$0xff]   ;;  %v5126_v15 = vld [vmem:[%s7353_s0 + $0x100] ss:$268 sps:$4 sm:$0xff]  }
 0x12b   :  { %v2409_v46 = vpop.f32.mrf.mxu0  ;;  %v2450_v47 = vpop.f32.mrf.mxu1 }
 0x12c   :  { %3206 = vmatpush1.bf16.msra.mxu0 %v5074_v37  ;;  %3247 = vmatpush1.bf16.msra.mxu1 %v5077_v40  ;;  %v5135_v40 = vmov 0.0   ;;  %v3507_v46 = vmul.f32 %v5905_v39, %v5905_v39  ;;  %v3438_v47 = vadd.f32 %v3437_v26, %v5905_v39 }
 0x12d   :  { %v2410_v50 = vpop.f32.mrf.mxu0  ;;  %v2451_v51 = vpop.f32.mrf.mxu1  ;;  %3279 = vmatprep.subr.bf16.mxu0 %v5082_v44  ;;  %3320 = vmatprep.subr.bf16.mxu1 %v5085_v45  ;;  %v5116_v44 = vld [vmem:[%s7353_s0 + $0x74c] ss:$268 sps:$4 sm:$0xff]   ;;  %v3572_v45 = vadd.f32 %v3571_v22, %v3506_v21  ;;  %v3512_v22 = vmul.f32 %v6038_v27, %v6038_v27 }
 0x12e   :  { %v5117_v50 = vld [vmem:[%s7353_s0 + $0x750] ss:$268 sps:$4 sm:$0xff]  }
 0x12f   :  { %4531 = vmatmul.mubr.msk.bf16.vlgmr.msra.gmra.mxu0 %vm2039_vm0, %v5714_v43  ;;  %4532 = vmatmul.mubr.msk.bf16.vlgmr.msra.gmra.mxu1 %vm2039_vm0, %v5714_v43  ;;  %v3573_v51 = vadd.f32 %v3572_v45, %v3507_v46  ;;  %v3514_v46 = vmul.f32 %v6040_v28, %v6040_v28 }
 0x130   :  { %3280 = vmatpush1.bf16.msra.mxu0 %v5080_v48  ;;  %3321 = vmatpush1.bf16.msra.mxu1 %v5083_v49  ;;  %v3508_v48 = vmul.f32 %v5964_v62, %v5964_v62  ;;  %v5114_v49 = vld [vmem:[%s7353_s0 + $0x748] ss:$268 sps:$4 sm:$0xff]  }
 0x131   :  { %3281 = vmatprep.subr.bf16.mxu0 %v5088_v52  ;;  %3322 = vmatprep.subr.bf16.mxu1 %v5091_v53  ;;  %v3439_v52 = vadd.f32 %v3438_v47, %v5964_v62 }
 0x132   :  { %3305 = vmatprep.mubr.bf16.mxu0 %v5134_v1  ;;  %3346 = vmatprep.mubr.bf16.mxu1 %v5134_v1  ;;  %v3574_v53 = vadd.f32 %v3573_v51, %v3508_v48  ;;  %v3516_v51 = vmul.f32 %v6112_v60, %v6112_v60 }
 0x134   :  { %3282 = vmatpush1.bf16.msra.mxu0 %v5086_v54  ;;  %3323 = vmatpush1.bf16.msra.mxu1 %v5089_v55  ;;  %v3509_v54 = vmul.f32 %v5974_v3, %v5974_v3  ;;  %v5118_v55 = vld [vmem:[%s7353_s0 + $0x530] ss:$268 sps:$4 sm:$0xff]  }
 0x135   :  { %3283 = vmatprep.subr.bf16.mxu0 %v5094_v56  ;;  %3324 = vmatprep.subr.bf16.mxu1 %v5097_v57  ;;  %v5121_v56 = vld [vmem:[%s7353_s0 + $0x538] ss:$268 sps:$4 sm:$0xff]   ;;  %v3440_v57 = vadd.f32 %v3439_v52, %v5974_v3 }
 0x138   :  { %3284 = vmatpush1.bf16.msra.mxu0 %v5092_v58  ;;  %3325 = vmatpush1.bf16.msra.mxu1 %v5095_v59  ;;  %v3510_v58 = vmul.f32 %v5966_v63, %v5966_v63  ;;  %v3575_v59 = vadd.f32 %v3574_v53, %v3509_v54 }
 0x139   :  { %3285 = vmatprep.subr.bf16.mxu0 %v5100_v0  ;;  %3326 = vmatprep.subr.bf16.mxu1 %v5103_v2  ;;  %v5122_v0 = vld [vmem:[%s7353_s0 + $0x318] ss:$268 sps:$4 sm:$0xff]   ;;  %v5125_v2 = vld [vmem:[%s7353_s0 + $0x320] ss:$268 sps:$4 sm:$0xff]  }
 0x13a   :  { %v3576_v11 = vadd.f32 %v3575_v59, %v3510_v58 }
 0x13b   :  { %v6264_v13 = vpop.f32.mrf.mxu0  ;;  %v6266_v14 = vpop.f32.mrf.mxu1 }
 0x13c   :  { %3286 = vmatpush1.bf16.msra.mxu0 %v5098_v7  ;;  %3327 = vmatpush1.bf16.msra.mxu1 %v5101_v8  ;;  %v5128_v7 = vld [vmem:[%s7353_s0 + $0x104] ss:$268 sps:$4 sm:$0xff]   ;;  %v3441_v8 = vadd.f32 %v3440_v57, %v5966_v63  ;;  %v3577_v26 = vadd.f32 %v3576_v11, %v3511_v12 }
 0x13d   :  { %v6276_v18 = vpop.f32.mrf.mxu0  ;;  %v6278_v19 = vpop.f32.mrf.mxu1  ;;  %3287 = vmatprep.subr.bf16.mxu0 %v5106_v9  ;;  %3328 = vmatprep.subr.bf16.mxu1 %v5109_v10 }
 0x13e   :  { %v3442_v21 = vadd.f32 %v3441_v8, %v5976_v4 }
 0x13f   :  { %v2491_v24 = vpop.f32.mrf.mxu0  ;;  %v2532_v25 = vpop.f32.mrf.mxu1 }
 0x140   :  { %3288 = vmatpush1.bf16.msra.mxu0 %v5104_v16  ;;  %3329 = vmatpush1.bf16.msra.mxu1 %v5107_v17  ;;  %v5129_v16 = vld [vmem:[%s7353_s0 + $0x108] ss:$268 sps:$4 sm:$0xff]  }
 0x141   :  { %v2492_v30 = vpop.f32.mrf.mxu0  ;;  %v2533_v37 = vpop.f32.mrf.mxu1  ;;  %3361 = vmatprep.subr.bf16.mxu0 %v5112_v20  ;;  %4611 = vmatprep.subr.bf16.mxu1 %v5135_v40 }
 0x142   :  { %v3578_v37 = vadd.f32 %v3577_v26, %v3512_v22 }
 0x143   :  { %4533 = vmatmul.mubr.msk.bf16.vlgmr.msra.gmra.mxu0 %vm2039_vm0, %v5714_v43  ;;  %4534 = vmatmul.mubr.msk.bf16.vlgmr.msra.gmra.mxu1 %vm2039_vm0, %v5714_v43  ;;  %v5120_v43 = vld [vmem:[%s7353_s0 + $0x534] ss:$268 sps:$4 sm:$0xff]  }
 0x144   :  { %3362 = vmatpush1.bf16.msra.mxu0 %v5110_v23  ;;  %4612 = vmatpush3.bf16.msra.mxu1 %v5113_v29  ;;  %v3443_v23 = vadd.f32 %v3442_v21, %v6038_v27  ;;  %v3519_v21 = vmul.f32 %v6124_v6, %v6124_v6 }
 0x145   :  { %3363 = vmatprep.subr.bf16.mxu0 %v5116_v44  ;;  %4613 = vmatprep.subr.bf16.mxu1 %v5135_v40  ;;  %v3513_v44 = vmul.f32 %v6048_v31, %v6048_v31 }
 0x146   :  { %3387 = vmatprep.mubr.bf16.mxu0 %v5134_v1  ;;  %4621 = vmatprep.mubr.msk.bf16.mxu1 %vm5136_vm1, %v5135_v40  ;;  %v5124_v1 = vld [vmem:[%s7353_s0 + $0x31c] ss:$268 sps:$4 sm:$0xff]   ;;  %v3444_v45 = vadd.f32 %v3443_v23, %v6048_v31 }
 0x147   :  { %v3579_v47 = vadd.f32 %v3578_v37, %v3513_v44  ;;  %v3522_v37 = vmul.f32 %v6188_v36, %v6188_v36 }
 0x148   :  { %3364 = vmatpush1.bf16.msra.mxu0 %v5114_v49  ;;  %4614 = vmatpush3.bf16.msra.mxu1 %v5117_v50  ;;  %v3445_v48 = vadd.f32 %v3444_v45, %v6040_v28  ;;  %v3515_v50 = vmul.f32 %v6050_v32, %v6050_v32 }
 0x149   :  { %3365 = vmatprep.subr.bf16.mxu0 %v5120_v43  ;;  %4615 = vmatprep.subr.bf16.mxu1 %v5135_v40  ;;  %v3580_v49 = vadd.f32 %v3579_v47, %v3514_v46 }
 0x14a   :  { %v3446_v43 = vadd.f32 %v3445_v48, %v6050_v32 }
 0x14b   :  { %v3581_v52 = vadd.f32 %v3580_v49, %v3515_v50  ;;  %v3523_v50 = vmul.f32 %v6198_v42, %v6198_v42 }
 0x14c   :  { %3366 = vmatpush1.bf16.msra.mxu0 %v5118_v55  ;;  %4616 = vmatpush3.bf16.msra.mxu1 %v5121_v56  ;;  %v3447_v53 = vadd.f32 %v3446_v43, %v6112_v60 }
 0x14d   :  { %3367 = vmatprep.subr.bf16.mxu0 %v5124_v1  ;;  %4617 = vmatprep.subr.bf16.mxu1 %v5135_v40  ;;  %v3582_v56 = vadd.f32 %v3581_v52, %v3516_v51  ;;  %v3517_v1 = vmul.f32 %v6122_v5, %v6122_v5 }
 0x14e   :  { %v3448_v59 = vadd.f32 %v3447_v53, %v6122_v5  ;;  %v3524_v53 = vmul.f32 %v6264_v13, %v6264_v13 }
 0x14f   :  { %v6339_v9 = vpop.f32.mrf.mxu0  ;;  %v6341_v10 = vpop.f32.mrf.mxu1  ;;  %v3583_v8 = vadd.f32 %v3582_v56, %v3517_v1 }
 0x150   :  { %3368 = vmatpush1.bf16.msra.mxu0 %v5122_v0  ;;  %4618 = vmatpush3.bf16.msra.mxu1 %v5125_v2 }
 0x151   :  { %v6351_v17 = vpop.f32.mrf.mxu0  ;;  %v6353_v20 = vpop.f32.mrf.mxu1  ;;  %3369 = vmatprep.subr.bf16.mxu0 %v5128_v7  ;;  %4619 = vmatprep.subr.bf16.mxu1 %v5135_v40  ;;  %v5133_v40 = vld [vmem:[%s7354_s1] sm:$0xf]  ;;  %v3518_v7 = vmul.f32 %v6114_v61, %v6114_v61 }
 0x153   :  { %v2573_v24 = vpop.f32.mrf.mxu0  ;;  %v2614_v25 = vpop.f32.mrf.mxu1 }
 0x154   :  { %3370 = vmatpush1.bf16.msra.mxu0 %v5126_v15  ;;  %4620 = vmatpush3.bf16.msra.mxu1 %v5129_v16  ;;  %v3449_v15 = vadd.f32 %v3448_v59, %v6114_v61  ;;  %v3584_v16 = vadd.f32 %v3583_v8, %v3518_v7  ;;  %v3520_v24 = vmul.f32 %v6186_v33, %v6186_v33 }
 0x155   :  { %v2574_v29 = vpop.f32.mrf.mxu0  ;;  %v2615_v30 = vpop.f32.mrf.mxu1  ;;  %v3525_v7 = vmul.f32 %v6276_v18, %v6276_v18 }
 0x156   :  { %v3450_v22 = vadd.f32 %v3449_v15, %v6124_v6  ;;  %v3585_v25 = vadd.f32 %v3584_v16, %v3519_v21  ;;  %v3521_v29 = vmul.f32 %v6196_v41, %v6196_v41  ;;  %v3527_v21 = vmul.f32 %v6278_v19, %v6278_v19 }
 0x157   :  { %4535 = vmatmul.mubr.msk.bf16.vlgmr.msra.gmra.mxu0 %vm2039_vm0, %v5133_v40  ;;  %4622 = vmatmul.mubr.msk.bf16.vlgmr.msra.gmra.mxu1 %vm2039_vm0, %v5133_v40 }
 0x158   :  { %v3451_v26 = vadd.f32 %v3450_v22, %v6186_v33  ;;  %v3586_v23 = vadd.f32 %v3585_v25, %v3520_v24  ;;  %v3528_v24 = vmul.f32 %v6339_v9, %v6339_v9 }
 0x15a   :  { %v3452_v30 = vadd.f32 %v3451_v26, %v6196_v41  ;;  %v3587_v44 = vadd.f32 %v3586_v23, %v3521_v29 }
 0x15c   :  { %v3453_v46 = vadd.f32 %v3452_v30, %v6188_v36  ;;  %v3588_v49 = vadd.f32 %v3587_v44, %v3522_v37 }
 0x15e   :  { %v3454_v52 = vadd.f32 %v3453_v46, %v6198_v42  ;;  %v3589_v59 = vadd.f32 %v3588_v49, %v3523_v50  ;;  %v3529_v46 = vmul.f32 %v6351_v17, %v6351_v17 }
 0x163   :  { %v6376_v54 = vpop.f32.mrf.mxu0  ;;  %v6378_v55 = vpop.f32.mrf.mxu1 }
 0x165   :  { %v6382_v57 = vpop.f32.mrf.mxu0  ;;  %v6384_v58 = vpop.f32.mrf.mxu1 }
 0x167   :  { %v2655_v0 = vpop.f32.mrf.mxu0  ;;  %v2696_v2 = vpop.f32.mrf.mxu1 }
 0x168   :  { %v3455_v0 = vadd.f32 %v3454_v52, %v6264_v13  ;;  %v3590_v2 = vadd.f32 %v3589_v59, %v3524_v53  ;;  %v3530_v53 = vmul.f32 %v6341_v10, %v6341_v10  ;;  %v3531_v59 = vmul.f32 %v6353_v20, %v6353_v20 }
 0x169   :  { %v2656_v11 = vpop.f32.mrf.mxu0  ;;  %v2697_v12 = vpop.f32.mrf.mxu1 }
 0x16a   :  { %v3456_v8 = vadd.f32 %v3455_v0, %v6276_v18  ;;  %v3526_v11 = vmul.f32 %v6266_v14, %v6266_v14  ;;  %v3591_v12 = vadd.f32 %v3590_v2, %v3525_v7  ;;  %v3532_v7 = vmul.f32 %v6376_v54, %v6376_v54 }
 0x16c   :  { %v3457_v15 = vadd.f32 %v3456_v8, %v6266_v14  ;;  %v3592_v16 = vadd.f32 %v3591_v12, %v3526_v11 }
 0x16e   :  { %v3458_v22 = vadd.f32 %v3457_v15, %v6278_v19  ;;  %v3593_v23 = vadd.f32 %v3592_v16, %v3527_v21  ;;  %v3533_v15 = vmul.f32 %v6382_v57, %v6382_v57 }
 0x170   :  { %v3459_v29 = vadd.f32 %v3458_v22, %v6339_v9  ;;  %v3594_v44 = vadd.f32 %v3593_v23, %v3528_v24  ;;  %v3534_v24 = vmul.f32 %v6378_v55, %v6378_v55 }
 0x177   :  { %v6401_v40 = vpop.f32.mrf.mxu0  ;;  %v6403_v45 = vpop.f32.mrf.mxu1 }
 0x179   :  { %v6406_v47 = vpop.f32.mrf.mxu0  ;;  %v6408_v48 = vpop.f32.mrf.mxu1 }
 0x17b   :  { %v2737_v43 = vpop.f32.mrf.mxu0  ;;  %v2778_v51 = vpop.f32.mrf.mxu1 }
 0x17c   :  { %v3460_v43 = vadd.f32 %v3459_v29, %v6351_v17 }
 0x17d   :  { %v2738_v56 = vpop.f32.mrf.mxu0  ;;  %v2779_v1 = vpop.f32.mrf.mxu1 }
 0x17e   :  { %v3595_v56 = vadd.f32 %v3594_v44, %v3529_v46  ;;  %v3461_v1 = vadd.f32 %v3460_v43, %v6341_v10  ;;  %v3535_v43 = vmul.f32 %v6384_v58, %v6384_v58 }
 0x180   :  { %v3596_v0 = vadd.f32 %v3595_v56, %v3530_v53  ;;  %v3462_v2 = vadd.f32 %v3461_v1, %v6353_v20  ;;  %v3536_v1 = vmul.f32 %v6401_v40, %v6401_v40 }
 0x182   :  { %v3597_v8 = vadd.f32 %v3596_v0, %v3531_v59  ;;  %v3463_v11 = vadd.f32 %v3462_v2, %v6376_v54 }
 0x184   :  { %v3598_v12 = vadd.f32 %v3597_v8, %v3532_v7  ;;  %v3464_v16 = vadd.f32 %v3463_v11, %v6382_v57  ;;  %v3537_v7 = vmul.f32 %v6406_v47, %v6406_v47  ;;  %v3538_v11 = vmul.f32 %v6403_v45, %v6403_v45 }
 0x186   :  { %v3599_v23 = vadd.f32 %v3598_v12, %v3533_v15  ;;  %v3465_v46 = vadd.f32 %v3464_v16, %v6378_v55  ;;  %v3539_v16 = vmul.f32 %v6408_v48, %v6408_v48 }
 0x188   :  { %v3466_v56 = vadd.f32 %v3465_v46, %v6384_v58 }
 0x18a   :  { %v3467_v0 = vadd.f32 %v3466_v56, %v6401_v40 }
 0x18b   :  { %v6427_v25 = vpop.f32.mrf.mxu0  ;;  %v6429_v26 = vpop.f32.mrf.mxu1 }
 0x18c   :  { %7391 = vst [vmem:[#allocation2_spill] sm:$0xff] %v6429_v26  ;;  %v3468_v8 = vadd.f32 %v3467_v0, %v6406_v47 }
 0x18d   :  { %v6432_v30 = vpop.f32.mrf.mxu0  ;;  %v6434_v37 = vpop.f32.mrf.mxu1 }
 0x18e   :  { %7392 = vst [vmem:[#allocation3_spill] sm:$0xff] %v6432_v30  ;;  %7393 = vst [vmem:[#allocation4_spill] sm:$0xff] %v6434_v37  ;;  %v3469_v15 = vadd.f32 %v3468_v8, %v6403_v45  ;;  %v3541_v0 = vmul.f32 %v6432_v30, %v6432_v30 }
 0x18f   :  { %v2819_v49 = vpop.f32.mrf.mxu0  ;;  %v2860_v50 = vpop.f32.mrf.mxu1 }
 0x191   :  { %v2820_v51 = vpop.f32.mrf.mxu0  ;;  %v2861_v52 = vpop.f32.mrf.mxu1 }
 0x192   :  { %v3600_v51 = vadd.f32 %v3599_v23, %v3534_v24 }
 0x194   :  { %v3601_v59 = vadd.f32 %v3600_v51, %v3535_v43 }
 0x196   :  { %v3602_v2 = vadd.f32 %v3601_v59, %v3536_v1 }
 0x198   :  { %v3603_v12 = vadd.f32 %v3602_v2, %v3537_v7 }
 0x19a   :  { %v3604_v24 = vadd.f32 %v3603_v12, %v3538_v11  ;;  %v3542_v11 = vmul.f32 %v6429_v26, %v6429_v26 }
 0x19f   :  { %v6451_v21 = vpop.f32.mrf.mxu0  ;;  %v6453_v22 = vpop.f32.mrf.mxu1 }
 0x1a0   :  { %7394 = vst [vmem:[#allocation5_spill] sm:$0xff] %v6451_v21 }
 0x1a1   :  { %v6457_v29 = vpop.f32.mrf.mxu0  ;;  %v6459_v44 = vpop.f32.mrf.mxu1 }
 0x1a2   :  { %7395 = vst [vmem:[#allocation6_spill] sm:$0xff] %v6457_v29 }
 0x1a3   :  { %v2901_v49 = vpop.f32.mrf.mxu0  ;;  %v2942_v50 = vpop.f32.mrf.mxu1 }
 0x1a4   :  { %v3470_v49 = vadd.f32 %v3469_v15, %v6408_v48  ;;  %v3540_v50 = vmul.f32 %v6427_v25, %v6427_v25 }
 0x1a5   :  { %v2902_v52 = vpop.f32.mrf.mxu0  ;;  %v2943_v53 = vpop.f32.mrf.mxu1 }
 0x1a6   :  { %v3605_v52 = vadd.f32 %v3604_v24, %v3539_v16  ;;  %v3471_v53 = vadd.f32 %v3470_v49, %v6427_v25  ;;  %v3543_v16 = vmul.f32 %v6434_v37, %v6434_v37 }
 0x1a8   :  { %v3606_v59 = vadd.f32 %v3605_v52, %v3540_v50  ;;  %v3472_v8 = vadd.f32 %v3471_v53, %v6432_v30  ;;  %v3544_v50 = vmul.f32 %v6451_v21, %v6451_v21  ;;  %v3545_v53 = vmul.f32 %v6457_v29, %v6457_v29 }
 0x1aa   :  { %v3607_v12 = vadd.f32 %v3606_v59, %v3541_v0  ;;  %v3473_v15 = vadd.f32 %v3472_v8, %v6429_v26 }
 0x1ac   :  { %v3608_v24 = vadd.f32 %v3607_v12, %v3542_v11  ;;  %v3474_v49 = vadd.f32 %v3473_v15, %v6434_v37  ;;  %v3546_v11 = vmul.f32 %v6453_v22, %v6453_v22 }
 0x1ae   :  { %v3609_v52 = vadd.f32 %v3608_v24, %v3543_v16 }
 0x1b3   :  { %v6476_v23 = vpop.f32.mrf.mxu0  ;;  %v6478_v46 = vpop.f32.mrf.mxu1 }
 0x1b4   :  { %7396 = vst [vmem:[#allocation7_spill] sm:$0xff] %v6478_v46 }
 0x1b5   :  { %v6483_v43 = vpop.f32.mrf.mxu0  ;;  %v6485_v51 = vpop.f32.mrf.mxu1 }
 0x1b6   :  { %7397 = vst [vmem:[#allocation8_spill] sm:$0xff] %v6483_v43  ;;  %7398 = vst [vmem:[#allocation9_spill] sm:$0xff] %v6485_v51 }
 0x1b7   :  { %v2983_v56 = vpop.f32.mrf.mxu0  ;;  %v3024_v1 = vpop.f32.mrf.mxu1 }
 0x1b8   :  { %v3475_v56 = vadd.f32 %v3474_v49, %v6451_v21  ;;  %v3610_v1 = vadd.f32 %v3609_v52, %v3544_v50  ;;  %v3547_v52 = vmul.f32 %v6459_v44, %v6459_v44 }
 0x1b9   :  { %v2984_v2 = vpop.f32.mrf.mxu0  ;;  %v3025_v7 = vpop.f32.mrf.mxu1 }
 0x1ba   :  { %v3476_v0 = vadd.f32 %v3475_v56, %v6457_v29  ;;  %v3611_v12 = vadd.f32 %v3610_v1, %v3545_v53  ;;  %v3548_v29 = vmul.f32 %v6476_v23, %v6476_v23  ;;  %v3549_v1 = vmul.f32 %v6483_v43, %v6483_v43 }
 0x1bc   :  { %v3477_v24 = vadd.f32 %v3476_v0, %v6453_v22  ;;  %v3612_v21 = vadd.f32 %v3611_v12, %v3546_v11  ;;  %v3550_v0 = vmul.f32 %v6478_v46, %v6478_v46 }
 0x1be   :  { %v3478_v56 = vadd.f32 %v3477_v24, %v6459_v44  ;;  %v3613_v37 = vadd.f32 %v3612_v21, %v3547_v52  ;;  %v3551_v21 = vmul.f32 %v6485_v51, %v6485_v51 }
 0x1c0   :  { %v3479_v26 = vadd.f32 %v3478_v56, %v6476_v23  ;;  %v3614_v30 = vadd.f32 %v3613_v37, %v3548_v29 }
 0x1c2   :  { %v3480_v53 = vadd.f32 %v3479_v26, %v6483_v43 }
 0x1c4   :  { %v3481_v11 = vadd.f32 %v3480_v53, %v6478_v46 }
 0x1c6   :  { %v3482_v26 = vadd.f32 %v3481_v11, %v6485_v51 }
 0x1c7   :  { %v6502_v2 = vpop.f32.mrf.mxu0  ;;  %v6504_v59 = vpop.f32.mrf.mxu1 }
 0x1c8   :  { %7399 = vst [vmem:[#allocation10_spill] sm:$0xff] %v6504_v59  ;;  %v3483_v56 = vadd.f32 %v3482_v26, %v6502_v2  ;;  %v3554_v43 = vmul.f32 %v6504_v59, %v6504_v59 }
 0x1c9   :  { %v6507_v7 = vpop.f32.mrf.mxu0  ;;  %v6509_v8 = vpop.f32.mrf.mxu1 }
 0x1ca   :  { %7400 = vst [vmem:[#allocation11_spill] sm:$0xff] %v6509_v8 }
 0x1cb   :  { %v3065_v15 = vpop.f32.mrf.mxu0  ;;  %v3106_v16 = vpop.f32.mrf.mxu1 }
 0x1cc   :  { %v3615_v15 = vadd.f32 %v3614_v30, %v3549_v1 }
 0x1cd   :  { %v3066_v49 = vpop.f32.mrf.mxu0  ;;  %v3107_v50 = vpop.f32.mrf.mxu1 }
 0x1ce   :  { %v3616_v24 = vadd.f32 %v3615_v15, %v3550_v0  ;;  %v3552_v49 = vmul.f32 %v6502_v2, %v6502_v2  ;;  %v3553_v0 = vmul.f32 %v6507_v7, %v6507_v7  ;;  %v3484_v15 = vadd.f32 %v3483_v56, %v6507_v7 }
 0x1d0   :  { %v3617_v52 = vadd.f32 %v3616_v24, %v3551_v21  ;;  %v3485_v51 = vadd.f32 %v3484_v15, %v6504_v59 }
 0x1d2   :  { %v3618_v46 = vadd.f32 %v3617_v52, %v3552_v49  ;;  %v3486_v24 = vadd.f32 %v3485_v51, %v6509_v8 }
 0x1d4   :  { %v3619_v11 = vadd.f32 %v3618_v46, %v3553_v0 }
 0x1d6   :  { %v3620_v21 = vadd.f32 %v3619_v11, %v3554_v43 }
 0x1db   :  { %v6526_v12 = vpop.f32.mrf.mxu0  ;;  %v6528_v16 = vpop.f32.mrf.mxu1 }
 0x1dc   :  { %7401 = vst [vmem:[#allocation12_spill] sm:$0xff] %v6526_v12  ;;  %7402 = vst [vmem:[#allocation13_spill] sm:$0xff] %v6528_v16  ;;  %v3556_v26 = vmul.f32 %v6526_v12, %v6526_v12  ;;  %v3558_v11 = vmul.f32 %v6528_v16, %v6528_v16 }
 0x1dd   :  { %v6532_v37 = vpop.f32.mrf.mxu0  ;;  %v6534_v29 = vpop.f32.mrf.mxu1 }
 0x1de   :  { %7403 = vst [vmem:[#allocation14_spill] sm:$0xff] %v6534_v29  ;;  %v3557_v46 = vmul.f32 %v6532_v37, %v6532_v37 }
 0x1df   :  { %v3147_v30 = vpop.f32.mrf.mxu0  ;;  %v3188_v50 = vpop.f32.mrf.mxu1 }
 0x1e0   :  { %v3555_v30 = vmul.f32 %v6509_v8, %v6509_v8  ;;  %v3487_v50 = vadd.f32 %v3486_v24, %v6526_v12 }
 0x1e1   :  { %v3148_v1 = vpop.f32.mrf.mxu0  ;;  %v3189_v53 = vpop.f32.mrf.mxu1 }
 0x1e2   :  { %v3621_v49 = vadd.f32 %v3620_v21, %v3555_v30  ;;  %v3488_v43 = vadd.f32 %v3487_v50, %v6532_v37 }
 0x1e4   :  { %v3622_v1 = vadd.f32 %v3621_v49, %v3556_v26  ;;  %v3489_v12 = vadd.f32 %v3488_v43, %v6528_v16  ;;  %v3559_v26 = vmul.f32 %v6534_v29, %v6534_v29 }
 0x1e6   :  { %v3623_v30 = vadd.f32 %v3622_v1, %v3557_v46  ;;  %v3490_v8 = vadd.f32 %v3489_v12, %v6534_v29 }
 0x1e8   :  { %v3624_v49 = vadd.f32 %v3623_v30, %v3558_v11 }
 0x1ea   :  { %v3625_v50 = vadd.f32 %v3624_v49, %v3559_v26 }
 0x1ef   :  { %v6552_v52 = vpop.f32.mrf.mxu0  ;;  %v6554_v56 = vpop.f32.mrf.mxu1 }
 0x1f0   :  { %7404 = vst [vmem:[#allocation15_spill] sm:$0xff] %v6552_v52  ;;  %7405 = vst [vmem:[#allocation16_spill] sm:$0xff] %v6554_v56  ;;  %v3560_v59 = vmul.f32 %v6552_v52, %v6552_v52  ;;  %v3562_v43 = vmul.f32 %v6554_v56, %v6554_v56 }
 0x1f1   :  { %v6558_v53 = vpop.f32.mrf.mxu0  ;;  %v6560_v0 = vpop.f32.mrf.mxu1 }
 0x1f2   :  { %7406 = vst [vmem:[#allocation17_spill] sm:$0xff] %v6558_v53  ;;  %7407 = vst [vmem:[#allocation18_spill] sm:$0xff] %v6560_v0  ;;  %v3561_v1 = vmul.f32 %v6558_v53, %v6558_v53 }
 0x1f3   :  { %v3229_v51 = vpop.f32.mrf.mxu0  ;;  %v3270_v15 = vpop.f32.mrf.mxu1 }
 0x1f4   :  { %v3491_v51 = vadd.f32 %v3490_v8, %v6552_v52  ;;  %v3626_v15 = vadd.f32 %v3625_v50, %v3560_v59  ;;  %v3563_v59 = vmul.f32 %v6560_v0, %v6560_v0 }
 0x1f5   :  { %v3230_v21 = vpop.f32.mrf.mxu0  ;;  %v3271_v24 = vpop.f32.mrf.mxu1 }
 0x1f6   :  { %v3492_v46 = vadd.f32 %v3491_v51, %v6558_v53  ;;  %v3627_v21 = vadd.f32 %v3626_v15, %v3561_v1 }
 0x1f8   :  { %v3493_v12 = vadd.f32 %v3492_v46, %v6554_v56  ;;  %v3628_v8 = vadd.f32 %v3627_v21, %v3562_v43 }
 0x1fa   :  { %v3494_v51 = vadd.f32 %v3493_v12, %v6560_v0  ;;  %v3629_v52 = vadd.f32 %v3628_v8, %v3563_v59 }
 0x203   :  { %v6577_v24 = vpop.f32.mrf.mxu0  ;;  %v6579_v11 = vpop.f32.mrf.mxu1 }
 0x204   :  { %7408 = vst [vmem:[#allocation19_spill] sm:$0xff] %v6577_v24  ;;  %7409 = vst [vmem:[#allocation20_spill] sm:$0xff] %v6579_v11  ;;  %v3564_v15 = vmul.f32 %v6577_v24, %v6577_v24  ;;  %v3495_v46 = vadd.f32 %v3494_v51, %v6577_v24  ;;  %v3566_v43 = vmul.f32 %v6579_v11, %v6579_v11 }
 0x205   :  { %v6582_v30 = vpop.f32.mrf.mxu0  ;;  %v6584_v26 = vpop.f32.mrf.mxu1 }
 0x206   :  { %7410 = vst [vmem:[#allocation21_spill] sm:$0xff] %v6582_v30  ;;  %7411 = vst [vmem:[#allocation22_spill] sm:$0xff] %v6584_v26  ;;  %v3630_v56 = vadd.f32 %v3629_v52, %v3564_v15  ;;  %v3565_v29 = vmul.f32 %v6582_v30, %v6582_v30  ;;  %v3496_v16 = vadd.f32 %v3495_v46, %v6582_v30 }
 0x207   :  { %v3311_v49 = vpop.f32.mrf.mxu0  ;;  %v3352_v50 = vpop.f32.mrf.mxu1 }
 0x208   :  { %v3631_v21 = vadd.f32 %v3630_v56, %v3565_v29  ;;  %v3497_v12 = vadd.f32 %v3496_v16, %v6579_v11  ;;  %v3567_v49 = vmul.f32 %v6584_v26, %v6584_v26 }
 0x209   :  { %v3312_v1 = vpop.f32.mrf.mxu0  ;;  %v3353_v53 = vpop.f32.mrf.mxu1 }
 0x20a   :  { %v3632_v50 = vadd.f32 %v3631_v21, %v3566_v43  ;;  %v3498_v53 = vadd.f32 %v3497_v12, %v6584_v26 }
 0x20c   :  { %v3633_v8 = vadd.f32 %v3632_v50, %v3567_v49 }
 0x217   :  { %v6601_v59 = vpop.f32.mrf.mxu0  ;;  %v6603_v52 = vpop.f32.mrf.mxu1 }
 0x218   :  { %7412 = vst [vmem:[#allocation23_spill] sm:$0xff] %v6601_v59  ;;  %v3499_v51 = vadd.f32 %v3498_v53, %v6601_v59  ;;  %v3568_v15 = vmul.f32 %v6601_v59, %v6601_v59  ;;  %v3570_v49 = vmul.f32 %v6603_v52, %v6603_v52 }
 0x219   :  { %v6608_v1 = vpop.f32.mrf.mxu0  ;;  %v4623_v29 = vpop.f32.mrf.mxu1 }
 0x21a   :  { %v3569_v16 = vmul.f32 %v6608_v1, %v6608_v1  ;;  %v3500_v56 = vadd.f32 %v3499_v51, %v6608_v1  ;;  %v3634_v46 = vadd.f32 %v3633_v8, %v3568_v15  ;;  %v3645_v15 = vld [vmem:[%s7355_s2] sm:$0xff] }
 0x21b   :  { %v3393_v43 = vpop.f32.mrf.mxu0  ;;  %v3433_v21 = vpop.f32.mrf.mxu1 }
 0x21c   :  { %v3501_v12 = vadd.f32 %v3500_v56, %v6603_v52  ;;  %v3635_v50 = vadd.f32 %v3634_v46, %v3569_v16 }
 0x21d   :  { %v3394_v53 = vpop.f32.mrf.mxu0  ;;  %v4624_v26 = vpop.f32.mrf.mxu1 }
 0x21e   :  { %3502 = vadd.xlane.f32.xlu0 %v3501_v12  ;;  %v3636_v59 = vadd.f32 %v3635_v50, %v3570_v49  ;;  %v3647_v26 = vld [vmem:[%s7356_s3] sm:$0xff]  ;;  %v7413_v12 = vld [vmem:[#allocation3_spill] sm:$0xff]  ;;  %v7415_v50 = vld [vmem:[#allocation4_spill] sm:$0xff] }
 0x21f   :  { %v7414_v49 = vld [vmem:[#allocation2_spill] sm:$0xff]  ;;  %v7416_v53 = vld [vmem:[#allocation5_spill] sm:$0xff] }
 0x222   :  { %3637 = vadd.xlane.f32.xlu0 %v3636_v59 }
 0x2a7   :  { %v3503_v29 = vpop.xlane.xlu0 %3502 }
 0x2a8   :  { %v3639_v11 = vmul.f32 0.000118343196, %v3503_v29  ;;  %v7417_v29 = vld [vmem:[#allocation6_spill] sm:$0xff] }
 0x2aa   :  { %v3641_v24 = vmul.f32 %v3639_v11, %v3639_v11 }
 0x2ab   :  { %v3638_v30 = vpop.xlane.xlu0 %3637 }
 0x2ac   :  { %v3640_v0 = vmul.f32 0.000118343196, %v3638_v30 }
 0x2ae   :  { %v3642_v51 = vsub.f32 %v3640_v0, %v3641_v24 }
 0x2b0   :  { %v3643_v8 = vadd.f32 1e-05, %v3642_v51 }
 0x2b2   :  { %5130 = vrsqrt.f32 %v3643_v8 }
 0x2bf   :  { %v5131_v56 = vpop.eup %5130 }
 0x2c0   :  { %v3646_v43 = vmul.f32 %v5131_v56, %v3645_v15  ;;  %v7418_v56 = vld [vmem:[#allocation8_spill] sm:$0xff] }
 0x2c2   :  { %3652 = vperm.xlu1 %4628, %v3646_v43   ;;  %v3648_v59 = vmul.f32 %v3646_v43, %v3639_v11 }
 0x2c4   :  { %v3649_v16 = vsub.f32 %v3647_v26, %v3648_v59  ;;  %v7419_v26 = vld [vmem:[#allocation7_spill] sm:$0xff] }
 0x2c6   :  { %3724 = vperm.xlu1 %4628, %v3649_v16   ;;  %v7420_v16 = vld [vmem:[#allocation9_spill] sm:$0xff] }
 0x33d   :  { %v6622_v46 = vpop.permute.xlu1 %3652 }
 0x33e   :  { %v6626_v0 = vmul.f32 %v6622_v46, %v5893_v34  ;;  %v6630_v24 = vmul.f32 %v6622_v46, %v5903_v38  ;;  %v6634_v30 = vmul.f32 %v6622_v46, %v5895_v35  ;;  %v6638_v21 = vmul.f32 %v6622_v46, %v5905_v39 }
 0x33f   :  { %v6642_v11 = vmul.f32 %v6622_v46, %v5964_v62  ;;  %v6646_v34 = vmul.f32 %v6622_v46, %v5974_v3  ;;  %v6650_v38 = vmul.f32 %v6622_v46, %v5966_v63  ;;  %v6654_v35 = vmul.f32 %v6622_v46, %v5976_v4 }
 0x340   :  { %v6658_v39 = vmul.f32 %v6622_v46, %v6038_v27  ;;  %v6662_v62 = vmul.f32 %v6622_v46, %v6048_v31  ;;  %v6666_v3 = vmul.f32 %v6622_v46, %v6040_v28  ;;  %v6670_v63 = vmul.f32 %v6622_v46, %v6050_v32 }
 0x341   :  { %v6674_v4 = vmul.f32 %v6622_v46, %v6112_v60  ;;  %v6678_v27 = vmul.f32 %v6622_v46, %v6122_v5  ;;  %v6682_v31 = vmul.f32 %v6622_v46, %v6114_v61  ;;  %v6686_v28 = vmul.f32 %v6622_v46, %v6124_v6 }
 0x342   :  { %v6690_v32 = vmul.f32 %v6622_v46, %v6186_v33  ;;  %v6694_v60 = vmul.f32 %v6622_v46, %v6196_v41  ;;  %v6698_v5 = vmul.f32 %v6622_v46, %v6188_v36  ;;  %v6702_v61 = vmul.f32 %v6622_v46, %v6198_v42 }
 0x343   :  { %v6706_v6 = vmul.f32 %v6622_v46, %v6264_v13  ;;  %v6710_v33 = vmul.f32 %v6622_v46, %v6276_v18  ;;  %v6714_v41 = vmul.f32 %v6622_v46, %v6266_v14  ;;  %v6718_v36 = vmul.f32 %v6622_v46, %v6278_v19 }
 0x344   :  { %v6722_v42 = vmul.f32 %v6622_v46, %v6339_v9  ;;  %v6726_v13 = vmul.f32 %v6622_v46, %v6351_v17  ;;  %v6730_v18 = vmul.f32 %v6622_v46, %v6341_v10  ;;  %v6734_v14 = vmul.f32 %v6622_v46, %v6353_v20 }
 0x345   :  { %v6738_v19 = vmul.f32 %v6622_v46, %v6376_v54  ;;  %v6742_v9 = vmul.f32 %v6622_v46, %v6382_v57  ;;  %v6746_v17 = vmul.f32 %v6622_v46, %v6378_v55  ;;  %v6750_v10 = vmul.f32 %v6622_v46, %v6384_v58 }
 0x346   :  { %v6754_v20 = vmul.f32 %v6622_v46, %v6401_v40  ;;  %v6758_v54 = vmul.f32 %v6622_v46, %v6406_v47  ;;  %v6762_v57 = vmul.f32 %v6622_v46, %v6403_v45  ;;  %v6766_v55 = vmul.f32 %v6622_v46, %v6408_v48 }
 0x347   :  { %v6770_v58 = vmul.f32 %v6622_v46, %v6427_v25  ;;  %v6774_v40 = vmul.f32 %v6622_v46, %v7413_v12  ;;  %v6778_v47 = vmul.f32 %v6622_v46, %v7414_v49  ;;  %v6782_v45 = vmul.f32 %v6622_v46, %v7415_v50  ;;  %v7422_v12 = vld [vmem:[#allocation10_spill] sm:$0xff]  ;;  %v7424_v50 = vld [vmem:[#allocation11_spill] sm:$0xff] }
 0x348   :  { %v6786_v48 = vmul.f32 %v6622_v46, %v7416_v53  ;;  %v6790_v25 = vmul.f32 %v6622_v46, %v7417_v29  ;;  %v6794_v51 = vmul.f32 %v6622_v46, %v6453_v22  ;;  %v6798_v8 = vmul.f32 %v6622_v46, %v6459_v44  ;;  %v7426_v29 = vld [vmem:[#allocation12_spill] sm:$0xff] }
 0x349   :  { %v6802_v15 = vmul.f32 %v6622_v46, %v6476_v23  ;;  %v6806_v43 = vmul.f32 %v6622_v46, %v7418_v56  ;;  %v6810_v59 = vmul.f32 %v6622_v46, %v7419_v26  ;;  %v6814_v22 = vmul.f32 %v6622_v46, %v7420_v16  ;;  %v7429_v26 = vld [vmem:[#allocation13_spill] sm:$0xff]  ;;  %v7431_v16 = vld [vmem:[#allocation14_spill] sm:$0xff] }
 0x34a   :  { %v6818_v44 = vmul.f32 %v6622_v46, %v6502_v2  ;;  %v6822_v23 = vmul.f32 %v6622_v46, %v6507_v7  ;;  %v6826_v49 = vmul.f32 %v6622_v46, %v7422_v12  ;;  %v6830_v53 = vmul.f32 %v6622_v46, %v7424_v50  ;;  %v7433_v50 = vld [vmem:[#allocation15_spill] sm:$0xff] }
 0x34b   :  { %v6834_v56 = vmul.f32 %v6622_v46, %v7426_v29  ;;  %v6838_v2 = vmul.f32 %v6622_v46, %v6532_v37  ;;  %v6842_v7 = vmul.f32 %v6622_v46, %v7429_v26  ;;  %v6846_v12 = vmul.f32 %v6622_v46, %v7431_v16  ;;  %v7435_v29 = vld [vmem:[#allocation17_spill] sm:$0xff]  ;;  %v7437_v37 = vld [vmem:[#allocation16_spill] sm:$0xff]  ;;  %v7439_v26 = vld [vmem:[#allocation18_spill] sm:$0xff] }
 0x34c   :  { %7421 = vst [vmem:[#allocation3_spill] sm:$0xff] %v6822_v23  ;;  %7423 = vst [vmem:[#allocation2_spill] sm:$0xff] %v6826_v49  ;;  %v6848_v49 = vpop.permute.xlu1 %3724  ;;  %v7440_v16 = vld [vmem:[#allocation19_spill] sm:$0xff]  ;;  %v7441_v23 = vld [vmem:[#allocation21_spill] sm:$0xff] }
 0x34d   :  { %7425 = vst [vmem:[#allocation4_spill] sm:$0xff] %v6830_v53  ;;  %7427 = vst [vmem:[#allocation5_spill] sm:$0xff] %v6834_v56  ;;  %v6852_v53 = vmul.f32 %v6622_v46, %v7433_v50  ;;  %v6856_v56 = vmul.f32 %v6622_v46, %v7435_v29  ;;  %v6872_v50 = vmul.f32 %v6622_v46, %v7441_v23 }
 0x34e   :  { %7428 = vst [vmem:[#allocation6_spill] sm:$0xff] %v6838_v2  ;;  %7430 = vst [vmem:[#allocation8_spill] sm:$0xff] %v6842_v7  ;;  %v6860_v2 = vmul.f32 %v6622_v46, %v7437_v37  ;;  %v6864_v7 = vmul.f32 %v6622_v46, %v7439_v26  ;;  %v6892_v23 = vmul.f32 %v6622_v46, %v6603_v52 }
 0x34f   :  { %7432 = vst [vmem:[#allocation7_spill] sm:$0xff] %v6846_v12  ;;  %7434 = vst [vmem:[#allocation9_spill] sm:$0xff] %v6852_v53  ;;  %v6868_v12 = vmul.f32 %v6622_v46, %v7440_v16  ;;  %v7442_v53 = vld [vmem:[#allocation20_spill] sm:$0xff]  ;;  %v6888_v16 = vmul.f32 %v6622_v46, %v6608_v1  ;;  %v6908_v1 = vadd.f32 %v6848_v49, %v6638_v21 }
 0x350   :  { %7436 = vst [vmem:[#allocation10_spill] sm:$0xff] %v6856_v56  ;;  %7438 = vst [vmem:[#allocation11_spill] sm:$0xff] %v6860_v2  ;;  %v6876_v29 = vmul.f32 %v6622_v46, %v7442_v53  ;;  %v7443_v56 = vld [vmem:[#allocation22_spill] sm:$0xff]  ;;  %v7444_v2 = vld [vmem:[#allocation23_spill] sm:$0xff]  ;;  %v6896_v53 = vadd.f32 %v6848_v49, %v6626_v0  ;;  %v6912_v52 = vadd.f32 %v6848_v49, %v6642_v11 }
 0x351   :  { %v6880_v37 = vmul.f32 %v6622_v46, %v7443_v56  ;;  %v6884_v26 = vmul.f32 %v6622_v46, %v7444_v2  ;;  %v6900_v56 = vadd.f32 %v6848_v49, %v6630_v24  ;;  %v6904_v2 = vadd.f32 %v6848_v49, %v6634_v30  ;;  %7448 = vst [vmem:[#allocation15_spill] sm:$0xff] %v6908_v1 }
 0x352   :  { %7445 = vst [vmem:[#allocation12_spill] sm:$0xff] %v6896_v53  ;;  %7449 = vst [vmem:[#allocation17_spill] sm:$0xff] %v6912_v52  ;;  %v6916_v46 = vadd.f32 %v6848_v49, %v6646_v34  ;;  %v6920_v0 = vadd.f32 %v6848_v49, %v6650_v38  ;;  %v6924_v24 = vadd.f32 %v6848_v49, %v6654_v35 }
 0x353   :  { %7446 = vst [vmem:[#allocation13_spill] sm:$0xff] %v6900_v56  ;;  %7447 = vst [vmem:[#allocation14_spill] sm:$0xff] %v6904_v2  ;;  %v6928_v30 = vadd.f32 %v6848_v49, %v6658_v39  ;;  %v6932_v21 = vadd.f32 %v6848_v49, %v6662_v62  ;;  %v6936_v11 = vadd.f32 %v6848_v49, %v6666_v3 }
 0x354   :  { %7450 = vst [vmem:[#allocation16_spill] sm:$0xff] %v6916_v46  ;;  %7451 = vst [vmem:[#allocation18_spill] sm:$0xff] %v6920_v0  ;;  %v6940_v34 = vadd.f32 %v6848_v49, %v6670_v63  ;;  %v6944_v38 = vadd.f32 %v6848_v49, %v6674_v4  ;;  %v6948_v35 = vadd.f32 %v6848_v49, %v6678_v27 }
 0x355   :  { %7452 = vst [vmem:[#allocation19_spill] sm:$0xff] %v6924_v24  ;;  %7453 = vst [vmem:[#allocation21_spill] sm:$0xff] %v6928_v30  ;;  %v6952_v39 = vadd.f32 %v6848_v49, %v6682_v31  ;;  %v6956_v62 = vadd.f32 %v6848_v49, %v6686_v28  ;;  %v6960_v3 = vadd.f32 %v6848_v49, %v6690_v32 }
 0x356   :  { %7454 = vst [vmem:[#allocation20_spill] sm:$0xff] %v6932_v21  ;;  %7455 = vst [vmem:[#allocation22_spill] sm:$0xff] %v6936_v11  ;;  %v6964_v63 = vadd.f32 %v6848_v49, %v6694_v60  ;;  %v6968_v4 = vadd.f32 %v6848_v49, %v6698_v5  ;;  %v6972_v27 = vadd.f32 %v6848_v49, %v6702_v61 }
 0x357   :  { %v6976_v31 = vadd.f32 %v6848_v49, %v6706_v6  ;;  %v6980_v28 = vadd.f32 %v6848_v49, %v6710_v33  ;;  %v6984_v32 = vadd.f32 %v6848_v49, %v6714_v41  ;;  %v6988_v60 = vadd.f32 %v6848_v49, %v6718_v36 }
 0x358   :  { %v6992_v5 = vadd.f32 %v6848_v49, %v6722_v42  ;;  %v6996_v61 = vadd.f32 %v6848_v49, %v6726_v13  ;;  %v7000_v6 = vadd.f32 %v6848_v49, %v6730_v18  ;;  %v7004_v33 = vadd.f32 %v6848_v49, %v6734_v14 }
 0x359   :  { %v7008_v41 = vadd.f32 %v6848_v49, %v6738_v19  ;;  %v7012_v36 = vadd.f32 %v6848_v49, %v6742_v9  ;;  %v7016_v42 = vadd.f32 %v6848_v49, %v6746_v17  ;;  %v7020_v13 = vadd.f32 %v6848_v49, %v6750_v10 }
 0x35a   :  { %v7024_v18 = vadd.f32 %v6848_v49, %v6754_v20  ;;  %v7028_v14 = vadd.f32 %v6848_v49, %v6758_v54  ;;  %v7032_v19 = vadd.f32 %v6848_v49, %v6762_v57  ;;  %v7036_v9 = vadd.f32 %v6848_v49, %v6766_v55 }
 0x35b   :  { %v7040_v17 = vadd.f32 %v6848_v49, %v6770_v58  ;;  %v7044_v10 = vadd.f32 %v6848_v49, %v6774_v40  ;;  %v7048_v20 = vadd.f32 %v6848_v49, %v6778_v47  ;;  %v7052_v54 = vadd.f32 %v6848_v49, %v6782_v45 }
 0x35c   :  { %v7056_v57 = vadd.f32 %v6848_v49, %v6786_v48  ;;  %v7060_v55 = vadd.f32 %v6848_v49, %v6790_v25  ;;  %v7064_v58 = vadd.f32 %v6848_v49, %v6794_v51  ;;  %v7068_v40 = vadd.f32 %v6848_v49, %v6798_v8  ;;  %v7461_v8 = vld [vmem:[#allocation3_spill] sm:$0xff] }
 0x35d   :  { %v7072_v47 = vadd.f32 %v6848_v49, %v6802_v15  ;;  %v7076_v45 = vadd.f32 %v6848_v49, %v6806_v43  ;;  %v7080_v48 = vadd.f32 %v6848_v49, %v6810_v59  ;;  %v7084_v25 = vadd.f32 %v6848_v49, %v6814_v22 }
 0x35e   :  { %v7088_v51 = vadd.f32 %v6848_v49, %v6818_v44  ;;  %v7092_v15 = vadd.f32 %v6848_v49, %v7461_v8 }
 0x35f   :  { %7456 = vst [vmem:[#allocation23_spill] sm:$0xff] %v7072_v47  ;;  %7457 = vst [vmem:[#allocation24_spill] sm:$0xff] %v7076_v45  ;;  %v7463_v47 = vld [vmem:[#allocation2_spill] sm:$0xff]  ;;  %v7465_v45 = vld [vmem:[#allocation4_spill] sm:$0xff] }
 0x360   :  { %7458 = vst [vmem:[#allocation25_spill] sm:$0xff] %v7080_v48  ;;  %7459 = vst [vmem:[#allocation26_spill] sm:$0xff] %v7084_v25  ;;  %v7096_v43 = vadd.f32 %v6848_v49, %v7463_v47  ;;  %v7100_v59 = vadd.f32 %v6848_v49, %v7465_v45  ;;  %v7467_v48 = vld [vmem:[#allocation5_spill] sm:$0xff]  ;;  %v7469_v25 = vld [vmem:[#allocation6_spill] sm:$0xff] }
 0x361   :  { %7460 = vst [vmem:[#allocation27_spill] sm:$0xff] %v7088_v51  ;;  %7462 = vst [vmem:[#allocation3_spill] sm:$0xff] %v7092_v15  ;;  %v7104_v22 = vadd.f32 %v6848_v49, %v7467_v48  ;;  %v7108_v44 = vadd.f32 %v6848_v49, %v7469_v25  ;;  %v7470_v51 = vld [vmem:[#allocation8_spill] sm:$0xff]  ;;  %v7471_v15 = vld [vmem:[#allocation7_spill] sm:$0xff] }
 0x362   :  { %7464 = vst [vmem:[#allocation2_spill] sm:$0xff] %v7096_v43  ;;  %7466 = vst [vmem:[#allocation4_spill] sm:$0xff] %v7100_v59  ;;  %v7112_v8 = vadd.f32 %v6848_v49, %v7470_v51  ;;  %v7116_v47 = vadd.f32 %v6848_v49, %v7471_v15  ;;  %v7472_v43 = vld [vmem:[#allocation9_spill] sm:$0xff]  ;;  %v7473_v59 = vld [vmem:[#allocation10_spill] sm:$0xff]  ;;  %v7132_v51 = vadd.f32 %v6848_v49, %v6864_v7 }
 0x363   :  { %7468 = vst [vmem:[#allocation5_spill] sm:$0xff] %v7104_v22  ;;  %v7120_v45 = vadd.f32 %v6848_v49, %v7472_v43  ;;  %v7124_v48 = vadd.f32 %v6848_v49, %v7473_v59  ;;  %v7474_v22 = vld [vmem:[#allocation11_spill] sm:$0xff]  ;;  %v7136_v15 = vadd.f32 %v6848_v49, %v6868_v12  ;;  %v7140_v43 = vadd.f32 %v6848_v49, %v6872_v50 }
 0x364   :  { %v7128_v25 = vadd.f32 %v6848_v49, %v7474_v22  ;;  %v7144_v59 = vadd.f32 %v6848_v49, %v6876_v29  ;;  %v7148_v22 = vadd.f32 %v6848_v49, %v6880_v37  ;;  %v7152_v7 = vadd.f32 %v6848_v49, %v6884_v26 }
 0x365   :  { %7475 = vst [vmem:[#allocation6_spill] sm:$0xff] %v7140_v43  ;;  %v7156_v12 = vadd.f32 %v6848_v49, %v6888_v16  ;;  %v7160_v50 = vadd.f32 %v6848_v49, %v6892_v23  ;;  %v3805_v29 = vmax.f32 %v6940_v34, 0.0  ;;  %v3807_v37 = vmax.f32 %v6948_v35, 0.0 }
 0x366   :  { %7476 = vst [vmem:[#allocation8_spill] sm:$0xff] %v7144_v59  ;;  %7477 = vst [vmem:[#allocation7_spill] sm:$0xff] %v7148_v22  ;;  %v3806_v59 = vmax.f32 %v6944_v38, 0.0  ;;  %v3808_v22 = vmax.f32 %v6952_v39, 0.0  ;;  %v3809_v26 = vmax.f32 %v6956_v62, 0.0  ;;  %v3811_v16 = vmax.f32 %v6964_v63, 0.0 }
 0x367   :  { %7478 = vst [vmem:[#allocation9_spill] sm:$0xff] %v7152_v7  ;;  %7479 = vst [vmem:[#allocation10_spill] sm:$0xff] %v7156_v12  ;;  %v3810_v7 = vmax.f32 %v6960_v3, 0.0  ;;  %v3812_v12 = vmax.f32 %v6968_v4, 0.0  ;;  %v3813_v49 = vmax.f32 %v6972_v27, 0.0  ;;  %v3814_v23 = vmax.f32 %v6976_v31, 0.0 }
 0x368   :  { %7480 = vst [vmem:[#allocation11_spill] sm:$0xff] %v7160_v50  ;;  %v3815_v34 = vmax.f32 %v6980_v28, 0.0  ;;  %v3816_v38 = vmax.f32 %v6984_v32, 0.0  ;;  %v3817_v35 = vmax.f32 %v6988_v60, 0.0  ;;  %v3818_v39 = vmax.f32 %v6992_v5, 0.0  ;;  %v7481_v43 = vld [vmem:[#allocation23_spill] sm:$0xff] }
 0x369   :  { %v3819_v62 = vmax.f32 %v6996_v61, 0.0  ;;  %v3820_v3 = vmax.f32 %v7000_v6, 0.0  ;;  %v3821_v63 = vmax.f32 %v7004_v33, 0.0  ;;  %v3822_v4 = vmax.f32 %v7008_v41, 0.0  ;;  %v7482_v11 = vld [vmem:[#allocation24_spill] sm:$0xff]  ;;  %v7483_v21 = vld [vmem:[#allocation25_spill] sm:$0xff] }
 0x36a   :  { %v3823_v27 = vmax.f32 %v7012_v36, 0.0  ;;  %v3824_v31 = vmax.f32 %v7016_v42, 0.0  ;;  %v3825_v28 = vmax.f32 %v7020_v13, 0.0  ;;  %v3826_v32 = vmax.f32 %v7024_v18, 0.0  ;;  %v7484_v30 = vld [vmem:[#allocation26_spill] sm:$0xff]  ;;  %v7485_v24 = vld [vmem:[#allocation27_spill] sm:$0xff] }
 0x36b   :  { %v3827_v60 = vmax.f32 %v7028_v14, 0.0  ;;  %v3828_v5 = vmax.f32 %v7032_v19, 0.0  ;;  %v3829_v61 = vmax.f32 %v7036_v9, 0.0  ;;  %v3830_v6 = vmax.f32 %v7040_v17, 0.0  ;;  %v7486_v0 = vld [vmem:[#allocation3_spill] sm:$0xff]  ;;  %v7487_v46 = vld [vmem:[#allocation2_spill] sm:$0xff] }
 0x36c   :  { %v3831_v33 = vmax.f32 %v7044_v10, 0.0  ;;  %v3832_v41 = vmax.f32 %v7048_v20, 0.0  ;;  %v3833_v36 = vmax.f32 %v7052_v54, 0.0  ;;  %v3834_v42 = vmax.f32 %v7056_v57, 0.0  ;;  %v7488_v52 = vld [vmem:[#allocation4_spill] sm:$0xff]  ;;  %v7489_v1 = vld [vmem:[#allocation5_spill] sm:$0xff] }
 0x36d   :  { %v3835_v13 = vmax.f32 %v7060_v55, 0.0  ;;  %v3836_v18 = vmax.f32 %v7064_v58, 0.0  ;;  %v3837_v14 = vmax.f32 %v7068_v40, 0.0  ;;  %v3838_v19 = vmax.f32 %v7481_v43, 0.0  ;;  %v7490_v2 = vld [vmem:[#allocation6_spill] sm:$0xff]  ;;  %v7491_v56 = vld [vmem:[#allocation8_spill] sm:$0xff] }
 0x36e   :  { %v3839_v9 = vmax.f32 %v7482_v11, 0.0  ;;  %v3840_v17 = vmax.f32 %v7483_v21, 0.0  ;;  %v3841_v10 = vmax.f32 %v7484_v30, 0.0  ;;  %v3842_v20 = vmax.f32 %v7485_v24, 0.0  ;;  %v7492_v53 = vld [vmem:[#allocation7_spill] sm:$0xff]  ;;  %v7493_v50 = vld [vmem:[#allocation9_spill] sm:$0xff] }
 0x36f   :  { %v3843_v54 = vmax.f32 %v7486_v0, 0.0  ;;  %v3844_v57 = vmax.f32 %v7487_v46, 0.0  ;;  %v3845_v55 = vmax.f32 %v7488_v52, 0.0  ;;  %v3846_v58 = vmax.f32 %v7489_v1, 0.0 }
 0x370   :  { %v3847_v40 = vmax.f32 %v7108_v44, 0.0  ;;  %v3848_v43 = vmax.f32 %v7112_v8, 0.0  ;;  %v3849_v11 = vmax.f32 %v7116_v47, 0.0  ;;  %v3850_v21 = vmax.f32 %v7120_v45, 0.0  ;;  %v7494_v47 = vld [vmem:[#allocation10_spill] sm:$0xff] }
 0x371   :  { %v3851_v30 = vmax.f32 %v7124_v48, 0.0  ;;  %v3852_v24 = vmax.f32 %v7128_v25, 0.0  ;;  %v3853_v0 = vmax.f32 %v7132_v51, 0.0  ;;  %v3854_v46 = vmax.f32 %v7136_v15, 0.0  ;;  %v7495_v48 = vld [vmem:[#allocation11_spill] sm:$0xff]  ;;  %v7496_v51 = vld [vmem:[#allocation12_spill] sm:$0xff] }
 0x372   :  { %v3855_v52 = vmax.f32 %v7490_v2, 0.0  ;;  %v3856_v1 = vmax.f32 %v7491_v56, 0.0  ;;  %v3857_v44 = vmax.f32 %v7492_v53, 0.0  ;;  %v3858_v8 = vmax.f32 %v7493_v50, 0.0  ;;  %v7498_v2 = vld [vmem:[#allocation13_spill] sm:$0xff]  ;;  %v7500_v50 = vld [vmem:[#allocation14_spill] sm:$0xff] }
 0x373   :  { %v3859_v45 = vmax.f32 %v7494_v47, 0.0  ;;  %v3860_v25 = vmax.f32 %v7495_v48, 0.0  ;;  %v7497_v15 = vmax.f32 %v7496_v51, 0.0  ;;  %v7499_v56 = vmax.f32 %v7498_v2, 0.0  ;;  %v7502_v48 = vld [vmem:[#allocation15_spill] sm:$0xff] }
 0x374   :  { %v7501_v47 = vmax.f32 %v7500_v50, 0.0  ;;  %v7503_v51 = vmax.f32 %v7502_v48, 0.0  ;;  %v7506_v50 = vld [vmem:[#allocation16_spill] sm:$0xff] }
 0x375   :  { %v4571_v53 = vpack.c.bf16 %v7499_v56, %v7497_v15  ;;  %v7504_v15 = vld [vmem:[#allocation17_spill] sm:$0xff]  ;;  %v7507_v48 = vmax.f32 %v7506_v50, 0.0  ;;  %v7510_v50 = vld [vmem:[#allocation19_spill] sm:$0xff] }
 0x376   :  { %v4572_v2 = vpack.c.bf16 %v7503_v51, %v7501_v47  ;;  %v7505_v56 = vmax.f32 %v7504_v15, 0.0  ;;  %v7508_v51 = vld [vmem:[#allocation18_spill] sm:$0xff] }
 0x377   :  { %v7509_v15 = vmax.f32 %v7508_v51, 0.0  ;;  %v7512_v51 = vld [vmem:[#allocation21_spill] sm:$0xff]  ;;  %4130 = vst [vmem:[%s7357_s4] sm:$0xff] %v4571_v53 }
 0x378   :  { %v4573_v47 = vpack.c.bf16 %v7507_v48, %v7505_v56  ;;  %v7511_v48 = vmax.f32 %v7510_v50, 0.0  ;;  %v7513_v50 = vmax.f32 %v7512_v51, 0.0  ;;  %4131 = vst [vmem:[%s7357_s4 + $0x8] sm:$0xff] %v4572_v2 }
 0x37a   :  { %v4574_v56 = vpack.c.bf16 %v7511_v48, %v7509_v15  ;;  %v7514_v15 = vld [vmem:[#allocation20_spill] sm:$0xff]  ;;  %4132 = vst [vmem:[%s7357_s4 + $0x10] sm:$0xff] %v4573_v47 }
 0x37b   :  { %v7515_v48 = vmax.f32 %v7514_v15, 0.0  ;;  %v7516_v15 = vld [vmem:[#allocation22_spill] sm:$0xff] }
 0x37c   :  { %4133 = vst [vmem:[%s7357_s4 + $0x18] sm:$0xff] %v4574_v56 }
 0x37d   :  { %v4575_v51 = vpack.c.bf16 %v7515_v48, %v7513_v50  ;;  %v7517_v48 = vmax.f32 %v7516_v15, 0.0  ;;  %v4577_v15 = vpack.c.bf16 %v3807_v37, %v3806_v59  ;;  %v4580_v37 = vpack.c.bf16 %v3813_v49, %v3812_v12 }
 0x37e   :  { %v4581_v59 = vpack.c.bf16 %v3815_v34, %v3814_v23  ;;  %v4586_v12 = vpack.c.bf16 %v3825_v28, %v3824_v31  ;;  %v4587_v49 = vpack.c.bf16 %v3827_v60, %v3826_v32  ;;  %v4588_v23 = vpack.c.bf16 %v3829_v61, %v3828_v5 }
 0x37f   :  { %v4576_v50 = vpack.c.bf16 %v3805_v29, %v7517_v48  ;;  %v4578_v29 = vpack.c.bf16 %v3809_v26, %v3808_v22  ;;  %v4579_v48 = vpack.c.bf16 %v3811_v16, %v3810_v7  ;;  %v4582_v22 = vpack.c.bf16 %v3817_v35, %v3816_v38  ;;  %4134 = vst [vmem:[%s7357_s4 + $0x20] sm:$0xff] %v4575_v51 }
 0x380   :  { %v4583_v26 = vpack.c.bf16 %v3819_v62, %v3818_v39  ;;  %v4584_v7 = vpack.c.bf16 %v3821_v63, %v3820_v3  ;;  %v4585_v16 = vpack.c.bf16 %v3823_v27, %v3822_v4  ;;  %4136 = vst [vmem:[%s7357_s4 + $0x30] sm:$0xff] %v4577_v15  ;;  %v4589_v34 = vpack.c.bf16 %v3831_v33, %v3830_v6 }
 0x381   :  { %4135 = vst [vmem:[%s7357_s4 + $0x28] sm:$0xff] %v4576_v50  ;;  %4137 = vst [vmem:[%s7357_s4 + $0x38] sm:$0xff] %v4578_v29  ;;  %v4590_v38 = vpack.c.bf16 %v3833_v36, %v3832_v41  ;;  %v4591_v35 = vpack.c.bf16 %v3835_v13, %v3834_v42  ;;  %v4592_v39 = vpack.c.bf16 %v3837_v14, %v3836_v18 }
 0x382   :  { %4138 = vst [vmem:[%s7357_s4 + $0x40] sm:$0xff] %v4579_v48  ;;  %4139 = vst [vmem:[%s7357_s4 + $0x48] sm:$0xff] %v4580_v37  ;;  %v4593_v62 = vpack.c.bf16 %v3839_v9, %v3838_v19  ;;  %v4594_v3 = vpack.c.bf16 %v3841_v10, %v3840_v17  ;;  %v4595_v63 = vpack.c.bf16 %v3843_v54, %v3842_v20 }
 0x383   :  { %4140 = vst [vmem:[%s7357_s4 + $0x50] sm:$0xff] %v4581_v59  ;;  %4141 = vst [vmem:[%s7357_s4 + $0x58] sm:$0xff] %v4582_v22  ;;  %v4596_v4 = vpack.c.bf16 %v3845_v55, %v3844_v57  ;;  %v4597_v27 = vpack.c.bf16 %v3847_v40, %v3846_v58  ;;  %v4598_v31 = vpack.c.bf16 %v3849_v11, %v3848_v43 }
 0x384   :  { %4142 = vst [vmem:[%s7357_s4 + $0x60] sm:$0xff] %v4583_v26  ;;  %4143 = vst [vmem:[%s7357_s4 + $0x68] sm:$0xff] %v4584_v7  ;;  %v4599_v28 = vpack.c.bf16 %v3851_v30, %v3850_v21  ;;  %v4600_v32 = vpack.c.bf16 %v3853_v0, %v3852_v24  ;;  %v4601_v60 = vpack.c.bf16 %v3855_v52, %v3854_v46 }
 0x385   :  { %4144 = vst [vmem:[%s7357_s4 + $0x70] sm:$0xff] %v4585_v16  ;;  %4145 = vst [vmem:[%s7357_s4 + $0x78] sm:$0xff] %v4586_v12  ;;  %v4602_v5 = vpack.c.bf16 %v3857_v44, %v3856_v1  ;;  %v4603_v61 = vpack.c.bf16 %v3859_v45, %v3858_v8  ;;  %v4604_v6 = vpack.c.bf16 %v3860_v25, %v3860_v25 }
 0x386   :  { %4146 = vst [vmem:[%s7357_s4 + $0x80] sm:$0xff] %v4587_v49  ;;  %4147 = vst [vmem:[%s7357_s4 + $0x88] sm:$0xff] %v4588_v23 }
 0x387   :  { %4148 = vst [vmem:[%s7357_s4 + $0x90] sm:$0xff] %v4589_v34  ;;  %4149 = vst [vmem:[%s7357_s4 + $0x98] sm:$0xff] %v4590_v38 }
 0x388   :  { %4150 = vst [vmem:[%s7357_s4 + $0xa0] sm:$0xff] %v4591_v35  ;;  %4151 = vst [vmem:[%s7357_s4 + $0xa8] sm:$0xff] %v4592_v39 }
 0x389   :  { %4152 = vst [vmem:[%s7357_s4 + $0xb0] sm:$0xff] %v4593_v62  ;;  %4153 = vst [vmem:[%s7357_s4 + $0xb8] sm:$0xff] %v4594_v3 }
 0x38a   :  { %4154 = vst [vmem:[%s7357_s4 + $0xc0] sm:$0xff] %v4595_v63  ;;  %4155 = vst [vmem:[%s7357_s4 + $0xc8] sm:$0xff] %v4596_v4 }
 0x38b   :  { %4156 = vst [vmem:[%s7357_s4 + $0xd0] sm:$0xff] %v4597_v27  ;;  %4157 = vst [vmem:[%s7357_s4 + $0xd8] sm:$0xff] %v4598_v31 }
 0x38c   :  { %4158 = vst [vmem:[%s7357_s4 + $0xe0] sm:$0xff] %v4599_v28  ;;  %4159 = vst [vmem:[%s7357_s4 + $0xe8] sm:$0xff] %v4600_v32 }
 0x38d   :  { %4160 = vst [vmem:[%s7357_s4 + $0xf0] sm:$0xff] %v4601_v60  ;;  %4161 = vst [vmem:[%s7357_s4 + $0xf8] sm:$0xff] %v4602_v5 }
 0x38e   :  { %4162 = vst [vmem:[%s7357_s4 + $0x100] sm:$0xff] %v4603_v61  ;;  %4163 = vst [vmem:[%s7357_s4 + $0x108] sm:$0xf] %v4604_v6 }

// kernel: _lambda_.11
= control target key start
LH: loop header
LB: loop body
LE: loop exit
PB: predicated region body
PF: predicated region fallthrough
CT: control target
= control target key end

     0   :  { %s3341_s12 = smov 0   ;;  %s3343_s13 = smov 0   ;;  %s4143_s0 = inlined_call_operand.vmem [shape: bf16[96,17408], index: 0, kind: input, shape index: {}]   ;;  %s4144_s1 = inlined_call_operand.vmem [shape: bf16[8,96], index: 1, kind: input, shape index: {}]   ;;  %s4145_s2 = inlined_call_operand.vmem [shape: f32[8,1], index: 2, kind: input, shape index: {}]   ;;  %s4146_s3 = inlined_call_operand.vmem [shape: f32[8,17408], index: 3, kind: output, shape index: {}]  }
   0x1   :  { %s3345_s14 = smov 0  }
   0x2 LB: > { %s2662_s15 = sadd.s32 4294967295, %s3318_s14   ;;  %s3358_s16 = sadd.s32 1, %s3318_s14   ;;  %s3318_s14 = sphi %s3345_s14, %s4149_s14   ;;  %s3314_s13 = sphi %s3343_s13, %s4148_s13   ;;  %s3310_s12 = sphi %s3341_s12, %s4147_s12  }
   0x3   : > { %s17_s17 = ssub.s32 %s3318_s14, %s3358_s16  ;;  %s20_s18 = sadd.s32 1, %s3314_s13 }
   0x4   : > { %p18_p0 = scmp.eq.s32.totalorder %s17_s17, 0  ;;  %p27_p1 = scmp.ne.s32.totalorder %s3314_s13, %s3310_s12 }
   0x5   : > { %p28_p2 = scmp.eq.s32.totalorder %s3318_s14, 0  ;;  %p2665_p4 = scmp.ge.s32.totalorder %s3318_s14, 4 }
   0x6   : > { %s3367_s19 = scalar_select %p18_p0, %s3314_s13, %s20_s18  }
   0x7   : > { %p29_p3 = por %p28_p2, %p27_p1  ;;  %127 = sbr.rel (%p2665_p4) target bundleno = 119 (0x77), region = 24 }
   0xc   : > { %130 = sbr.rel (!%p29_p3) target bundleno = 119 (0x77), region = 28  ;;  %s132_s20 = sand.u32 (%p29_p3), 1, %s3314_s13  }
   0xd   : > { %s2892_s21 = smul.u32 (%p29_p3), 136, %s3318_s14 }
   0xe   : > { %s2893_s22 = smul.u32 (%p29_p3), 1632, %s132_s20 }
   0xf   : > { %s3375_s25 = scalar_lea.vmem (%p29_p3), %s4143_s0, %s2892_s21 }
  0x10   : > { %v150_v0 = vld [vmem:[%s3375_s25] sm:$0xff] (%p29_p3)  ;;  %v152_v1 = vld [vmem:[%s3375_s25 + $0x8] sm:$0xff] (%p29_p3)  ;;  %v154_v2 = vld [vmem:[%s3375_s25 + $0x10] sm:$0xff] (%p29_p3)  ;;  %s3380_s26 = scalar_lea.vmem (%p29_p3), [#allocation2], %s2893_s22 }
  0x11   : > { %151 = vst [vmem:[%s3380_s26] sm:$0xff] %v150_v0  ;;  %153 = vst [vmem:[%s3380_s26 + $0x8] sm:$0xff] %v152_v1  ;;  %v156_v3 = vld [vmem:[%s3375_s25 + $0x18] sm:$0xff]  ;;  %v158_v4 = vld [vmem:[%s3375_s25 + $0x20] sm:$0xff] }
  0x12   : > { %155 = vst [vmem:[%s3380_s26 + $0x10] sm:$0xff] %v154_v2  ;;  %v160_v5 = vld [vmem:[%s3375_s25 + $0x28] sm:$0xff]  ;;  %157 = vst [vmem:[%s3380_s26 + $0x18] sm:$0xff] %v156_v3  ;;  %v162_v6 = vld [vmem:[%s3375_s25 + $0x30] sm:$0xff] }
  0x13   : > { %159 = vst [vmem:[%s3380_s26 + $0x20] sm:$0xff] %v158_v4  ;;  %161 = vst [vmem:[%s3380_s26 + $0x28] sm:$0xff] %v160_v5  ;;  %v164_v7 = vld [vmem:[%s3375_s25 + $0x38] sm:$0xff]  ;;  %v166_v8 = vld [vmem:[%s3375_s25 + $0x40] sm:$0xff] }
  0x14   : > { %163 = vst [vmem:[%s3380_s26 + $0x30] sm:$0xff] %v162_v6  ;;  %165 = vst [vmem:[%s3380_s26 + $0x38] sm:$0xff] %v164_v7  ;;  %v168_v9 = vld [vmem:[%s3375_s25 + $0x48] sm:$0xff]  ;;  %v170_v10 = vld [vmem:[%s3375_s25 + $0x50] sm:$0xff] }
  0x15   : > { %167 = vst [vmem:[%s3380_s26 + $0x40] sm:$0xff] %v166_v8  ;;  %v172_v11 = vld [vmem:[%s3375_s25 + $0x58] sm:$0xff]  ;;  %169 = vst [vmem:[%s3380_s26 + $0x48] sm:$0xff] %v168_v9  ;;  %v174_v12 = vld [vmem:[%s3375_s25 + $0x60] sm:$0xff] }
  0x16   : > { %171 = vst [vmem:[%s3380_s26 + $0x50] sm:$0xff] %v170_v10  ;;  %173 = vst [vmem:[%s3380_s26 + $0x58] sm:$0xff] %v172_v11  ;;  %v176_v13 = vld [vmem:[%s3375_s25 + $0x68] sm:$0xff]  ;;  %v178_v14 = vld [vmem:[%s3375_s25 + $0x70] sm:$0xff] }
  0x17   : > { %175 = vst [vmem:[%s3380_s26 + $0x60] sm:$0xff] %v174_v12  ;;  %177 = vst [vmem:[%s3380_s26 + $0x68] sm:$0xff] %v176_v13  ;;  %v180_v15 = vld [vmem:[%s3375_s25 + $0x78] sm:$0xff]  ;;  %v182_v16 = vld [vmem:[%s3375_s25 + $0x80] sm:$0xff] }
  0x18   : > { %179 = vst [vmem:[%s3380_s26 + $0x70] sm:$0xff] %v178_v14  ;;  %v184_v17 = vld [vmem:[%s3375_s25 + $0x220] sm:$0xff]  ;;  %181 = vst [vmem:[%s3380_s26 + $0x78] sm:$0xff] %v180_v15  ;;  %v186_v18 = vld [vmem:[%s3375_s25 + $0x228] sm:$0xff] }
  0x19   : > { %183 = vst [vmem:[%s3380_s26 + $0x80] sm:$0xff] %v182_v16  ;;  %185 = vst [vmem:[%s3380_s26 + $0x88] sm:$0xff] %v184_v17  ;;  %v188_v19 = vld [vmem:[%s3375_s25 + $0x230] sm:$0xff]  ;;  %v190_v20 = vld [vmem:[%s3375_s25 + $0x238] sm:$0xff] }
  0x1a   : > { %187 = vst [vmem:[%s3380_s26 + $0x90] sm:$0xff] %v186_v18  ;;  %189 = vst [vmem:[%s3380_s26 + $0x98] sm:$0xff] %v188_v19  ;;  %v192_v21 = vld [vmem:[%s3375_s25 + $0x240] sm:$0xff]  ;;  %v194_v22 = vld [vmem:[%s3375_s25 + $0x248] sm:$0xff] }
  0x1b   : > { %191 = vst [vmem:[%s3380_s26 + $0xa0] sm:$0xff] %v190_v20  ;;  %v196_v23 = vld [vmem:[%s3375_s25 + $0x250] sm:$0xff]  ;;  %193 = vst [vmem:[%s3380_s26 + $0xa8] sm:$0xff] %v192_v21  ;;  %v198_v24 = vld [vmem:[%s3375_s25 + $0x258] sm:$0xff] }
  0x1c   : > { %195 = vst [vmem:[%s3380_s26 + $0xb0] sm:$0xff] %v194_v22  ;;  %197 = vst [vmem:[%s3380_s26 + $0xb8] sm:$0xff] %v196_v23  ;;  %v200_v25 = vld [vmem:[%s3375_s25 + $0x260] sm:$0xff]  ;;  %v202_v26 = vld [vmem:[%s3375_s25 + $0x268] sm:$0xff] }
  0x1d   : > { %199 = vst [vmem:[%s3380_s26 + $0xc0] sm:$0xff] %v198_v24  ;;  %201 = vst [vmem:[%s3380_s26 + $0xc8] sm:$0xff] %v200_v25  ;;  %v204_v27 = vld [vmem:[%s3375_s25 + $0x270] sm:$0xff]  ;;  %v206_v28 = vld [vmem:[%s3375_s25 + $0x278] sm:$0xff] }
  0x1e   : > { %203 = vst [vmem:[%s3380_s26 + $0xd0] sm:$0xff] %v202_v26  ;;  %v208_v29 = vld [vmem:[%s3375_s25 + $0x280] sm:$0xff]  ;;  %205 = vst [vmem:[%s3380_s26 + $0xd8] sm:$0xff] %v204_v27  ;;  %v210_v30 = vld [vmem:[%s3375_s25 + $0x288] sm:$0xff] }
  0x1f   : > { %207 = vst [vmem:[%s3380_s26 + $0xe0] sm:$0xff] %v206_v28  ;;  %209 = vst [vmem:[%s3380_s26 + $0xe8] sm:$0xff] %v208_v29  ;;  %v212_v31 = vld [vmem:[%s3375_s25 + $0x290] sm:$0xff]  ;;  %v214_v32 = vld [vmem:[%s3375_s25 + $0x298] sm:$0xff] }
  0x20   : > { %211 = vst [vmem:[%s3380_s26 + $0xf0] sm:$0xff] %v210_v30  ;;  %213 = vst [vmem:[%s3380_s26 + $0xf8] sm:$0xff] %v212_v31  ;;  %v216_v33 = vld [vmem:[%s3375_s25 + $0x2a0] sm:$0xff]  ;;  %v220_v35 = vld [vmem:[%s3375_s25 + $0x448] sm:$0xff] }
  0x21   : > { %215 = vst [vmem:[%s3380_s26 + $0x100] sm:$0xff] %v214_v32  ;;  %v218_v34 = vld [vmem:[%s3375_s25 + $0x440] sm:$0xff]  ;;  %217 = vst [vmem:[%s3380_s26 + $0x108] sm:$0xff] %v216_v33  ;;  %v222_v36 = vld [vmem:[%s3375_s25 + $0x450] sm:$0xff] }
  0x22   : > { %219 = vst [vmem:[%s3380_s26 + $0x110] sm:$0xff] %v218_v34  ;;  %221 = vst [vmem:[%s3380_s26 + $0x118] sm:$0xff] %v220_v35  ;;  %v224_v37 = vld [vmem:[%s3375_s25 + $0x458] sm:$0xff]  ;;  %v226_v38 = vld [vmem:[%s3375_s25 + $0x460] sm:$0xff] }
  0x23   : > { %223 = vst [vmem:[%s3380_s26 + $0x120] sm:$0xff] %v222_v36  ;;  %225 = vst [vmem:[%s3380_s26 + $0x128] sm:$0xff] %v224_v37  ;;  %v228_v39 = vld [vmem:[%s3375_s25 + $0x468] sm:$0xff]  ;;  %v230_v40 = vld [vmem:[%s3375_s25 + $0x470] sm:$0xff] }
  0x24   : > { %227 = vst [vmem:[%s3380_s26 + $0x130] sm:$0xff] %v226_v38  ;;  %v232_v41 = vld [vmem:[%s3375_s25 + $0x478] sm:$0xff]  ;;  %229 = vst [vmem:[%s3380_s26 + $0x138] sm:$0xff] %v228_v39  ;;  %v234_v42 = vld [vmem:[%s3375_s25 + $0x480] sm:$0xff] }
  0x25   : > { %231 = vst [vmem:[%s3380_s26 + $0x140] sm:$0xff] %v230_v40  ;;  %233 = vst [vmem:[%s3380_s26 + $0x148] sm:$0xff] %v232_v41  ;;  %v236_v43 = vld [vmem:[%s3375_s25 + $0x488] sm:$0xff]  ;;  %v238_v44 = vld [vmem:[%s3375_s25 + $0x490] sm:$0xff] }
  0x26   : > { %235 = vst [vmem:[%s3380_s26 + $0x150] sm:$0xff] %v234_v42  ;;  %237 = vst [vmem:[%s3380_s26 + $0x158] sm:$0xff] %v236_v43  ;;  %v240_v45 = vld [vmem:[%s3375_s25 + $0x498] sm:$0xff]  ;;  %v242_v46 = vld [vmem:[%s3375_s25 + $0x4a0] sm:$0xff] }
  0x27   : > { %239 = vst [vmem:[%s3380_s26 + $0x160] sm:$0xff] %v238_v44  ;;  %v244_v47 = vld [vmem:[%s3375_s25 + $0x4a8] sm:$0xff]  ;;  %241 = vst [vmem:[%s3380_s26 + $0x168] sm:$0xff] %v240_v45  ;;  %v246_v48 = vld [vmem:[%s3375_s25 + $0x4b0] sm:$0xff] }
  0x28   : > { %243 = vst [vmem:[%s3380_s26 + $0x170] sm:$0xff] %v242_v46  ;;  %245 = vst [vmem:[%s3380_s26 + $0x178] sm:$0xff] %v244_v47  ;;  %v248_v49 = vld [vmem:[%s3375_s25 + $0x4b8] sm:$0xff]  ;;  %v250_v50 = vld [vmem:[%s3375_s25 + $0x4c0] sm:$0xff] }
  0x29   : > { %247 = vst [vmem:[%s3380_s26 + $0x180] sm:$0xff] %v246_v48  ;;  %249 = vst [vmem:[%s3380_s26 + $0x188] sm:$0xff] %v248_v49  ;;  %v252_v51 = vld [vmem:[%s3375_s25 + $0x660] sm:$0xff]  ;;  %v254_v52 = vld [vmem:[%s3375_s25 + $0x668] sm:$0xff] }
  0x2a   : > { %251 = vst [vmem:[%s3380_s26 + $0x190] sm:$0xff] %v250_v50  ;;  %v256_v53 = vld [vmem:[%s3375_s25 + $0x670] sm:$0xff]  ;;  %253 = vst [vmem:[%s3380_s26 + $0x198] sm:$0xff] %v252_v51  ;;  %v258_v54 = vld [vmem:[%s3375_s25 + $0x678] sm:$0xff] }
  0x2b   : > { %255 = vst [vmem:[%s3380_s26 + $0x1a0] sm:$0xff] %v254_v52  ;;  %257 = vst [vmem:[%s3380_s26 + $0x1a8] sm:$0xff] %v256_v53  ;;  %v260_v55 = vld [vmem:[%s3375_s25 + $0x680] sm:$0xff]  ;;  %v262_v56 = vld [vmem:[%s3375_s25 + $0x688] sm:$0xff] }
  0x2c   : > { %259 = vst [vmem:[%s3380_s26 + $0x1b0] sm:$0xff] %v258_v54  ;;  %261 = vst [vmem:[%s3380_s26 + $0x1b8] sm:$0xff] %v260_v55  ;;  %v264_v57 = vld [vmem:[%s3375_s25 + $0x690] sm:$0xff]  ;;  %v266_v58 = vld [vmem:[%s3375_s25 + $0x698] sm:$0xff] }
  0x2d   : > { %263 = vst [vmem:[%s3380_s26 + $0x1c0] sm:$0xff] %v262_v56  ;;  %v268_v59 = vld [vmem:[%s3375_s25 + $0x6a0] sm:$0xff]  ;;  %265 = vst [vmem:[%s3380_s26 + $0x1c8] sm:$0xff] %v264_v57  ;;  %v270_v60 = vld [vmem:[%s3375_s25 + $0x6a8] sm:$0xff] }
  0x2e   : > { %267 = vst [vmem:[%s3380_s26 + $0x1d0] sm:$0xff] %v266_v58  ;;  %269 = vst [vmem:[%s3380_s26 + $0x1d8] sm:$0xff] %v268_v59  ;;  %v272_v61 = vld [vmem:[%s3375_s25 + $0x6b0] sm:$0xff]  ;;  %v274_v62 = vld [vmem:[%s3375_s25 + $0x6b8] sm:$0xff] }
  0x2f   : > { %271 = vst [vmem:[%s3380_s26 + $0x1e0] sm:$0xff] %v270_v60  ;;  %273 = vst [vmem:[%s3380_s26 + $0x1e8] sm:$0xff] %v272_v61  ;;  %v276_v63 = vld [vmem:[%s3375_s25 + $0x6c0] sm:$0xff]  ;;  %v278_v0 = vld [vmem:[%s3375_s25 + $0x6c8] sm:$0xff] }
  0x30   : > { %275 = vst [vmem:[%s3380_s26 + $0x1f0] sm:$0xff] %v274_v62  ;;  %v280_v1 = vld [vmem:[%s3375_s25 + $0x6d0] sm:$0xff]  ;;  %277 = vst [vmem:[%s3380_s26 + $0x1f8] sm:$0xff] %v276_v63  ;;  %v282_v2 = vld [vmem:[%s3375_s25 + $0x6d8] sm:$0xff] }
  0x31   : > { %279 = vst [vmem:[%s3380_s26 + $0x200] sm:$0xff] %v278_v0  ;;  %281 = vst [vmem:[%s3380_s26 + $0x208] sm:$0xff] %v280_v1  ;;  %v284_v3 = vld [vmem:[%s3375_s25 + $0x6e0] sm:$0xff]  ;;  %v288_v5 = vld [vmem:[%s3375_s25 + $0x888] sm:$0xff] }
  0x32   : > { %v286_v4 = vld [vmem:[%s3375_s25 + $0x880] sm:$0xff]  ;;  %283 = vst [vmem:[%s3380_s26 + $0x210] sm:$0xff] %v282_v2  ;;  %285 = vst [vmem:[%s3380_s26 + $0x218] sm:$0xff] %v284_v3  ;;  %v290_v6 = vld [vmem:[%s3375_s25 + $0x890] sm:$0xff] }
  0x33   : > { %287 = vst [vmem:[%s3380_s26 + $0x220] sm:$0xff] %v286_v4  ;;  %v292_v7 = vld [vmem:[%s3375_s25 + $0x898] sm:$0xff]  ;;  %289 = vst [vmem:[%s3380_s26 + $0x228] sm:$0xff] %v288_v5  ;;  %v294_v8 = vld [vmem:[%s3375_s25 + $0x8a0] sm:$0xff] }
  0x34   : > { %291 = vst [vmem:[%s3380_s26 + $0x230] sm:$0xff] %v290_v6  ;;  %293 = vst [vmem:[%s3380_s26 + $0x238] sm:$0xff] %v292_v7  ;;  %v296_v9 = vld [vmem:[%s3375_s25 + $0x8a8] sm:$0xff]  ;;  %v298_v10 = vld [vmem:[%s3375_s25 + $0x8b0] sm:$0xff] }
  0x35   : > { %295 = vst [vmem:[%s3380_s26 + $0x240] sm:$0xff] %v294_v8  ;;  %297 = vst [vmem:[%s3380_s26 + $0x248] sm:$0xff] %v296_v9  ;;  %v300_v11 = vld [vmem:[%s3375_s25 + $0x8b8] sm:$0xff]  ;;  %v302_v12 = vld [vmem:[%s3375_s25 + $0x8c0] sm:$0xff] }
  0x36   : > { %299 = vst [vmem:[%s3380_s26 + $0x250] sm:$0xff] %v298_v10  ;;  %v304_v13 = vld [vmem:[%s3375_s25 + $0x8c8] sm:$0xff]  ;;  %301 = vst [vmem:[%s3380_s26 + $0x258] sm:$0xff] %v300_v11  ;;  %v306_v14 = vld [vmem:[%s3375_s25 + $0x8d0] sm:$0xff] }
  0x37   : > { %303 = vst [vmem:[%s3380_s26 + $0x260] sm:$0xff] %v302_v12  ;;  %305 = vst [vmem:[%s3380_s26 + $0x268] sm:$0xff] %v304_v13  ;;  %v308_v15 = vld [vmem:[%s3375_s25 + $0x8d8] sm:$0xff]  ;;  %v310_v16 = vld [vmem:[%s3375_s25 + $0x8e0] sm:$0xff] }
  0x38   : > { %307 = vst [vmem:[%s3380_s26 + $0x270] sm:$0xff] %v306_v14  ;;  %309 = vst [vmem:[%s3380_s26 + $0x278] sm:$0xff] %v308_v15  ;;  %v312_v17 = vld [vmem:[%s3375_s25 + $0x8e8] sm:$0xff]  ;;  %v314_v18 = vld [vmem:[%s3375_s25 + $0x8f0] sm:$0xff] }
  0x39   : > { %311 = vst [vmem:[%s3380_s26 + $0x280] sm:$0xff] %v310_v16  ;;  %v316_v19 = vld [vmem:[%s3375_s25 + $0x8f8] sm:$0xff]  ;;  %313 = vst [vmem:[%s3380_s26 + $0x288] sm:$0xff] %v312_v17  ;;  %v318_v20 = vld [vmem:[%s3375_s25 + $0x900] sm:$0xff] }
  0x3a   : > { %315 = vst [vmem:[%s3380_s26 + $0x290] sm:$0xff] %v314_v18  ;;  %317 = vst [vmem:[%s3380_s26 + $0x298] sm:$0xff] %v316_v19  ;;  %v320_v21 = vld [vmem:[%s3375_s25 + $0xaa0] sm:$0xff]  ;;  %v322_v22 = vld [vmem:[%s3375_s25 + $0xaa8] sm:$0xff] }
  0x3b   : > { %319 = vst [vmem:[%s3380_s26 + $0x2a0] sm:$0xff] %v318_v20  ;;  %321 = vst [vmem:[%s3380_s26 + $0x2a8] sm:$0xff] %v320_v21  ;;  %v324_v23 = vld [vmem:[%s3375_s25 + $0xab0] sm:$0xff]  ;;  %v326_v24 = vld [vmem:[%s3375_s25 + $0xab8] sm:$0xff] }
  0x3c   : > { %323 = vst [vmem:[%s3380_s26 + $0x2b0] sm:$0xff] %v322_v22  ;;  %v328_v25 = vld [vmem:[%s3375_s25 + $0xac0] sm:$0xff]  ;;  %325 = vst [vmem:[%s3380_s26 + $0x2b8] sm:$0xff] %v324_v23  ;;  %v330_v26 = vld [vmem:[%s3375_s25 + $0xac8] sm:$0xff] }
  0x3d   : > { %327 = vst [vmem:[%s3380_s26 + $0x2c0] sm:$0xff] %v326_v24  ;;  %329 = vst [vmem:[%s3380_s26 + $0x2c8] sm:$0xff] %v328_v25  ;;  %v332_v27 = vld [vmem:[%s3375_s25 + $0xad0] sm:$0xff]  ;;  %v334_v28 = vld [vmem:[%s3375_s25 + $0xad8] sm:$0xff] }
  0x3e   : > { %331 = vst [vmem:[%s3380_s26 + $0x2d0] sm:$0xff] %v330_v26  ;;  %333 = vst [vmem:[%s3380_s26 + $0x2d8] sm:$0xff] %v332_v27  ;;  %v336_v29 = vld [vmem:[%s3375_s25 + $0xae0] sm:$0xff]  ;;  %v338_v30 = vld [vmem:[%s3375_s25 + $0xae8] sm:$0xff] }
  0x3f   : > { %335 = vst [vmem:[%s3380_s26 + $0x2e0] sm:$0xff] %v334_v28  ;;  %v340_v31 = vld [vmem:[%s3375_s25 + $0xaf0] sm:$0xff]  ;;  %337 = vst [vmem:[%s3380_s26 + $0x2e8] sm:$0xff] %v336_v29  ;;  %v342_v32 = vld [vmem:[%s3375_s25 + $0xaf8] sm:$0xff] }
  0x40   : > { %339 = vst [vmem:[%s3380_s26 + $0x2f0] sm:$0xff] %v338_v30  ;;  %341 = vst [vmem:[%s3380_s26 + $0x2f8] sm:$0xff] %v340_v31  ;;  %v344_v33 = vld [vmem:[%s3375_s25 + $0xb00] sm:$0xff]  ;;  %v346_v34 = vld [vmem:[%s3375_s25 + $0xb08] sm:$0xff] }
  0x41   : > { %343 = vst [vmem:[%s3380_s26 + $0x300] sm:$0xff] %v342_v32  ;;  %345 = vst [vmem:[%s3380_s26 + $0x308] sm:$0xff] %v344_v33  ;;  %v348_v35 = vld [vmem:[%s3375_s25 + $0xb10] sm:$0xff]  ;;  %v350_v36 = vld [vmem:[%s3375_s25 + $0xb18] sm:$0xff] }
  0x42   : > { %347 = vst [vmem:[%s3380_s26 + $0x310] sm:$0xff] %v346_v34  ;;  %v352_v37 = vld [vmem:[%s3375_s25 + $0xb20] sm:$0xff]  ;;  %349 = vst [vmem:[%s3380_s26 + $0x318] sm:$0xff] %v348_v35  ;;  %v356_v39 = vld [vmem:[%s3375_s25 + $0xcc8] sm:$0xff] }
  0x43   : > { %351 = vst [vmem:[%s3380_s26 + $0x320] sm:$0xff] %v350_v36  ;;  %353 = vst [vmem:[%s3380_s26 + $0x328] sm:$0xff] %v352_v37  ;;  %v354_v38 = vld [vmem:[%s3375_s25 + $0xcc0] sm:$0xff]  ;;  %v358_v40 = vld [vmem:[%s3375_s25 + $0xcd0] sm:$0xff] }
  0x44   : > { %355 = vst [vmem:[%s3380_s26 + $0x330] sm:$0xff] %v354_v38  ;;  %357 = vst [vmem:[%s3380_s26 + $0x338] sm:$0xff] %v356_v39  ;;  %v360_v41 = vld [vmem:[%s3375_s25 + $0xcd8] sm:$0xff]  ;;  %v362_v42 = vld [vmem:[%s3375_s25 + $0xce0] sm:$0xff] }
  0x45   : > { %359 = vst [vmem:[%s3380_s26 + $0x340] sm:$0xff] %v358_v40  ;;  %v364_v43 = vld [vmem:[%s3375_s25 + $0xce8] sm:$0xff]  ;;  %361 = vst [vmem:[%s3380_s26 + $0x348] sm:$0xff] %v360_v41  ;;  %v366_v44 = vld [vmem:[%s3375_s25 + $0xcf0] sm:$0xff] }
  0x46   : > { %363 = vst [vmem:[%s3380_s26 + $0x350] sm:$0xff] %v362_v42  ;;  %365 = vst [vmem:[%s3380_s26 + $0x358] sm:$0xff] %v364_v43  ;;  %v368_v45 = vld [vmem:[%s3375_s25 + $0xcf8] sm:$0xff]  ;;  %v370_v46 = vld [vmem:[%s3375_s25 + $0xd00] sm:$0xff] }
  0x47   : > { %367 = vst [vmem:[%s3380_s26 + $0x360] sm:$0xff] %v366_v44  ;;  %369 = vst [vmem:[%s3380_s26 + $0x368] sm:$0xff] %v368_v45  ;;  %v372_v47 = vld [vmem:[%s3375_s25 + $0xd08] sm:$0xff]  ;;  %v374_v48 = vld [vmem:[%s3375_s25 + $0xd10] sm:$0xff] }
  0x48   : > { %371 = vst [vmem:[%s3380_s26 + $0x370] sm:$0xff] %v370_v46  ;;  %v376_v49 = vld [vmem:[%s3375_s25 + $0xd18] sm:$0xff]  ;;  %373 = vst [vmem:[%s3380_s26 + $0x378] sm:$0xff] %v372_v47  ;;  %v378_v50 = vld [vmem:[%s3375_s25 + $0xd20] sm:$0xff] }
  0x49   : > { %375 = vst [vmem:[%s3380_s26 + $0x380] sm:$0xff] %v374_v48  ;;  %377 = vst [vmem:[%s3380_s26 + $0x388] sm:$0xff] %v376_v49  ;;  %v380_v51 = vld [vmem:[%s3375_s25 + $0xd28] sm:$0xff]  ;;  %v382_v52 = vld [vmem:[%s3375_s25 + $0xd30] sm:$0xff] }
  0x4a   : > { %379 = vst [vmem:[%s3380_s26 + $0x390] sm:$0xff] %v378_v50  ;;  %381 = vst [vmem:[%s3380_s26 + $0x398] sm:$0xff] %v380_v51  ;;  %v384_v53 = vld [vmem:[%s3375_s25 + $0xd38] sm:$0xff]  ;;  %v386_v54 = vld [vmem:[%s3375_s25 + $0xd40] sm:$0xff] }
  0x4b   : > { %383 = vst [vmem:[%s3380_s26 + $0x3a0] sm:$0xff] %v382_v52  ;;  %v388_v55 = vld [vmem:[%s3375_s25 + $0xee0] sm:$0xff]  ;;  %385 = vst [vmem:[%s3380_s26 + $0x3a8] sm:$0xff] %v384_v53  ;;  %v390_v56 = vld [vmem:[%s3375_s25 + $0xee8] sm:$0xff] }
  0x4c   : > { %387 = vst [vmem:[%s3380_s26 + $0x3b0] sm:$0xff] %v386_v54  ;;  %389 = vst [vmem:[%s3380_s26 + $0x3b8] sm:$0xff] %v388_v55  ;;  %v392_v57 = vld [vmem:[%s3375_s25 + $0xef0] sm:$0xff]  ;;  %v394_v58 = vld [vmem:[%s3375_s25 + $0xef8] sm:$0xff] }
  0x4d   : > { %391 = vst [vmem:[%s3380_s26 + $0x3c0] sm:$0xff] %v390_v56  ;;  %393 = vst [vmem:[%s3380_s26 + $0x3c8] sm:$0xff] %v392_v57  ;;  %v396_v59 = vld [vmem:[%s3375_s25 + $0xf00] sm:$0xff]  ;;  %v398_v60 = vld [vmem:[%s3375_s25 + $0xf08] sm:$0xff] }
  0x4e   : > { %395 = vst [vmem:[%s3380_s26 + $0x3d0] sm:$0xff] %v394_v58  ;;  %v400_v61 = vld [vmem:[%s3375_s25 + $0xf10] sm:$0xff]  ;;  %397 = vst [vmem:[%s3380_s26 + $0x3d8] sm:$0xff] %v396_v59  ;;  %v402_v62 = vld [vmem:[%s3375_s25 + $0xf18] sm:$0xff] }
  0x4f   : > { %399 = vst [vmem:[%s3380_s26 + $0x3e0] sm:$0xff] %v398_v60  ;;  %401 = vst [vmem:[%s3380_s26 + $0x3e8] sm:$0xff] %v400_v61  ;;  %v404_v63 = vld [vmem:[%s3375_s25 + $0xf20] sm:$0xff]  ;;  %v406_v0 = vld [vmem:[%s3375_s25 + $0xf28] sm:$0xff] }
  0x50   : > { %403 = vst [vmem:[%s3380_s26 + $0x3f0] sm:$0xff] %v402_v62  ;;  %405 = vst [vmem:[%s3380_s26 + $0x3f8] sm:$0xff] %v404_v63  ;;  %v408_v1 = vld [vmem:[%s3375_s25 + $0xf30] sm:$0xff]  ;;  %v410_v2 = vld [vmem:[%s3375_s25 + $0xf38] sm:$0xff] }
  0x51   : > { %407 = vst [vmem:[%s3380_s26 + $0x400] sm:$0xff] %v406_v0  ;;  %v412_v3 = vld [vmem:[%s3375_s25 + $0xf40] sm:$0xff]  ;;  %409 = vst [vmem:[%s3380_s26 + $0x408] sm:$0xff] %v408_v1  ;;  %v414_v4 = vld [vmem:[%s3375_s25 + $0xf48] sm:$0xff] }
  0x52   : > { %411 = vst [vmem:[%s3380_s26 + $0x410] sm:$0xff] %v410_v2  ;;  %413 = vst [vmem:[%s3380_s26 + $0x418] sm:$0xff] %v412_v3  ;;  %v416_v5 = vld [vmem:[%s3375_s25 + $0xf50] sm:$0xff]  ;;  %v418_v6 = vld [vmem:[%s3375_s25 + $0xf58] sm:$0xff] }
  0x53   : > { %415 = vst [vmem:[%s3380_s26 + $0x420] sm:$0xff] %v414_v4  ;;  %417 = vst [vmem:[%s3380_s26 + $0x428] sm:$0xff] %v416_v5  ;;  %v420_v7 = vld [vmem:[%s3375_s25 + $0xf60] sm:$0xff]  ;;  %v424_v9 = vld [vmem:[%s3375_s25 + $0x1108] sm:$0xff] }
  0x54   : > { %419 = vst [vmem:[%s3380_s26 + $0x430] sm:$0xff] %v418_v6  ;;  %v422_v8 = vld [vmem:[%s3375_s25 + $0x1100] sm:$0xff]  ;;  %421 = vst [vmem:[%s3380_s26 + $0x438] sm:$0xff] %v420_v7  ;;  %v426_v10 = vld [vmem:[%s3375_s25 + $0x1110] sm:$0xff] }
  0x55   : > { %423 = vst [vmem:[%s3380_s26 + $0x440] sm:$0xff] %v422_v8  ;;  %425 = vst [vmem:[%s3380_s26 + $0x448] sm:$0xff] %v424_v9  ;;  %v428_v11 = vld [vmem:[%s3375_s25 + $0x1118] sm:$0xff]  ;;  %v430_v12 = vld [vmem:[%s3375_s25 + $0x1120] sm:$0xff] }
  0x56   : > { %427 = vst [vmem:[%s3380_s26 + $0x450] sm:$0xff] %v426_v10  ;;  %429 = vst [vmem:[%s3380_s26 + $0x458] sm:$0xff] %v428_v11  ;;  %v432_v13 = vld [vmem:[%s3375_s25 + $0x1128] sm:$0xff]  ;;  %v434_v14 = vld [vmem:[%s3375_s25 + $0x1130] sm:$0xff] }
  0x57   : > { %431 = vst [vmem:[%s3380_s26 + $0x460] sm:$0xff] %v430_v12  ;;  %v436_v15 = vld [vmem:[%s3375_s25 + $0x1138] sm:$0xff]  ;;  %433 = vst [vmem:[%s3380_s26 + $0x468] sm:$0xff] %v432_v13  ;;  %v438_v16 = vld [vmem:[%s3375_s25 + $0x1140] sm:$0xff] }
  0x58   : > { %435 = vst [vmem:[%s3380_s26 + $0x470] sm:$0xff] %v434_v14  ;;  %437 = vst [vmem:[%s3380_s26 + $0x478] sm:$0xff] %v436_v15  ;;  %v440_v17 = vld [vmem:[%s3375_s25 + $0x1148] sm:$0xff]  ;;  %v442_v18 = vld [vmem:[%s3375_s25 + $0x1150] sm:$0xff] }
  0x59   : > { %439 = vst [vmem:[%s3380_s26 + $0x480] sm:$0xff] %v438_v16  ;;  %441 = vst [vmem:[%s3380_s26 + $0x488] sm:$0xff] %v440_v17  ;;  %v444_v19 = vld [vmem:[%s3375_s25 + $0x1158] sm:$0xff]  ;;  %v446_v20 = vld [vmem:[%s3375_s25 + $0x1160] sm:$0xff] }
  0x5a   : > { %443 = vst [vmem:[%s3380_s26 + $0x490] sm:$0xff] %v442_v18  ;;  %v448_v21 = vld [vmem:[%s3375_s25 + $0x1168] sm:$0xff]  ;;  %445 = vst [vmem:[%s3380_s26 + $0x498] sm:$0xff] %v444_v19  ;;  %v450_v22 = vld [vmem:[%s3375_s25 + $0x1170] sm:$0xff] }
  0x5b   : > { %447 = vst [vmem:[%s3380_s26 + $0x4a0] sm:$0xff] %v446_v20  ;;  %449 = vst [vmem:[%s3380_s26 + $0x4a8] sm:$0xff] %v448_v21  ;;  %v452_v23 = vld [vmem:[%s3375_s25 + $0x1178] sm:$0xff]  ;;  %v454_v24 = vld [vmem:[%s3375_s25 + $0x1180] sm:$0xff] }
  0x5c   : > { %451 = vst [vmem:[%s3380_s26 + $0x4b0] sm:$0xff] %v450_v22  ;;  %453 = vst [vmem:[%s3380_s26 + $0x4b8] sm:$0xff] %v452_v23  ;;  %v456_v25 = vld [vmem:[%s3375_s25 + $0x1320] sm:$0xff]  ;;  %v458_v26 = vld [vmem:[%s3375_s25 + $0x1328] sm:$0xff] }
  0x5d   : > { %455 = vst [vmem:[%s3380_s26 + $0x4c0] sm:$0xff] %v454_v24  ;;  %v460_v27 = vld [vmem:[%s3375_s25 + $0x1330] sm:$0xff]  ;;  %457 = vst [vmem:[%s3380_s26 + $0x4c8] sm:$0xff] %v456_v25  ;;  %v462_v28 = vld [vmem:[%s3375_s25 + $0x1338] sm:$0xff] }
  0x5e   : > { %459 = vst [vmem:[%s3380_s26 + $0x4d0] sm:$0xff] %v458_v26  ;;  %461 = vst [vmem:[%s3380_s26 + $0x4d8] sm:$0xff] %v460_v27  ;;  %v464_v29 = vld [vmem:[%s3375_s25 + $0x1340] sm:$0xff]  ;;  %v466_v30 = vld [vmem:[%s3375_s25 + $0x1348] sm:$0xff] }
  0x5f   : > { %463 = vst [vmem:[%s3380_s26 + $0x4e0] sm:$0xff] %v462_v28  ;;  %465 = vst [vmem:[%s3380_s26 + $0x4e8] sm:$0xff] %v464_v29  ;;  %v468_v31 = vld [vmem:[%s3375_s25 + $0x1350] sm:$0xff]  ;;  %v470_v32 = vld [vmem:[%s3375_s25 + $0x1358] sm:$0xff] }
  0x60   : > { %467 = vst [vmem:[%s3380_s26 + $0x4f0] sm:$0xff] %v466_v30  ;;  %v472_v33 = vld [vmem:[%s3375_s25 + $0x1360] sm:$0xff]  ;;  %469 = vst [vmem:[%s3380_s26 + $0x4f8] sm:$0xff] %v468_v31  ;;  %v474_v34 = vld [vmem:[%s3375_s25 + $0x1368] sm:$0xff] }
  0x61   : > { %471 = vst [vmem:[%s3380_s26 + $0x500] sm:$0xff] %v470_v32  ;;  %473 = vst [vmem:[%s3380_s26 + $0x508] sm:$0xff] %v472_v33  ;;  %v476_v35 = vld [vmem:[%s3375_s25 + $0x1370] sm:$0xff]  ;;  %v478_v36 = vld [vmem:[%s3375_s25 + $0x1378] sm:$0xff] }
  0x62   : > { %475 = vst [vmem:[%s3380_s26 + $0x510] sm:$0xff] %v474_v34  ;;  %477 = vst [vmem:[%s3380_s26 + $0x518] sm:$0xff] %v476_v35  ;;  %v480_v37 = vld [vmem:[%s3375_s25 + $0x1380] sm:$0xff]  ;;  %v482_v38 = vld [vmem:[%s3375_s25 + $0x1388] sm:$0xff] }
  0x63   : > { %479 = vst [vmem:[%s3380_s26 + $0x520] sm:$0xff] %v478_v36  ;;  %v484_v39 = vld [vmem:[%s3375_s25 + $0x1390] sm:$0xff]  ;;  %481 = vst [vmem:[%s3380_s26 + $0x528] sm:$0xff] %v480_v37  ;;  %v486_v40 = vld [vmem:[%s3375_s25 + $0x1398] sm:$0xff] }
  0x64   : > { %483 = vst [vmem:[%s3380_s26 + $0x530] sm:$0xff] %v482_v38  ;;  %485 = vst [vmem:[%s3380_s26 + $0x538] sm:$0xff] %v484_v39  ;;  %v488_v41 = vld [vmem:[%s3375_s25 + $0x13a0] sm:$0xff]  ;;  %v492_v43 = vld [vmem:[%s3375_s25 + $0x1548] sm:$0xff] }
  0x65   : > { %v490_v42 = vld [vmem:[%s3375_s25 + $0x1540] sm:$0xff]  ;;  %487 = vst [vmem:[%s3380_s26 + $0x540] sm:$0xff] %v486_v40  ;;  %489 = vst [vmem:[%s3380_s26 + $0x548] sm:$0xff] %v488_v41  ;;  %v494_v44 = vld [vmem:[%s3375_s25 + $0x1550] sm:$0xff] }
  0x66   : > { %491 = vst [vmem:[%s3380_s26 + $0x550] sm:$0xff] %v490_v42  ;;  %v496_v45 = vld [vmem:[%s3375_s25 + $0x1558] sm:$0xff]  ;;  %493 = vst [vmem:[%s3380_s26 + $0x558] sm:$0xff] %v492_v43  ;;  %v498_v46 = vld [vmem:[%s3375_s25 + $0x1560] sm:$0xff] }
  0x67   : > { %495 = vst [vmem:[%s3380_s26 + $0x560] sm:$0xff] %v494_v44  ;;  %497 = vst [vmem:[%s3380_s26 + $0x568] sm:$0xff] %v496_v45  ;;  %v500_v47 = vld [vmem:[%s3375_s25 + $0x1568] sm:$0xff]  ;;  %v502_v48 = vld [vmem:[%s3375_s25 + $0x1570] sm:$0xff] }
  0x68   : > { %499 = vst [vmem:[%s3380_s26 + $0x570] sm:$0xff] %v498_v46  ;;  %501 = vst [vmem:[%s3380_s26 + $0x578] sm:$0xff] %v500_v47  ;;  %v504_v49 = vld [vmem:[%s3375_s25 + $0x1578] sm:$0xff]  ;;  %v506_v50 = vld [vmem:[%s3375_s25 + $0x1580] sm:$0xff] }
  0x69   : > { %503 = vst [vmem:[%s3380_s26 + $0x580] sm:$0xff] %v502_v48  ;;  %v508_v51 = vld [vmem:[%s3375_s25 + $0x1588] sm:$0xff]  ;;  %505 = vst [vmem:[%s3380_s26 + $0x588] sm:$0xff] %v504_v49  ;;  %v510_v52 = vld [vmem:[%s3375_s25 + $0x1590] sm:$0xff] }
  0x6a   : > { %507 = vst [vmem:[%s3380_s26 + $0x590] sm:$0xff] %v506_v50  ;;  %509 = vst [vmem:[%s3380_s26 + $0x598] sm:$0xff] %v508_v51  ;;  %v512_v53 = vld [vmem:[%s3375_s25 + $0x1598] sm:$0xff]  ;;  %v514_v54 = vld [vmem:[%s3375_s25 + $0x15a0] sm:$0xff] }
  0x6b   : > { %511 = vst [vmem:[%s3380_s26 + $0x5a0] sm:$0xff] %v510_v52  ;;  %513 = vst [vmem:[%s3380_s26 + $0x5a8] sm:$0xff] %v512_v53  ;;  %v516_v55 = vld [vmem:[%s3375_s25 + $0x15a8] sm:$0xff]  ;;  %v518_v56 = vld [vmem:[%s3375_s25 + $0x15b0] sm:$0xff] }
  0x6c   : > { %515 = vst [vmem:[%s3380_s26 + $0x5b0] sm:$0xff] %v514_v54  ;;  %v520_v57 = vld [vmem:[%s3375_s25 + $0x15b8] sm:$0xff]  ;;  %517 = vst [vmem:[%s3380_s26 + $0x5b8] sm:$0xff] %v516_v55  ;;  %v522_v58 = vld [vmem:[%s3375_s25 + $0x15c0] sm:$0xff] }
  0x6d   : > { %519 = vst [vmem:[%s3380_s26 + $0x5c0] sm:$0xff] %v518_v56  ;;  %521 = vst [vmem:[%s3380_s26 + $0x5c8] sm:$0xff] %v520_v57  ;;  %v524_v59 = vld [vmem:[%s3375_s25 + $0x1760] sm:$0xff]  ;;  %v526_v60 = vld [vmem:[%s3375_s25 + $0x1768] sm:$0xff] }
  0x6e   : > { %523 = vst [vmem:[%s3380_s26 + $0x5d0] sm:$0xff] %v522_v58  ;;  %525 = vst [vmem:[%s3380_s26 + $0x5d8] sm:$0xff] %v524_v59  ;;  %v528_v61 = vld [vmem:[%s3375_s25 + $0x1770] sm:$0xff]  ;;  %v530_v62 = vld [vmem:[%s3375_s25 + $0x1778] sm:$0xff] }
  0x6f   : > { %527 = vst [vmem:[%s3380_s26 + $0x5e0] sm:$0xff] %v526_v60  ;;  %v532_v63 = vld [vmem:[%s3375_s25 + $0x1780] sm:$0xff]  ;;  %529 = vst [vmem:[%s3380_s26 + $0x5e8] sm:$0xff] %v528_v61  ;;  %v534_v0 = vld [vmem:[%s3375_s25 + $0x1788] sm:$0xff] }
  0x70   : > { %531 = vst [vmem:[%s3380_s26 + $0x5f0] sm:$0xff] %v530_v62  ;;  %533 = vst [vmem:[%s3380_s26 + $0x5f8] sm:$0xff] %v532_v63  ;;  %v536_v1 = vld [vmem:[%s3375_s25 + $0x1790] sm:$0xff]  ;;  %v538_v2 = vld [vmem:[%s3375_s25 + $0x1798] sm:$0xff] }
  0x71   : > { %535 = vst [vmem:[%s3380_s26 + $0x600] sm:$0xff] %v534_v0  ;;  %537 = vst [vmem:[%s3380_s26 + $0x608] sm:$0xff] %v536_v1  ;;  %v540_v3 = vld [vmem:[%s3375_s25 + $0x17a0] sm:$0xff]  ;;  %v542_v4 = vld [vmem:[%s3375_s25 + $0x17a8] sm:$0xff] }
  0x72   : > { %539 = vst [vmem:[%s3380_s26 + $0x610] sm:$0xff] %v538_v2  ;;  %v544_v5 = vld [vmem:[%s3375_s25 + $0x17b0] sm:$0xff]  ;;  %541 = vst [vmem:[%s3380_s26 + $0x618] sm:$0xff] %v540_v3  ;;  %v546_v6 = vld [vmem:[%s3375_s25 + $0x17b8] sm:$0xff] }
  0x73   : > { %543 = vst [vmem:[%s3380_s26 + $0x620] sm:$0xff] %v542_v4  ;;  %545 = vst [vmem:[%s3380_s26 + $0x628] sm:$0xff] %v544_v5  ;;  %v548_v7 = vld [vmem:[%s3375_s25 + $0x17c0] sm:$0xff]  ;;  %v550_v8 = vld [vmem:[%s3375_s25 + $0x17c8] sm:$0xff] }
  0x74   : > { %547 = vst [vmem:[%s3380_s26 + $0x630] sm:$0xff] %v546_v6  ;;  %549 = vst [vmem:[%s3380_s26 + $0x638] sm:$0xff] %v548_v7  ;;  %v552_v9 = vld [vmem:[%s3375_s25 + $0x17d0] sm:$0xff]  ;;  %v554_v10 = vld [vmem:[%s3375_s25 + $0x17d8] sm:$0xff] }
  0x75   : > { %551 = vst [vmem:[%s3380_s26 + $0x640] sm:$0xff] %v550_v8  ;;  %v556_v11 = vld [vmem:[%s3375_s25 + $0x17e0] sm:$0xff]  ;;  %553 = vst [vmem:[%s3380_s26 + $0x648] sm:$0xff] %v552_v9 }
  0x76   : > { %555 = vst [vmem:[%s3380_s26 + $0x650] sm:$0xff] %v554_v10  ;;  %557 = vst [vmem:[%s3380_s26 + $0x658] sm:$0xff] %v556_v11 }
  0x77 PF: > { %p2667_p5 = scmp.ge.s32.totalorder %s3318_s14, 1  ;;  %p562_p6 = scmp.lt.s32.totalorder %s3318_s14, 5 }
  0x79   : > { %p563_p7 = pnand %p2667_p5, %p562_p6 }
  0x7a   : > { %s569_s27 = sand.u32 (!%p563_p7), 1, %s3310_s12   ;;  %s593_s9 = smul.u32 (!%p563_p7), 34, %s2662_s15 }
  0x7b   : > { %566 = sbr.rel (%p563_p7) target bundleno = 558 (0x22e), region = 51 }
  0x7c   : > { %s2894_s30 = smul.u32 (!%p563_p7), 1632, %s569_s27  ;;  %p594_p8 = scmp.lt.s32.totalorder (!%p563_p7), %s593_s9, 135 }
  0x7e   : > { %s3796_s4 = scalar_lea.vmem (!%p563_p7), [#allocation2], %s2894_s30 }
  0x80   : > { %v805_v12 = vld [vmem:[%s4145_s2] sm:$0xff]  ;;  %v3320_v13 = vmov 0   ;;  %v2921_v14 = vld [vmem:[%s3796_s4 + $0x554] ss:$136 sps:$4 sm:$0xff]   ;;  %v2923_v15 = vld [vmem:[%s3796_s4 + $0x550] ss:$136 sps:$4 sm:$0xff]  }
  0x81   : > { %1867 = vmatprep.mubr.bf16.mxu0 %v3320_v13  ;;  %1908 = vmatprep.mubr.bf16.mxu1 %v3320_v13  ;;  %v2924_v16 = vld [vmem:[%s3796_s4 + $0x444] ss:$136 sps:$4 sm:$0xff]   ;;  %v2926_v17 = vld [vmem:[%s3796_s4 + $0x440] ss:$136 sps:$4 sm:$0xff]   ;;  %v2927_v18 = vld [vmem:[%s3796_s4 + $0x334] ss:$136 sps:$4 sm:$0xff]  }
  0x82   : > { %2920 = vset.pattern.permute.xlu0 %v3320_v13  ;;  %1839 = vmatprep.subr.bf16.mxu0 %v2921_v14  ;;  %v2929_v19 = vld [vmem:[%s3796_s4 + $0x330] ss:$136 sps:$4 sm:$0xff]   ;;  %v2936_v20 = vld [vmem:[%s3796_s4 + $0x55c] ss:$136 sps:$4 sm:$0xff]   ;;  %v2942_v23 = vld [vmem:[%s3796_s4 + $0x44c] ss:$136 sps:$4 sm:$0xff]  }
  0x83   : > { %808 = vperm.xlu0 %2920, %v805_v12   ;;  %1840 = vmatpush1.bf16.msra.mxu0 %v2923_v15  ;;  %v2938_v21 = vld [vmem:[%s3796_s4 + $0x558] ss:$136 sps:$4 sm:$0xff]   ;;  %v2930_v22 = vld [vmem:[%s3796_s4 + $0x224] ss:$136 sps:$4 sm:$0xff]   ;;  %v2944_v24 = vld [vmem:[%s3796_s4 + $0x448] ss:$136 sps:$4 sm:$0xff]  }
  0x84   : > { %1841 = vmatprep.subr.bf16.mxu0 %v2924_v16  ;;  %1880 = vmatprep.subr.bf16.mxu1 %v2936_v20  ;;  %v2932_v25 = vld [vmem:[%s3796_s4 + $0x220] ss:$136 sps:$4 sm:$0xff]   ;;  %v2933_v26 = vld [vmem:[%s3796_s4 + $0x114] ss:$136 sps:$4 sm:$0xff]   ;;  %v2935_v29 = vld [vmem:[%s3796_s4 + $0x110] ss:$136 sps:$4 sm:$0xff]  }
  0x85   : > { %1881 = vmatpush1.bf16.msra.mxu1 %v2938_v21  ;;  %v2948_v27 = vld [vmem:[%s3796_s4 + $0x33c] ss:$136 sps:$4 sm:$0xff]   ;;  %v2950_v28 = vld [vmem:[%s3796_s4 + $0x338] ss:$136 sps:$4 sm:$0xff]   ;;  %v2954_v30 = vld [vmem:[%s3796_s4 + $0x22c] ss:$136 sps:$4 sm:$0xff]  }
  0x86   : > { %1882 = vmatprep.subr.bf16.mxu1 %v2942_v23  ;;  %v2939_v31 = vld [vmem:[%s3796_s4 + $0x4] ss:$136 sps:$4 sm:$0xff]   ;;  %v2956_v32 = vld [vmem:[%s3796_s4 + $0x228] ss:$136 sps:$4 sm:$0xff]   ;;  %v3823_v36 = vld [vmem:[%s4144_s1] sm:$0xf] }
  0x87   : > { %1842 = vmatpush1.bf16.msra.mxu0 %v2926_v17  ;;  %v2941_v33 = vld [vmem:[%s3796_s4] ss:$136 sps:$4 sm:$0xff]   ;;  %v2960_v34 = vld [vmem:[%s3796_s4 + $0x11c] ss:$136 sps:$4 sm:$0xff]   ;;  %vm1831_vm0 = vcmask 785408   ;;  %s4151_s9 = smov (!%p594_p8, %s593_s9), 135 }
  0x88   : > { %1843 = vmatprep.subr.bf16.mxu0 %v2927_v18  ;;  %v2947_v35 = vld [vmem:[%s3796_s4 + $0x564] ss:$136 sps:$4 sm:$0xff]   ;;  %v2962_v37 = vld [vmem:[%s3796_s4 + $0x118] ss:$136 sps:$4 sm:$0xff]   ;;  %v2953_v40 = vld [vmem:[%s3796_s4 + $0x454] ss:$136 sps:$4 sm:$0xff]  }
  0x89   : > { %1883 = vmatpush1.bf16.msra.mxu1 %v2944_v24  ;;  %v2945_v38 = vld [vmem:[%s3796_s4 + $0x560] ss:$136 sps:$4 sm:$0xff]   ;;  %v2966_v39 = vld [vmem:[%s3796_s4 + $0xc] ss:$136 sps:$4 sm:$0xff]   ;;  %v2951_v42 = vld [vmem:[%s3796_s4 + $0x450] ss:$136 sps:$4 sm:$0xff]  }
  0x8a   : > { %1884 = vmatprep.subr.bf16.mxu1 %v2948_v27  ;;  %v2968_v41 = vld [vmem:[%s3796_s4 + $0x8] ss:$136 sps:$4 sm:$0xff]   ;;  %v2974_v43 = vld [vmem:[%s3796_s4 + $0x56c] ss:$136 sps:$4 sm:$0xff]   ;;  %v2980_v47 = vld [vmem:[%s3796_s4 + $0x45c] ss:$136 sps:$4 sm:$0xff]  }
  0x8b   : > { %1844 = vmatpush1.bf16.msra.mxu0 %v2929_v19  ;;  %v2959_v44 = vld [vmem:[%s3796_s4 + $0x344] ss:$136 sps:$4 sm:$0xff]   ;;  %v2972_v45 = vld [vmem:[%s3796_s4 + $0x568] ss:$136 sps:$4 sm:$0xff]   ;;  %v2965_v48 = vld [vmem:[%s3796_s4 + $0x234] ss:$136 sps:$4 sm:$0xff]  }
  0x8c   : > { %1845 = vmatprep.subr.bf16.mxu0 %v2930_v22  ;;  %v2957_v46 = vld [vmem:[%s3796_s4 + $0x340] ss:$136 sps:$4 sm:$0xff]   ;;  %v2963_v50 = vld [vmem:[%s3796_s4 + $0x230] ss:$136 sps:$4 sm:$0xff]   ;;  %v2986_v51 = vld [vmem:[%s3796_s4 + $0x34c] ss:$136 sps:$4 sm:$0xff]  }
  0x8d   : > { %1885 = vmatpush1.bf16.msra.mxu1 %v2950_v28  ;;  %v2978_v49 = vld [vmem:[%s3796_s4 + $0x458] ss:$136 sps:$4 sm:$0xff]   ;;  %v2971_v52 = vld [vmem:[%s3796_s4 + $0x124] ss:$136 sps:$4 sm:$0xff]   ;;  %v2984_v53 = vld [vmem:[%s3796_s4 + $0x348] ss:$136 sps:$4 sm:$0xff]  }
  0x8e   : > { %1886 = vmatprep.subr.bf16.mxu1 %v2954_v30  ;;  %v2969_v54 = vld [vmem:[%s3796_s4 + $0x120] ss:$136 sps:$4 sm:$0xff]   ;;  %v2992_v55 = vld [vmem:[%s3796_s4 + $0x23c] ss:$136 sps:$4 sm:$0xff]   ;;  %v2975_v58 = vld [vmem:[%s3796_s4 + $0x10] ss:$136 sps:$4 sm:$0xff]  }
  0x8f   : > { %1846 = vmatpush1.bf16.msra.mxu0 %v2932_v25  ;;  %v2977_v56 = vld [vmem:[%s3796_s4 + $0x14] ss:$136 sps:$4 sm:$0xff]   ;;  %v2990_v57 = vld [vmem:[%s3796_s4 + $0x238] ss:$136 sps:$4 sm:$0xff]   ;;  %v2996_v61 = vld [vmem:[%s3796_s4 + $0x128] ss:$136 sps:$4 sm:$0xff]  }
  0x90   : > { %1847 = vmatprep.subr.bf16.mxu0 %v2933_v26  ;;  %v2998_v59 = vld [vmem:[%s3796_s4 + $0x12c] ss:$136 sps:$4 sm:$0xff]   ;;  %v2981_v62 = vld [vmem:[%s3796_s4 + $0x570] ss:$136 sps:$4 sm:$0xff]   ;;  %v3004_v63 = vld [vmem:[%s3796_s4 + $0x1c] ss:$136 sps:$4 sm:$0xff]  }
  0x91   : > { %1887 = vmatpush1.bf16.msra.mxu1 %v2956_v32  ;;  %v2983_v60 = vld [vmem:[%s3796_s4 + $0x574] ss:$136 sps:$4 sm:$0xff]   ;;  %v2989_v0 = vld [vmem:[%s3796_s4 + $0x464] ss:$136 sps:$4 sm:$0xff]   ;;  %v3002_v1 = vld [vmem:[%s3796_s4 + $0x18] ss:$136 sps:$4 sm:$0xff]  }
  0x92   : > { %1888 = vmatprep.subr.bf16.mxu1 %v2960_v34  ;;  %v2987_v2 = vld [vmem:[%s3796_s4 + $0x460] ss:$136 sps:$4 sm:$0xff]   ;;  %v3010_v3 = vld [vmem:[%s3796_s4 + $0x57c] ss:$136 sps:$4 sm:$0xff]   ;;  %v2993_v6 = vld [vmem:[%s3796_s4 + $0x350] ss:$136 sps:$4 sm:$0xff]  }
  0x93   : > { %1848 = vmatpush1.bf16.msra.mxu0 %v2935_v29  ;;  %v2995_v4 = vld [vmem:[%s3796_s4 + $0x354] ss:$136 sps:$4 sm:$0xff]   ;;  %v3008_v5 = vld [vmem:[%s3796_s4 + $0x578] ss:$136 sps:$4 sm:$0xff]   ;;  %v3001_v8 = vld [vmem:[%s3796_s4 + $0x244] ss:$136 sps:$4 sm:$0xff]  }
  0x94   : > { %1849 = vmatprep.subr.bf16.mxu0 %v2939_v31  ;;  %v3016_v7 = vld [vmem:[%s3796_s4 + $0x46c] ss:$136 sps:$4 sm:$0xff]   ;;  %v3014_v9 = vld [vmem:[%s3796_s4 + $0x468] ss:$136 sps:$4 sm:$0xff]   ;;  %v3022_v11 = vld [vmem:[%s3796_s4 + $0x35c] ss:$136 sps:$4 sm:$0xff]  }
  0x95   : > { %1889 = vmatpush1.bf16.msra.mxu1 %v2962_v37  ;;  %v2999_v10 = vld [vmem:[%s3796_s4 + $0x240] ss:$136 sps:$4 sm:$0xff]   ;;  %v3007_v12 = vld [vmem:[%s3796_s4 + $0x134] ss:$136 sps:$4 sm:$0xff]   ;;  %v3005_v15 = vld [vmem:[%s3796_s4 + $0x130] ss:$136 sps:$4 sm:$0xff]  }
  0x96   : > { %1890 = vmatprep.subr.bf16.mxu1 %v2966_v39  ;;  %v3020_v14 = vld [vmem:[%s3796_s4 + $0x358] ss:$136 sps:$4 sm:$0xff]   ;;  %v3028_v16 = vld [vmem:[%s3796_s4 + $0x24c] ss:$136 sps:$4 sm:$0xff]   ;;  %v3026_v18 = vld [vmem:[%s3796_s4 + $0x248] ss:$136 sps:$4 sm:$0xff]  }
  0x97   : > { %1850 = vmatpush1.bf16.msra.mxu0 %v2941_v33  ;;  %v3013_v17 = vld [vmem:[%s3796_s4 + $0x24] ss:$136 sps:$4 sm:$0xff]   ;;  %v3011_v19 = vld [vmem:[%s3796_s4 + $0x20] ss:$136 sps:$4 sm:$0xff]   ;;  %v3025_v25 = vld [vmem:[%s3796_s4 + $0x474] ss:$136 sps:$4 sm:$0xff]  }
  0x98   : > { %1921 = vmatprep.subr.bf16.mxu0 %v2947_v35  ;;  %v3034_v20 = vld [vmem:[%s3796_s4 + $0x13c] ss:$136 sps:$4 sm:$0xff]   ;;  %v3032_v22 = vld [vmem:[%s3796_s4 + $0x138] ss:$136 sps:$4 sm:$0xff]   ;;  %v3040_v24 = vld [vmem:[%s3796_s4 + $0x2c] ss:$136 sps:$4 sm:$0xff]  }
  0x99   : > { %1891 = vmatpush1.bf16.msra.mxu1 %v2968_v41  ;;  %v3019_v21 = vld [vmem:[%s3796_s4 + $0x584] ss:$136 sps:$4 sm:$0xff]   ;;  %v3017_v23 = vld [vmem:[%s3796_s4 + $0x580] ss:$136 sps:$4 sm:$0xff]   ;;  %v3023_v27 = vld [vmem:[%s3796_s4 + $0x470] ss:$136 sps:$4 sm:$0xff]  }
  0x9a   : > { %2873 = vmatmul.mubr.msk.bf16.vlgmr.msra.gmra.mxu0 %vm1831_vm0, %v3823_v36  ;;  %1962 = vmatprep.subr.bf16.mxu1 %v2974_v43  ;;  %v3038_v26 = vld [vmem:[%s3796_s4 + $0x28] ss:$136 sps:$4 sm:$0xff]   ;;  %v3046_v28 = vld [vmem:[%s3796_s4 + $0x58c] ss:$136 sps:$4 sm:$0xff]   ;;  %v3052_v32 = vld [vmem:[%s3796_s4 + $0x47c] ss:$136 sps:$4 sm:$0xff]  }
  0x9b   : > { %1922 = vmatpush1.bf16.msra.mxu0 %v2945_v38  ;;  %1949 = vmatprep.mubr.bf16.mxu0 %v3320_v13  ;;  %v3031_v29 = vld [vmem:[%s3796_s4 + $0x364] ss:$136 sps:$4 sm:$0xff]   ;;  %v3044_v30 = vld [vmem:[%s3796_s4 + $0x588] ss:$136 sps:$4 sm:$0xff]   ;;  %v3037_v33 = vld [vmem:[%s3796_s4 + $0x254] ss:$136 sps:$4 sm:$0xff]  }
  0x9c   : > { %1923 = vmatprep.subr.bf16.mxu0 %v2953_v40  ;;  %2874 = vmatmul.mubr.msk.bf16.vlgmr.msra.gmra.mxu1 %vm1831_vm0, %v3823_v36  ;;  %v3029_v31 = vld [vmem:[%s3796_s4 + $0x360] ss:$136 sps:$4 sm:$0xff]   ;;  %v3035_v35 = vld [vmem:[%s3796_s4 + $0x250] ss:$136 sps:$4 sm:$0xff]   ;;  %v3058_v37 = vld [vmem:[%s3796_s4 + $0x36c] ss:$136 sps:$4 sm:$0xff]  }
  0x9d   : > { %1963 = vmatpush1.bf16.msra.mxu1 %v2972_v45  ;;  %1990 = vmatprep.mubr.bf16.mxu1 %v3320_v13  ;;  %v3050_v34 = vld [vmem:[%s3796_s4 + $0x478] ss:$136 sps:$4 sm:$0xff]   ;;  %v3043_v38 = vld [vmem:[%s3796_s4 + $0x144] ss:$136 sps:$4 sm:$0xff]   ;;  %v3056_v39 = vld [vmem:[%s3796_s4 + $0x368] ss:$136 sps:$4 sm:$0xff]  }
  0x9e   : > { %1964 = vmatprep.subr.bf16.mxu1 %v2980_v47  ;;  %v3041_v40 = vld [vmem:[%s3796_s4 + $0x140] ss:$136 sps:$4 sm:$0xff]   ;;  %v3064_v41 = vld [vmem:[%s3796_s4 + $0x25c] ss:$136 sps:$4 sm:$0xff]   ;;  %v3070_v45 = vld [vmem:[%s3796_s4 + $0x14c] ss:$136 sps:$4 sm:$0xff]  }
  0x9f   : > { %1924 = vmatpush1.bf16.msra.mxu0 %v2951_v42  ;;  %v3049_v42 = vld [vmem:[%s3796_s4 + $0x34] ss:$136 sps:$4 sm:$0xff]   ;;  %v3062_v43 = vld [vmem:[%s3796_s4 + $0x258] ss:$136 sps:$4 sm:$0xff]   ;;  %v3068_v47 = vld [vmem:[%s3796_s4 + $0x148] ss:$136 sps:$4 sm:$0xff]  }
  0xa0   : > { %1925 = vmatprep.subr.bf16.mxu0 %v2959_v44  ;;  %v3047_v44 = vld [vmem:[%s3796_s4 + $0x30] ss:$136 sps:$4 sm:$0xff]   ;;  %s2668_s10 = sshll.u32 %s4151_s9, 3 }
  0xa1   : > { %1965 = vmatpush1.bf16.msra.mxu1 %v2978_v49  ;;  %v3076_v49 = vld [vmem:[%s3796_s4 + $0x3c] ss:$136 sps:$4 sm:$0xff]   ;;  %s4067_s14 = scalar_lea.vmem %s4146_s3, %s2668_s10 }
  0xa2   : > { %1966 = vmatprep.subr.bf16.mxu1 %v2986_v51  ;;  %v3074_v51 = vld [vmem:[%s3796_s4 + $0x38] ss:$136 sps:$4 sm:$0xff]  }
  0xa3   : > { %1926 = vmatpush1.bf16.msra.mxu0 %v2957_v46  ;;  %v3055_v46 = vld [vmem:[%s3796_s4 + $0x594] ss:$136 sps:$4 sm:$0xff]  }
  0xa4   : > { %1927 = vmatprep.subr.bf16.mxu0 %v2965_v48  ;;  %v3053_v48 = vld [vmem:[%s3796_s4 + $0x590] ss:$136 sps:$4 sm:$0xff]  }
  0xa5   : > { %1967 = vmatpush1.bf16.msra.mxu1 %v2984_v53  ;;  %v3082_v53 = vld [vmem:[%s3796_s4 + $0x59c] ss:$136 sps:$4 sm:$0xff]  }
  0xa6   : > { %1968 = vmatprep.subr.bf16.mxu1 %v2992_v55  ;;  %v3080_v55 = vld [vmem:[%s3796_s4 + $0x598] ss:$136 sps:$4 sm:$0xff]  }
  0xa7   : > { %1928 = vmatpush1.bf16.msra.mxu0 %v2963_v50  ;;  %v3061_v50 = vld [vmem:[%s3796_s4 + $0x484] ss:$136 sps:$4 sm:$0xff]  }
  0xa8   : > { %1929 = vmatprep.subr.bf16.mxu0 %v2971_v52  ;;  %v3059_v52 = vld [vmem:[%s3796_s4 + $0x480] ss:$136 sps:$4 sm:$0xff]  }
  0xa9   : > { %1969 = vmatpush1.bf16.msra.mxu1 %v2990_v57  ;;  %v3088_v57 = vld [vmem:[%s3796_s4 + $0x48c] ss:$136 sps:$4 sm:$0xff]  }
  0xaa   : > { %1970 = vmatprep.subr.bf16.mxu1 %v2998_v59  ;;  %v3086_v59 = vld [vmem:[%s3796_s4 + $0x488] ss:$136 sps:$4 sm:$0xff]  }
  0xab   : > { %1930 = vmatpush1.bf16.msra.mxu0 %v2969_v54  ;;  %v3067_v54 = vld [vmem:[%s3796_s4 + $0x374] ss:$136 sps:$4 sm:$0xff]  }
  0xac   : > { %1931 = vmatprep.subr.bf16.mxu0 %v2977_v56  ;;  %v3065_v56 = vld [vmem:[%s3796_s4 + $0x370] ss:$136 sps:$4 sm:$0xff]  }
  0xad   : > { %1971 = vmatpush1.bf16.msra.mxu1 %v2996_v61  ;;  %v3094_v61 = vld [vmem:[%s3796_s4 + $0x37c] ss:$136 sps:$4 sm:$0xff]  }
  0xae   : > { %1972 = vmatprep.subr.bf16.mxu1 %v3004_v63  ;;  %v3092_v63 = vld [vmem:[%s3796_s4 + $0x378] ss:$136 sps:$4 sm:$0xff]  }
  0xaf   : > { %1932 = vmatpush1.bf16.msra.mxu0 %v2975_v58  ;;  %v3073_v58 = vld [vmem:[%s3796_s4 + $0x264] ss:$136 sps:$4 sm:$0xff]  }
  0xb0   : > { %2003 = vmatprep.subr.bf16.mxu0 %v2983_v60  ;;  %v3071_v60 = vld [vmem:[%s3796_s4 + $0x260] ss:$136 sps:$4 sm:$0xff]  }
  0xb1   : > { %1973 = vmatpush1.bf16.msra.mxu1 %v3002_v1  ;;  %v3100_v1 = vld [vmem:[%s3796_s4 + $0x26c] ss:$136 sps:$4 sm:$0xff]  }
  0xb2   : > { %2875 = vmatmul.mubr.msk.bf16.vlgmr.msra.gmra.mxu0 %vm1831_vm0, %v3823_v36  ;;  %2044 = vmatprep.subr.bf16.mxu1 %v3010_v3  ;;  %v3098_v3 = vld [vmem:[%s3796_s4 + $0x268] ss:$136 sps:$4 sm:$0xff]  }
  0xb3   : > { %2004 = vmatpush1.bf16.msra.mxu0 %v2981_v62  ;;  %2031 = vmatprep.mubr.bf16.mxu0 %v3320_v13  ;;  %v3079_v62 = vld [vmem:[%s3796_s4 + $0x154] ss:$136 sps:$4 sm:$0xff]  }
  0xb4   : > { %2005 = vmatprep.subr.bf16.mxu0 %v2989_v0  ;;  %2876 = vmatmul.mubr.msk.bf16.vlgmr.msra.gmra.mxu1 %vm1831_vm0, %v3823_v36  ;;  %v3077_v0 = vld [vmem:[%s3796_s4 + $0x150] ss:$136 sps:$4 sm:$0xff]  }
  0xb5   : > { %2045 = vmatpush1.bf16.msra.mxu1 %v3008_v5  ;;  %2072 = vmatprep.mubr.bf16.mxu1 %v3320_v13  ;;  %v3106_v5 = vld [vmem:[%s3796_s4 + $0x15c] ss:$136 sps:$4 sm:$0xff]  }
  0xb6   : > { %2046 = vmatprep.subr.bf16.mxu1 %v3016_v7  ;;  %v3104_v7 = vld [vmem:[%s3796_s4 + $0x158] ss:$136 sps:$4 sm:$0xff]  }
  0xb7   : > { %2006 = vmatpush1.bf16.msra.mxu0 %v2987_v2  ;;  %v3085_v2 = vld [vmem:[%s3796_s4 + $0x44] ss:$136 sps:$4 sm:$0xff]  }
  0xb8   : > { %2007 = vmatprep.subr.bf16.mxu0 %v2995_v4  ;;  %v3083_v4 = vld [vmem:[%s3796_s4 + $0x40] ss:$136 sps:$4 sm:$0xff]  }
  0xb9   : > { %2047 = vmatpush1.bf16.msra.mxu1 %v3014_v9  ;;  %v3112_v9 = vld [vmem:[%s3796_s4 + $0x4c] ss:$136 sps:$4 sm:$0xff]  }
  0xba   : > { %2048 = vmatprep.subr.bf16.mxu1 %v3022_v11  ;;  %v3110_v11 = vld [vmem:[%s3796_s4 + $0x48] ss:$136 sps:$4 sm:$0xff]  }
  0xbb   : > { %2008 = vmatpush1.bf16.msra.mxu0 %v2993_v6  ;;  %v3091_v6 = vld [vmem:[%s3796_s4 + $0x5a4] ss:$136 sps:$4 sm:$0xff]  }
  0xbc   : > { %2009 = vmatprep.subr.bf16.mxu0 %v3001_v8  ;;  %v3089_v8 = vld [vmem:[%s3796_s4 + $0x5a0] ss:$136 sps:$4 sm:$0xff]  }
  0xbd   : > { %2049 = vmatpush1.bf16.msra.mxu1 %v3020_v14  ;;  %v3118_v14 = vld [vmem:[%s3796_s4 + $0x5ac] ss:$136 sps:$4 sm:$0xff]  }
  0xbe   : > { %2050 = vmatprep.subr.bf16.mxu1 %v3028_v16  ;;  %v3116_v16 = vld [vmem:[%s3796_s4 + $0x5a8] ss:$136 sps:$4 sm:$0xff]  }
  0xbf   : > { %2010 = vmatpush1.bf16.msra.mxu0 %v2999_v10  ;;  %v3097_v10 = vld [vmem:[%s3796_s4 + $0x494] ss:$136 sps:$4 sm:$0xff]  }
  0xc0   : > { %2011 = vmatprep.subr.bf16.mxu0 %v3007_v12  ;;  %v3095_v12 = vld [vmem:[%s3796_s4 + $0x490] ss:$136 sps:$4 sm:$0xff]  }
  0xc1   : > { %2051 = vmatpush1.bf16.msra.mxu1 %v3026_v18  ;;  %v3124_v18 = vld [vmem:[%s3796_s4 + $0x49c] ss:$136 sps:$4 sm:$0xff]  }
  0xc2   : > { %2052 = vmatprep.subr.bf16.mxu1 %v3034_v20  ;;  %v3122_v20 = vld [vmem:[%s3796_s4 + $0x498] ss:$136 sps:$4 sm:$0xff]  }
  0xc3   : > { %2012 = vmatpush1.bf16.msra.mxu0 %v3005_v15  ;;  %v3103_v15 = vld [vmem:[%s3796_s4 + $0x384] ss:$136 sps:$4 sm:$0xff]  }
  0xc4   : > { %2013 = vmatprep.subr.bf16.mxu0 %v3013_v17  ;;  %v3101_v17 = vld [vmem:[%s3796_s4 + $0x380] ss:$136 sps:$4 sm:$0xff]  }
  0xc5   : > { %2053 = vmatpush1.bf16.msra.mxu1 %v3032_v22  ;;  %v3130_v22 = vld [vmem:[%s3796_s4 + $0x38c] ss:$136 sps:$4 sm:$0xff]  }
  0xc6   : > { %2054 = vmatprep.subr.bf16.mxu1 %v3040_v24  ;;  %v3128_v24 = vld [vmem:[%s3796_s4 + $0x388] ss:$136 sps:$4 sm:$0xff]  }
  0xc7   : > { %2014 = vmatpush1.bf16.msra.mxu0 %v3011_v19  ;;  %v3109_v19 = vld [vmem:[%s3796_s4 + $0x274] ss:$136 sps:$4 sm:$0xff]  }
  0xc8   : > { %2085 = vmatprep.subr.bf16.mxu0 %v3019_v21  ;;  %v3107_v21 = vld [vmem:[%s3796_s4 + $0x270] ss:$136 sps:$4 sm:$0xff]  }
  0xc9   : > { %2055 = vmatpush1.bf16.msra.mxu1 %v3038_v26  ;;  %v3136_v26 = vld [vmem:[%s3796_s4 + $0x27c] ss:$136 sps:$4 sm:$0xff]  }
  0xca   : > { %2877 = vmatmul.mubr.msk.bf16.vlgmr.msra.gmra.mxu0 %vm1831_vm0, %v3823_v36  ;;  %2126 = vmatprep.subr.bf16.mxu1 %v3046_v28  ;;  %v3134_v28 = vld [vmem:[%s3796_s4 + $0x278] ss:$136 sps:$4 sm:$0xff]  }
  0xcb   : > { %2086 = vmatpush1.bf16.msra.mxu0 %v3017_v23  ;;  %2113 = vmatprep.mubr.bf16.mxu0 %v3320_v13  ;;  %v3115_v23 = vld [vmem:[%s3796_s4 + $0x164] ss:$136 sps:$4 sm:$0xff]  }
  0xcc   : > { %2087 = vmatprep.subr.bf16.mxu0 %v3025_v25  ;;  %2878 = vmatmul.mubr.msk.bf16.vlgmr.msra.gmra.mxu1 %vm1831_vm0, %v3823_v36  ;;  %v3113_v25 = vld [vmem:[%s3796_s4 + $0x160] ss:$136 sps:$4 sm:$0xff]  }
  0xcd   : > { %2127 = vmatpush1.bf16.msra.mxu1 %v3044_v30  ;;  %2154 = vmatprep.mubr.bf16.mxu1 %v3320_v13  ;;  %v3142_v30 = vld [vmem:[%s3796_s4 + $0x16c] ss:$136 sps:$4 sm:$0xff]  }
  0xce   : > { %2128 = vmatprep.subr.bf16.mxu1 %v3052_v32  ;;  %v3140_v32 = vld [vmem:[%s3796_s4 + $0x168] ss:$136 sps:$4 sm:$0xff]  }
  0xcf   : > { %2088 = vmatpush1.bf16.msra.mxu0 %v3023_v27  ;;  %v3121_v27 = vld [vmem:[%s3796_s4 + $0x54] ss:$136 sps:$4 sm:$0xff]  }
  0xd0   : > { %2089 = vmatprep.subr.bf16.mxu0 %v3031_v29  ;;  %v3119_v29 = vld [vmem:[%s3796_s4 + $0x50] ss:$136 sps:$4 sm:$0xff]  }
  0xd1   : > { %2129 = vmatpush1.bf16.msra.mxu1 %v3050_v34  ;;  %v3148_v34 = vld [vmem:[%s3796_s4 + $0x5c] ss:$136 sps:$4 sm:$0xff]  }
  0xd2   : > { %2130 = vmatprep.subr.bf16.mxu1 %v3058_v37  ;;  %v3146_v37 = vld [vmem:[%s3796_s4 + $0x58] ss:$136 sps:$4 sm:$0xff]  }
  0xd3   : > { %2090 = vmatpush1.bf16.msra.mxu0 %v3029_v31  ;;  %v3127_v31 = vld [vmem:[%s3796_s4 + $0x5b4] ss:$136 sps:$4 sm:$0xff]  }
  0xd4   : > { %2091 = vmatprep.subr.bf16.mxu0 %v3037_v33  ;;  %v3125_v33 = vld [vmem:[%s3796_s4 + $0x5b0] ss:$136 sps:$4 sm:$0xff]  }
  0xd5   : > { %2131 = vmatpush1.bf16.msra.mxu1 %v3056_v39  ;;  %v3154_v39 = vld [vmem:[%s3796_s4 + $0x5bc] ss:$136 sps:$4 sm:$0xff]  }
  0xd6   : > { %2132 = vmatprep.subr.bf16.mxu1 %v3064_v41  ;;  %v3152_v41 = vld [vmem:[%s3796_s4 + $0x5b8] ss:$136 sps:$4 sm:$0xff]  }
  0xd7   : > { %2092 = vmatpush1.bf16.msra.mxu0 %v3035_v35  ;;  %v3133_v35 = vld [vmem:[%s3796_s4 + $0x4a4] ss:$136 sps:$4 sm:$0xff]  }
  0xd8   : > { %2093 = vmatprep.subr.bf16.mxu0 %v3043_v38  ;;  %v3131_v38 = vld [vmem:[%s3796_s4 + $0x4a0] ss:$136 sps:$4 sm:$0xff]  }
  0xd9   : > { %2133 = vmatpush1.bf16.msra.mxu1 %v3062_v43  ;;  %v3160_v43 = vld [vmem:[%s3796_s4 + $0x4ac] ss:$136 sps:$4 sm:$0xff]  }
  0xda   : > { %2134 = vmatprep.subr.bf16.mxu1 %v3070_v45  ;;  %v3158_v45 = vld [vmem:[%s3796_s4 + $0x4a8] ss:$136 sps:$4 sm:$0xff]  }
  0xdb   : > { %2094 = vmatpush1.bf16.msra.mxu0 %v3041_v40  ;;  %v3139_v40 = vld [vmem:[%s3796_s4 + $0x394] ss:$136 sps:$4 sm:$0xff]  }
  0xdc   : > { %2095 = vmatprep.subr.bf16.mxu0 %v3049_v42  ;;  %v3137_v42 = vld [vmem:[%s3796_s4 + $0x390] ss:$136 sps:$4 sm:$0xff]  }
  0xdd   : > { %2135 = vmatpush1.bf16.msra.mxu1 %v3068_v47  ;;  %v3166_v47 = vld [vmem:[%s3796_s4 + $0x39c] ss:$136 sps:$4 sm:$0xff]  }
  0xde   : > { %2136 = vmatprep.subr.bf16.mxu1 %v3076_v49  ;;  %v3164_v49 = vld [vmem:[%s3796_s4 + $0x398] ss:$136 sps:$4 sm:$0xff]  }
  0xdf   : > { %2096 = vmatpush1.bf16.msra.mxu0 %v3047_v44  ;;  %v3145_v44 = vld [vmem:[%s3796_s4 + $0x284] ss:$136 sps:$4 sm:$0xff]  }
  0xe0   : > { %2167 = vmatprep.subr.bf16.mxu0 %v3055_v46  ;;  %v3143_v46 = vld [vmem:[%s3796_s4 + $0x280] ss:$136 sps:$4 sm:$0xff]  }
  0xe1   : > { %2137 = vmatpush1.bf16.msra.mxu1 %v3074_v51  ;;  %v3172_v51 = vld [vmem:[%s3796_s4 + $0x28c] ss:$136 sps:$4 sm:$0xff]  }
  0xe2   : > { %2879 = vmatmul.mubr.msk.bf16.vlgmr.msra.gmra.mxu0 %vm1831_vm0, %v3823_v36  ;;  %2208 = vmatprep.subr.bf16.mxu1 %v3082_v53  ;;  %v3170_v53 = vld [vmem:[%s3796_s4 + $0x288] ss:$136 sps:$4 sm:$0xff]  }
  0xe3   : > { %2168 = vmatpush1.bf16.msra.mxu0 %v3053_v48  ;;  %2195 = vmatprep.mubr.bf16.mxu0 %v3320_v13  ;;  %v3151_v48 = vld [vmem:[%s3796_s4 + $0x174] ss:$136 sps:$4 sm:$0xff]  }
  0xe4   : > { %2169 = vmatprep.subr.bf16.mxu0 %v3061_v50  ;;  %2880 = vmatmul.mubr.msk.bf16.vlgmr.msra.gmra.mxu1 %vm1831_vm0, %v3823_v36  ;;  %v3149_v50 = vld [vmem:[%s3796_s4 + $0x170] ss:$136 sps:$4 sm:$0xff]  }
  0xe5   : > { %2209 = vmatpush1.bf16.msra.mxu1 %v3080_v55  ;;  %2236 = vmatprep.mubr.bf16.mxu1 %v3320_v13  ;;  %v3178_v55 = vld [vmem:[%s3796_s4 + $0x17c] ss:$136 sps:$4 sm:$0xff]  }
  0xe6   : > { %2210 = vmatprep.subr.bf16.mxu1 %v3088_v57  ;;  %v3176_v57 = vld [vmem:[%s3796_s4 + $0x178] ss:$136 sps:$4 sm:$0xff]  }
  0xe7   : > { %2170 = vmatpush1.bf16.msra.mxu0 %v3059_v52  ;;  %v3157_v52 = vld [vmem:[%s3796_s4 + $0x64] ss:$136 sps:$4 sm:$0xff]  }
  0xe8   : > { %2171 = vmatprep.subr.bf16.mxu0 %v3067_v54  ;;  %v3155_v54 = vld [vmem:[%s3796_s4 + $0x60] ss:$136 sps:$4 sm:$0xff]  }
  0xe9   : > { %2211 = vmatpush1.bf16.msra.mxu1 %v3086_v59  ;;  %v3184_v59 = vld [vmem:[%s3796_s4 + $0x6c] ss:$136 sps:$4 sm:$0xff]  }
  0xea   : > { %2212 = vmatprep.subr.bf16.mxu1 %v3094_v61  ;;  %v3182_v61 = vld [vmem:[%s3796_s4 + $0x68] ss:$136 sps:$4 sm:$0xff]  }
  0xeb   : > { %2172 = vmatpush1.bf16.msra.mxu0 %v3065_v56  ;;  %v3163_v56 = vld [vmem:[%s3796_s4 + $0x5c4] ss:$136 sps:$4 sm:$0xff]  }
  0xec   : > { %2173 = vmatprep.subr.bf16.mxu0 %v3073_v58  ;;  %v3161_v58 = vld [vmem:[%s3796_s4 + $0x5c0] ss:$136 sps:$4 sm:$0xff]  }
  0xed   : > { %2213 = vmatpush1.bf16.msra.mxu1 %v3092_v63  ;;  %v3190_v63 = vld [vmem:[%s3796_s4 + $0x5cc] ss:$136 sps:$4 sm:$0xff]  }
  0xee   : > { %2214 = vmatprep.subr.bf16.mxu1 %v3100_v1  ;;  %v3188_v1 = vld [vmem:[%s3796_s4 + $0x5c8] ss:$136 sps:$4 sm:$0xff]  }
  0xef   : > { %2174 = vmatpush1.bf16.msra.mxu0 %v3071_v60  ;;  %v3169_v60 = vld [vmem:[%s3796_s4 + $0x4b4] ss:$136 sps:$4 sm:$0xff]  }
  0xf0   : > { %2175 = vmatprep.subr.bf16.mxu0 %v3079_v62  ;;  %v3167_v62 = vld [vmem:[%s3796_s4 + $0x4b0] ss:$136 sps:$4 sm:$0xff]  }
  0xf1   : > { %2215 = vmatpush1.bf16.msra.mxu1 %v3098_v3  ;;  %v3196_v3 = vld [vmem:[%s3796_s4 + $0x4bc] ss:$136 sps:$4 sm:$0xff]  }
  0xf2   : > { %2216 = vmatprep.subr.bf16.mxu1 %v3106_v5  ;;  %v3194_v5 = vld [vmem:[%s3796_s4 + $0x4b8] ss:$136 sps:$4 sm:$0xff]  }
  0xf3   : > { %2176 = vmatpush1.bf16.msra.mxu0 %v3077_v0  ;;  %v3175_v0 = vld [vmem:[%s3796_s4 + $0x3a4] ss:$136 sps:$4 sm:$0xff]  }
  0xf4   : > { %2177 = vmatprep.subr.bf16.mxu0 %v3085_v2  ;;  %v3173_v2 = vld [vmem:[%s3796_s4 + $0x3a0] ss:$136 sps:$4 sm:$0xff]  }
  0xf5   : > { %2217 = vmatpush1.bf16.msra.mxu1 %v3104_v7  ;;  %v3202_v7 = vld [vmem:[%s3796_s4 + $0x3ac] ss:$136 sps:$4 sm:$0xff]  }
  0xf6   : > { %2218 = vmatprep.subr.bf16.mxu1 %v3112_v9  ;;  %v3200_v9 = vld [vmem:[%s3796_s4 + $0x3a8] ss:$136 sps:$4 sm:$0xff]  }
  0xf7   : > { %2178 = vmatpush1.bf16.msra.mxu0 %v3083_v4  ;;  %v3181_v4 = vld [vmem:[%s3796_s4 + $0x294] ss:$136 sps:$4 sm:$0xff]  }
  0xf8   : > { %2249 = vmatprep.subr.bf16.mxu0 %v3091_v6  ;;  %v3179_v6 = vld [vmem:[%s3796_s4 + $0x290] ss:$136 sps:$4 sm:$0xff]  }
  0xf9   : > { %2219 = vmatpush1.bf16.msra.mxu1 %v3110_v11  ;;  %v3193_v11 = vld [vmem:[%s3796_s4 + $0x74] ss:$136 sps:$4 sm:$0xff]  }
  0xfa   : > { %2881 = vmatmul.mubr.msk.bf16.vlgmr.msra.gmra.mxu0 %vm1831_vm0, %v3823_v36  ;;  %2290 = vmatprep.subr.bf16.mxu1 %v3118_v14  ;;  %v3191_v14 = vld [vmem:[%s3796_s4 + $0x70] ss:$136 sps:$4 sm:$0xff]  }
  0xfb   : > { %2250 = vmatpush1.bf16.msra.mxu0 %v3089_v8  ;;  %2277 = vmatprep.mubr.bf16.mxu0 %v3320_v13  ;;  %v3187_v8 = vld [vmem:[%s3796_s4 + $0x184] ss:$136 sps:$4 sm:$0xff]  }
  0xfc   : > { %2251 = vmatprep.subr.bf16.mxu0 %v3097_v10  ;;  %2882 = vmatmul.mubr.msk.bf16.vlgmr.msra.gmra.mxu1 %vm1831_vm0, %v3823_v36  ;;  %v3208_v10 = vld [vmem:[%s3796_s4 + $0x29c] ss:$136 sps:$4 sm:$0xff]  }
  0xfd   : > { %2291 = vmatpush1.bf16.msra.mxu1 %v3116_v16  ;;  %2318 = vmatprep.mubr.bf16.mxu1 %v3320_v13  ;;  %v3199_v16 = vld [vmem:[%s3796_s4 + $0x5d4] ss:$136 sps:$4 sm:$0xff]  }
  0xfe   : > { %2292 = vmatprep.subr.bf16.mxu1 %v3124_v18  ;;  %v3197_v18 = vld [vmem:[%s3796_s4 + $0x5d0] ss:$136 sps:$4 sm:$0xff]  }
  0xff   : > { %2252 = vmatpush1.bf16.msra.mxu0 %v3095_v12  ;;  %v3206_v12 = vld [vmem:[%s3796_s4 + $0x298] ss:$136 sps:$4 sm:$0xff]  }
 0x100   : > { %2253 = vmatprep.subr.bf16.mxu0 %v3103_v15  ;;  %v3214_v15 = vld [vmem:[%s3796_s4 + $0x18c] ss:$136 sps:$4 sm:$0xff]  }
 0x101   : > { %2293 = vmatpush1.bf16.msra.mxu1 %v3122_v20  ;;  %v3205_v20 = vld [vmem:[%s3796_s4 + $0x4c4] ss:$136 sps:$4 sm:$0xff]  }
 0x102   : > { %2294 = vmatprep.subr.bf16.mxu1 %v3130_v22  ;;  %v3218_v22 = vld [vmem:[%s3796_s4 + $0x78] ss:$136 sps:$4 sm:$0xff]  }
 0x103   : > { %2254 = vmatpush1.bf16.msra.mxu0 %v3101_v17  ;;  %v3212_v17 = vld [vmem:[%s3796_s4 + $0x188] ss:$136 sps:$4 sm:$0xff]  }
 0x104   : > { %2255 = vmatprep.subr.bf16.mxu0 %v3109_v19  ;;  %v3220_v19 = vld [vmem:[%s3796_s4 + $0x7c] ss:$136 sps:$4 sm:$0xff]  }
 0x105   : > { %2295 = vmatpush1.bf16.msra.mxu1 %v3128_v24  ;;  %v3211_v24 = vld [vmem:[%s3796_s4 + $0x3b4] ss:$136 sps:$4 sm:$0xff]  }
 0x106   : > { %2296 = vmatprep.subr.bf16.mxu1 %v3136_v26  ;;  %v3217_v26 = vld [vmem:[%s3796_s4 + $0x2a4] ss:$136 sps:$4 sm:$0xff]  }
 0x107   : > { %2256 = vmatpush1.bf16.msra.mxu0 %v3107_v21  ;;  %v3295_v21 = vld [vmem:[%s4144_s1] sm:$0xf] }
 0x108   : > { %2257 = vmatprep.subr.bf16.mxu0 %v3115_v23  ;;  %v3203_v23 = vld [vmem:[%s3796_s4 + $0x4c0] ss:$136 sps:$4 sm:$0xff]  }
 0x109   : > { %2297 = vmatpush1.bf16.msra.mxu1 %v3134_v28  ;;  %v3223_v28 = vld [vmem:[%s3796_s4 + $0x194] ss:$136 sps:$4 sm:$0xff]  }
 0x10a   : > { %2298 = vmatprep.subr.bf16.mxu1 %v3142_v30  ;;  %v3226_v30 = vld [vmem:[%s3796_s4 + $0x84] ss:$136 sps:$4 sm:$0xff]  }
 0x10b   : > { %2258 = vmatpush1.bf16.msra.mxu0 %v3113_v25  ;;  %v3209_v25 = vld [vmem:[%s3796_s4 + $0x3b0] ss:$136 sps:$4 sm:$0xff]  }
 0x10c   : > { %2259 = vmatprep.subr.bf16.mxu0 %v3121_v27  ;;  %v3215_v27 = vld [vmem:[%s3796_s4 + $0x2a0] ss:$136 sps:$4 sm:$0xff]  }
 0x10d   : > { %2299 = vmatpush1.bf16.msra.mxu1 %v3140_v32 }
 0x10e   : > { %2300 = vmatprep.subr.bf16.mxu1 %v3148_v34 }
 0x10f   : > { %2260 = vmatpush1.bf16.msra.mxu0 %v3119_v29  ;;  %v3221_v29 = vld [vmem:[%s3796_s4 + $0x190] ss:$136 sps:$4 sm:$0xff]  }
 0x110   : > { %2331 = vmatprep.subr.bf16.mxu0 %v3127_v31  ;;  %v3224_v31 = vld [vmem:[%s3796_s4 + $0x80] ss:$136 sps:$4 sm:$0xff]  }
 0x111   : > { %2301 = vmatpush1.bf16.msra.mxu1 %v3146_v37 }
 0x112   : > { %2883 = vmatmul.mubr.msk.bf16.vlgmr.msra.gmra.mxu0 %vm1831_vm0, %v3823_v36  ;;  %2372 = vmatprep.subr.bf16.mxu1 %v3154_v39 }
 0x113   : > { %2332 = vmatpush1.bf16.msra.mxu0 %v3125_v33  ;;  %2359 = vmatprep.mubr.bf16.mxu0 %v3320_v13 }
 0x114   : > { %2333 = vmatprep.subr.bf16.mxu0 %v3133_v35  ;;  %2884 = vmatmul.mubr.msk.bf16.vlgmr.msra.gmra.mxu1 %vm1831_vm0, %v3823_v36 }
 0x115   : > { %2373 = vmatpush1.bf16.msra.mxu1 %v3152_v41  ;;  %2400 = vmatprep.mubr.bf16.mxu1 %v3320_v13 }
 0x116   : > { %2374 = vmatprep.subr.bf16.mxu1 %v3160_v43 }
 0x117   : > { %2334 = vmatpush1.bf16.msra.mxu0 %v3131_v38 }
 0x118   : > { %2335 = vmatprep.subr.bf16.mxu0 %v3139_v40 }
 0x119   : > { %2375 = vmatpush1.bf16.msra.mxu1 %v3158_v45 }
 0x11a   : > { %2376 = vmatprep.subr.bf16.mxu1 %v3166_v47 }
 0x11b   : > { %2336 = vmatpush1.bf16.msra.mxu0 %v3137_v42 }
 0x11c   : > { %2337 = vmatprep.subr.bf16.mxu0 %v3145_v44 }
 0x11d   : > { %2377 = vmatpush1.bf16.msra.mxu1 %v3164_v49 }
 0x11e   : > { %2378 = vmatprep.subr.bf16.mxu1 %v3172_v51 }
 0x11f   : > { %2338 = vmatpush1.bf16.msra.mxu0 %v3143_v46 }
 0x120   : > { %2339 = vmatprep.subr.bf16.mxu0 %v3151_v48 }
 0x121   : > { %2379 = vmatpush1.bf16.msra.mxu1 %v3170_v53 }
 0x122   : > { %2380 = vmatprep.subr.bf16.mxu1 %v3178_v55 }
 0x123   : > { %2340 = vmatpush1.bf16.msra.mxu0 %v3149_v50 }
 0x124   : > { %2341 = vmatprep.subr.bf16.mxu0 %v3157_v52 }
 0x125   : > { %2381 = vmatpush1.bf16.msra.mxu1 %v3176_v57 }
 0x126   : > { %2382 = vmatprep.subr.bf16.mxu1 %v3184_v59 }
 0x127   : > { %2342 = vmatpush1.bf16.msra.mxu0 %v3155_v54 }
 0x128   : > { %2413 = vmatprep.subr.bf16.mxu0 %v3163_v56 }
 0x129   : > { %2383 = vmatpush1.bf16.msra.mxu1 %v3182_v61 }
 0x12a   : > { %2885 = vmatmul.mubr.msk.bf16.vlgmr.msra.gmra.mxu0 %vm1831_vm0, %v3823_v36  ;;  %2454 = vmatprep.subr.bf16.mxu1 %v3190_v63 }
 0x12b   : > { %2414 = vmatpush1.bf16.msra.mxu0 %v3161_v58  ;;  %2441 = vmatprep.mubr.bf16.mxu0 %v3320_v13 }
 0x12c   : > { %2415 = vmatprep.subr.bf16.mxu0 %v3169_v60  ;;  %2886 = vmatmul.mubr.msk.bf16.vlgmr.msra.gmra.mxu1 %vm1831_vm0, %v3823_v36  ;;  %v3185_v36 = vld [vmem:[%s3796_s4 + $0x180] ss:$136 sps:$4 sm:$0xff]  }
 0x12d   : > { %2455 = vmatpush1.bf16.msra.mxu1 %v3188_v1  ;;  %2482 = vmatprep.mubr.bf16.mxu1 %v3320_v13 }
 0x12e   : > { %2456 = vmatprep.subr.bf16.mxu1 %v3196_v3 }
 0x12f   : > { %2416 = vmatpush1.bf16.msra.mxu0 %v3167_v62 }
 0x130   : > { %2417 = vmatprep.subr.bf16.mxu0 %v3175_v0 }
 0x131   : > { %2457 = vmatpush1.bf16.msra.mxu1 %v3194_v5 }
 0x132   : > { %2458 = vmatprep.subr.bf16.mxu1 %v3202_v7 }
 0x133   : > { %2418 = vmatpush1.bf16.msra.mxu0 %v3173_v2 }
 0x134   : > { %2419 = vmatprep.subr.bf16.mxu0 %v3181_v4 }
 0x135   : > { %2459 = vmatpush1.bf16.msra.mxu1 %v3200_v9 }
 0x136   : > { %2460 = vmatprep.subr.bf16.mxu1 %v3208_v10 }
 0x137   : > { %2420 = vmatpush1.bf16.msra.mxu0 %v3179_v6 }
 0x138   : > { %2421 = vmatprep.subr.bf16.mxu0 %v3187_v8 }
 0x139   : > { %2461 = vmatpush1.bf16.msra.mxu1 %v3206_v12 }
 0x13a   : > { %2462 = vmatprep.subr.bf16.mxu1 %v3214_v15 }
 0x13b   : > { %2422 = vmatpush1.bf16.msra.mxu0 %v3185_v36 }
 0x13c   : > { %2423 = vmatprep.subr.bf16.mxu0 %v3193_v11 }
 0x13d   : > { %2463 = vmatpush1.bf16.msra.mxu1 %v3212_v17 }
 0x13e   : > { %2464 = vmatprep.subr.bf16.mxu1 %v3220_v19 }
 0x13f   : > { %2424 = vmatpush1.bf16.msra.mxu0 %v3191_v14 }
 0x140   : > { %2495 = vmatprep.subr.bf16.mxu0 %v3199_v16 }
 0x141   : > { %2465 = vmatpush1.bf16.msra.mxu1 %v3218_v22 }
 0x142   : > { %2887 = vmatmul.mubr.msk.bf16.vlgmr.msra.gmra.mxu0 %vm1831_vm0, %v3295_v21 }
 0x143   : > { %2496 = vmatpush1.bf16.msra.mxu0 %v3197_v18  ;;  %2523 = vmatprep.mubr.bf16.mxu0 %v3320_v13  ;;  %v4055_v13 = vpop.permute.xlu0 %808 }
 0x144   : > { %2497 = vmatprep.subr.bf16.mxu0 %v3205_v20  ;;  %2888 = vmatmul.mubr.msk.bf16.vlgmr.msra.gmra.mxu1 %vm1831_vm0, %v3295_v21 }
 0x147   : > { %2498 = vmatpush1.bf16.msra.mxu0 %v3203_v23 }
 0x148   : > { %2499 = vmatprep.subr.bf16.mxu0 %v3211_v24 }
 0x14b   : > { %2500 = vmatpush1.bf16.msra.mxu0 %v3209_v25 }
 0x14c   : > { %2501 = vmatprep.subr.bf16.mxu0 %v3217_v26 }
 0x14f   : > { %2502 = vmatpush1.bf16.msra.mxu0 %v3215_v27 }
 0x150   : > { %2503 = vmatprep.subr.bf16.mxu0 %v3223_v28 }
 0x153   : > { %2504 = vmatpush1.bf16.msra.mxu0 %v3221_v29 }
 0x154   : > { %2505 = vmatprep.subr.bf16.mxu0 %v3226_v30 }
 0x157   : > { %2506 = vmatpush1.bf16.msra.mxu0 %v3224_v31 }
 0x15a   : > { %v1869_v32 = vpop.f32.mrf.mxu0  ;;  %2889 = vmatmul.mubr.msk.bf16.vlgmr.msra.gmra.mxu0 %vm1831_vm0, %v3295_v21 }
 0x15b   : > { %v1870_v33 = vadd.f32 %v1869_v32, %v4055_v13 }
 0x15c   : > { %v1871_v34 = vpop.f32.mrf.mxu0  ;;  %v1910_v39 = vpop.f32.mrf.mxu1 }
 0x15d   : > { %3227 = vtanh.f32 %v1870_v33  ;;  %v1872_v35 = vadd.f32 %v1871_v34, %v4055_v13  ;;  %v1911_v40 = vadd.f32 %v1910_v39, %v4055_v13 }
 0x15e   : > { %v1873_v37 = vpop.f32.mrf.mxu0  ;;  %v1912_v41 = vpop.f32.mrf.mxu1 }
 0x15f   : > { %3229 = vtanh.f32 %v1872_v35  ;;  %v1913_v42 = vadd.f32 %v1912_v41, %v4055_v13 }
 0x160   : > { %v1874_v38 = vpop.f32.mrf.mxu0  ;;  %3231 = vtanh.f32 %v1911_v40  ;;  %v1914_v43 = vpop.f32.mrf.mxu1 }
 0x161   : > { %3233 = vtanh.f32 %v1913_v42 }
 0x162   : > { %v1915_v44 = vpop.f32.mrf.mxu1 }
 0x16a   : > { %v3228_v45 = vpop.eup %3227 }
 0x16b   : > { %2566 = vst [vmem:[%s4067_s14] sm:$0xff] %v3228_v45 }
 0x16c   : > { %v3230_v46 = vpop.eup %3229 }
 0x16d   : > { %2567 = vst [vmem:[%s4067_s14 + $0x8] sm:$0xff] %v3230_v46  ;;  %v3232_v47 = vpop.eup %3231 }
 0x16e   : > { %2568 = vst [vmem:[%s4067_s14 + $0x10] sm:$0xff] %v3232_v47  ;;  %v3234_v49 = vpop.eup %3233 }
 0x16f   : > { %2569 = vst [vmem:[%s4067_s14 + $0x18] sm:$0xff] %v3234_v49 }
 0x172   : > { %v1951_v48 = vpop.f32.mrf.mxu0 }
 0x173   : > { %v1952_v50 = vadd.f32 %v1951_v48, %v4055_v13 }
 0x174   : > { %v1953_v51 = vpop.f32.mrf.mxu0  ;;  %v1992_v55 = vpop.f32.mrf.mxu1 }
 0x175   : > { %3235 = vtanh.f32 %v1952_v50  ;;  %v1954_v52 = vadd.f32 %v1953_v51, %v4055_v13  ;;  %v1993_v56 = vadd.f32 %v1992_v55, %v4055_v13 }
 0x176   : > { %v1955_v53 = vpop.f32.mrf.mxu0  ;;  %v1994_v57 = vpop.f32.mrf.mxu1 }
 0x177   : > { %3237 = vtanh.f32 %v1954_v52  ;;  %v1995_v58 = vadd.f32 %v1994_v57, %v4055_v13 }
 0x178   : > { %v1956_v54 = vpop.f32.mrf.mxu0  ;;  %3239 = vtanh.f32 %v1993_v56  ;;  %v1996_v59 = vpop.f32.mrf.mxu1 }
 0x179   : > { %3241 = vtanh.f32 %v1995_v58 }
 0x17a   : > { %v1997_v60 = vpop.f32.mrf.mxu1 }
 0x182   : > { %v3236_v61 = vpop.eup %3235 }
 0x183   : > { %2570 = vst [vmem:[%s4067_s14 + $0x20] sm:$0xff] %v3236_v61 }
 0x184   : > { %v3238_v62 = vpop.eup %3237 }
 0x185   : > { %2571 = vst [vmem:[%s4067_s14 + $0x28] sm:$0xff] %v3238_v62  ;;  %v3240_v63 = vpop.eup %3239 }
 0x186   : > { %2572 = vst [vmem:[%s4067_s14 + $0x30] sm:$0xff] %v3240_v63  ;;  %v3242_v1 = vpop.eup %3241 }
 0x187   : > { %2573 = vst [vmem:[%s4067_s14 + $0x38] sm:$0xff] %v3242_v1 }
 0x18a   : > { %v2033_v0 = vpop.f32.mrf.mxu0 }
 0x18b   : > { %v2034_v2 = vadd.f32 %v2033_v0, %v4055_v13 }
 0x18c   : > { %v2035_v3 = vpop.f32.mrf.mxu0  ;;  %v2074_v7 = vpop.f32.mrf.mxu1 }
 0x18d   : > { %3243 = vtanh.f32 %v2034_v2  ;;  %v2036_v4 = vadd.f32 %v2035_v3, %v4055_v13  ;;  %v2075_v8 = vadd.f32 %v2074_v7, %v4055_v13 }
 0x18e   : > { %v2037_v5 = vpop.f32.mrf.mxu0  ;;  %v2076_v9 = vpop.f32.mrf.mxu1 }
 0x18f   : > { %3245 = vtanh.f32 %v2036_v4  ;;  %v2077_v36 = vadd.f32 %v2076_v9, %v4055_v13 }
 0x190   : > { %v2038_v6 = vpop.f32.mrf.mxu0  ;;  %3247 = vtanh.f32 %v2075_v8  ;;  %v2078_v10 = vpop.f32.mrf.mxu1 }
 0x191   : > { %3249 = vtanh.f32 %v2077_v36 }
 0x192   : > { %v2079_v11 = vpop.f32.mrf.mxu1 }
 0x19a   : > { %v3244_v12 = vpop.eup %3243 }
 0x19b   : > { %2574 = vst [vmem:[%s4067_s14 + $0x40] sm:$0xff] %v3244_v12 }
 0x19c   : > { %v3246_v14 = vpop.eup %3245 }
 0x19d   : > { %2575 = vst [vmem:[%s4067_s14 + $0x48] sm:$0xff] %v3246_v14  ;;  %v3248_v15 = vpop.eup %3247 }
 0x19e   : > { %2576 = vst [vmem:[%s4067_s14 + $0x50] sm:$0xff] %v3248_v15  ;;  %v3250_v17 = vpop.eup %3249 }
 0x19f   : > { %2577 = vst [vmem:[%s4067_s14 + $0x58] sm:$0xff] %v3250_v17 }
 0x1a2   : > { %v2115_v16 = vpop.f32.mrf.mxu0 }
 0x1a3   : > { %v2116_v18 = vadd.f32 %v2115_v16, %v4055_v13 }
 0x1a4   : > { %v2117_v19 = vpop.f32.mrf.mxu0  ;;  %v2156_v23 = vpop.f32.mrf.mxu1 }
 0x1a5   : > { %3251 = vtanh.f32 %v2116_v18  ;;  %v2118_v20 = vadd.f32 %v2117_v19, %v4055_v13  ;;  %v2157_v24 = vadd.f32 %v2156_v23, %v4055_v13 }
 0x1a6   : > { %v2119_v21 = vpop.f32.mrf.mxu0  ;;  %v2158_v25 = vpop.f32.mrf.mxu1 }
 0x1a7   : > { %3253 = vtanh.f32 %v2118_v20  ;;  %v2159_v26 = vadd.f32 %v2158_v25, %v4055_v13 }
 0x1a8   : > { %v2120_v22 = vpop.f32.mrf.mxu0  ;;  %3255 = vtanh.f32 %v2157_v24  ;;  %v2160_v27 = vpop.f32.mrf.mxu1 }
 0x1a9   : > { %3257 = vtanh.f32 %v2159_v26 }
 0x1aa   : > { %v2161_v28 = vpop.f32.mrf.mxu1 }
 0x1b2   : > { %v3252_v29 = vpop.eup %3251 }
 0x1b3   : > { %2578 = vst [vmem:[%s4067_s14 + $0x60] sm:$0xff] %v3252_v29 }
 0x1b4   : > { %v3254_v30 = vpop.eup %3253 }
 0x1b5   : > { %2579 = vst [vmem:[%s4067_s14 + $0x68] sm:$0xff] %v3254_v30  ;;  %v3256_v31 = vpop.eup %3255 }
 0x1b6   : > { %2580 = vst [vmem:[%s4067_s14 + $0x70] sm:$0xff] %v3256_v31  ;;  %v3258_v33 = vpop.eup %3257 }
 0x1b7   : > { %2581 = vst [vmem:[%s4067_s14 + $0x78] sm:$0xff] %v3258_v33 }
 0x1ba   : > { %v2197_v32 = vpop.f32.mrf.mxu0 }
 0x1bb   : > { %v2198_v34 = vadd.f32 %v2197_v32, %v4055_v13 }
 0x1bc   : > { %v2199_v35 = vpop.f32.mrf.mxu0  ;;  %v2238_v40 = vpop.f32.mrf.mxu1 }
 0x1bd   : > { %3259 = vtanh.f32 %v2198_v34  ;;  %v2200_v37 = vadd.f32 %v2199_v35, %v4055_v13  ;;  %v2239_v41 = vadd.f32 %v2238_v40, %v4055_v13 }
 0x1be   : > { %v2201_v38 = vpop.f32.mrf.mxu0  ;;  %v2240_v42 = vpop.f32.mrf.mxu1 }
 0x1bf   : > { %3261 = vtanh.f32 %v2200_v37  ;;  %v2241_v43 = vadd.f32 %v2240_v42, %v4055_v13 }
 0x1c0   : > { %v2202_v39 = vpop.f32.mrf.mxu0  ;;  %3263 = vtanh.f32 %v2239_v41  ;;  %v2242_v44 = vpop.f32.mrf.mxu1 }
 0x1c1   : > { %3265 = vtanh.f32 %v2241_v43 }
 0x1c2   : > { %v2243_v45 = vpop.f32.mrf.mxu1 }
 0x1ca   : > { %v3260_v46 = vpop.eup %3259 }
 0x1cb   : > { %2582 = vst [vmem:[%s4067_s14 + $0x80] sm:$0xff] %v3260_v46 }
 0x1cc   : > { %v3262_v47 = vpop.eup %3261 }
 0x1cd   : > { %2583 = vst [vmem:[%s4067_s14 + $0x88] sm:$0xff] %v3262_v47  ;;  %v3264_v48 = vpop.eup %3263 }
 0x1ce   : > { %2584 = vst [vmem:[%s4067_s14 + $0x90] sm:$0xff] %v3264_v48  ;;  %v3266_v50 = vpop.eup %3265 }
 0x1cf   : > { %2585 = vst [vmem:[%s4067_s14 + $0x98] sm:$0xff] %v3266_v50 }
 0x1d2   : > { %v2279_v49 = vpop.f32.mrf.mxu0 }
 0x1d3   : > { %v2280_v51 = vadd.f32 %v2279_v49, %v4055_v13 }
 0x1d4   : > { %v2281_v52 = vpop.f32.mrf.mxu0  ;;  %v2320_v56 = vpop.f32.mrf.mxu1 }
 0x1d5   : > { %3267 = vtanh.f32 %v2280_v51  ;;  %v2282_v53 = vadd.f32 %v2281_v52, %v4055_v13  ;;  %v2321_v57 = vadd.f32 %v2320_v56, %v4055_v13 }
 0x1d6   : > { %v2283_v54 = vpop.f32.mrf.mxu0  ;;  %v2322_v58 = vpop.f32.mrf.mxu1 }
 0x1d7   : > { %3269 = vtanh.f32 %v2282_v53  ;;  %v2323_v59 = vadd.f32 %v2322_v58, %v4055_v13 }
 0x1d8   : > { %v2284_v55 = vpop.f32.mrf.mxu0  ;;  %3271 = vtanh.f32 %v2321_v57  ;;  %v2324_v60 = vpop.f32.mrf.mxu1 }
 0x1d9   : > { %3273 = vtanh.f32 %v2323_v59 }
 0x1da   : > { %v2325_v61 = vpop.f32.mrf.mxu1 }
 0x1e2   : > { %v3268_v62 = vpop.eup %3267 }
 0x1e3   : > { %2586 = vst [vmem:[%s4067_s14 + $0xa0] sm:$0xff] %v3268_v62 }
 0x1e4   : > { %v3270_v63 = vpop.eup %3269 }
 0x1e5   : > { %2587 = vst [vmem:[%s4067_s14 + $0xa8] sm:$0xff] %v3270_v63  ;;  %v3272_v0 = vpop.eup %3271 }
 0x1e6   : > { %2588 = vst [vmem:[%s4067_s14 + $0xb0] sm:$0xff] %v3272_v0  ;;  %v3274_v2 = vpop.eup %3273 }
 0x1e7   : > { %2589 = vst [vmem:[%s4067_s14 + $0xb8] sm:$0xff] %v3274_v2 }
 0x1ea   : > { %v2361_v1 = vpop.f32.mrf.mxu0 }
 0x1eb   : > { %v2362_v3 = vadd.f32 %v2361_v1, %v4055_v13 }
 0x1ec   : > { %v2363_v4 = vpop.f32.mrf.mxu0  ;;  %v2402_v8 = vpop.f32.mrf.mxu1 }
 0x1ed   : > { %3275 = vtanh.f32 %v2362_v3  ;;  %v2364_v5 = vadd.f32 %v2363_v4, %v4055_v13  ;;  %v2403_v9 = vadd.f32 %v2402_v8, %v4055_v13 }
 0x1ee   : > { %v2365_v6 = vpop.f32.mrf.mxu0  ;;  %v2404_v36 = vpop.f32.mrf.mxu1 }
 0x1ef   : > { %3277 = vtanh.f32 %v2364_v5  ;;  %v2405_v10 = vadd.f32 %v2404_v36, %v4055_v13 }
 0x1f0   : > { %v2366_v7 = vpop.f32.mrf.mxu0  ;;  %3279 = vtanh.f32 %v2403_v9  ;;  %v2406_v11 = vpop.f32.mrf.mxu1 }
 0x1f1   : > { %3281 = vtanh.f32 %v2405_v10 }
 0x1f2   : > { %v2407_v12 = vpop.f32.mrf.mxu1 }
 0x1fa   : > { %v3276_v14 = vpop.eup %3275 }
 0x1fb   : > { %2590 = vst [vmem:[%s4067_s14 + $0xc0] sm:$0xff] %v3276_v14 }
 0x1fc   : > { %v3278_v15 = vpop.eup %3277 }
 0x1fd   : > { %2591 = vst [vmem:[%s4067_s14 + $0xc8] sm:$0xff] %v3278_v15  ;;  %v3280_v16 = vpop.eup %3279 }
 0x1fe   : > { %2592 = vst [vmem:[%s4067_s14 + $0xd0] sm:$0xff] %v3280_v16  ;;  %v3282_v18 = vpop.eup %3281 }
 0x1ff   : > { %2593 = vst [vmem:[%s4067_s14 + $0xd8] sm:$0xff] %v3282_v18 }
 0x202   : > { %v2443_v17 = vpop.f32.mrf.mxu0 }
 0x203   : > { %v2444_v19 = vadd.f32 %v2443_v17, %v4055_v13 }
 0x204   : > { %v2445_v20 = vpop.f32.mrf.mxu0  ;;  %v2484_v24 = vpop.f32.mrf.mxu1 }
 0x205   : > { %3283 = vtanh.f32 %v2444_v19  ;;  %v2446_v21 = vadd.f32 %v2445_v20, %v4055_v13  ;;  %v2485_v25 = vadd.f32 %v2484_v24, %v4055_v13 }
 0x206   : > { %v2447_v22 = vpop.f32.mrf.mxu0  ;;  %v2486_v26 = vpop.f32.mrf.mxu1 }
 0x207   : > { %3285 = vtanh.f32 %v2446_v21  ;;  %v2487_v27 = vadd.f32 %v2486_v26, %v4055_v13 }
 0x208   : > { %v2448_v23 = vpop.f32.mrf.mxu0  ;;  %3287 = vtanh.f32 %v2485_v25  ;;  %v2488_v28 = vpop.f32.mrf.mxu1 }
 0x209   : > { %3289 = vtanh.f32 %v2487_v27 }
 0x20a   : > { %v2489_v29 = vpop.f32.mrf.mxu1 }
 0x212   : > { %v3284_v30 = vpop.eup %3283 }
 0x213   : > { %2594 = vst [vmem:[%s4067_s14 + $0xe0] sm:$0xff] %v3284_v30 }
 0x214   : > { %v3286_v31 = vpop.eup %3285 }
 0x215   : > { %2595 = vst [vmem:[%s4067_s14 + $0xe8] sm:$0xff] %v3286_v31  ;;  %v3288_v32 = vpop.eup %3287 }
 0x216   : > { %2596 = vst [vmem:[%s4067_s14 + $0xf0] sm:$0xff] %v3288_v32  ;;  %v3290_v34 = vpop.eup %3289 }
 0x217   : > { %2597 = vst [vmem:[%s4067_s14 + $0xf8] sm:$0xff] %v3290_v34 }
 0x21a   : > { %v2525_v33 = vpop.f32.mrf.mxu0 }
 0x21b   : > { %v2526_v35 = vadd.f32 %v2525_v33, %v4055_v13 }
 0x21c   : > { %v2527_v37 = vpop.f32.mrf.mxu0 }
 0x21d   : > { %3291 = vtanh.f32 %v2526_v35  ;;  %v2528_v38 = vadd.f32 %v2527_v37, %v4055_v13 }
 0x21e   : > { %v2529_v39 = vpop.f32.mrf.mxu0 }
 0x21f   : > { %3293 = vtanh.f32 %v2528_v38 }
 0x220   : > { %v2530_v40 = vpop.f32.mrf.mxu0 }
 0x22a   : > { %v3292_v41 = vpop.eup %3291 }
 0x22b   : > { %2598 = vst [vmem:[%s4067_s14 + $0x100] sm:$0xff] %v3292_v41 }
 0x22c   : > { %v3294_v42 = vpop.eup %3293 }
 0x22d   : > { %2599 = vst [vmem:[%s4067_s14 + $0x108] sm:$0xff] %v3294_v42 }
 0x22e PF: > { %p10_p9 = scmp.ge.s32.totalorder %s3358_s16, 6   ;;  %s4147_s12 = smov %s3314_s13 }
 0x22f   : > { %s4148_s13 = smov %s3367_s19  ;;  %s4149_s14 = smov %s3358_s16 }
 0x230   :  { %12 = sbr.rel (!%p10_p9) target bundleno = 2 (0x2), region = 90 }

</bundles_post_ra>
